<compile_context>
chip_gen: v7x
topology: tpu7x:2x2x1
jax: 0.10.0
libtpu: 0.0.40
codegen_flags: <defaults>
</compile_context>

<pallas_src>
import functools

import jax
import jax.numpy as jnp
from jax import lax
from jax.experimental import pallas as pl
from jax.experimental.pallas import tpu as pltpu


_COMPUTE_DTYPE = jnp.bfloat16      # MXU operand dtype (f32 accumulation everywhere)


def _vmem_limit_bytes():
    """Per-generation VMEM budget: <=32 MiB on v7x (64 MiB parts), more on v5e/v6e."""
    try:
        info = pltpu.get_tpu_info()
        cap = getattr(info, "vmem_capacity_bytes", None)
        if cap:
            if cap <= 64 * 1024 * 1024:
                return 32 * 1024 * 1024
            return min(cap // 2, 100 * 1024 * 1024)
    except Exception:
        pass
    return 32 * 1024 * 1024


_VMEM_LIMIT = _vmem_limit_bytes()
_ROW_TILE_TARGET = 4096 if _VMEM_LIMIT <= 32 * 1024 * 1024 else 16384


# --------------------------------- helpers ----------------------------------

def _layernorm(x, g, b, eps=1e-5):
    mean = jnp.mean(x, axis=-1, keepdims=True)
    var = jnp.mean(jnp.square(x - mean), axis=-1, keepdims=True)
    return (x - mean) * lax.rsqrt(var + eps) * g + b


def _pick_row_tile(H, W, target_elems):
    """Rows per tile: divides H, lane-dense (th*W % 128 == 0) output blocks."""
    cands = [t for t in range(8, H, 8) if H % t == 0 and (t * W) % 128 == 0]
    if not cands:
        return H
    small = [t for t in cands if t * W <= target_elems]
    return max(small) if small else min(cands)


# -------- fused encoder + regressor + bin-centers + query-fold kernel -------

def _encoder_head_kernel(
        patches_ref, pos_ref, wpe_ref, bpe_ref,
        wq_ref, wk_ref, wv_ref, bq_ref, bk_ref, bv_ref,
        wo_ref, bo_ref, ln1g_ref, ln1b_ref,
        w1_ref, b1_ref, w2_ref, b2_ref, ln2g_ref, ln2b_ref,
        r1w_ref, r1b_ref, r2w_ref, r2b_ref, r3w_ref, r3b_ref,
        pw_ref, smat_ref,
        centers_ref, wc_ref,
        *, heads, num_layers, q_nums, min_val, max_val):
    S = patches_ref.shape[1]
    E = wpe_ref.shape[1]
    dh = E // heads
    cd = wpe_ref.dtype
    scale = 1.0 / float(dh) ** 0.5

    # ---- patch embedding (stride == kernel conv as one matmul) + pos enc ----
    x = jnp.dot(patches_ref[0], wpe_ref[...],
                preferred_element_type=jnp.float32)
    x = x + bpe_ref[...] + pos_ref[...]                              # (S, E) f32

    # ---- 4 post-norm transformer encoder layers (eval: dropout is a no-op) ----
    # TODO(synk): for very large S a flash-style tiled attention would be needed;
    # this module uses small patch grids so the full (heads, S, S) scores fit VMEM.
    for l in range(num_layers):
        xc = x.astype(cd)
        q = jnp.dot(xc, wq_ref[l], preferred_element_type=jnp.float32) + bq_ref[l]
        k = jnp.dot(xc, wk_ref[l], preferred_element_type=jnp.float32) + bk_ref[l]
        v = jnp.dot(xc, wv_ref[l], preferred_element_type=jnp.float32) + bv_ref[l]

        qh = q.astype(cd).reshape(S, heads, dh).transpose(1, 0, 2)   # (h, S, dh)
        kh = k.astype(cd).reshape(S, heads, dh).transpose(1, 0, 2)
        vh = v.astype(cd).reshape(S, heads, dh).transpose(1, 0, 2)

        s = jnp.einsum("hqd,hkd->hqk", qh, kh,
                       preferred_element_type=jnp.float32) * scale   # (h, S, S)
        s = s - jnp.max(s, axis=-1, keepdims=True)
        p = jnp.exp(s)
        p = p * pl.reciprocal(jnp.sum(p, axis=-1, keepdims=True), approx=True)
        ctx = jnp.einsum("hqk,hkd->hqd", p.astype(cd), vh,
                         preferred_element_type=jnp.float32)         # (h, S, dh)
        ctx = ctx.astype(cd).transpose(1, 0, 2).reshape(S, E)

        attn = jnp.dot(ctx, wo_ref[l],
                       preferred_element_type=jnp.float32) + bo_ref[l]
        x = _layernorm(x + attn, ln1g_ref[l], ln1b_ref[l])

        ff = jnp.dot(x.astype(cd), w1_ref[l],
                     preferred_element_type=jnp.float32) + b1_ref[l]
        ff = jnp.maximum(ff, 0.0)
        ff = jnp.dot(ff.astype(cd), w2_ref[l],
                     preferred_element_type=jnp.float32) + b2_ref[l]
        x = _layernorm(x + ff, ln2g_ref[l], ln2b_ref[l])

    # ---- regressor MLP + 'linear' bin normalisation + cumulative centers ----
    head = x[0:1, :]                                                 # (1, E)
    y = jnp.dot(head.astype(cd), r1w_ref[...],
                preferred_element_type=jnp.float32) + r1b_ref[...]
    y = jnp.where(y >= 0.0, y, 0.01 * y)
    y = jnp.dot(y.astype(cd), r2w_ref[...],
                preferred_element_type=jnp.float32) + r2b_ref[...]
    y = jnp.where(y >= 0.0, y, 0.01 * y)
    y = jnp.dot(y.astype(cd), r3w_ref[...],
                preferred_element_type=jnp.float32) + r3b_ref[...]
    # norm == 'linear': relu + eps(0.1), row-normalize (exact divide for bin
    # precision), widths -> cumulative centers (f32 smat matmul, tiny).
    y = jnp.maximum(y, 0.0) + 0.1
    y = y / jnp.sum(y, axis=-1, keepdims=True)
    widths = (max_val - min_val) * y                                 # (1, dout)
    centers = min_val + jnp.dot(widths, smat_ref[...],
                                preferred_element_type=jnp.float32)
    centers_ref[...] = centers.reshape(1, 1, -1)

    # ---- exact pre-fold of the energy + 1x1-conv:  Wc = prob_w @ queries ----
    # (kept in f32; the tail then only needs one K=E matmul per pixel tile)
    queries = x[1:q_nums + 1, :]                                     # (Q, E)
    wc = jnp.dot(pw_ref[...], queries,
                 preferred_element_type=jnp.float32)                 # (dout, E)
    wc_ref[...] = wc.reshape(1, *wc.shape)


# ---- fused tail: conv3x3 (K=9C matmul) + folded logits + softmax + depth ----

def _depth_tail_kernel(cols_ref, w3_ref, b3_ref, wc_ref, pb_ref, c_ref, o_ref):
    cd = w3_ref.dtype
    # conv3x3 as ONE matmul on the pre-im2col'ed lane-dense slab
    feat = jnp.dot(cols_ref[0], w3_ref[...],
                   preferred_element_type=jnp.float32) + b3_ref[...]  # (th*W, E)
    # logits = feat @ (queries^T prob_w^T) + prob_b   (Wc pre-folded per batch)
    logits = lax.dot_general(feat.astype(cd), wc_ref[0].astype(cd),
                             (((1,), (1,)), ((), ())),
                             preferred_element_type=jnp.float32)      # (th*W, dout)
    logits = logits + pb_ref[...]
    # channel softmax + centers-weighted depth, lane-dense (1, th*W) result
    logits = logits - jnp.max(logits, axis=-1, keepdims=True)
    prob = jnp.exp(logits)
    prob = prob * pl.reciprocal(jnp.sum(prob, axis=-1, keepdims=True), approx=True)
    pred = lax.dot_general(c_ref[0], prob, (((1,), (1,)), ((), ())),
                           preferred_element_type=jnp.float32)        # (1, th*W)
    o_ref[...] = pred.reshape(1, 1, -1)


# --------------------------------- forward ----------------------------------

def lite_depth_decoder_forward(x0, params, cfg):
    Nb, C, H, W = x0.shape
    E = cfg["embedding_dim"]
    p = cfg["patch_size"]
    heads = cfg["num_heads"]
    Q = cfg["query_nums"]
    dout = cfg["dim_out"]
    min_val, max_val = cfg["min_val"], cfg["max_val"]
    cd = _COMPUTE_DTYPE

    L = len(params["layers"])
    FF = params["layers"][0]["lin1_w"].shape[0]
    R = params["r1_w"].shape[0]
    Cpp = C * p * p
    Hp, Wp = H // p, W // p
    S = Hp * Wp
    assert S >= Q + 1, "sequence must cover regression head + queries"

    # ---------- stage 1 operands: patch im2col (exact, stride == kernel) ----------
    patches = (x0.reshape(Nb, C, Hp, p, Wp, p)
                 .transpose(0, 2, 4, 1, 3, 5)
                 .reshape(Nb, S, Cpp)).astype(cd)
    pos = params["pos_enc"][:S].astype(jnp.float32)
    wpe = params["conv_pxp_w"].reshape(E, Cpp).T.astype(cd)
    bpe = params["conv_pxp_b"].reshape(1, E).astype(jnp.float32)

    def stack(fn):
        return jnp.stack([fn(lp) for lp in params["layers"]])

    wq = stack(lambda lp: lp["in_proj_w"][:E].T.astype(cd))
    wk = stack(lambda lp: lp["in_proj_w"][E:2 * E].T.astype(cd))
    wv = stack(lambda lp: lp["in_proj_w"][2 * E:].T.astype(cd))
    bq = stack(lambda lp: lp["in_proj_b"][:E].reshape(1, E))
    bk = stack(lambda lp: lp["in_proj_b"][E:2 * E].reshape(1, E))
    bv = stack(lambda lp: lp["in_proj_b"][2 * E:].reshape(1, E))
    wo = stack(lambda lp: lp["out_proj_w"].T.astype(cd))
    bo = stack(lambda lp: lp["out_proj_b"].reshape(1, E))
    ln1g = stack(lambda lp: lp["ln1_g"].reshape(1, E))
    ln1b = stack(lambda lp: lp["ln1_b"].reshape(1, E))
    w1 = stack(lambda lp: lp["lin1_w"].T.astype(cd))
    b1 = stack(lambda lp: lp["lin1_b"].reshape(1, FF))
    w2 = stack(lambda lp: lp["lin2_w"].T.astype(cd))
    b2 = stack(lambda lp: lp["lin2_b"].reshape(1, E))
    ln2g = stack(lambda lp: lp["ln2_g"].reshape(1, E))
    ln2b = stack(lambda lp: lp["ln2_b"].reshape(1, E))

    r1w = params["r1_w"].T.astype(cd)
    r1b = params["r1_b"].reshape(1, R)
    r2w = params["r2_w"].T.astype(cd)
    r2b = params["r2_b"].reshape(1, R)
    r3w = params["r3_w"].T.astype(cd)
    r3b = params["r3_b"].reshape(1, dout)
    pw = params["prob_w"].reshape(dout, Q).astype(jnp.float32)
    # centers[j] = min + sum_{i<j} w_i + 0.5*w_j == min + widths @ smat
    smat = (jnp.triu(jnp.ones((dout, dout), jnp.float32))
            - 0.5 * jnp.eye(dout, dtype=jnp.float32))

    def const_spec(shape):
        zeros = (0,) * len(shape)
        return pl.BlockSpec(shape, lambda n, _z=zeros: _z)

    centers, wc = pl.pallas_call(
        functools.partial(_encoder_head_kernel, heads=heads, num_layers=L,
                          q_nums=Q, min_val=min_val, max_val=max_val),
        grid=(Nb,),
        in_specs=[
            pl.BlockSpec((1, S, Cpp), lambda n: (n, 0, 0)),
            const_spec((S, E)), const_spec((Cpp, E)), const_spec((1, E)),
            const_spec((L, E, E)), const_spec((L, E, E)), const_spec((L, E, E)),
            const_spec((L, 1, E)), const_spec((L, 1, E)), const_spec((L, 1, E)),
            const_spec((L, E, E)), const_spec((L, 1, E)),
            const_spec((L, 1, E)), const_spec((L, 1, E)),
            const_spec((L, E, FF)), const_spec((L, 1, FF)),
            const_spec((L, FF, E)), const_spec((L, 1, E)),
            const_spec((L, 1, E)), const_spec((L, 1, E)),
            const_spec((E, R)), const_spec((1, R)),
            const_spec((R, R)), const_spec((1, R)),
            const_spec((R, dout)), const_spec((1, dout)),
            const_spec((dout, Q)), const_spec((dout, dout)),
        ],
        out_specs=(pl.BlockSpec((1, 1, dout), lambda n: (n, 0, 0)),
                   pl.BlockSpec((1, dout, E), lambda n: (n, 0, 0))),
        out_shape=(jax.ShapeDtypeStruct((Nb, 1, dout), jnp.float32),
                   jax.ShapeDtypeStruct((Nb, dout, E), jnp.float32)),
        compiler_params=pltpu.CompilerParams(
            dimension_semantics=("parallel",),
            vmem_limit_bytes=_VMEM_LIMIT),
    )(patches, pos, wpe, bpe,
      wq, wk, wv, bq, bk, bv, wo, bo, ln1g, ln1b,
      w1, b1, w2, b2, ln2g, ln2b,
      r1w, r1b, r2w, r2b, r3w, r3b, pw, smat)

    # ---------- stage 2: lane-dense conv3x3 im2col slab built once in XLA ----------
    xpad = jnp.pad(x0.transpose(0, 2, 3, 1), ((0, 0), (1, 1), (1, 1), (0, 0)))
    cols = jnp.concatenate(
        [xpad[:, kh:kh + H, kw:kw + W, :] for kh in range(3) for kw in range(3)],
        axis=-1).reshape(Nb, H * W, 9 * C).astype(cd)
    w3 = params["conv3_w"].transpose(2, 3, 1, 0).reshape(9 * C, E).astype(cd)
    b3 = params["conv3_b"].reshape(1, E).astype(jnp.float32)
    pb = params["prob_b"].reshape(1, dout).astype(jnp.float32)

    th = _pick_row_tile(H, W, _ROW_TILE_TARGET)
    n_tiles = H // th

    pred = pl.pallas_call(
        _depth_tail_kernel,
        grid=(Nb, n_tiles),
        in_specs=[
            pl.BlockSpec((1, th * W, 9 * C), lambda n, t: (n, t, 0)),
            pl.BlockSpec((9 * C, E), lambda n, t: (0, 0)),
            pl.BlockSpec((1, E), lambda n, t: (0, 0)),
            pl.BlockSpec((1, dout, E), lambda n, t: (n, 0, 0)),
            pl.BlockSpec((1, dout), lambda n, t: (0, 0)),
            pl.BlockSpec((1, 1, dout), lambda n, t: (n, 0, 0)),
        ],
        out_specs=pl.BlockSpec((1, 1, th * W), lambda n, t: (n, 0, t)),
        out_shape=jax.ShapeDtypeStruct((Nb, 1, H * W), jnp.float32),
        compiler_params=pltpu.CompilerParams(
            dimension_semantics=("parallel", "parallel"),
            vmem_limit_bytes=_VMEM_LIMIT),
    )(cols, w3, b3, wc, pb, centers)

    return {("disp", 0): pred.reshape(Nb, 1, H, W)}


# ---------------------------- parameter init ---------------------------------

def init_params(key, cfg):
    C = cfg["in_channels"]
    E = cfg["embedding_dim"]
    p = cfg["patch_size"]
    Q = cfg["query_nums"]
    dout = cfg["dim_out"]
    ff = 512  # dim_feedforward is hard-coded in the module

    def nrm(k, shape, scale=0.05):
        return scale * jax.random.normal(k, shape, jnp.float32)

    keys = iter(jax.random.split(key, 64))
    params = {
        "conv_pxp_w": nrm(next(keys), (E, C, p, p)),
        "conv_pxp_b": nrm(next(keys), (E,)),
        "pos_enc": jax.random.uniform(next(keys), (1000, E), jnp.float32),
        "conv3_w": nrm(next(keys), (E, C, 3, 3)),
        "conv3_b": nrm(next(keys), (E,)),
        "r1_w": nrm(next(keys), (256, E)), "r1_b": nrm(next(keys), (256,)),
        "r2_w": nrm(next(keys), (256, 256)), "r2_b": nrm(next(keys), (256,)),
        "r3_w": nrm(next(keys), (dout, 256)), "r3_b": nrm(next(keys), (dout,)),
        "prob_w": nrm(next(keys), (dout, Q, 1, 1)),
        "prob_b": nrm(next(keys), (dout,)),
        "layers": [],
    }
    # TODO(synk): bins_regressor is defined in __init__ but never used in forward.
    for _ in range(4):
        lk = iter(jax.random.split(next(keys), 16))
        params["layers"].append({
            "in_proj_w": nrm(next(lk), (3 * E, E)),
            "in_proj_b": nrm(next(lk), (3 * E,)),
            "out_proj_w": nrm(next(lk), (E, E)),
            "out_proj_b": nrm(next(lk), (E,)),
            "lin1_w": nrm(next(lk), (ff, E)),
            "lin1_b": nrm(next(lk), (ff,)),
            "lin2_w": nrm(next(lk), (E, ff)),
            "lin2_b": nrm(next(lk), (E,)),
            "ln1_g": jnp.ones((E,), jnp.float32),
            "ln1_b": jnp.zeros((E,), jnp.float32),
            "ln2_g": jnp.ones((E,), jnp.float32),
            "ln2_b": jnp.zeros((E,), jnp.float32),
        })
    return params


# ------------------------- pure-JAX f32 reference ----------------------------

def _ref_ln(x, g, b, eps=1e-5):
    m = x.mean(-1, keepdims=True)
    v = ((x - m) ** 2).mean(-1, keepdims=True)
    return (x - m) / jnp.sqrt(v + eps) * g + b


def _reference_forward(x0, params, cfg):
    Nb, C, H, W = x0.shape
    E, p = cfg["embedding_dim"], cfg["patch_size"]
    heads, Q, dout = cfg["num_heads"], cfg["query_nums"], cfg["dim_out"]
    min_val, max_val = cfg["min_val"], cfg["max_val"]
    Hp, Wp = H // p, W // p
    S = Hp * Wp
    dh = E // heads

    patches = (x0.reshape(Nb, C, Hp, p, Wp, p).transpose(0, 2, 4, 1, 3, 5)
                 .reshape(Nb, S, C * p * p))
    x = patches @ params["conv_pxp_w"].reshape(E, -1).T + params["conv_pxp_b"]
    x = x + params["pos_enc"][:S][None]
    for lp in params["layers"]:
        q = x @ lp["in_proj_w"][:E].T + lp["in_proj_b"][:E]
        k = x @ lp["in_proj_w"][E:2 * E].T + lp["in_proj_b"][E:2 * E]
        v = x @ lp["in_proj_w"][2 * E:].T + lp["in_proj_b"][2 * E:]
        qh = q.reshape(Nb, S, heads, dh).transpose(0, 2, 1, 3)
        kh = k.reshape(Nb, S, heads, dh).transpose(0, 2, 1, 3)
        vh = v.reshape(Nb, S, heads, dh).transpose(0, 2, 1, 3)
        s = jnp.einsum("nhqd,nhkd->nhqk", qh, kh) / jnp.sqrt(float(dh))
        pr = jax.nn.softmax(s, axis=-1)
        ctx = jnp.einsum("nhqk,nhkd->nhqd", pr, vh).transpose(0, 2, 1, 3)
        attn = ctx.reshape(Nb, S, E) @ lp["out_proj_w"].T + lp["out_proj_b"]
        x = _ref_ln(x + attn, lp["ln1_g"], lp["ln1_b"])
        ff = jax.nn.relu(x @ lp["lin1_w"].T + lp["lin1_b"]) @ lp["lin2_w"].T + lp["lin2_b"]
        x = _ref_ln(x + ff, lp["ln2_g"], lp["ln2_b"])

    head = x[:, 0]
    queries = x[:, 1:Q + 1]
    y = head @ params["r1_w"].T + params["r1_b"]
    y = jnp.where(y >= 0, y, 0.01 * y)
    y = y @ params["r2_w"].T + params["r2_b"]
    y = jnp.where(y >= 0, y, 0.01 * y)
    y = y @ params["r3_w"].T + params["r3_b"]
    y = jax.nn.relu(y) + 0.1
    y = y / y.sum(-1, keepdims=True)
    widths = (max_val - min_val) * y
    edges = jnp.cumsum(jnp.concatenate(
        [jnp.full((Nb, 1), min_val, jnp.float32), widths], -1), -1)
    centers = 0.5 * (edges[:, :-1] + edges[:, 1:])

    feat = lax.conv_general_dilated(x0, params["conv3_w"], (1, 1), "SAME",
                                    dimension_numbers=("NCHW", "OIHW", "NCHW"))
    feat = feat + params["conv3_b"][None, :, None, None]
    en = jnp.einsum("nqe,nehw->nqhw", queries, feat)
    logits = jnp.einsum("dq,nqhw->ndhw", params["prob_w"].reshape(dout, Q), en)
    logits = logits + params["prob_b"][None, :, None, None]
    prob = jax.nn.softmax(logits, axis=1)
    return jnp.sum(prob * centers[:, :, None, None], axis=1, keepdims=True)


if __name__ == "__main__":
    cfg = dict(in_channels=4, embedding_dim=32, patch_size=4, num_heads=4,
               query_nums=8, dim_out=16, min_val=0.001, max_val=10.0)
    key = jax.random.PRNGKey(0)
    pkey, xkey = jax.random.split(key)
    params = init_params(pkey, cfg)
    x0 = jax.random.normal(xkey, (2, cfg["in_channels"], 16, 16), jnp.float32)

    fwd = jax.jit(functools.partial(lite_depth_decoder_forward, cfg=cfg))
    outputs = fwd(x0, params)
    pred = outputs[("disp", 0)]
    jax.block_until_ready(pred)

    assert pred.shape == (2, 1, 16, 16)
    assert bool(jnp.all(jnp.isfinite(pred)))

    # sanity check vs. a pure-JAX f32 reference (bf16 MXU + approx-reciprocal
    # softmax introduce small deviations; tolerance is 8% of the depth range)
    ref = _reference_forward(x0, params, cfg)
    err = float(jnp.max(jnp.abs(pred - ref)))
    assert err < 0.08 * (cfg["max_val"] - cfg["min_val"]), f"max |diff| vs ref: {err}"

    print("KERNEL_OK")
</pallas_src>

<mosaic_0001>
module attributes {stable_mosaic.version = 11 : i64} {
  func.func @_depth_tail_kernel(%arg0: i32, %arg1: i32, %arg2: memref<1x128x36xbf16, #tpu.memory_space<vmem>>, %arg3: memref<36x32xbf16, #tpu.memory_space<vmem>>, %arg4: memref<1x32xf32, #tpu.memory_space<vmem>>, %arg5: memref<1x16x32xf32, #tpu.memory_space<vmem>>, %arg6: memref<1x16xf32, #tpu.memory_space<vmem>>, %arg7: memref<1x1x16xf32, #tpu.memory_space<vmem>>, %arg8: memref<1x1x128xf32, #tpu.memory_space<vmem>>) attributes {dimension_semantics = [#tpu.dimension_semantics<parallel>, #tpu.dimension_semantics<parallel>], iteration_bounds = array<i64: 2, 2>, scalar_prefetch = 0 : i64, scratch_operands = 0 : i64, tpu.core_type = #tpu.core_type<tc>, window_params = [{transform_indices = @transform_0, window_bounds = array<i64: 1, 128, 36>}, {pipeline_mode = #tpu.pipeline_mode<synchronous>, transform_indices = @transform_1, window_bounds = array<i64: 36, 32>}, {pipeline_mode = #tpu.pipeline_mode<synchronous>, transform_indices = @transform_2, window_bounds = array<i64: 1, 32>}, {transform_indices = @transform_3, window_bounds = array<i64: 1, 16, 32>}, {pipeline_mode = #tpu.pipeline_mode<synchronous>, transform_indices = @transform_4, window_bounds = array<i64: 1, 16>}, {transform_indices = @transform_5, window_bounds = array<i64: 1, 1, 16>}, {transform_indices = @transform_6, window_bounds = array<i64: 1, 1, 128>}]} {
    %c0 = arith.constant 0 : index
    %c0_0 = arith.constant 0 : index
    %c0_1 = arith.constant 0 : index
    %0 = vector.load %arg2[%c0, %c0_0, %c0_1] : memref<1x128x36xbf16, #tpu.memory_space<vmem>>, vector<1x128x36xbf16>
    %1 = vector.shape_cast %0 : vector<1x128x36xbf16> to vector<128x36xbf16>
    %c0_2 = arith.constant 0 : index
    %c0_3 = arith.constant 0 : index
    %2 = vector.load %arg3[%c0_2, %c0_3] : memref<36x32xbf16, #tpu.memory_space<vmem>>, vector<36x32xbf16>
    %cst = arith.constant dense<0.000000e+00> : vector<128x32xf32>
    %3 = tpu.matmul %1, %2, %cst {dimension_numbers = #tpu.dot_dimension_numbers<[1], [0], [0], [1], [0, 0, 1, 1], [], []>} : vector<128x36xbf16>, vector<36x32xbf16>, vector<128x32xf32> -> vector<128x32xf32>
    %c0_4 = arith.constant 0 : index
    %c0_5 = arith.constant 0 : index
    %4 = vector.load %arg4[%c0_4, %c0_5] : memref<1x32xf32, #tpu.memory_space<vmem>>, vector<1x32xf32>
    %5 = vector.broadcast %4 : vector<1x32xf32> to vector<128x32xf32>
    %6 = arith.addf %3, %5 : vector<128x32xf32>
    %7 = arith.truncf %6 : vector<128x32xf32> to vector<128x32xbf16>
    %c0_6 = arith.constant 0 : index
    %c0_7 = arith.constant 0 : index
    %c0_8 = arith.constant 0 : index
    %8 = vector.load %arg5[%c0_6, %c0_7, %c0_8] : memref<1x16x32xf32, #tpu.memory_space<vmem>>, vector<1x16x32xf32>
    %9 = vector.shape_cast %8 : vector<1x16x32xf32> to vector<16x32xf32>
    %10 = arith.truncf %9 : vector<16x32xf32> to vector<16x32xbf16>
    %cst_9 = arith.constant dense<0.000000e+00> : vector<128x16xf32>
    %11 = tpu.matmul %7, %10, %cst_9 {dimension_numbers = #tpu.dot_dimension_numbers<[1], [1], [0], [0], [0, 0, 1, 0], [], []>} : vector<128x32xbf16>, vector<16x32xbf16>, vector<128x16xf32> -> vector<128x16xf32>
    %c0_10 = arith.constant 0 : index
    %c0_11 = arith.constant 0 : index
    %12 = vector.load %arg6[%c0_10, %c0_11] : memref<1x16xf32, #tpu.memory_space<vmem>>, vector<1x16xf32>
    %13 = vector.broadcast %12 : vector<1x16xf32> to vector<128x16xf32>
    %14 = arith.addf %11, %13 : vector<128x16xf32>
    %cst_12 = arith.constant dense<0xFF800000> : vector<128xf32>
    %15 = vector.multi_reduction <maximumf>, %14, %cst_12 [1] : vector<128x16xf32> to vector<128xf32>
    %16 = vector.shape_cast %15 : vector<128xf32> to vector<128x1xf32>
    %17 = vector.broadcast %16 : vector<128x1xf32> to vector<128x16xf32>
    %18 = arith.subf %14, %17 : vector<128x16xf32>
    %19 = math.exp %18 : vector<128x16xf32>
    %cst_13 = arith.constant dense<0.000000e+00> : vector<128xf32>
    %20 = vector.multi_reduction <add>, %19, %cst_13 [1] : vector<128x16xf32> to vector<128xf32>
    %21 = vector.shape_cast %20 : vector<128xf32> to vector<128x1xf32>
    %22 = tpu.reciprocal %21 {approx = true} : vector<128x1xf32> -> vector<128x1xf32>
    %23 = vector.broadcast %22 : vector<128x1xf32> to vector<128x16xf32>
    %24 = arith.mulf %19, %23 : vector<128x16xf32>
    %c0_14 = arith.constant 0 : index
    %c0_15 = arith.constant 0 : index
    %c0_16 = arith.constant 0 : index
    %25 = vector.load %arg7[%c0_14, %c0_15, %c0_16] : memref<1x1x16xf32, #tpu.memory_space<vmem>>, vector<1x1x16xf32>
    %26 = vector.shape_cast %25 : vector<1x1x16xf32> to vector<1x16xf32>
    %cst_17 = arith.constant dense<0.000000e+00> : vector<1x128xf32>
    %27 = tpu.matmul %26, %24, %cst_17 {dimension_numbers = #tpu.dot_dimension_numbers<[1], [1], [0], [0], [0, 0, 1, 0], [], []>} : vector<1x16xf32>, vector<128x16xf32>, vector<1x128xf32> -> vector<1x128xf32>
    %28 = vector.shape_cast %27 : vector<1x128xf32> to vector<1x1x128xf32>
    %c0_18 = arith.constant 0 : index
    %c0_19 = arith.constant 0 : index
    %c0_20 = arith.constant 0 : index
    %29 = vector.load %arg8[%c0_18, %c0_19, %c0_20] : memref<1x1x128xf32, #tpu.memory_space<vmem>>, vector<1x1x128xf32>
    tpu.vector_store %arg8[%c0_18, %c0_19, %c0_20], %28 {strides = array<i32>} : memref<1x1x128xf32, #tpu.memory_space<vmem>>, vector<1x1x128xf32>,
    return
  }
  func.func @transform_0(%arg0: i32, %arg1: i32) -> (i32, i32, i32) {
    %c0_i32 = arith.constant 0 : i32
    %c0_i32_0 = arith.constant 0 : i32
    return %arg0, %arg1, %c0_i32 : i32, i32, i32
  }
  func.func @transform_1(%arg0: i32, %arg1: i32) -> (i32, i32) {
    %c0_i32 = arith.constant 0 : i32
    %c0_i32_0 = arith.constant 0 : i32
    %c0_i32_1 = arith.constant 0 : i32
    return %c0_i32, %c0_i32_0 : i32, i32
  }
  func.func @transform_2(%arg0: i32, %arg1: i32) -> (i32, i32) {
    %c0_i32 = arith.constant 0 : i32
    %c0_i32_0 = arith.constant 0 : i32
    %c0_i32_1 = arith.constant 0 : i32
    return %c0_i32, %c0_i32_0 : i32, i32
  }
  func.func @transform_3(%arg0: i32, %arg1: i32) -> (i32, i32, i32) {
    %c0_i32 = arith.constant 0 : i32
    %c0_i32_0 = arith.constant 0 : i32
    %c0_i32_1 = arith.constant 0 : i32
    return %arg0, %c0_i32, %c0_i32_0 : i32, i32, i32
  }
  func.func @transform_4(%arg0: i32, %arg1: i32) -> (i32, i32) {
    %c0_i32 = arith.constant 0 : i32
    %c0_i32_0 = arith.constant 0 : i32
    %c0_i32_1 = arith.constant 0 : i32
    return %c0_i32, %c0_i32_0 : i32, i32
  }
  func.func @transform_5(%arg0: i32, %arg1: i32) -> (i32, i32, i32) {
    %c0_i32 = arith.constant 0 : i32
    %c0_i32_0 = arith.constant 0 : i32
    %c0_i32_1 = arith.constant 0 : i32
    return %arg0, %c0_i32, %c0_i32_0 : i32, i32, i32
  }
  func.func @transform_6(%arg0: i32, %arg1: i32) -> (i32, i32, i32) {
    %c0_i32 = arith.constant 0 : i32
    %c0_i32_0 = arith.constant 0 : i32
    return %arg0, %c0_i32, %arg1 : i32, i32, i32
  }
}

module attributes {stable_mosaic.version = 11 : i64} {
  func.func @_encoder_head_kernel(%arg0: i32, %arg1: memref<1x16x64xbf16, #tpu.memory_space<vmem>>, %arg2: memref<16x32xf32, #tpu.memory_space<vmem>>, %arg3: memref<64x32xbf16, #tpu.memory_space<vmem>>, %arg4: memref<1x32xf32, #tpu.memory_space<vmem>>, %arg5: memref<4x32x32xbf16, #tpu.memory_space<vmem>>, %arg6: memref<4x32x32xbf16, #tpu.memory_space<vmem>>, %arg7: memref<4x32x32xbf16, #tpu.memory_space<vmem>>, %arg8: memref<4x1x32xf32, #tpu.memory_space<vmem>>, %arg9: memref<4x1x32xf32, #tpu.memory_space<vmem>>, %arg10: memref<4x1x32xf32, #tpu.memory_space<vmem>>, %arg11: memref<4x32x32xbf16, #tpu.memory_space<vmem>>, %arg12: memref<4x1x32xf32, #tpu.memory_space<vmem>>, %arg13: memref<4x1x32xf32, #tpu.memory_space<vmem>>, %arg14: memref<4x1x32xf32, #tpu.memory_space<vmem>>, %arg15: memref<4x32x512xbf16, #tpu.memory_space<vmem>>, %arg16: memref<4x1x512xf32, #tpu.memory_space<vmem>>, %arg17: memref<4x512x32xbf16, #tpu.memory_space<vmem>>, %arg18: memref<4x1x32xf32, #tpu.memory_space<vmem>>, %arg19: memref<4x1x32xf32, #tpu.memory_space<vmem>>, %arg20: memref<4x1x32xf32, #tpu.memory_space<vmem>>, %arg21: memref<32x256xbf16, #tpu.memory_space<vmem>>, %arg22: memref<1x256xf32, #tpu.memory_space<vmem>>, %arg23: memref<256x256xbf16, #tpu.memory_space<vmem>>, %arg24: memref<1x256xf32, #tpu.memory_space<vmem>>, %arg25: memref<256x16xbf16, #tpu.memory_space<vmem>>, %arg26: memref<1x16xf32, #tpu.memory_space<vmem>>, %arg27: memref<16x8xf32, #tpu.memory_space<vmem>>, %arg28: memref<16x16xf32, #tpu.memory_space<vmem>>, %arg29: memref<1x1x16xf32, #tpu.memory_space<vmem>>, %arg30: memref<1x16x32xf32, #tpu.memory_space<vmem>>) attributes {dimension_semantics = [#tpu.dimension_semantics<parallel>], iteration_bounds = array<i64: 2>, scalar_prefetch = 0 : i64, scratch_operands = 0 : i64, tpu.core_type = #tpu.core_type<tc>, window_params = [{transform_indices = @transform_0, window_bounds = array<i64: 1, 16, 64>}, {pipeline_mode = #tpu.pipeline_mode<synchronous>, transform_indices = @transform_1, window_bounds = array<i64: 16, 32>}, {pipeline_mode = #tpu.pipeline_mode<synchronous>, transform_indices = @transform_2, window_bounds = array<i64: 64, 32>}, {pipeline_mode = #tpu.pipeline_mode<synchronous>, transform_indices = @transform_3, window_bounds = array<i64: 1, 32>}, {pipeline_mode = #tpu.pipeline_mode<synchronous>, transform_indices = @transform_4, window_bounds = array<i64: 4, 32, 32>}, {pipeline_mode = #tpu.pipeline_mode<synchronous>, transform_indices = @transform_5, window_bounds = array<i64: 4, 32, 32>}, {pipeline_mode = #tpu.pipeline_mode<synchronous>, transform_indices = @transform_6, window_bounds = array<i64: 4, 32, 32>}, {pipeline_mode = #tpu.pipeline_mode<synchronous>, transform_indices = @transform_7, window_bounds = array<i64: 4, 1, 32>}, {pipeline_mode = #tpu.pipeline_mode<synchronous>, transform_indices = @transform_8, window_bounds = array<i64: 4, 1, 32>}, {pipeline_mode = #tpu.pipeline_mode<synchronous>, transform_indices = @transform_9, window_bounds = array<i64: 4, 1, 32>}, {pipeline_mode = #tpu.pipeline_mode<synchronous>, transform_indices = @transform_10, window_bounds = array<i64: 4, 32, 32>}, {pipeline_mode = #tpu.pipeline_mode<synchronous>, transform_indices = @transform_11, window_bounds = array<i64: 4, 1, 32>}, {pipeline_mode = #tpu.pipeline_mode<synchronous>, transform_indices = @transform_12, window_bounds = array<i64: 4, 1, 32>}, {pipeline_mode = #tpu.pipeline_mode<synchronous>, transform_indices = @transform_13, window_bounds = array<i64: 4, 1, 32>}, {pipeline_mode = #tpu.pipeline_mode<synchronous>, transform_indices = @transform_14, window_bounds = array<i64: 4, 32, 512>}, {pipeline_mode = #tpu.pipeline_mode<synchronous>, transform_indices = @transform_15, window_bounds = array<i64: 4, 1, 512>}, {pipeline_mode = #tpu.pipeline_mode<synchronous>, transform_indices = @transform_16, window_bounds = array<i64: 4, 512, 32>}, {pipeline_mode = #tpu.pipeline_mode<synchronous>, transform_indices = @transform_17, window_bounds = array<i64: 4, 1, 32>}, {pipeline_mode = #tpu.pipeline_mode<synchronous>, transform_indices = @transform_18, window_bounds = array<i64: 4, 1, 32>}, {pipeline_mode = #tpu.pipeline_mode<synchronous>, transform_indices = @transform_19, window_bounds = array<i64: 4, 1, 32>}, {pipeline_mode = #tpu.pipeline_mode<synchronous>, transform_indices = @transform_20, window_bounds = array<i64: 32, 256>}, {pipeline_mode = #tpu.pipeline_mode<synchronous>, transform_indices = @transform_21, window_bounds = array<i64: 1, 256>}, {pipeline_mode = #tpu.pipeline_mode<synchronous>, transform_indices = @transform_22, window_bounds = array<i64: 256, 256>}, {pipeline_mode = #tpu.pipeline_mode<synchronous>, transform_indices = @transform_23, window_bounds = array<i64: 1, 256>}, {pipeline_mode = #tpu.pipeline_mode<synchronous>, transform_indices = @transform_24, window_bounds = array<i64: 256, 16>}, {pipeline_mode = #tpu.pipeline_mode<synchronous>, transform_indices = @transform_25, window_bounds = array<i64: 1, 16>}, {pipeline_mode = #tpu.pipeline_mode<synchronous>, transform_indices = @transform_26, window_bounds = array<i64: 16, 8>}, {pipeline_mode = #tpu.pipeline_mode<synchronous>, transform_indices = @transform_27, window_bounds = array<i64: 16, 16>}, {transform_indices = @transform_28, window_bounds = array<i64: 1, 1, 16>}, {transform_indices = @transform_29, window_bounds = array<i64: 1, 16, 32>}]} {
    %c0 = arith.constant 0 : index
    %c0_0 = arith.constant 0 : index
    %c0_1 = arith.constant 0 : index
    %0 = vector.load %arg1[%c0, %c0_0, %c0_1] : memref<1x16x64xbf16, #tpu.memory_space<vmem>>, vector<1x16x64xbf16>
    %1 = vector.shape_cast %0 : vector<1x16x64xbf16> to vector<16x64xbf16>
    %c0_2 = arith.constant 0 : index
    %c0_3 = arith.constant 0 : index
    %2 = vector.load %arg3[%c0_2, %c0_3] : memref<64x32xbf16, #tpu.memory_space<vmem>>, vector<64x32xbf16>
    %cst = arith.constant dense<0.000000e+00> : vector<16x32xf32>
    %3 = tpu.matmul %1, %2, %cst {dimension_numbers = #tpu.dot_dimension_numbers<[1], [0], [0], [1], [0, 0, 1, 1], [], []>} : vector<16x64xbf16>, vector<64x32xbf16>, vector<16x32xf32> -> vector<16x32xf32>
    %c0_4 = arith.constant 0 : index
    %c0_5 = arith.constant 0 : index
    %4 = vector.load %arg4[%c0_4, %c0_5] : memref<1x32xf32, #tpu.memory_space<vmem>>, vector<1x32xf32>
    %5 = vector.broadcast %4 : vector<1x32xf32> to vector<16x32xf32>
    %6 = arith.addf %3, %5 : vector<16x32xf32>
    %c0_6 = arith.constant 0 : index
    %c0_7 = arith.constant 0 : index
    %7 = vector.load %arg2[%c0_6, %c0_7] : memref<16x32xf32, #tpu.memory_space<vmem>>, vector<16x32xf32>
    %8 = arith.addf %6, %7 : vector<16x32xf32>
    %9 = arith.truncf %8 : vector<16x32xf32> to vector<16x32xbf16>
    %c0_8 = arith.constant 0 : index
    %c0_9 = arith.constant 0 : index
    %c0_10 = arith.constant 0 : index
    %10 = vector.load %arg5[%c0_8, %c0_9, %c0_10] : memref<4x32x32xbf16, #tpu.memory_space<vmem>>, vector<1x32x32xbf16>
    %11 = vector.shape_cast %10 : vector<1x32x32xbf16> to vector<32x32xbf16>
    %cst_11 = arith.constant dense<0.000000e+00> : vector<16x32xf32>
    %12 = tpu.matmul %9, %11, %cst_11 {dimension_numbers = #tpu.dot_dimension_numbers<[1], [0], [0], [1], [0, 0, 1, 1], [], []>} : vector<16x32xbf16>, vector<32x32xbf16>, vector<16x32xf32> -> vector<16x32xf32>
    %c0_12 = arith.constant 0 : index
    %c0_13 = arith.constant 0 : index
    %c0_14 = arith.constant 0 : index
    %13 = vector.load %arg8[%c0_12, %c0_13, %c0_14] : memref<4x1x32xf32, #tpu.memory_space<vmem>>, vector<1x1x32xf32>
    %14 = vector.shape_cast %13 : vector<1x1x32xf32> to vector<1x32xf32>
    %15 = vector.broadcast %14 : vector<1x32xf32> to vector<16x32xf32>
    %16 = arith.addf %12, %15 : vector<16x32xf32>
    %c0_15 = arith.constant 0 : index
    %c0_16 = arith.constant 0 : index
    %c0_17 = arith.constant 0 : index
    %17 = vector.load %arg6[%c0_15, %c0_16, %c0_17] : memref<4x32x32xbf16, #tpu.memory_space<vmem>>, vector<1x32x32xbf16>
    %18 = vector.shape_cast %17 : vector<1x32x32xbf16> to vector<32x32xbf16>
    %cst_18 = arith.constant dense<0.000000e+00> : vector<16x32xf32>
    %19 = tpu.matmul %9, %18, %cst_18 {dimension_numbers = #tpu.dot_dimension_numbers<[1], [0], [0], [1], [0, 0, 1, 1], [], []>} : vector<16x32xbf16>, vector<32x32xbf16>, vector<16x32xf32> -> vector<16x32xf32>
    %c0_19 = arith.constant 0 : index
    %c0_20 = arith.constant 0 : index
    %c0_21 = arith.constant 0 : index
    %20 = vector.load %arg9[%c0_19, %c0_20, %c0_21] : memref<4x1x32xf32, #tpu.memory_space<vmem>>, vector<1x1x32xf32>
    %21 = vector.shape_cast %20 : vector<1x1x32xf32> to vector<1x32xf32>
    %22 = vector.broadcast %21 : vector<1x32xf32> to vector<16x32xf32>
    %23 = arith.addf %19, %22 : vector<16x32xf32>
    %c0_22 = arith.constant 0 : index
    %c0_23 = arith.constant 0 : index
    %c0_24 = arith.constant 0 : index
    %24 = vector.load %arg7[%c0_22, %c0_23, %c0_24] : memref<4x32x32xbf16, #tpu.memory_space<vmem>>, vector<1x32x32xbf16>
    %25 = vector.shape_cast %24 : vector<1x32x32xbf16> to vector<32x32xbf16>
    %cst_25 = arith.constant dense<0.000000e+00> : vector<16x32xf32>
    %26 = tpu.matmul %9, %25, %cst_25 {dimension_numbers = #tpu.dot_dimension_numbers<[1], [0], [0], [1], [0, 0, 1, 1], [], []>} : vector<16x32xbf16>, vector<32x32xbf16>, vector<16x32xf32> -> vector<16x32xf32>
    %c0_26 = arith.constant 0 : index
    %c0_27 = arith.constant 0 : index
    %c0_28 = arith.constant 0 : index
    %27 = vector.load %arg10[%c0_26, %c0_27, %c0_28] : memref<4x1x32xf32, #tpu.memory_space<vmem>>, vector<1x1x32xf32>
    %28 = vector.shape_cast %27 : vector<1x1x32xf32> to vector<1x32xf32>
    %29 = vector.broadcast %28 : vector<1x32xf32> to vector<16x32xf32>
    %30 = arith.addf %26, %29 : vector<16x32xf32>
    %31 = arith.truncf %16 : vector<16x32xf32> to vector<16x32xbf16>
    %32 = vector.shape_cast %31 : vector<16x32xbf16> to vector<16x4x8xbf16>
    %33 = tpu.transpose %32, [1, 0, 2] : vector<16x4x8xbf16> -> vector<4x16x8xbf16>
    %34 = arith.truncf %23 : vector<16x32xf32> to vector<16x32xbf16>
    %35 = vector.shape_cast %34 : vector<16x32xbf16> to vector<16x4x8xbf16>
    %36 = tpu.transpose %35, [1, 0, 2] : vector<16x4x8xbf16> -> vector<4x16x8xbf16>
    %37 = arith.truncf %30 : vector<16x32xf32> to vector<16x32xbf16>
    %38 = vector.shape_cast %37 : vector<16x32xbf16> to vector<16x4x8xbf16>
    %39 = tpu.transpose %38, [1, 0, 2] : vector<16x4x8xbf16> -> vector<4x16x8xbf16>
    "tpu.trace_start"() <{level = 10 : i32, message = "hqd,hkd->hqk"}> : () -> ()
    %cst_29 = arith.constant dense<0.000000e+00> : vector<4x16x16xf32>
    %40 = tpu.matmul %33, %36, %cst_29 {dimension_numbers = #tpu.dot_dimension_numbers<[2], [2], [1], [1], [0, 0, 0, 1, 1, 1], [0], [0]>} : vector<4x16x8xbf16>, vector<4x16x8xbf16>, vector<4x16x16xf32> -> vector<4x16x16xf32>
    "tpu.trace_stop"() : () -> ()
    %cst_30 = arith.constant 0.353553385 : f32
    %41 = vector.broadcast %cst_30 : f32 to vector<4x16x16xf32>
    %42 = arith.mulf %40, %41 : vector<4x16x16xf32>
    %cst_31 = arith.constant dense<0xFF800000> : vector<4x16xf32>
    %43 = vector.multi_reduction <maximumf>, %42, %cst_31 [2] : vector<4x16x16xf32> to vector<4x16xf32>
    %44 = vector.shape_cast %43 : vector<4x16xf32> to vector<4x16x1xf32>
    %45 = vector.broadcast %44 : vector<4x16x1xf32> to vector<4x16x16xf32>
    %46 = arith.subf %42, %45 : vector<4x16x16xf32>
    %47 = math.exp %46 : vector<4x16x16xf32>
    %cst_32 = arith.constant dense<0.000000e+00> : vector<4x16xf32>
    %48 = vector.multi_reduction <add>, %47, %cst_32 [2] : vector<4x16x16xf32> to vector<4x16xf32>
    %49 = vector.shape_cast %48 : vector<4x16xf32> to vector<4x16x1xf32>
    %50 = tpu.reciprocal %49 {approx = true} : vector<4x16x1xf32> -> vector<4x16x1xf32>
    %51 = vector.broadcast %50 : vector<4x16x1xf32> to vector<4x16x16xf32>
    %52 = arith.mulf %47, %51 : vector<4x16x16xf32>
    %53 = arith.truncf %52 : vector<4x16x16xf32> to vector<4x16x16xbf16>
    "tpu.trace_start"() <{level = 10 : i32, message = "hqk,hkd->hqd"}> : () -> ()
    %cst_33 = arith.constant dense<0.000000e+00> : vector<4x16x8xf32>
    %54 = tpu.matmul %53, %39, %cst_33 {dimension_numbers = #tpu.dot_dimension_numbers<[2], [1], [1], [2], [0, 0, 0, 1, 1, 2], [0], [0]>} : vector<4x16x16xbf16>, vector<4x16x8xbf16>, vector<4x16x8xf32> -> vector<4x16x8xf32>
    "tpu.trace_stop"() : () -> ()
    %55 = arith.truncf %54 : vector<4x16x8xf32> to vector<4x16x8xbf16>
    %56 = tpu.transpose %55, [1, 0, 2] : vector<4x16x8xbf16> -> vector<16x4x8xbf16>
    %57 = vector.shape_cast %56 : vector<16x4x8xbf16> to vector<16x32xbf16>
    %c0_34 = arith.constant 0 : index
    %c0_35 = arith.constant 0 : index
    %c0_36 = arith.constant 0 : index
    %58 = vector.load %arg11[%c0_34, %c0_35, %c0_36] : memref<4x32x32xbf16, #tpu.memory_space<vmem>>, vector<1x32x32xbf16>
    %59 = vector.shape_cast %58 : vector<1x32x32xbf16> to vector<32x32xbf16>
    %cst_37 = arith.constant dense<0.000000e+00> : vector<16x32xf32>
    %60 = tpu.matmul %57, %59, %cst_37 {dimension_numbers = #tpu.dot_dimension_numbers<[1], [0], [0], [1], [0, 0, 1, 1], [], []>} : vector<16x32xbf16>, vector<32x32xbf16>, vector<16x32xf32> -> vector<16x32xf32>
    %c0_38 = arith.constant 0 : index
    %c0_39 = arith.constant 0 : index
    %c0_40 = arith.constant 0 : index
    %61 = vector.load %arg12[%c0_38, %c0_39, %c0_40] : memref<4x1x32xf32, #tpu.memory_space<vmem>>, vector<1x1x32xf32>
    %62 = vector.shape_cast %61 : vector<1x1x32xf32> to vector<1x32xf32>
    %63 = vector.broadcast %62 : vector<1x32xf32> to vector<16x32xf32>
    %64 = arith.addf %60, %63 : vector<16x32xf32>
    %65 = arith.addf %8, %64 : vector<16x32xf32>
    %c0_41 = arith.constant 0 : index
    %c0_42 = arith.constant 0 : index
    %c0_43 = arith.constant 0 : index
    %66 = vector.load %arg13[%c0_41, %c0_42, %c0_43] : memref<4x1x32xf32, #tpu.memory_space<vmem>>, vector<1x1x32xf32>
    %67 = vector.shape_cast %66 : vector<1x1x32xf32> to vector<1x32xf32>
    %c0_44 = arith.constant 0 : index
    %c0_45 = arith.constant 0 : index
    %c0_46 = arith.constant 0 : index
    %68 = vector.load %arg14[%c0_44, %c0_45, %c0_46] : memref<4x1x32xf32, #tpu.memory_space<vmem>>, vector<1x1x32xf32>
    %69 = vector.shape_cast %68 : vector<1x1x32xf32> to vector<1x32xf32>
    %cst_47 = arith.constant dense<0.000000e+00> : vector<16xf32>
    %70 = vector.multi_reduction <add>, %65, %cst_47 [1] : vector<16x32xf32> to vector<16xf32>
    %71 = vector.shape_cast %70 : vector<16xf32> to vector<16x1xf32>
    %cst_48 = arith.constant 3.200000e+01 : f32
    %72 = vector.broadcast %cst_48 : f32 to vector<16x1xf32>
    %73 = arith.divf %71, %72 : vector<16x1xf32>
    %74 = vector.broadcast %73 : vector<16x1xf32> to vector<16x32xf32>
    %75 = arith.subf %65, %74 : vector<16x32xf32>
    %76 = arith.mulf %75, %75 : vector<16x32xf32>
    %cst_49 = arith.constant dense<0.000000e+00> : vector<16xf32>
    %77 = vector.multi_reduction <add>, %76, %cst_49 [1] : vector<16x32xf32> to vector<16xf32>
    %78 = vector.shape_cast %77 : vector<16xf32> to vector<16x1xf32>
    %cst_50 = arith.constant 3.200000e+01 : f32
    %79 = vector.broadcast %cst_50 : f32 to vector<16x1xf32>
    %80 = arith.divf %78, %79 : vector<16x1xf32>
    %81 = vector.broadcast %73 : vector<16x1xf32> to vector<16x32xf32>
    %82 = arith.subf %65, %81 : vector<16x32xf32>
    %cst_51 = arith.constant 9.99999974E-6 : f32
    %83 = vector.broadcast %cst_51 : f32 to vector<16x1xf32>
    %84 = arith.addf %80, %83 : vector<16x1xf32>
    %85 = math.rsqrt %84 : vector<16x1xf32>
    %86 = vector.broadcast %85 : vector<16x1xf32> to vector<16x32xf32>
    %87 = arith.mulf %82, %86 : vector<16x32xf32>
    %88 = vector.broadcast %67 : vector<1x32xf32> to vector<16x32xf32>
    %89 = arith.mulf %87, %88 : vector<16x32xf32>
    %90 = vector.broadcast %69 : vector<1x32xf32> to vector<16x32xf32>
    %91 = arith.addf %89, %90 : vector<16x32xf32>
    %92 = arith.truncf %91 : vector<16x32xf32> to vector<16x32xbf16>
    %c0_52 = arith.constant 0 : index
    %c0_53 = arith.constant 0 : index
    %c0_54 = arith.constant 0 : index
    %93 = vector.load %arg15[%c0_52, %c0_53, %c0_54] : memref<4x32x512xbf16, #tpu.memory_space<vmem>>, vector<1x32x512xbf16>
    %94 = vector.shape_cast %93 : vector<1x32x512xbf16> to vector<32x512xbf16>
    %cst_55 = arith.constant dense<0.000000e+00> : vector<16x512xf32>
    %95 = tpu.matmul %92, %94, %cst_55 {dimension_numbers = #tpu.dot_dimension_numbers<[1], [0], [0], [1], [0, 0, 1, 1], [], []>} : vector<16x32xbf16>, vector<32x512xbf16>, vector<16x512xf32> -> vector<16x512xf32>
    %c0_56 = arith.constant 0 : index
    %c0_57 = arith.constant 0 : index
    %c0_58 = arith.constant 0 : index
    %96 = vector.load %arg16[%c0_56, %c0_57, %c0_58] : memref<4x1x512xf32, #tpu.memory_space<vmem>>, vector<1x1x512xf32>
    %97 = vector.shape_cast %96 : vector<1x1x512xf32> to vector<1x512xf32>
    %98 = vector.broadcast %97 : vector<1x512xf32> to vector<16x512xf32>
    %99 = arith.addf %95, %98 : vector<16x512xf32>
    %cst_59 = arith.constant 0.000000e+00 : f32
    %100 = vector.broadcast %cst_59 : f32 to vector<16x512xf32>
    %101 = arith.maximumf %99, %100 : vector<16x512xf32>
    %102 = arith.truncf %101 : vector<16x512xf32> to vector<16x512xbf16>
    %c0_60 = arith.constant 0 : index
    %c0_61 = arith.constant 0 : index
    %c0_62 = arith.constant 0 : index
    %103 = vector.load %arg17[%c0_60, %c0_61, %c0_62] : memref<4x512x32xbf16, #tpu.memory_space<vmem>>, vector<1x512x32xbf16>
    %104 = vector.shape_cast %103 : vector<1x512x32xbf16> to vector<512x32xbf16>
    %cst_63 = arith.constant dense<0.000000e+00> : vector<16x32xf32>
    %105 = tpu.matmul %102, %104, %cst_63 {dimension_numbers = #tpu.dot_dimension_numbers<[1], [0], [0], [1], [0, 0, 1, 1], [], []>} : vector<16x512xbf16>, vector<512x32xbf16>, vector<16x32xf32> -> vector<16x32xf32>
    %c0_64 = arith.constant 0 : index
    %c0_65 = arith.constant 0 : index
    %c0_66 = arith.constant 0 : index
    %106 = vector.load %arg18[%c0_64, %c0_65, %c0_66] : memref<4x1x32xf32, #tpu.memory_space<vmem>>, vector<1x1x32xf32>
    %107 = vector.shape_cast %106 : vector<1x1x32xf32> to vector<1x32xf32>
    %108 = vector.broadcast %107 : vector<1x32xf32> to vector<16x32xf32>
    %109 = arith.addf %105, %108 : vector<16x32xf32>
    %110 = arith.addf %91, %109 : vector<16x32xf32>
    %c0_67 = arith.constant 0 : index
    %c0_68 = arith.constant 0 : index
    %c0_69 = arith.constant 0 : index
    %111 = vector.load %arg19[%c0_67, %c0_68, %c0_69] : memref<4x1x32xf32, #tpu.memory_space<vmem>>, vector<1x1x32xf32>
    %112 = vector.shape_cast %111 : vector<1x1x32xf32> to vector<1x32xf32>
    %c0_70 = arith.constant 0 : index
    %c0_71 = arith.constant 0 : index
    %c0_72 = arith.constant 0 : index
    %113 = vector.load %arg20[%c0_70, %c0_71, %c0_72] : memref<4x1x32xf32, #tpu.memory_space<vmem>>, vector<1x1x32xf32>
    %114 = vector.shape_cast %113 : vector<1x1x32xf32> to vector<1x32xf32>
    %cst_73 = arith.constant dense<0.000000e+00> : vector<16xf32>
    %115 = vector.multi_reduction <add>, %110, %cst_73 [1] : vector<16x32xf32> to vector<16xf32>
    %116 = vector.shape_cast %115 : vector<16xf32> to vector<16x1xf32>
    %cst_74 = arith.constant 3.200000e+01 : f32
    %117 = vector.broadcast %cst_74 : f32 to vector<16x1xf32>
    %118 = arith.divf %116, %117 : vector<16x1xf32>
    %119 = vector.broadcast %118 : vector<16x1xf32> to vector<16x32xf32>
    %120 = arith.subf %110, %119 : vector<16x32xf32>
    %121 = arith.mulf %120, %120 : vector<16x32xf32>
    %cst_75 = arith.constant dense<0.000000e+00> : vector<16xf32>
    %122 = vector.multi_reduction <add>, %121, %cst_75 [1] : vector<16x32xf32> to vector<16xf32>
    %123 = vector.shape_cast %122 : vector<16xf32> to vector<16x1xf32>
    %cst_76 = arith.constant 3.200000e+01 : f32
    %124 = vector.broadcast %cst_76 : f32 to vector<16x1xf32>
    %125 = arith.divf %123, %124 : vector<16x1xf32>
    %126 = vector.broadcast %118 : vector<16x1xf32> to vector<16x32xf32>
    %127 = arith.subf %110, %126 : vector<16x32xf32>
    %cst_77 = arith.constant 9.99999974E-6 : f32
    %128 = vector.broadcast %cst_77 : f32 to vector<16x1xf32>
    %129 = arith.addf %125, %128 : vector<16x1xf32>
    %130 = math.rsqrt %129 : vector<16x1xf32>
    %131 = vector.broadcast %130 : vector<16x1xf32> to vector<16x32xf32>
    %132 = arith.mulf %127, %131 : vector<16x32xf32>
    %133 = vector.broadcast %112 : vector<1x32xf32> to vector<16x32xf32>
    %134 = arith.mulf %132, %133 : vector<16x32xf32>
    %135 = vector.broadcast %114 : vector<1x32xf32> to vector<16x32xf32>
    %136 = arith.addf %134, %135 : vector<16x32xf32>
    %137 = arith.truncf %136 : vector<16x32xf32> to vector<16x32xbf16>
    %c1 = arith.constant 1 : index
    %c0_78 = arith.constant 0 : index
    %c0_79 = arith.constant 0 : index
    %138 = vector.load %arg5[%c1, %c0_78, %c0_79] : memref<4x32x32xbf16, #tpu.memory_space<vmem>>, vector<1x32x32xbf16>
    %139 = vector.shape_cast %138 : vector<1x32x32xbf16> to vector<32x32xbf16>
    %cst_80 = arith.constant dense<0.000000e+00> : vector<16x32xf32>
    %140 = tpu.matmul %137, %139, %cst_80 {dimension_numbers = #tpu.dot_dimension_numbers<[1], [0], [0], [1], [0, 0, 1, 1], [], []>} : vector<16x32xbf16>, vector<32x32xbf16>, vector<16x32xf32> -> vector<16x32xf32>
    %c1_81 = arith.constant 1 : index
    %c0_82 = arith.constant 0 : index
    %c0_83 = arith.constant 0 : index
    %141 = vector.load %arg8[%c1_81, %c0_82, %c0_83] : memref<4x1x32xf32, #tpu.memory_space<vmem>>, vector<1x1x32xf32>
    %142 = vector.shape_cast %141 : vector<1x1x32xf32> to vector<1x32xf32>
    %143 = vector.broadcast %142 : vector<1x32xf32> to vector<16x32xf32>
    %144 = arith.addf %140, %143 : vector<16x32xf32>
    %c1_84 = arith.constant 1 : index
    %c0_85 = arith.constant 0 : index
    %c0_86 = arith.constant 0 : index
    %145 = vector.load %arg6[%c1_84, %c0_85, %c0_86] : memref<4x32x32xbf16, #tpu.memory_space<vmem>>, vector<1x32x32xbf16>
    %146 = vector.shape_cast %145 : vector<1x32x32xbf16> to vector<32x32xbf16>
    %cst_87 = arith.constant dense<0.000000e+00> : vector<16x32xf32>
    %147 = tpu.matmul %137, %146, %cst_87 {dimension_numbers = #tpu.dot_dimension_numbers<[1], [0], [0], [1], [0, 0, 1, 1], [], []>} : vector<16x32xbf16>, vector<32x32xbf16>, vector<16x32xf32> -> vector<16x32xf32>
    %c1_88 = arith.constant 1 : index
    %c0_89 = arith.constant 0 : index
    %c0_90 = arith.constant 0 : index
    %148 = vector.load %arg9[%c1_88, %c0_89, %c0_90] : memref<4x1x32xf32, #tpu.memory_space<vmem>>, vector<1x1x32xf32>
    %149 = vector.shape_cast %148 : vector<1x1x32xf32> to vector<1x32xf32>
    %150 = vector.broadcast %149 : vector<1x32xf32> to vector<16x32xf32>
    %151 = arith.addf %147, %150 : vector<16x32xf32>
    %c1_91 = arith.constant 1 : index
    %c0_92 = arith.constant 0 : index
    %c0_93 = arith.constant 0 : index
    %152 = vector.load %arg7[%c1_91, %c0_92, %c0_93] : memref<4x32x32xbf16, #tpu.memory_space<vmem>>, vector<1x32x32xbf16>
    %153 = vector.shape_cast %152 : vector<1x32x32xbf16> to vector<32x32xbf16>
    %cst_94 = arith.constant dense<0.000000e+00> : vector<16x32xf32>
    %154 = tpu.matmul %137, %153, %cst_94 {dimension_numbers = #tpu.dot_dimension_numbers<[1], [0], [0], [1], [0, 0, 1, 1], [], []>} : vector<16x32xbf16>, vector<32x32xbf16>, vector<16x32xf32> -> vector<16x32xf32>
    %c1_95 = arith.constant 1 : index
    %c0_96 = arith.constant 0 : index
    %c0_97 = arith.constant 0 : index
    %155 = vector.load %arg10[%c1_95, %c0_96, %c0_97] : memref<4x1x32xf32, #tpu.memory_space<vmem>>, vector<1x1x32xf32>
    %156 = vector.shape_cast %155 : vector<1x1x32xf32> to vector<1x32xf32>
    %157 = vector.broadcast %156 : vector<1x32xf32> to vector<16x32xf32>
    %158 = arith.addf %154, %157 : vector<16x32xf32>
    %159 = arith.truncf %144 : vector<16x32xf32> to vector<16x32xbf16>
    %160 = vector.shape_cast %159 : vector<16x32xbf16> to vector<16x4x8xbf16>
    %161 = tpu.transpose %160, [1, 0, 2] : vector<16x4x8xbf16> -> vector<4x16x8xbf16>
    %162 = arith.truncf %151 : vector<16x32xf32> to vector<16x32xbf16>
    %163 = vector.shape_cast %162 : vector<16x32xbf16> to vector<16x4x8xbf16>
    %164 = tpu.transpose %163, [1, 0, 2] : vector<16x4x8xbf16> -> vector<4x16x8xbf16>
    %165 = arith.truncf %158 : vector<16x32xf32> to vector<16x32xbf16>
    %166 = vector.shape_cast %165 : vector<16x32xbf16> to vector<16x4x8xbf16>
    %167 = tpu.transpose %166, [1, 0, 2] : vector<16x4x8xbf16> -> vector<4x16x8xbf16>
    "tpu.trace_start"() <{level = 10 : i32, message = "hqd,hkd->hqk"}> : () -> ()
    %cst_98 = arith.constant dense<0.000000e+00> : vector<4x16x16xf32>
    %168 = tpu.matmul %161, %164, %cst_98 {dimension_numbers = #tpu.dot_dimension_numbers<[2], [2], [1], [1], [0, 0, 0, 1, 1, 1], [0], [0]>} : vector<4x16x8xbf16>, vector<4x16x8xbf16>, vector<4x16x16xf32> -> vector<4x16x16xf32>
    "tpu.trace_stop"() : () -> ()
    %cst_99 = arith.constant 0.353553385 : f32
    %169 = vector.broadcast %cst_99 : f32 to vector<4x16x16xf32>
    %170 = arith.mulf %168, %169 : vector<4x16x16xf32>
    %cst_100 = arith.constant dense<0xFF800000> : vector<4x16xf32>
    %171 = vector.multi_reduction <maximumf>, %170, %cst_100 [2] : vector<4x16x16xf32> to vector<4x16xf32>
    %172 = vector.shape_cast %171 : vector<4x16xf32> to vector<4x16x1xf32>
    %173 = vector.broadcast %172 : vector<4x16x1xf32> to vector<4x16x16xf32>
    %174 = arith.subf %170, %173 : vector<4x16x16xf32>
    %175 = math.exp %174 : vector<4x16x16xf32>
    %cst_101 = arith.constant dense<0.000000e+00> : vector<4x16xf32>
    %176 = vector.multi_reduction <add>, %175, %cst_101 [2] : vector<4x16x16xf32> to vector<4x16xf32>
    %177 = vector.shape_cast %176 : vector<4x16xf32> to vector<4x16x1xf32>
    %178 = tpu.reciprocal %177 {approx = true} : vector<4x16x1xf32> -> vector<4x16x1xf32>
    %179 = vector.broadcast %178 : vector<4x16x1xf32> to vector<4x16x16xf32>
    %180 = arith.mulf %175, %179 : vector<4x16x16xf32>
    %181 = arith.truncf %180 : vector<4x16x16xf32> to vector<4x16x16xbf16>
    "tpu.trace_start"() <{level = 10 : i32, message = "hqk,hkd->hqd"}> : () -> ()
    %cst_102 = arith.constant dense<0.000000e+00> : vector<4x16x8xf32>
    %182 = tpu.matmul %181, %167, %cst_102 {dimension_numbers = #tpu.dot_dimension_numbers<[2], [1], [1], [2], [0, 0, 0, 1, 1, 2], [0], [0]>} : vector<4x16x16xbf16>, vector<4x16x8xbf16>, vector<4x16x8xf32> -> vector<4x16x8xf32>
    "tpu.trace_stop"() : () -> ()
    %183 = arith.truncf %182 : vector<4x16x8xf32> to vector<4x16x8xbf16>
    %184 = tpu.transpose %183, [1, 0, 2] : vector<4x16x8xbf16> -> vector<16x4x8xbf16>
    %185 = vector.shape_cast %184 : vector<16x4x8xbf16> to vector<16x32xbf16>
    %c1_103 = arith.constant 1 : index
    %c0_104 = arith.constant 0 : index
    %c0_105 = arith.constant 0 : index
    %186 = vector.load %arg11[%c1_103, %c0_104, %c0_105] : memref<4x32x32xbf16, #tpu.memory_space<vmem>>, vector<1x32x32xbf16>
    %187 = vector.shape_cast %186 : vector<1x32x32xbf16> to vector<32x32xbf16>
    %cst_106 = arith.constant dense<0.000000e+00> : vector<16x32xf32>
    %188 = tpu.matmul %185, %187, %cst_106 {dimension_numbers = #tpu.dot_dimension_numbers<[1], [0], [0], [1], [0, 0, 1, 1], [], []>} : vector<16x32xbf16>, vector<32x32xbf16>, vector<16x32xf32> -> vector<16x32xf32>
    %c1_107 = arith.constant 1 : index
    %c0_108 = arith.constant 0 : index
    %c0_109 = arith.constant 0 : index
    %189 = vector.load %arg12[%c1_107, %c0_108, %c0_109] : memref<4x1x32xf32, #tpu.memory_space<vmem>>, vector<1x1x32xf32>
    %190 = vector.shape_cast %189 : vector<1x1x32xf32> to vector<1x32xf32>
    %191 = vector.broadcast %190 : vector<1x32xf32> to vector<16x32xf32>
    %192 = arith.addf %188, %191 : vector<16x32xf32>
    %193 = arith.addf %136, %192 : vector<16x32xf32>
    %c1_110 = arith.constant 1 : index
    %c0_111 = arith.constant 0 : index
    %c0_112 = arith.constant 0 : index
    %194 = vector.load %arg13[%c1_110, %c0_111, %c0_112] : memref<4x1x32xf32, #tpu.memory_space<vmem>>, vector<1x1x32xf32>
    %195 = vector.shape_cast %194 : vector<1x1x32xf32> to vector<1x32xf32>
    %c1_113 = arith.constant 1 : index
    %c0_114 = arith.constant 0 : index
    %c0_115 = arith.constant 0 : index
    %196 = vector.load %arg14[%c1_113, %c0_114, %c0_115] : memref<4x1x32xf32, #tpu.memory_space<vmem>>, vector<1x1x32xf32>
    %197 = vector.shape_cast %196 : vector<1x1x32xf32> to vector<1x32xf32>
    %cst_116 = arith.constant dense<0.000000e+00> : vector<16xf32>
    %198 = vector.multi_reduction <add>, %193, %cst_116 [1] : vector<16x32xf32> to vector<16xf32>
    %199 = vector.shape_cast %198 : vector<16xf32> to vector<16x1xf32>
    %cst_117 = arith.constant 3.200000e+01 : f32
    %200 = vector.broadcast %cst_117 : f32 to vector<16x1xf32>
    %201 = arith.divf %199, %200 : vector<16x1xf32>
    %202 = vector.broadcast %201 : vector<16x1xf32> to vector<16x32xf32>
    %203 = arith.subf %193, %202 : vector<16x32xf32>
    %204 = arith.mulf %203, %203 : vector<16x32xf32>
    %cst_118 = arith.constant dense<0.000000e+00> : vector<16xf32>
    %205 = vector.multi_reduction <add>, %204, %cst_118 [1] : vector<16x32xf32> to vector<16xf32>
    %206 = vector.shape_cast %205 : vector<16xf32> to vector<16x1xf32>
    %cst_119 = arith.constant 3.200000e+01 : f32
    %207 = vector.broadcast %cst_119 : f32 to vector<16x1xf32>
    %208 = arith.divf %206, %207 : vector<16x1xf32>
    %209 = vector.broadcast %201 : vector<16x1xf32> to vector<16x32xf32>
    %210 = arith.subf %193, %209 : vector<16x32xf32>
    %cst_120 = arith.constant 9.99999974E-6 : f32
    %211 = vector.broadcast %cst_120 : f32 to vector<16x1xf32>
    %212 = arith.addf %208, %211 : vector<16x1xf32>
    %213 = math.rsqrt %212 : vector<16x1xf32>
    %214 = vector.broadcast %213 : vector<16x1xf32> to vector<16x32xf32>
    %215 = arith.mulf %210, %214 : vector<16x32xf32>
    %216 = vector.broadcast %195 : vector<1x32xf32> to vector<16x32xf32>
    %217 = arith.mulf %215, %216 : vector<16x32xf32>
    %218 = vector.broadcast %197 : vector<1x32xf32> to vector<16x32xf32>
    %219 = arith.addf %217, %218 : vector<16x32xf32>
    %220 = arith.truncf %219 : vector<16x32xf32> to vector<16x32xbf16>
    %c1_121 = arith.constant 1 : index
    %c0_122 = arith.constant 0 : index
    %c0_123 = arith.constant 0 : index
    %221 = vector.load %arg15[%c1_121, %c0_122, %c0_123] : memref<4x32x512xbf16, #tpu.memory_space<vmem>>, vector<1x32x512xbf16>
    %222 = vector.shape_cast %221 : vector<1x32x512xbf16> to vector<32x512xbf16>
    %cst_124 = arith.constant dense<0.000000e+00> : vector<16x512xf32>
    %223 = tpu.matmul %220, %222, %cst_124 {dimension_numbers = #tpu.dot_dimension_numbers<[1], [0], [0], [1], [0, 0, 1, 1], [], []>} : vector<16x32xbf16>, vector<32x512xbf16>, vector<16x512xf32> -> vector<16x512xf32>
    %c1_125 = arith.constant 1 : index
    %c0_126 = arith.constant 0 : index
    %c0_127 = arith.constant 0 : index
    %224 = vector.load %arg16[%c1_125, %c0_126, %c0_127] : memref<4x1x512xf32, #tpu.memory_space<vmem>>, vector<1x1x512xf32>
    %225 = vector.shape_cast %224 : vector<1x1x512xf32> to vector<1x512xf32>
    %226 = vector.broadcast %225 : vector<1x512xf32> to vector<16x512xf32>
    %227 = arith.addf %223, %226 : vector<16x512xf32>
    %cst_128 = arith.constant 0.000000e+00 : f32
    %228 = vector.broadcast %cst_128 : f32 to vector<16x512xf32>
    %229 = arith.maximumf %227, %228 : vector<16x512xf32>
    %230 = arith.truncf %229 : vector<16x512xf32> to vector<16x512xbf16>
    %c1_129 = arith.constant 1 : index
    %c0_130 = arith.constant 0 : index
    %c0_131 = arith.constant 0 : index
    %231 = vector.load %arg17[%c1_129, %c0_130, %c0_131] : memref<4x512x32xbf16, #tpu.memory_space<vmem>>, vector<1x512x32xbf16>
    %232 = vector.shape_cast %231 : vector<1x512x32xbf16> to vector<512x32xbf16>
    %cst_132 = arith.constant dense<0.000000e+00> : vector<16x32xf32>
    %233 = tpu.matmul %230, %232, %cst_132 {dimension_numbers = #tpu.dot_dimension_numbers<[1], [0], [0], [1], [0, 0, 1, 1], [], []>} : vector<16x512xbf16>, vector<512x32xbf16>, vector<16x32xf32> -> vector<16x32xf32>
    %c1_133 = arith.constant 1 : index
    %c0_134 = arith.constant 0 : index
    %c0_135 = arith.constant 0 : index
    %234 = vector.load %arg18[%c1_133, %c0_134, %c0_135] : memref<4x1x32xf32, #tpu.memory_space<vmem>>, vector<1x1x32xf32>
    %235 = vector.shape_cast %234 : vector<1x1x32xf32> to vector<1x32xf32>
    %236 = vector.broadcast %235 : vector<1x32xf32> to vector<16x32xf32>
    %237 = arith.addf %233, %236 : vector<16x32xf32>
    %238 = arith.addf %219, %237 : vector<16x32xf32>
    %c1_136 = arith.constant 1 : index
    %c0_137 = arith.constant 0 : index
    %c0_138 = arith.constant 0 : index
    %239 = vector.load %arg19[%c1_136, %c0_137, %c0_138] : memref<4x1x32xf32, #tpu.memory_space<vmem>>, vector<1x1x32xf32>
    %240 = vector.shape_cast %239 : vector<1x1x32xf32> to vector<1x32xf32>
    %c1_139 = arith.constant 1 : index
    %c0_140 = arith.constant 0 : index
    %c0_141 = arith.constant 0 : index
    %241 = vector.load %arg20[%c1_139, %c0_140, %c0_141] : memref<4x1x32xf32, #tpu.memory_space<vmem>>, vector<1x1x32xf32>
    %242 = vector.shape_cast %241 : vector<1x1x32xf32> to vector<1x32xf32>
    %cst_142 = arith.constant dense<0.000000e+00> : vector<16xf32>
    %243 = vector.multi_reduction <add>, %238, %cst_142 [1] : vector<16x32xf32> to vector<16xf32>
    %244 = vector.shape_cast %243 : vector<16xf32> to vector<16x1xf32>
    %cst_143 = arith.constant 3.200000e+01 : f32
    %245 = vector.broadcast %cst_143 : f32 to vector<16x1xf32>
    %246 = arith.divf %244, %245 : vector<16x1xf32>
    %247 = vector.broadcast %246 : vector<16x1xf32> to vector<16x32xf32>
    %248 = arith.subf %238, %247 : vector<16x32xf32>
    %249 = arith.mulf %248, %248 : vector<16x32xf32>
    %cst_144 = arith.constant dense<0.000000e+00> : vector<16xf32>
    %250 = vector.multi_reduction <add>, %249, %cst_144 [1] : vector<16x32xf32> to vector<16xf32>
    %251 = vector.shape_cast %250 : vector<16xf32> to vector<16x1xf32>
    %cst_145 = arith.constant 3.200000e+01 : f32
    %252 = vector.broadcast %cst_145 : f32 to vector<16x1xf32>
    %253 = arith.divf %251, %252 : vector<16x1xf32>
    %254 = vector.broadcast %246 : vector<16x1xf32> to vector<16x32xf32>
    %255 = arith.subf %238, %254 : vector<16x32xf32>
    %cst_146 = arith.constant 9.99999974E-6 : f32
    %256 = vector.broadcast %cst_146 : f32 to vector<16x1xf32>
    %257 = arith.addf %253, %256 : vector<16x1xf32>
    %258 = math.rsqrt %257 : vector<16x1xf32>
    %259 = vector.broadcast %258 : vector<16x1xf32> to vector<16x32xf32>
    %260 = arith.mulf %255, %259 : vector<16x32xf32>
    %261 = vector.broadcast %240 : vector<1x32xf32> to vector<16x32xf32>
    %262 = arith.mulf %260, %261 : vector<16x32xf32>
    %263 = vector.broadcast %242 : vector<1x32xf32> to vector<16x32xf32>
    %264 = arith.addf %262, %263 : vector<16x32xf32>
    %265 = arith.truncf %264 : vector<16x32xf32> to vector<16x32xbf16>
    %c2 = arith.constant 2 : index
    %c0_147 = arith.constant 0 : index
    %c0_148 = arith.constant 0 : index
    %266 = vector.load %arg5[%c2, %c0_147, %c0_148] : memref<4x32x32xbf16, #tpu.memory_space<vmem>>, vector<1x32x32xbf16>
    %267 = vector.shape_cast %266 : vector<1x32x32xbf16> to vector<32x32xbf16>
    %cst_149 = arith.constant dense<0.000000e+00> : vector<16x32xf32>
    %268 = tpu.matmul %265, %267, %cst_149 {dimension_numbers = #tpu.dot_dimension_numbers<[1], [0], [0], [1], [0, 0, 1, 1], [], []>} : vector<16x32xbf16>, vector<32x32xbf16>, vector<16x32xf32> -> vector<16x32xf32>
    %c2_150 = arith.constant 2 : index
    %c0_151 = arith.constant 0 : index
    %c0_152 = arith.constant 0 : index
    %269 = vector.load %arg8[%c2_150, %c0_151, %c0_152] : memref<4x1x32xf32, #tpu.memory_space<vmem>>, vector<1x1x32xf32>
    %270 = vector.shape_cast %269 : vector<1x1x32xf32> to vector<1x32xf32>
    %271 = vector.broadcast %270 : vector<1x32xf32> to vector<16x32xf32>
    %272 = arith.addf %268, %271 : vector<16x32xf32>
    %c2_153 = arith.constant 2 : index
    %c0_154 = arith.constant 0 : index
    %c0_155 = arith.constant 0 : index
    %273 = vector.load %arg6[%c2_153, %c0_154, %c0_155] : memref<4x32x32xbf16, #tpu.memory_space<vmem>>, vector<1x32x32xbf16>
    %274 = vector.shape_cast %273 : vector<1x32x32xbf16> to vector<32x32xbf16>
    %cst_156 = arith.constant dense<0.000000e+00> : vector<16x32xf32>
    %275 = tpu.matmul %265, %274, %cst_156 {dimension_numbers = #tpu.dot_dimension_numbers<[1], [0], [0], [1], [0, 0, 1, 1], [], []>} : vector<16x32xbf16>, vector<32x32xbf16>, vector<16x32xf32> -> vector<16x32xf32>
    %c2_157 = arith.constant 2 : index
    %c0_158 = arith.constant 0 : index
    %c0_159 = arith.constant 0 : index
    %276 = vector.load %arg9[%c2_157, %c0_158, %c0_159] : memref<4x1x32xf32, #tpu.memory_space<vmem>>, vector<1x1x32xf32>
    %277 = vector.shape_cast %276 : vector<1x1x32xf32> to vector<1x32xf32>
    %278 = vector.broadcast %277 : vector<1x32xf32> to vector<16x32xf32>
    %279 = arith.addf %275, %278 : vector<16x32xf32>
    %c2_160 = arith.constant 2 : index
    %c0_161 = arith.constant 0 : index
    %c0_162 = arith.constant 0 : index
    %280 = vector.load %arg7[%c2_160, %c0_161, %c0_162] : memref<4x32x32xbf16, #tpu.memory_space<vmem>>, vector<1x32x32xbf16>
    %281 = vector.shape_cast %280 : vector<1x32x32xbf16> to vector<32x32xbf16>
    %cst_163 = arith.constant dense<0.000000e+00> : vector<16x32xf32>
    %282 = tpu.matmul %265, %281, %cst_163 {dimension_numbers = #tpu.dot_dimension_numbers<[1], [0], [0], [1], [0, 0, 1, 1], [], []>} : vector<16x32xbf16>, vector<32x32xbf16>, vector<16x32xf32> -> vector<16x32xf32>
    %c2_164 = arith.constant 2 : index
    %c0_165 = arith.constant 0 : index
    %c0_166 = arith.constant 0 : index
    %283 = vector.load %arg10[%c2_164, %c0_165, %c0_166] : memref<4x1x32xf32, #tpu.memory_space<vmem>>, vector<1x1x32xf32>
    %284 = vector.shape_cast %283 : vector<1x1x32xf32> to vector<1x32xf32>
    %285 = vector.broadcast %284 : vector<1x32xf32> to vector<16x32xf32>
    %286 = arith.addf %282, %285 : vector<16x32xf32>
    %287 = arith.truncf %272 : vector<16x32xf32> to vector<16x32xbf16>
    %288 = vector.shape_cast %287 : vector<16x32xbf16> to vector<16x4x8xbf16>
    %289 = tpu.transpose %288, [1, 0, 2] : vector<16x4x8xbf16> -> vector<4x16x8xbf16>
    %290 = arith.truncf %279 : vector<16x32xf32> to vector<16x32xbf16>
    %291 = vector.shape_cast %290 : vector<16x32xbf16> to vector<16x4x8xbf16>
    %292 = tpu.transpose %291, [1, 0, 2] : vector<16x4x8xbf16> -> vector<4x16x8xbf16>
    %293 = arith.truncf %286 : vector<16x32xf32> to vector<16x32xbf16>
    %294 = vector.shape_cast %293 : vector<16x32xbf16> to vector<16x4x8xbf16>
    %295 = tpu.transpose %294, [1, 0, 2] : vector<16x4x8xbf16> -> vector<4x16x8xbf16>
    "tpu.trace_start"() <{level = 10 : i32, message = "hqd,hkd->hqk"}> : () -> ()
    %cst_167 = arith.constant dense<0.000000e+00> : vector<4x16x16xf32>
    %296 = tpu.matmul %289, %292, %cst_167 {dimension_numbers = #tpu.dot_dimension_numbers<[2], [2], [1], [1], [0, 0, 0, 1, 1, 1], [0], [0]>} : vector<4x16x8xbf16>, vector<4x16x8xbf16>, vector<4x16x16xf32> -> vector<4x16x16xf32>
    "tpu.trace_stop"() : () -> ()
    %cst_168 = arith.constant 0.353553385 : f32
    %297 = vector.broadcast %cst_168 : f32 to vector<4x16x16xf32>
    %298 = arith.mulf %296, %297 : vector<4x16x16xf32>
    %cst_169 = arith.constant dense<0xFF800000> : vector<4x16xf32>
    %299 = vector.multi_reduction <maximumf>, %298, %cst_169 [2] : vector<4x16x16xf32> to vector<4x16xf32>
    %300 = vector.shape_cast %299 : vector<4x16xf32> to vector<4x16x1xf32>
    %301 = vector.broadcast %300 : vector<4x16x1xf32> to vector<4x16x16xf32>
    %302 = arith.subf %298, %301 : vector<4x16x16xf32>
    %303 = math.exp %302 : vector<4x16x16xf32>
    %cst_170 = arith.constant dense<0.000000e+00> : vector<4x16xf32>
    %304 = vector.multi_reduction <add>, %303, %cst_170 [2] : vector<4x16x16xf32> to vector<4x16xf32>
    %305 = vector.shape_cast %304 : vector<4x16xf32> to vector<4x16x1xf32>
    %306 = tpu.reciprocal %305 {approx = true} : vector<4x16x1xf32> -> vector<4x16x1xf32>
    %307 = vector.broadcast %306 : vector<4x16x1xf32> to vector<4x16x16xf32>
    %308 = arith.mulf %303, %307 : vector<4x16x16xf32>
    %309 = arith.truncf %308 : vector<4x16x16xf32> to vector<4x16x16xbf16>
    "tpu.trace_start"() <{level = 10 : i32, message = "hqk,hkd->hqd"}> : () -> ()
    %cst_171 = arith.constant dense<0.000000e+00> : vector<4x16x8xf32>
    %310 = tpu.matmul %309, %295, %cst_171 {dimension_numbers = #tpu.dot_dimension_numbers<[2], [1], [1], [2], [0, 0, 0, 1, 1, 2], [0], [0]>} : vector<4x16x16xbf16>, vector<4x16x8xbf16>, vector<4x16x8xf32> -> vector<4x16x8xf32>
    "tpu.trace_stop"() : () -> ()
    %311 = arith.truncf %310 : vector<4x16x8xf32> to vector<4x16x8xbf16>
    %312 = tpu.transpose %311, [1, 0, 2] : vector<4x16x8xbf16> -> vector<16x4x8xbf16>
    %313 = vector.shape_cast %312 : vector<16x4x8xbf16> to vector<16x32xbf16>
    %c2_172 = arith.constant 2 : index
    %c0_173 = arith.constant 0 : index
    %c0_174 = arith.constant 0 : index
    %314 = vector.load %arg11[%c2_172, %c0_173, %c0_174] : memref<4x32x32xbf16, #tpu.memory_space<vmem>>, vector<1x32x32xbf16>
    %315 = vector.shape_cast %314 : vector<1x32x32xbf16> to vector<32x32xbf16>
    %cst_175 = arith.constant dense<0.000000e+00> : vector<16x32xf32>
    %316 = tpu.matmul %313, %315, %cst_175 {dimension_numbers = #tpu.dot_dimension_numbers<[1], [0], [0], [1], [0, 0, 1, 1], [], []>} : vector<16x32xbf16>, vector<32x32xbf16>, vector<16x32xf32> -> vector<16x32xf32>
    %c2_176 = arith.constant 2 : index
    %c0_177 = arith.constant 0 : index
    %c0_178 = arith.constant 0 : index
    %317 = vector.load %arg12[%c2_176, %c0_177, %c0_178] : memref<4x1x32xf32, #tpu.memory_space<vmem>>, vector<1x1x32xf32>
    %318 = vector.shape_cast %317 : vector<1x1x32xf32> to vector<1x32xf32>
    %319 = vector.broadcast %318 : vector<1x32xf32> to vector<16x32xf32>
    %320 = arith.addf %316, %319 : vector<16x32xf32>
    %321 = arith.addf %264, %320 : vector<16x32xf32>
    %c2_179 = arith.constant 2 : index
    %c0_180 = arith.constant 0 : index
    %c0_181 = arith.constant 0 : index
    %322 = vector.load %arg13[%c2_179, %c0_180, %c0_181] : memref<4x1x32xf32, #tpu.memory_space<vmem>>, vector<1x1x32xf32>
    %323 = vector.shape_cast %322 : vector<1x1x32xf32> to vector<1x32xf32>
    %c2_182 = arith.constant 2 : index
    %c0_183 = arith.constant 0 : index
    %c0_184 = arith.constant 0 : index
    %324 = vector.load %arg14[%c2_182, %c0_183, %c0_184] : memref<4x1x32xf32, #tpu.memory_space<vmem>>, vector<1x1x32xf32>
    %325 = vector.shape_cast %324 : vector<1x1x32xf32> to vector<1x32xf32>
    %cst_185 = arith.constant dense<0.000000e+00> : vector<16xf32>
    %326 = vector.multi_reduction <add>, %321, %cst_185 [1] : vector<16x32xf32> to vector<16xf32>
    %327 = vector.shape_cast %326 : vector<16xf32> to vector<16x1xf32>
    %cst_186 = arith.constant 3.200000e+01 : f32
    %328 = vector.broadcast %cst_186 : f32 to vector<16x1xf32>
    %329 = arith.divf %327, %328 : vector<16x1xf32>
    %330 = vector.broadcast %329 : vector<16x1xf32> to vector<16x32xf32>
    %331 = arith.subf %321, %330 : vector<16x32xf32>
    %332 = arith.mulf %331, %331 : vector<16x32xf32>
    %cst_187 = arith.constant dense<0.000000e+00> : vector<16xf32>
    %333 = vector.multi_reduction <add>, %332, %cst_187 [1] : vector<16x32xf32> to vector<16xf32>
    %334 = vector.shape_cast %333 : vector<16xf32> to vector<16x1xf32>
    %cst_188 = arith.constant 3.200000e+01 : f32
    %335 = vector.broadcast %cst_188 : f32 to vector<16x1xf32>
    %336 = arith.divf %334, %335 : vector<16x1xf32>
    %337 = vector.broadcast %329 : vector<16x1xf32> to vector<16x32xf32>
    %338 = arith.subf %321, %337 : vector<16x32xf32>
    %cst_189 = arith.constant 9.99999974E-6 : f32
    %339 = vector.broadcast %cst_189 : f32 to vector<16x1xf32>
    %340 = arith.addf %336, %339 : vector<16x1xf32>
    %341 = math.rsqrt %340 : vector<16x1xf32>
    %342 = vector.broadcast %341 : vector<16x1xf32> to vector<16x32xf32>
    %343 = arith.mulf %338, %342 : vector<16x32xf32>
    %344 = vector.broadcast %323 : vector<1x32xf32> to vector<16x32xf32>
    %345 = arith.mulf %343, %344 : vector<16x32xf32>
    %346 = vector.broadcast %325 : vector<1x32xf32> to vector<16x32xf32>
    %347 = arith.addf %345, %346 : vector<16x32xf32>
    %348 = arith.truncf %347 : vector<16x32xf32> to vector<16x32xbf16>
    %c2_190 = arith.constant 2 : index
    %c0_191 = arith.constant 0 : index
    %c0_192 = arith.constant 0 : index
    %349 = vector.load %arg15[%c2_190, %c0_191, %c0_192] : memref<4x32x512xbf16, #tpu.memory_space<vmem>>, vector<1x32x512xbf16>
    %350 = vector.shape_cast %349 : vector<1x32x512xbf16> to vector<32x512xbf16>
    %cst_193 = arith.constant dense<0.000000e+00> : vector<16x512xf32>
    %351 = tpu.matmul %348, %350, %cst_193 {dimension_numbers = #tpu.dot_dimension_numbers<[1], [0], [0], [1], [0, 0, 1, 1], [], []>} : vector<16x32xbf16>, vector<32x512xbf16>, vector<16x512xf32> -> vector<16x512xf32>
    %c2_194 = arith.constant 2 : index
    %c0_195 = arith.constant 0 : index
    %c0_196 = arith.constant 0 : index
    %352 = vector.load %arg16[%c2_194, %c0_195, %c0_196] : memref<4x1x512xf32, #tpu.memory_space<vmem>>, vector<1x1x512xf32>
    %353 = vector.shape_cast %352 : vector<1x1x512xf32> to vector<1x512xf32>
    %354 = vector.broadcast %353 : vector<1x512xf32> to vector<16x512xf32>
    %355 = arith.addf %351, %354 : vector<16x512xf32>
    %cst_197 = arith.constant 0.000000e+00 : f32
    %356 = vector.broadcast %cst_197 : f32 to vector<16x512xf32>
    %357 = arith.maximumf %355, %356 : vector<16x512xf32>
    %358 = arith.truncf %357 : vector<16x512xf32> to vector<16x512xbf16>
    %c2_198 = arith.constant 2 : index
    %c0_199 = arith.constant 0 : index
    %c0_200 = arith.constant 0 : index
    %359 = vector.load %arg17[%c2_198, %c0_199, %c0_200] : memref<4x512x32xbf16, #tpu.memory_space<vmem>>, vector<1x512x32xbf16>
    %360 = vector.shape_cast %359 : vector<1x512x32xbf16> to vector<512x32xbf16>
    %cst_201 = arith.constant dense<0.000000e+00> : vector<16x32xf32>
    %361 = tpu.matmul %358, %360, %cst_201 {dimension_numbers = #tpu.dot_dimension_numbers<[1], [0], [0], [1], [0, 0, 1, 1], [], []>} : vector<16x512xbf16>, vector<512x32xbf16>, vector<16x32xf32> -> vector<16x32xf32>
    %c2_202 = arith.constant 2 : index
    %c0_203 = arith.constant 0 : index
    %c0_204 = arith.constant 0 : index
    %362 = vector.load %arg18[%c2_202, %c0_203, %c0_204] : memref<4x1x32xf32, #tpu.memory_space<vmem>>, vector<1x1x32xf32>
    %363 = vector.shape_cast %362 : vector<1x1x32xf32> to vector<1x32xf32>
    %364 = vector.broadcast %363 : vector<1x32xf32> to vector<16x32xf32>
    %365 = arith.addf %361, %364 : vector<16x32xf32>
    %366 = arith.addf %347, %365 : vector<16x32xf32>
    %c2_205 = arith.constant 2 : index
    %c0_206 = arith.constant 0 : index
    %c0_207 = arith.constant 0 : index
    %367 = vector.load %arg19[%c2_205, %c0_206, %c0_207] : memref<4x1x32xf32, #tpu.memory_space<vmem>>, vector<1x1x32xf32>
    %368 = vector.shape_cast %367 : vector<1x1x32xf32> to vector<1x32xf32>
    %c2_208 = arith.constant 2 : index
    %c0_209 = arith.constant 0 : index
    %c0_210 = arith.constant 0 : index
    %369 = vector.load %arg20[%c2_208, %c0_209, %c0_210] : memref<4x1x32xf32, #tpu.memory_space<vmem>>, vector<1x1x32xf32>
    %370 = vector.shape_cast %369 : vector<1x1x32xf32> to vector<1x32xf32>
    %cst_211 = arith.constant dense<0.000000e+00> : vector<16xf32>
    %371 = vector.multi_reduction <add>, %366, %cst_211 [1] : vector<16x32xf32> to vector<16xf32>
    %372 = vector.shape_cast %371 : vector<16xf32> to vector<16x1xf32>
    %cst_212 = arith.constant 3.200000e+01 : f32
    %373 = vector.broadcast %cst_212 : f32 to vector<16x1xf32>
    %374 = arith.divf %372, %373 : vector<16x1xf32>
    %375 = vector.broadcast %374 : vector<16x1xf32> to vector<16x32xf32>
    %376 = arith.subf %366, %375 : vector<16x32xf32>
    %377 = arith.mulf %376, %376 : vector<16x32xf32>
    %cst_213 = arith.constant dense<0.000000e+00> : vector<16xf32>
    %378 = vector.multi_reduction <add>, %377, %cst_213 [1] : vector<16x32xf32> to vector<16xf32>
    %379 = vector.shape_cast %378 : vector<16xf32> to vector<16x1xf32>
    %cst_214 = arith.constant 3.200000e+01 : f32
    %380 = vector.broadcast %cst_214 : f32 to vector<16x1xf32>
    %381 = arith.divf %379, %380 : vector<16x1xf32>
    %382 = vector.broadcast %374 : vector<16x1xf32> to vector<16x32xf32>
    %383 = arith.subf %366, %382 : vector<16x32xf32>
    %cst_215 = arith.constant 9.99999974E-6 : f32
    %384 = vector.broadcast %cst_215 : f32 to vector<16x1xf32>
    %385 = arith.addf %381, %384 : vector<16x1xf32>
    %386 = math.rsqrt %385 : vector<16x1xf32>
    %387 = vector.broadcast %386 : vector<16x1xf32> to vector<16x32xf32>
    %388 = arith.mulf %383, %387 : vector<16x32xf32>
    %389 = vector.broadcast %368 : vector<1x32xf32> to vector<16x32xf32>
    %390 = arith.mulf %388, %389 : vector<16x32xf32>
    %391 = vector.broadcast %370 : vector<1x32xf32> to vector<16x32xf32>
    %392 = arith.addf %390, %391 : vector<16x32xf32>
    %393 = arith.truncf %392 : vector<16x32xf32> to vector<16x32xbf16>
    %c3 = arith.constant 3 : index
    %c0_216 = arith.constant 0 : index
    %c0_217 = arith.constant 0 : index
    %394 = vector.load %arg5[%c3, %c0_216, %c0_217] : memref<4x32x32xbf16, #tpu.memory_space<vmem>>, vector<1x32x32xbf16>
    %395 = vector.shape_cast %394 : vector<1x32x32xbf16> to vector<32x32xbf16>
    %cst_218 = arith.constant dense<0.000000e+00> : vector<16x32xf32>
    %396 = tpu.matmul %393, %395, %cst_218 {dimension_numbers = #tpu.dot_dimension_numbers<[1], [0], [0], [1], [0, 0, 1, 1], [], []>} : vector<16x32xbf16>, vector<32x32xbf16>, vector<16x32xf32> -> vector<16x32xf32>
    %c3_219 = arith.constant 3 : index
    %c0_220 = arith.constant 0 : index
    %c0_221 = arith.constant 0 : index
    %397 = vector.load %arg8[%c3_219, %c0_220, %c0_221] : memref<4x1x32xf32, #tpu.memory_space<vmem>>, vector<1x1x32xf32>
    %398 = vector.shape_cast %397 : vector<1x1x32xf32> to vector<1x32xf32>
    %399 = vector.broadcast %398 : vector<1x32xf32> to vector<16x32xf32>
    %400 = arith.addf %396, %399 : vector<16x32xf32>
    %c3_222 = arith.constant 3 : index
    %c0_223 = arith.constant 0 : index
    %c0_224 = arith.constant 0 : index
    %401 = vector.load %arg6[%c3_222, %c0_223, %c0_224] : memref<4x32x32xbf16, #tpu.memory_space<vmem>>, vector<1x32x32xbf16>
    %402 = vector.shape_cast %401 : vector<1x32x32xbf16> to vector<32x32xbf16>
    %cst_225 = arith.constant dense<0.000000e+00> : vector<16x32xf32>
    %403 = tpu.matmul %393, %402, %cst_225 {dimension_numbers = #tpu.dot_dimension_numbers<[1], [0], [0], [1], [0, 0, 1, 1], [], []>} : vector<16x32xbf16>, vector<32x32xbf16>, vector<16x32xf32> -> vector<16x32xf32>
    %c3_226 = arith.constant 3 : index
    %c0_227 = arith.constant 0 : index
    %c0_228 = arith.constant 0 : index
    %404 = vector.load %arg9[%c3_226, %c0_227, %c0_228] : memref<4x1x32xf32, #tpu.memory_space<vmem>>, vector<1x1x32xf32>
    %405 = vector.shape_cast %404 : vector<1x1x32xf32> to vector<1x32xf32>
    %406 = vector.broadcast %405 : vector<1x32xf32> to vector<16x32xf32>
    %407 = arith.addf %403, %406 : vector<16x32xf32>
    %c3_229 = arith.constant 3 : index
    %c0_230 = arith.constant 0 : index
    %c0_231 = arith.constant 0 : index
    %408 = vector.load %arg7[%c3_229, %c0_230, %c0_231] : memref<4x32x32xbf16, #tpu.memory_space<vmem>>, vector<1x32x32xbf16>
    %409 = vector.shape_cast %408 : vector<1x32x32xbf16> to vector<32x32xbf16>
    %cst_232 = arith.constant dense<0.000000e+00> : vector<16x32xf32>
    %410 = tpu.matmul %393, %409, %cst_232 {dimension_numbers = #tpu.dot_dimension_numbers<[1], [0], [0], [1], [0, 0, 1, 1], [], []>} : vector<16x32xbf16>, vector<32x32xbf16>, vector<16x32xf32> -> vector<16x32xf32>
    %c3_233 = arith.constant 3 : index
    %c0_234 = arith.constant 0 : index
    %c0_235 = arith.constant 0 : index
    %411 = vector.load %arg10[%c3_233, %c0_234, %c0_235] : memref<4x1x32xf32, #tpu.memory_space<vmem>>, vector<1x1x32xf32>
    %412 = vector.shape_cast %411 : vector<1x1x32xf32> to vector<1x32xf32>
    %413 = vector.broadcast %412 : vector<1x32xf32> to vector<16x32xf32>
    %414 = arith.addf %410, %413 : vector<16x32xf32>
    %415 = arith.truncf %400 : vector<16x32xf32> to vector<16x32xbf16>
    %416 = vector.shape_cast %415 : vector<16x32xbf16> to vector<16x4x8xbf16>
    %417 = tpu.transpose %416, [1, 0, 2] : vector<16x4x8xbf16> -> vector<4x16x8xbf16>
    %418 = arith.truncf %407 : vector<16x32xf32> to vector<16x32xbf16>
    %419 = vector.shape_cast %418 : vector<16x32xbf16> to vector<16x4x8xbf16>
    %420 = tpu.transpose %419, [1, 0, 2] : vector<16x4x8xbf16> -> vector<4x16x8xbf16>
    %421 = arith.truncf %414 : vector<16x32xf32> to vector<16x32xbf16>
    %422 = vector.shape_cast %421 : vector<16x32xbf16> to vector<16x4x8xbf16>
    %423 = tpu.transpose %422, [1, 0, 2] : vector<16x4x8xbf16> -> vector<4x16x8xbf16>
    "tpu.trace_start"() <{level = 10 : i32, message = "hqd,hkd->hqk"}> : () -> ()
    %cst_236 = arith.constant dense<0.000000e+00> : vector<4x16x16xf32>
    %424 = tpu.matmul %417, %420, %cst_236 {dimension_numbers = #tpu.dot_dimension_numbers<[2], [2], [1], [1], [0, 0, 0, 1, 1, 1], [0], [0]>} : vector<4x16x8xbf16>, vector<4x16x8xbf16>, vector<4x16x16xf32> -> vector<4x16x16xf32>
    "tpu.trace_stop"() : () -> ()
    %cst_237 = arith.constant 0.353553385 : f32
    %425 = vector.broadcast %cst_237 : f32 to vector<4x16x16xf32>
    %426 = arith.mulf %424, %425 : vector<4x16x16xf32>
    %cst_238 = arith.constant dense<0xFF800000> : vector<4x16xf32>
    %427 = vector.multi_reduction <maximumf>, %426, %cst_238 [2] : vector<4x16x16xf32> to vector<4x16xf32>
    %428 = vector.shape_cast %427 : vector<4x16xf32> to vector<4x16x1xf32>
    %429 = vector.broadcast %428 : vector<4x16x1xf32> to vector<4x16x16xf32>
    %430 = arith.subf %426, %429 : vector<4x16x16xf32>
    %431 = math.exp %430 : vector<4x16x16xf32>
    %cst_239 = arith.constant dense<0.000000e+00> : vector<4x16xf32>
    %432 = vector.multi_reduction <add>, %431, %cst_239 [2] : vector<4x16x16xf32> to vector<4x16xf32>
    %433 = vector.shape_cast %432 : vector<4x16xf32> to vector<4x16x1xf32>
    %434 = tpu.reciprocal %433 {approx = true} : vector<4x16x1xf32> -> vector<4x16x1xf32>
    %435 = vector.broadcast %434 : vector<4x16x1xf32> to vector<4x16x16xf32>
    %436 = arith.mulf %431, %435 : vector<4x16x16xf32>
    %437 = arith.truncf %436 : vector<4x16x16xf32> to vector<4x16x16xbf16>
    "tpu.trace_start"() <{level = 10 : i32, message = "hqk,hkd->hqd"}> : () -> ()
    %cst_240 = arith.constant dense<0.000000e+00> : vector<4x16x8xf32>
    %438 = tpu.matmul %437, %423, %cst_240 {dimension_numbers = #tpu.dot_dimension_numbers<[2], [1], [1], [2], [0, 0, 0, 1, 1, 2], [0], [0]>} : vector<4x16x16xbf16>, vector<4x16x8xbf16>, vector<4x16x8xf32> -> vector<4x16x8xf32>
    "tpu.trace_stop"() : () -> ()
    %439 = arith.truncf %438 : vector<4x16x8xf32> to vector<4x16x8xbf16>
    %440 = tpu.transpose %439, [1, 0, 2] : vector<4x16x8xbf16> -> vector<16x4x8xbf16>
    %441 = vector.shape_cast %440 : vector<16x4x8xbf16> to vector<16x32xbf16>
    %c3_241 = arith.constant 3 : index
    %c0_242 = arith.constant 0 : index
    %c0_243 = arith.constant 0 : index
    %442 = vector.load %arg11[%c3_241, %c0_242, %c0_243] : memref<4x32x32xbf16, #tpu.memory_space<vmem>>, vector<1x32x32xbf16>
    %443 = vector.shape_cast %442 : vector<1x32x32xbf16> to vector<32x32xbf16>
    %cst_244 = arith.constant dense<0.000000e+00> : vector<16x32xf32>
    %444 = tpu.matmul %441, %443, %cst_244 {dimension_numbers = #tpu.dot_dimension_numbers<[1], [0], [0], [1], [0, 0, 1, 1], [], []>} : vector<16x32xbf16>, vector<32x32xbf16>, vector<16x32xf32> -> vector<16x32xf32>
    %c3_245 = arith.constant 3 : index
    %c0_246 = arith.constant 0 : index
    %c0_247 = arith.constant 0 : index
    %445 = vector.load %arg12[%c3_245, %c0_246, %c0_247] : memref<4x1x32xf32, #tpu.memory_space<vmem>>, vector<1x1x32xf32>
    %446 = vector.shape_cast %445 : vector<1x1x32xf32> to vector<1x32xf32>
    %447 = vector.broadcast %446 : vector<1x32xf32> to vector<16x32xf32>
    %448 = arith.addf %444, %447 : vector<16x32xf32>
    %449 = arith.addf %392, %448 : vector<16x32xf32>
    %c3_248 = arith.constant 3 : index
    %c0_249 = arith.constant 0 : index
    %c0_250 = arith.constant 0 : index
    %450 = vector.load %arg13[%c3_248, %c0_249, %c0_250] : memref<4x1x32xf32, #tpu.memory_space<vmem>>, vector<1x1x32xf32>
    %451 = vector.shape_cast %450 : vector<1x1x32xf32> to vector<1x32xf32>
    %c3_251 = arith.constant 3 : index
    %c0_252 = arith.constant 0 : index
    %c0_253 = arith.constant 0 : index
    %452 = vector.load %arg14[%c3_251, %c0_252, %c0_253] : memref<4x1x32xf32, #tpu.memory_space<vmem>>, vector<1x1x32xf32>
    %453 = vector.shape_cast %452 : vector<1x1x32xf32> to vector<1x32xf32>
    %cst_254 = arith.constant dense<0.000000e+00> : vector<16xf32>
    %454 = vector.multi_reduction <add>, %449, %cst_254 [1] : vector<16x32xf32> to vector<16xf32>
    %455 = vector.shape_cast %454 : vector<16xf32> to vector<16x1xf32>
    %cst_255 = arith.constant 3.200000e+01 : f32
    %456 = vector.broadcast %cst_255 : f32 to vector<16x1xf32>
    %457 = arith.divf %455, %456 : vector<16x1xf32>
    %458 = vector.broadcast %457 : vector<16x1xf32> to vector<16x32xf32>
    %459 = arith.subf %449, %458 : vector<16x32xf32>
    %460 = arith.mulf %459, %459 : vector<16x32xf32>
    %cst_256 = arith.constant dense<0.000000e+00> : vector<16xf32>
    %461 = vector.multi_reduction <add>, %460, %cst_256 [1] : vector<16x32xf32> to vector<16xf32>
    %462 = vector.shape_cast %461 : vector<16xf32> to vector<16x1xf32>
    %cst_257 = arith.constant 3.200000e+01 : f32
    %463 = vector.broadcast %cst_257 : f32 to vector<16x1xf32>
    %464 = arith.divf %462, %463 : vector<16x1xf32>
    %465 = vector.broadcast %457 : vector<16x1xf32> to vector<16x32xf32>
    %466 = arith.subf %449, %465 : vector<16x32xf32>
    %cst_258 = arith.constant 9.99999974E-6 : f32
    %467 = vector.broadcast %cst_258 : f32 to vector<16x1xf32>
    %468 = arith.addf %464, %467 : vector<16x1xf32>
    %469 = math.rsqrt %468 : vector<16x1xf32>
    %470 = vector.broadcast %469 : vector<16x1xf32> to vector<16x32xf32>
    %471 = arith.mulf %466, %470 : vector<16x32xf32>
    %472 = vector.broadcast %451 : vector<1x32xf32> to vector<16x32xf32>
    %473 = arith.mulf %471, %472 : vector<16x32xf32>
    %474 = vector.broadcast %453 : vector<1x32xf32> to vector<16x32xf32>
    %475 = arith.addf %473, %474 : vector<16x32xf32>
    %476 = arith.truncf %475 : vector<16x32xf32> to vector<16x32xbf16>
    %c3_259 = arith.constant 3 : index
    %c0_260 = arith.constant 0 : index
    %c0_261 = arith.constant 0 : index
    %477 = vector.load %arg15[%c3_259, %c0_260, %c0_261] : memref<4x32x512xbf16, #tpu.memory_space<vmem>>, vector<1x32x512xbf16>
    %478 = vector.shape_cast %477 : vector<1x32x512xbf16> to vector<32x512xbf16>
    %cst_262 = arith.constant dense<0.000000e+00> : vector<16x512xf32>
    %479 = tpu.matmul %476, %478, %cst_262 {dimension_numbers = #tpu.dot_dimension_numbers<[1], [0], [0], [1], [0, 0, 1, 1], [], []>} : vector<16x32xbf16>, vector<32x512xbf16>, vector<16x512xf32> -> vector<16x512xf32>
    %c3_263 = arith.constant 3 : index
    %c0_264 = arith.constant 0 : index
    %c0_265 = arith.constant 0 : index
    %480 = vector.load %arg16[%c3_263, %c0_264, %c0_265] : memref<4x1x512xf32, #tpu.memory_space<vmem>>, vector<1x1x512xf32>
    %481 = vector.shape_cast %480 : vector<1x1x512xf32> to vector<1x512xf32>
    %482 = vector.broadcast %481 : vector<1x512xf32> to vector<16x512xf32>
    %483 = arith.addf %479, %482 : vector<16x512xf32>
    %cst_266 = arith.constant 0.000000e+00 : f32
    %484 = vector.broadcast %cst_266 : f32 to vector<16x512xf32>
    %485 = arith.maximumf %483, %484 : vector<16x512xf32>
    %486 = arith.truncf %485 : vector<16x512xf32> to vector<16x512xbf16>
    %c3_267 = arith.constant 3 : index
    %c0_268 = arith.constant 0 : index
    %c0_269 = arith.constant 0 : index
    %487 = vector.load %arg17[%c3_267, %c0_268, %c0_269] : memref<4x512x32xbf16, #tpu.memory_space<vmem>>, vector<1x512x32xbf16>
    %488 = vector.shape_cast %487 : vector<1x512x32xbf16> to vector<512x32xbf16>
    %cst_270 = arith.constant dense<0.000000e+00> : vector<16x32xf32>
    %489 = tpu.matmul %486, %488, %cst_270 {dimension_numbers = #tpu.dot_dimension_numbers<[1], [0], [0], [1], [0, 0, 1, 1], [], []>} : vector<16x512xbf16>, vector<512x32xbf16>, vector<16x32xf32> -> vector<16x32xf32>
    %c3_271 = arith.constant 3 : index
    %c0_272 = arith.constant 0 : index
    %c0_273 = arith.constant 0 : index
    %490 = vector.load %arg18[%c3_271, %c0_272, %c0_273] : memref<4x1x32xf32, #tpu.memory_space<vmem>>, vector<1x1x32xf32>
    %491 = vector.shape_cast %490 : vector<1x1x32xf32> to vector<1x32xf32>
    %492 = vector.broadcast %491 : vector<1x32xf32> to vector<16x32xf32>
    %493 = arith.addf %489, %492 : vector<16x32xf32>
    %494 = arith.addf %475, %493 : vector<16x32xf32>
    %c3_274 = arith.constant 3 : index
    %c0_275 = arith.constant 0 : index
    %c0_276 = arith.constant 0 : index
    %495 = vector.load %arg19[%c3_274, %c0_275, %c0_276] : memref<4x1x32xf32, #tpu.memory_space<vmem>>, vector<1x1x32xf32>
    %496 = vector.shape_cast %495 : vector<1x1x32xf32> to vector<1x32xf32>
    %c3_277 = arith.constant 3 : index
    %c0_278 = arith.constant 0 : index
    %c0_279 = arith.constant 0 : index
    %497 = vector.load %arg20[%c3_277, %c0_278, %c0_279] : memref<4x1x32xf32, #tpu.memory_space<vmem>>, vector<1x1x32xf32>
    %498 = vector.shape_cast %497 : vector<1x1x32xf32> to vector<1x32xf32>
    %cst_280 = arith.constant dense<0.000000e+00> : vector<16xf32>
    %499 = vector.multi_reduction <add>, %494, %cst_280 [1] : vector<16x32xf32> to vector<16xf32>
    %500 = vector.shape_cast %499 : vector<16xf32> to vector<16x1xf32>
    %cst_281 = arith.constant 3.200000e+01 : f32
    %501 = vector.broadcast %cst_281 : f32 to vector<16x1xf32>
    %502 = arith.divf %500, %501 : vector<16x1xf32>
    %503 = vector.broadcast %502 : vector<16x1xf32> to vector<16x32xf32>
    %504 = arith.subf %494, %503 : vector<16x32xf32>
    %505 = arith.mulf %504, %504 : vector<16x32xf32>
    %cst_282 = arith.constant dense<0.000000e+00> : vector<16xf32>
    %506 = vector.multi_reduction <add>, %505, %cst_282 [1] : vector<16x32xf32> to vector<16xf32>
    %507 = vector.shape_cast %506 : vector<16xf32> to vector<16x1xf32>
    %cst_283 = arith.constant 3.200000e+01 : f32
    %508 = vector.broadcast %cst_283 : f32 to vector<16x1xf32>
    %509 = arith.divf %507, %508 : vector<16x1xf32>
    %510 = vector.broadcast %502 : vector<16x1xf32> to vector<16x32xf32>
    %511 = arith.subf %494, %510 : vector<16x32xf32>
    %cst_284 = arith.constant 9.99999974E-6 : f32
    %512 = vector.broadcast %cst_284 : f32 to vector<16x1xf32>
    %513 = arith.addf %509, %512 : vector<16x1xf32>
    %514 = math.rsqrt %513 : vector<16x1xf32>
    %515 = vector.broadcast %514 : vector<16x1xf32> to vector<16x32xf32>
    %516 = arith.mulf %511, %515 : vector<16x32xf32>
    %517 = vector.broadcast %496 : vector<1x32xf32> to vector<16x32xf32>
    %518 = arith.mulf %516, %517 : vector<16x32xf32>
    %519 = vector.broadcast %498 : vector<1x32xf32> to vector<16x32xf32>
    %520 = arith.addf %518, %519 : vector<16x32xf32>
    %521 = vector.extract_strided_slice %520 {offsets = [0, 0], sizes = [1, 32], strides = [1, 1]} : vector<16x32xf32> to vector<1x32xf32>
    %522 = arith.truncf %521 : vector<1x32xf32> to vector<1x32xbf16>
    %c0_285 = arith.constant 0 : index
    %c0_286 = arith.constant 0 : index
    %523 = vector.load %arg21[%c0_285, %c0_286] : memref<32x256xbf16, #tpu.memory_space<vmem>>, vector<32x256xbf16>
    %cst_287 = arith.constant dense<0.000000e+00> : vector<1x256xf32>
    %524 = tpu.matmul %522, %523, %cst_287 {dimension_numbers = #tpu.dot_dimension_numbers<[1], [0], [0], [1], [0, 0, 1, 1], [], []>} : vector<1x32xbf16>, vector<32x256xbf16>, vector<1x256xf32> -> vector<1x256xf32>
    %c0_288 = arith.constant 0 : index
    %c0_289 = arith.constant 0 : index
    %525 = vector.load %arg22[%c0_288, %c0_289] : memref<1x256xf32, #tpu.memory_space<vmem>>, vector<1x256xf32>
    %526 = arith.addf %524, %525 : vector<1x256xf32>
    %cst_290 = arith.constant 0.000000e+00 : f32
    %527 = vector.broadcast %cst_290 : f32 to vector<1x256xf32>
    %528 = arith.cmpf oge, %526, %527 : vector<1x256xf32>
    %cst_291 = arith.constant 0.00999999977 : f32
    %529 = vector.broadcast %cst_291 : f32 to vector<1x256xf32>
    %530 = arith.mulf %529, %526 : vector<1x256xf32>
    %531 = arith.select %528, %526, %530 : vector<1x256xi1>, vector<1x256xf32>
    %532 = arith.truncf %531 : vector<1x256xf32> to vector<1x256xbf16>
    %c0_292 = arith.constant 0 : index
    %c0_293 = arith.constant 0 : index
    %533 = vector.load %arg23[%c0_292, %c0_293] : memref<256x256xbf16, #tpu.memory_space<vmem>>, vector<256x256xbf16>
    %cst_294 = arith.constant dense<0.000000e+00> : vector<1x256xf32>
    %534 = tpu.matmul %532, %533, %cst_294 {dimension_numbers = #tpu.dot_dimension_numbers<[1], [0], [0], [1], [0, 0, 1, 1], [], []>} : vector<1x256xbf16>, vector<256x256xbf16>, vector<1x256xf32> -> vector<1x256xf32>
    %c0_295 = arith.constant 0 : index
    %c0_296 = arith.constant 0 : index
    %535 = vector.load %arg24[%c0_295, %c0_296] : memref<1x256xf32, #tpu.memory_space<vmem>>, vector<1x256xf32>
    %536 = arith.addf %534, %535 : vector<1x256xf32>
    %cst_297 = arith.constant 0.000000e+00 : f32
    %537 = vector.broadcast %cst_297 : f32 to vector<1x256xf32>
    %538 = arith.cmpf oge, %536, %537 : vector<1x256xf32>
    %cst_298 = arith.constant 0.00999999977 : f32
    %539 = vector.broadcast %cst_298 : f32 to vector<1x256xf32>
    %540 = arith.mulf %539, %536 : vector<1x256xf32>
    %541 = arith.select %538, %536, %540 : vector<1x256xi1>, vector<1x256xf32>
    %542 = arith.truncf %541 : vector<1x256xf32> to vector<1x256xbf16>
    %c0_299 = arith.constant 0 : index
    %c0_300 = arith.constant 0 : index
    %543 = vector.load %arg25[%c0_299, %c0_300] : memref<256x16xbf16, #tpu.memory_space<vmem>>, vector<256x16xbf16>
    %cst_301 = arith.constant dense<0.000000e+00> : vector<1x16xf32>
    %544 = tpu.matmul %542, %543, %cst_301 {dimension_numbers = #tpu.dot_dimension_numbers<[1], [0], [0], [1], [0, 0, 1, 1], [], []>} : vector<1x256xbf16>, vector<256x16xbf16>, vector<1x16xf32> -> vector<1x16xf32>
    %c0_302 = arith.constant 0 : index
    %c0_303 = arith.constant 0 : index
    %545 = vector.load %arg26[%c0_302, %c0_303] : memref<1x16xf32, #tpu.memory_space<vmem>>, vector<1x16xf32>
    %546 = arith.addf %544, %545 : vector<1x16xf32>
    %cst_304 = arith.constant 0.000000e+00 : f32
    %547 = vector.broadcast %cst_304 : f32 to vector<1x16xf32>
    %548 = arith.maximumf %546, %547 : vector<1x16xf32>
    %cst_305 = arith.constant 1.000000e-01 : f32
    %549 = vector.broadcast %cst_305 : f32 to vector<1x16xf32>
    %550 = arith.addf %548, %549 : vector<1x16xf32>
    %cst_306 = arith.constant dense<0.000000e+00> : vector<1xf32>
    %551 = vector.multi_reduction <add>, %550, %cst_306 [1] : vector<1x16xf32> to vector<1xf32>
    %552 = vector.shape_cast %551 : vector<1xf32> to vector<1x1xf32>
    %553 = vector.broadcast %552 : vector<1x1xf32> to vector<1x16xf32>
    %554 = arith.divf %550, %553 : vector<1x16xf32>
    %cst_307 = arith.constant 9.99899959 : f32
    %555 = vector.broadcast %cst_307 : f32 to vector<1x16xf32>
    %556 = arith.mulf %555, %554 : vector<1x16xf32>
    %c0_308 = arith.constant 0 : index
    %c0_309 = arith.constant 0 : index
    %557 = vector.load %arg28[%c0_308, %c0_309] : memref<16x16xf32, #tpu.memory_space<vmem>>, vector<16x16xf32>
    %cst_310 = arith.constant dense<0.000000e+00> : vector<1x16xf32>
    %558 = tpu.matmul %556, %557, %cst_310 {dimension_numbers = #tpu.dot_dimension_numbers<[1], [0], [0], [1], [0, 0, 1, 1], [], []>} : vector<1x16xf32>, vector<16x16xf32>, vector<1x16xf32> -> vector<1x16xf32>
    %cst_311 = arith.constant 1.000000e-03 : f32
    %559 = vector.broadcast %cst_311 : f32 to vector<1x16xf32>
    %560 = arith.addf %559, %558 : vector<1x16xf32>
    %561 = vector.shape_cast %560 : vector<1x16xf32> to vector<1x1x16xf32>
    %c0_312 = arith.constant 0 : index
    %c0_313 = arith.constant 0 : index
    %c0_314 = arith.constant 0 : index
    %562 = vector.load %arg29[%c0_312, %c0_313, %c0_314] : memref<1x1x16xf32, #tpu.memory_space<vmem>>, vector<1x1x16xf32>
    tpu.vector_store %arg29[%c0_312, %c0_313, %c0_314], %561 {strides = array<i32>} : memref<1x1x16xf32, #tpu.memory_space<vmem>>, vector<1x1x16xf32>,
    %563 = vector.extract_strided_slice %520 {offsets = [1, 0], sizes = [8, 32], strides = [1, 1]} : vector<16x32xf32> to vector<8x32xf32>
    %c0_315 = arith.constant 0 : index
    %c0_316 = arith.constant 0 : index
    %564 = vector.load %arg27[%c0_315, %c0_316] : memref<16x8xf32, #tpu.memory_space<vmem>>, vector<16x8xf32>
    %cst_317 = arith.constant dense<0.000000e+00> : vector<16x32xf32>
    %565 = tpu.matmul %564, %563, %cst_317 {dimension_numbers = #tpu.dot_dimension_numbers<[1], [0], [0], [1], [0, 0, 1, 1], [], []>} : vector<16x8xf32>, vector<8x32xf32>, vector<16x32xf32> -> vector<16x32xf32>
    %566 = vector.shape_cast %565 : vector<16x32xf32> to vector<1x16x32xf32>
    %c0_318 = arith.constant 0 : index
    %c0_319 = arith.constant 0 : index
    %c0_320 = arith.constant 0 : index
    %567 = vector.load %arg30[%c0_318, %c0_319, %c0_320] : memref<1x16x32xf32, #tpu.memory_space<vmem>>, vector<1x16x32xf32>
    tpu.vector_store %arg30[%c0_318, %c0_319, %c0_320], %566 {strides = array<i32>} : memref<1x16x32xf32, #tpu.memory_space<vmem>>, vector<1x16x32xf32>,
    return
  }
  func.func @transform_0(%arg0: i32) -> (i32, i32, i32) {
    %c0_i32 = arith.constant 0 : i32
    %c0_i32_0 = arith.constant 0 : i32
    %c0_i32_1 = arith.constant 0 : i32
    return %arg0, %c0_i32, %c0_i32_0 : i32, i32, i32
  }
  func.func @transform_1(%arg0: i32) -> (i32, i32) {
    %c0_i32 = arith.constant 0 : i32
    %c0_i32_0 = arith.constant 0 : i32
    %c0_i32_1 = arith.constant 0 : i32
    return %c0_i32, %c0_i32_0 : i32, i32
  }
  func.func @transform_2(%arg0: i32) -> (i32, i32) {
    %c0_i32 = arith.constant 0 : i32
    %c0_i32_0 = arith.constant 0 : i32
    %c0_i32_1 = arith.constant 0 : i32
    return %c0_i32, %c0_i32_0 : i32, i32
  }
  func.func @transform_3(%arg0: i32) -> (i32, i32) {
    %c0_i32 = arith.constant 0 : i32
    %c0_i32_0 = arith.constant 0 : i32
    %c0_i32_1 = arith.constant 0 : i32
    return %c0_i32, %c0_i32_0 : i32, i32
  }
  func.func @transform_4(%arg0: i32) -> (i32, i32, i32) {
    %c0_i32 = arith.constant 0 : i32
    %c0_i32_0 = arith.constant 0 : i32
    %c0_i32_1 = arith.constant 0 : i32
    %c0_i32_2 = arith.constant 0 : i32
    return %c0_i32, %c0_i32_0, %c0_i32_1 : i32, i32, i32
  }
  func.func @transform_5(%arg0: i32) -> (i32, i32, i32) {
    %c0_i32 = arith.constant 0 : i32
    %c0_i32_0 = arith.constant 0 : i32
    %c0_i32_1 = arith.constant 0 : i32
    %c0_i32_2 = arith.constant 0 : i32
    return %c0_i32, %c0_i32_0, %c0_i32_1 : i32, i32, i32
  }
  func.func @transform_6(%arg0: i32) -> (i32, i32, i32) {
    %c0_i32 = arith.constant 0 : i32
    %c0_i32_0 = arith.constant 0 : i32
    %c0_i32_1 = arith.constant 0 : i32
    %c0_i32_2 = arith.constant 0 : i32
    return %c0_i32, %c0_i32_0, %c0_i32_1 : i32, i32, i32
  }
  func.func @transform_7(%arg0: i32) -> (i32, i32, i32) {
    %c0_i32 = arith.constant 0 : i32
    %c0_i32_0 = arith.constant 0 : i32
    %c0_i32_1 = arith.constant 0 : i32
    %c0_i32_2 = arith.constant 0 : i32
    return %c0_i32, %c0_i32_0, %c0_i32_1 : i32, i32, i32
  }
  func.func @transform_8(%arg0: i32) -> (i32, i32, i32) {
    %c0_i32 = arith.constant 0 : i32
    %c0_i32_0 = arith.constant 0 : i32
    %c0_i32_1 = arith.constant 0 : i32
    %c0_i32_2 = arith.constant 0 : i32
    return %c0_i32, %c0_i32_0, %c0_i32_1 : i32, i32, i32
  }
  func.func @transform_9(%arg0: i32) -> (i32, i32, i32) {
    %c0_i32 = arith.constant 0 : i32
    %c0_i32_0 = arith.constant 0 : i32
    %c0_i32_1 = arith.constant 0 : i32
    %c0_i32_2 = arith.constant 0 : i32
    return %c0_i32, %c0_i32_0, %c0_i32_1 : i32, i32, i32
  }
  func.func @transform_10(%arg0: i32) -> (i32, i32, i32) {
    %c0_i32 = arith.constant 0 : i32
    %c0_i32_0 = arith.constant 0 : i32
    %c0_i32_1 = arith.constant 0 : i32
    %c0_i32_2 = arith.constant 0 : i32
    return %c0_i32, %c0_i32_0, %c0_i32_1 : i32, i32, i32
  }
  func.func @transform_11(%arg0: i32) -> (i32, i32, i32) {
    %c0_i32 = arith.constant 0 : i32
    %c0_i32_0 = arith.constant 0 : i32
    %c0_i32_1 = arith.constant 0 : i32
    %c0_i32_2 = arith.constant 0 : i32
    return %c0_i32, %c0_i32_0, %c0_i32_1 : i32, i32, i32
  }
  func.func @transform_12(%arg0: i32) -> (i32, i32, i32) {
    %c0_i32 = arith.constant 0 : i32
    %c0_i32_0 = arith.constant 0 : i32
    %c0_i32_1 = arith.constant 0 : i32
    %c0_i32_2 = arith.constant 0 : i32
    return %c0_i32, %c0_i32_0, %c0_i32_1 : i32, i32, i32
  }
  func.func @transform_13(%arg0: i32) -> (i32, i32, i32) {
    %c0_i32 = arith.constant 0 : i32
    %c0_i32_0 = arith.constant 0 : i32
    %c0_i32_1 = arith.constant 0 : i32
    %c0_i32_2 = arith.constant 0 : i32
    return %c0_i32, %c0_i32_0, %c0_i32_1 : i32, i32, i32
  }
  func.func @transform_14(%arg0: i32) -> (i32, i32, i32) {
    %c0_i32 = arith.constant 0 : i32
    %c0_i32_0 = arith.constant 0 : i32
    %c0_i32_1 = arith.constant 0 : i32
    %c0_i32_2 = arith.constant 0 : i32
    return %c0_i32, %c0_i32_0, %c0_i32_1 : i32, i32, i32
  }
  func.func @transform_15(%arg0: i32) -> (i32, i32, i32) {
    %c0_i32 = arith.constant 0 : i32
    %c0_i32_0 = arith.constant 0 : i32
    %c0_i32_1 = arith.constant 0 : i32
    %c0_i32_2 = arith.constant 0 : i32
    return %c0_i32, %c0_i32_0, %c0_i32_1 : i32, i32, i32
  }
  func.func @transform_16(%arg0: i32) -> (i32, i32, i32) {
    %c0_i32 = arith.constant 0 : i32
    %c0_i32_0 = arith.constant 0 : i32
    %c0_i32_1 = arith.constant 0 : i32
    %c0_i32_2 = arith.constant 0 : i32
    return %c0_i32, %c0_i32_0, %c0_i32_1 : i32, i32, i32
  }
  func.func @transform_17(%arg0: i32) -> (i32, i32, i32) {
    %c0_i32 = arith.constant 0 : i32
    %c0_i32_0 = arith.constant 0 : i32
    %c0_i32_1 = arith.constant 0 : i32
    %c0_i32_2 = arith.constant 0 : i32
    return %c0_i32, %c0_i32_0, %c0_i32_1 : i32, i32, i32
  }
  func.func @transform_18(%arg0: i32) -> (i32, i32, i32) {
    %c0_i32 = arith.constant 0 : i32
    %c0_i32_0 = arith.constant 0 : i32
    %c0_i32_1 = arith.constant 0 : i32
    %c0_i32_2 = arith.constant 0 : i32
    return %c0_i32, %c0_i32_0, %c0_i32_1 : i32, i32, i32
  }
  func.func @transform_19(%arg0: i32) -> (i32, i32, i32) {
    %c0_i32 = arith.constant 0 : i32
    %c0_i32_0 = arith.constant 0 : i32
    %c0_i32_1 = arith.constant 0 : i32
    %c0_i32_2 = arith.constant 0 : i32
    return %c0_i32, %c0_i32_0, %c0_i32_1 : i32, i32, i32
  }
  func.func @transform_20(%arg0: i32) -> (i32, i32) {
    %c0_i32 = arith.constant 0 : i32
    %c0_i32_0 = arith.constant 0 : i32
    %c0_i32_1 = arith.constant 0 : i32
    return %c0_i32, %c0_i32_0 : i32, i32
  }
  func.func @transform_21(%arg0: i32) -> (i32, i32) {
    %c0_i32 = arith.constant 0 : i32
    %c0_i32_0 = arith.constant 0 : i32
    %c0_i32_1 = arith.constant 0 : i32
    return %c0_i32, %c0_i32_0 : i32, i32
  }
  func.func @transform_22(%arg0: i32) -> (i32, i32) {
    %c0_i32 = arith.constant 0 : i32
    %c0_i32_0 = arith.constant 0 : i32
    %c0_i32_1 = arith.constant 0 : i32
    return %c0_i32, %c0_i32_0 : i32, i32
  }
  func.func @transform_23(%arg0: i32) -> (i32, i32) {
    %c0_i32 = arith.constant 0 : i32
    %c0_i32_0 = arith.constant 0 : i32
    %c0_i32_1 = arith.constant 0 : i32
    return %c0_i32, %c0_i32_0 : i32, i32
  }
  func.func @transform_24(%arg0: i32) -> (i32, i32) {
    %c0_i32 = arith.constant 0 : i32
    %c0_i32_0 = arith.constant 0 : i32
    %c0_i32_1 = arith.constant 0 : i32
    return %c0_i32, %c0_i32_0 : i32, i32
  }
  func.func @transform_25(%arg0: i32) -> (i32, i32) {
    %c0_i32 = arith.constant 0 : i32
    %c0_i32_0 = arith.constant 0 : i32
    %c0_i32_1 = arith.constant 0 : i32
    return %c0_i32, %c0_i32_0 : i32, i32
  }
  func.func @transform_26(%arg0: i32) -> (i32, i32) {
    %c0_i32 = arith.constant 0 : i32
    %c0_i32_0 = arith.constant 0 : i32
    %c0_i32_1 = arith.constant 0 : i32
    return %c0_i32, %c0_i32_0 : i32, i32
  }
  func.func @transform_27(%arg0: i32) -> (i32, i32) {
    %c0_i32 = arith.constant 0 : i32
    %c0_i32_0 = arith.constant 0 : i32
    %c0_i32_1 = arith.constant 0 : i32
    return %c0_i32, %c0_i32_0 : i32, i32
  }
  func.func @transform_28(%arg0: i32) -> (i32, i32, i32) {
    %c0_i32 = arith.constant 0 : i32
    %c0_i32_0 = arith.constant 0 : i32
    %c0_i32_1 = arith.constant 0 : i32
    return %arg0, %c0_i32, %c0_i32_0 : i32, i32, i32
  }
  func.func @transform_29(%arg0: i32) -> (i32, i32, i32) {
    %c0_i32 = arith.constant 0 : i32
    %c0_i32_0 = arith.constant 0 : i32
    %c0_i32_1 = arith.constant 0 : i32
    return %arg0, %c0_i32, %c0_i32_0 : i32, i32, i32
  }
}

</mosaic_0001>

<bundles_post_ra>
// kernel: lite_depth_decoder_forward.3
= control target key start
LH: loop header
LB: loop body
LE: loop exit
PB: predicated region body
PF: predicated region fallthrough
CT: control target
= control target key end

     0   :  { %s1476_s21 = smov 0   ;;  %s1478_s22 = smov 0   ;;  %s1768_s0 = inlined_call_operand.vmem [shape: bf16[2,256,36], index: 0, kind: input, shape index: {}]   ;;  %s1769_s1 = inlined_call_operand.vmem [shape: bf16[36,32], index: 1, kind: input, shape index: {}]   ;;  %s1770_s2 = inlined_call_operand.vmem [shape: f32[1,32], index: 2, kind: input, shape index: {}]   ;;  %s1771_s3 = inlined_call_operand.vmem [shape: f32[2,16,32], index: 3, kind: input, shape index: {}]   ;;  %s1772_s4 = inlined_call_operand.vmem [shape: f32[1,16], index: 4, kind: input, shape index: {}]   ;;  %s1773_s5 = inlined_call_operand.vmem [shape: f32[2,1,16], index: 5, kind: input, shape index: {}]   ;;  %s1774_s6 = inlined_call_operand.vmem [shape: f32[2,1,256], index: 6, kind: output, shape index: {}]  }
   0x1   :  { %s1480_s23 = smov 0   ;;  %s1482_s24 = smov 0  }
   0x2   :  { %s1484_s25 = smov 0  }
   0x3 LB: > { %s25_s26 = sadd.s32 1, %s1428_s23  ;;  %s28_s27 = sadd.s32 1, %s1432_s24  ;;  %s1436_s25 = sphi %s1484_s25, %s16_s25   ;;  %s1432_s24 = sphi %s1482_s24, %s1780_s24   ;;  %s1428_s23 = sphi %s1480_s23, %s1779_s23   ;;  %s1424_s22 = sphi %s1478_s22, %s1778_s22   ;;  %s1420_s21 = sphi %s1476_s21, %s1777_s21  }
   0x4   : > { %p26_p0 = scmp.ge.s32.totalorder %s25_s26, 2  ;;  %p1078_p1 = scmp.ge.s32.totalorder %s1436_s25, 1 }
   0x5   : > { %p251_p2 = scmp.lt.s32.totalorder %s1436_s25, 5 }
   0x6   : > { %s1782_s26 = smov (%p26_p0, %s25_s26), 0  ;;  %s1784_s27 = smov (!%p26_p0, %s28_s27), %s1432_s24 }
   0x7   : > { %p252_p3 = pnand %p1078_p1, %p251_p2  ;;  %p30_p4 = scmp.ge.s32.totalorder %s1784_s27, 2 }
   0x8   : > { %v1323_v0 = vld [vmem:[%s1769_s1] sm:$0xff] (!%p252_p3)   ;;  %v1324_v1 = vld [vmem:[%s1769_s1 + $0x8] sm:$0xff] (!%p252_p3)   ;;  %s1079_s8 = sshll.u32 (!%p252_p3), %s1420_s21, 4  ;;  %p296_p5 = scmp.lt.s32.totalorder (!%p252_p3), %s1424_s22, 1  ;;  %vm429_vm0 = vcmask (!%p252_p3), 1041408   ;;  %vm404_vm1 = vcmask (!%p252_p3), 293888  }
   0x9   : > { %s1786_s27 = smov (%p30_p4, %s1784_s27), 0  ;;  %255 = sbr.rel (%p252_p3) target bundleno = 1054 (0x41e), region = 44 }
   0xa   : > { %1171 = vmatprep.subr.bf16.mxu0 (!%p252_p3), %v1323_v0  ;;  %p298_p6 = scmp.lt.s32.totalorder (!%p252_p3), %s1079_s8, 31  ;;  %v1325_v2 = vld [vmem:[%s1769_s1 + $0x10] ss:$0 sps:$4 sm:$0x33] (!%p252_p3)   ;;  %vm548_vm2 = vcmask (!%p252_p3), 261120   ;;  %vm673_vm3 = vcmask (!%p252_p3), 130048  }
   0xb   : > { %1172 = vmatpush3.bf16.msra.mxu0 (!%p252_p3), %v1323_v0  ;;  %v431_v3 = vsel (!%p252_p3), %vm429_vm0, %v1325_v2, 0  ;;  %v1085_v17 = vld [vmem:[%s1770_s2] ss:$0 sm:$0xff] (!%p252_p3)  ;;  %vm1439_vm4 = vmmov (!%p252_p3), 0   ;;  %vm1701_vm5 = vmpackc.low (!%p252_p3), %vm673_vm3, %vm673_vm3  ;;  %p315_p7 = scmp.lt.s32.totalorder (!%p252_p3), %s1420_s21, 1 }
   0xc   : > { %1173 = vmatprep.subr.bf16.mxu0 (!%p252_p3), %v1324_v1  ;;  %v1105_v57 = vld [vmem:[%s1772_s4] ss:$0 sm:$0xff] (!%p252_p3) }
   0xf   : > { %1174 = vmatpush3.bf16.msra.mxu0 (!%p252_p3), %v1324_v1 }
  0x10   : > { %s1788_s22 = smov (!%p296_p5, %s1424_s22), 1  ;;  %s1790_s8 = smov (!%p298_p6, %s1079_s8), 31  ;;  %1278 = vmatprep.subr.msk.bf16.mxu0 %vm429_vm0, %v1325_v2 }
  0x11   : > { %s1080_s11 = sshll.u32 %s1788_s22, 5  ;;  %s1133_s17 = sshll.u32 %s1788_s22, 4 }
  0x12   : > { %s301_s12 = sadd.s32 %s1080_s11, %s1790_s8  ;;  %s309_s20 = scalar_lea.vmem %s1771_s3, %s1133_s17 }
  0x13   : > { %s1081_s13 = sshll.u32 %s301_s12, 2  ;;  %1176 = vmatpush3.bf16.msra.mxu0 %v431_v3  ;;  %v538_v12 = vld [vmem:[%s309_s20] sm:$0xff]  ;;  %v539_v13 = vld [vmem:[%s309_s20 + $0x8] sm:$0xff]  ;;  %s312_s10 = scalar_lea.vmem %s1773_s5, %s1788_s22 }
  0x14   : > { %s303_s16 = scalar_lea.vmem %s1768_s0, %s1081_s13  ;;  %v540_v14 = vpack.c.bf16 %v539_v13, %v538_v12  ;;  %s1792_s21 = smov (!%p315_p7, %s1420_s21), 1 }
  0x15   : > { %v1326_v4 = vld [vmem:[%s303_s16] sm:$0xff]   ;;  %v1327_v5 = vld [vmem:[%s303_s16 + $0x8] sm:$0xff]   ;;  %v1328_v6 = vld [vmem:[%s303_s16 + $0x10] sm:$0xff]   ;;  %s1084_s11 = sshll.u32 %s1788_s22, 1 }
  0x16   : > { %1177 = vmatprep.mubr.msk.bf16.mxu0 %vm404_vm1, %v1326_v4  ;;  %v1329_v7 = vld [vmem:[%s303_s16 + $0x18] sm:$0xff]   ;;  %v1330_v8 = vld [vmem:[%s303_s16 + $0x20] sm:$0xff]   ;;  %v1331_v9 = vld [vmem:[%s303_s16 + $0x28] sm:$0xff]   ;;  %1279 = vmatprep.subr.msk.bf16.mxu1 %vm548_vm2, %v540_v14  ;;  %v574_v15 = vsel %vm548_vm2, %v540_v14, 0  ;;  %s318_s12 = sadd.s32 %s1084_s11, %s1792_s21 }
  0x17   : > { %1178 = vmatmul.mubr.msk.bf16.vlgmr.msra.gmra.mrb[0].mxu0 %vm404_vm1, %v1327_v5  ;;  %v1332_v10 = vld [vmem:[%s303_s16 + $0x30] sm:$0xff]   ;;  %v1333_v11 = vld [vmem:[%s303_s16 + $0x38] sm:$0xff]   ;;  %1194 = vmatpush3.bf16.xpose.msra.mxu1 %v574_v15  ;;  %s319_s15 = scalar_lea.vmem %s1774_s6, %s318_s12 }
  0x18   : > { %1181 = vmatprep.mubr.msk.bf16.mxu0 %vm404_vm1, %v1328_v6 }
  0x1f   : > { %1182 = vmatmul.mubr.msk.bf16.gmra.mrb[4].mxu0 %vm404_vm1, %v1329_v7 }
  0x20   : > { %1185 = vmatprep.mubr.msk.bf16.mxu0 %vm404_vm1, %v1330_v8 }
  0x27   : > { %1186 = vmatmul.mubr.msk.bf16.gmra.mrb[8].mxu0 %vm404_vm1, %v1331_v9 }
  0x28   : > { %1189 = vmatprep.mubr.msk.bf16.mxu0 %vm404_vm1, %v1332_v10 }
  0x2f   : > { %1190 = vmatmul.mubr.msk.bf16.gmra.mrb[12].mxu0 %vm404_vm1, %v1333_v11 }
  0xea   : > { %v1179_v16 = vpop.f32.mrb[0].mxu0 }
  0xeb   : > { %v467_v18 = vpop.f32.mrb[1].mxu0  ;;  %v476_v20 = vadd.f32 %v1179_v16, %v1085_v17 }
  0xec   : > { %v1180_v19 = vpop.f32.mrb[2].mxu0  ;;  %v468_v23 = vadd.f32 %v1085_v17, %v467_v18 }
  0xed   : > { %v479_v21 = vadd.f32 %v1180_v19, %v1085_v17  ;;  %v470_v22 = vpop.f32.mrb[3].mxu0 }
  0xee   : > { %v471_v24 = vadd.f32 %v1085_v17, %v470_v22 }
  0xef   : > { %v531_v25 = vpack.c.bf16 %v479_v21, %v476_v20 }
  0xf0   : > { %v530_v26 = vpack.c.bf16 %v471_v24, %v468_v23 }
  0xf2   : > { %v1183_v27 = vpop.f32.mrb[4].mxu0  ;;  %1195 = vmatprep.mubr.msk.bf16.mxu1 %vm548_vm2, %v530_v26 }
  0xf3   : > { %v492_v28 = vadd.f32 %v1183_v27, %v1085_v17  ;;  %v483_v29 = vpop.f32.mrb[5].mxu0  ;;  %1196 = vmatmul.mubr.msk.bf16.vlgmr.msra.gmra.mrb[0].mxu1 %vm548_vm2, %v531_v25 }
  0xf4   : > { %v484_v30 = vadd.f32 %v1085_v17, %v483_v29  ;;  %v1184_v31 = vpop.f32.mrb[6].mxu0 }
  0xf5   : > { %v495_v32 = vadd.f32 %v1184_v31, %v1085_v17  ;;  %v486_v33 = vpop.f32.mrb[7].mxu0 }
  0xf6   : > { %v487_v34 = vadd.f32 %v1085_v17, %v486_v33 }
  0xf7   : > { %v533_v35 = vpack.c.bf16 %v495_v32, %v492_v28 }
  0xf8   : > { %v532_v36 = vpack.c.bf16 %v487_v34, %v484_v30 }
  0xfa   : > { %v1187_v37 = vpop.f32.mrb[8].mxu0  ;;  %1199 = vmatprep.mubr.msk.bf16.mxu1 %vm548_vm2, %v532_v36 }
  0xfb   : > { %v508_v38 = vadd.f32 %v1187_v37, %v1085_v17  ;;  %v499_v39 = vpop.f32.mrb[9].mxu0  ;;  %1200 = vmatmul.mubr.msk.bf16.gmra.mrb[4].mxu1 %vm548_vm2, %v533_v35 }
  0xfc   : > { %v500_v40 = vadd.f32 %v1085_v17, %v499_v39  ;;  %v1188_v41 = vpop.f32.mrb[10].mxu0 }
  0xfd   : > { %v511_v42 = vadd.f32 %v1188_v41, %v1085_v17  ;;  %v502_v43 = vpop.f32.mrb[11].mxu0 }
  0xfe   : > { %v503_v44 = vadd.f32 %v1085_v17, %v502_v43 }
  0xff   : > { %v535_v45 = vpack.c.bf16 %v511_v42, %v508_v38 }
 0x100   : > { %v534_v46 = vpack.c.bf16 %v503_v44, %v500_v40 }
 0x102   : > { %v1191_v47 = vpop.f32.mrb[12].mxu0  ;;  %1203 = vmatprep.mubr.msk.bf16.mxu1 %vm548_vm2, %v534_v46 }
 0x103   : > { %v524_v48 = vadd.f32 %v1191_v47, %v1085_v17  ;;  %v515_v49 = vpop.f32.mrb[13].mxu0  ;;  %1204 = vmatmul.mubr.msk.bf16.gmra.mrb[8].mxu1 %vm548_vm2, %v535_v45 }
 0x104   : > { %v516_v50 = vadd.f32 %v1085_v17, %v515_v49  ;;  %v1192_v51 = vpop.f32.mrb[14].mxu0 }
 0x105   : > { %v527_v52 = vadd.f32 %v1192_v51, %v1085_v17  ;;  %v518_v53 = vpop.f32.mrb[15].mxu0 }
 0x106   : > { %v519_v54 = vadd.f32 %v1085_v17, %v518_v53 }
 0x107   : > { %v537_v55 = vpack.c.bf16 %v527_v52, %v524_v48 }
 0x108   : > { %v536_v56 = vpack.c.bf16 %v519_v54, %v516_v50 }
 0x10a   : > { %1207 = vmatprep.mubr.msk.bf16.mxu1 %vm548_vm2, %v536_v56 }
 0x10b   : > { %1208 = vmatmul.mubr.msk.bf16.gmra.mrb[12].mxu1 %vm548_vm2, %v537_v55 }
 0x1c6   : > { %v1197_v58 = vpop.f32.mrb[0].mxu1 }
 0x1c7   : > { %v1552_v59 = vadd.f32 %v1197_v58, %v1105_v57  ;;  %v610_v60 = vpop.f32.mrb[1].mxu1 }
 0x1c8   : > { %v1554_v61 = vadd.f32 %v1105_v57, %v610_v60  ;;  %v1198_v62 = vpop.f32.mrb[2].mxu1 }
 0x1c9   : > { %v1556_v63 = vadd.f32 %v1198_v62, %v1105_v57  ;;  %v613_v0 = vpop.f32.mrb[3].mxu1  ;;  %v680_v1 = vsel %vm673_vm3, %v1552_v59, -inf }
 0x1ca   : > { %v1560_v2 = vadd.f32 %v1105_v57, %v613_v0  ;;  %681 = vmax.xlane.f32.xlu1 %v680_v1  ;;  %v674_v3 = vsel %vm673_vm3, %v1554_v61, -inf }
 0x1cb   : > { %675 = vmax.xlane.f32.xlu0 %v674_v3  ;;  %v683_v4 = vsel %vm673_vm3, %v1556_v63, -inf }
 0x1cc   : > { %v677_v6 = vsel %vm673_vm3, %v1560_v2, -inf }
 0x1ce   : > { %684 = vmax.xlane.f32.xlu1 %v683_v4  ;;  %v1201_v5 = vpop.f32.mrb[4].mxu1 }
 0x1cf   : > { %v626_v7 = vpop.f32.mrb[5].mxu1  ;;  %678 = vmax.xlane.f32.xlu0 %v677_v6  ;;  %v1568_v8 = vadd.f32 %v1201_v5, %v1105_v57 }
 0x1d0   : > { %v1570_v9 = vadd.f32 %v1105_v57, %v626_v7  ;;  %v1202_v10 = vpop.f32.mrb[6].mxu1 }
 0x1d1   : > { %v629_v11 = vpop.f32.mrb[7].mxu1  ;;  %v1572_v12 = vadd.f32 %v1202_v10, %v1105_v57  ;;  %v692_v16 = vsel %vm673_vm3, %v1568_v8, -inf }
 0x1d2   : > { %v1574_v13 = vadd.f32 %v1105_v57, %v629_v11  ;;  %v686_v14 = vsel %vm673_vm3, %v1570_v9, -inf }
 0x1d3   : > { %687 = vmax.xlane.f32.xlu0 %v686_v14  ;;  %v695_v18 = vsel %vm673_vm3, %v1572_v12, -inf }
 0x1d4   : > { %v689_v15 = vsel %vm673_vm3, %v1574_v13, -inf }
 0x1d5   : > { %690 = vmax.xlane.f32.xlu1 %v689_v15 }
 0x1d6   : > { %v1205_v17 = vpop.f32.mrb[8].mxu1 }
 0x1d7   : > { %v642_v19 = vpop.f32.mrb[9].mxu1  ;;  %693 = vmax.xlane.f32.xlu0 %v692_v16  ;;  %v1584_v20 = vadd.f32 %v1205_v17, %v1105_v57 }
 0x1d8   : > { %v1586_v21 = vadd.f32 %v1105_v57, %v642_v19  ;;  %v1206_v22 = vpop.f32.mrb[10].mxu1 }
 0x1d9   : > { %v645_v23 = vpop.f32.mrb[11].mxu1  ;;  %696 = vmax.xlane.f32.xlu1 %v695_v18  ;;  %v1588_v24 = vadd.f32 %v1206_v22, %v1105_v57  ;;  %v704_v28 = vsel %vm673_vm3, %v1584_v20, -inf }
 0x1da   : > { %v1590_v25 = vadd.f32 %v1105_v57, %v645_v23  ;;  %v698_v26 = vsel %vm673_vm3, %v1586_v21, -inf }
 0x1db   : > { %699 = vmax.xlane.f32.xlu0 %v698_v26  ;;  %v707_v30 = vsel %vm673_vm3, %v1588_v24, -inf }
 0x1dc   : > { %v701_v27 = vsel %vm673_vm3, %v1590_v25, -inf }
 0x1dd   : > { %702 = vmax.xlane.f32.xlu1 %v701_v27 }
 0x1de   : > { %v1209_v29 = vpop.f32.mrb[12].mxu1 }
 0x1df   : > { %v658_v31 = vpop.f32.mrb[13].mxu1  ;;  %705 = vmax.xlane.f32.xlu0 %v704_v28  ;;  %v1600_v32 = vadd.f32 %v1209_v29, %v1105_v57 }
 0x1e0   : > { %v1602_v33 = vadd.f32 %v1105_v57, %v658_v31  ;;  %v1210_v34 = vpop.f32.mrb[14].mxu1 }
 0x1e1   : > { %v661_v35 = vpop.f32.mrb[15].mxu1  ;;  %708 = vmax.xlane.f32.xlu1 %v707_v30  ;;  %v1604_v36 = vadd.f32 %v1210_v34, %v1105_v57  ;;  %v716_v40 = vsel %vm673_vm3, %v1600_v32, -inf }
 0x1e2   : > { %v1606_v37 = vadd.f32 %v1105_v57, %v661_v35  ;;  %v710_v38 = vsel %vm673_vm3, %v1602_v33, -inf }
 0x1e3   : > { %711 = vmax.xlane.f32.xlu0 %v710_v38  ;;  %v719_v41 = vsel %vm673_vm3, %v1604_v36, -inf }
 0x1e4   : > { %v713_v39 = vsel %vm673_vm3, %v1606_v37, -inf }
 0x1e5   : > { %714 = vmax.xlane.f32.xlu1 %v713_v39 }
 0x1e7   : > { %717 = vmax.xlane.f32.xlu0 %v716_v40 }
 0x1e9   : > { %720 = vmax.xlane.f32.xlu1 %v719_v41 }
 0x257   : > { %v682_v42 = vpop.xlane.xlu1 %681 }
 0x258   : > { %v724_v43 = vsub.f32 %v1552_v59, %v682_v42  ;;  %v676_v44 = vpop.xlane.xlu0 %675 }
 0x259   : > { %v722_v45 = vsub.f32 %v1554_v61, %v676_v44 }
 0x25a   : > { %v742_v46 = vmul.f32 1.442695, %v724_v43 }
 0x25b   : > { %v738_v47 = vmul.f32 1.442695, %v722_v45  ;;  %v685_v48 = vpop.xlane.xlu1 %684 }
 0x25c   : > { %v725_v49 = vsub.f32 %v1556_v63, %v685_v48  ;;  %v679_v50 = vpop.xlane.xlu0 %678 }
 0x25d   : > { %1334 = vpow2.f32 %v738_v47  ;;  %v723_v51 = vsub.f32 %v1560_v2, %v679_v50 }
 0x25e   : > { %1336 = vpow2.f32 %v742_v46  ;;  %v744_v52 = vmul.f32 1.442695, %v725_v49 }
 0x25f   : > { %v740_v53 = vmul.f32 1.442695, %v723_v51 }
 0x260   : > { %v688_v54 = vpop.xlane.xlu0 %687 }
 0x261   : > { %1338 = vpow2.f32 %v740_v53  ;;  %v726_v55 = vsub.f32 %v1570_v9, %v688_v54 }
 0x262   : > { %v691_v56 = vpop.xlane.xlu1 %690  ;;  %1340 = vpow2.f32 %v744_v52 }
 0x263   : > { %v746_v57 = vmul.f32 1.442695, %v726_v55  ;;  %v727_v58 = vsub.f32 %v1574_v13, %v691_v56 }
 0x264   : > { %v694_v59 = vpop.xlane.xlu0 %693 }
 0x265   : > { %1342 = vpow2.f32 %v746_v57  ;;  %v748_v60 = vmul.f32 1.442695, %v727_v58  ;;  %v728_v61 = vsub.f32 %v1568_v8, %v694_v59  ;;  %v1438_v58 = vmov 0.0|0.0  }
 0x266   : > { %v697_v62 = vpop.xlane.xlu1 %696  ;;  %1246 = vmatprep.subr.bf16.mxu1 %v1438_v58  ;;  %v1440_v59 = vmov 0.0  }
 0x267   : > { %v1623_v63 = vpop.eup %1334  ;;  %1344 = vpow2.f32 %v748_v60  ;;  %v750_v0 = vmul.f32 1.442695, %v728_v61  ;;  %v729_v1 = vsub.f32 %v1572_v12, %v697_v62  ;;  %1243 = vmatprep.mubr.msk.f32.mxu1 %vm1439_vm4, %v1440_v59 }
 0x268   : > { %v700_v2 = vpop.xlane.xlu0 %699  ;;  %v770_v3 = vsel %vm673_vm3, %v1623_v63, 0.0  ;;  %v1628_v4 = vpop.eup %1336 }
 0x269   : > { %1346 = vpow2.f32 %v750_v0  ;;  %v752_v5 = vmul.f32 1.442695, %v729_v1  ;;  %v730_v6 = vsub.f32 %v1586_v21, %v700_v2  ;;  %771 = vadd.xlane.f32.xlu0 %v770_v3  ;;  %v776_v12 = vsel %vm673_vm3, %v1628_v4, 0.0 }
 0x26a   : > { %v703_v7 = vpop.xlane.xlu1 %702 }
 0x26b   : > { %v1631_v8 = vpop.eup %1338  ;;  %1348 = vpow2.f32 %v752_v5  ;;  %v754_v9 = vmul.f32 1.442695, %v730_v6  ;;  %v731_v10 = vsub.f32 %v1590_v25, %v703_v7 }
 0x26c   : > { %v706_v11 = vpop.xlane.xlu0 %705  ;;  %v773_v13 = vsel %vm673_vm3, %v1631_v8, 0.0  ;;  %v1638_v14 = vpop.eup %1340 }
 0x26d   : > { %1350 = vpow2.f32 %v754_v9  ;;  %v756_v15 = vmul.f32 1.442695, %v731_v10  ;;  %v732_v16 = vsub.f32 %v1584_v20, %v706_v11  ;;  %777 = vadd.xlane.f32.xlu0 %v776_v12  ;;  %774 = vadd.xlane.f32.xlu1 %v773_v13  ;;  %v779_v23 = vsel %vm673_vm3, %v1638_v14, 0.0 }
 0x26e   : > { %v709_v17 = vpop.xlane.xlu1 %708 }
 0x26f   : > { %v1641_v18 = vpop.eup %1342  ;;  %1352 = vpow2.f32 %v756_v15  ;;  %v758_v19 = vmul.f32 1.442695, %v732_v16  ;;  %v733_v21 = vsub.f32 %v1588_v24, %v709_v17 }
 0x270   : > { %v712_v22 = vpop.xlane.xlu0 %711  ;;  %v782_v25 = vsel %vm673_vm3, %v1641_v18, 0.0 }
 0x271   : > { %v1648_v26 = vpop.eup %1344  ;;  %1354 = vpow2.f32 %v758_v19  ;;  %v760_v20 = vmul.f32 1.442695, %v733_v21  ;;  %v734_v27 = vsub.f32 %v1602_v33, %v712_v22  ;;  %780 = vadd.xlane.f32.xlu1 %v779_v23  ;;  %783 = vadd.xlane.f32.xlu0 %v782_v25 }
 0x272   : > { %v715_v28 = vpop.xlane.xlu1 %714  ;;  %v785_v34 = vsel %vm673_vm3, %v1648_v26, 0.0 }
 0x273   : > { %v1651_v29 = vpop.eup %1346  ;;  %1356 = vpow2.f32 %v760_v20  ;;  %v762_v24 = vmul.f32 1.442695, %v734_v27  ;;  %v735_v30 = vsub.f32 %v1606_v37, %v715_v28 }
 0x274   : > { %v718_v31 = vpop.xlane.xlu0 %717  ;;  %v788_v35 = vsel %vm673_vm3, %v1651_v29, 0.0 }
 0x275   : > { %v1658_v38 = vpop.eup %1348  ;;  %1358 = vpow2.f32 %v762_v24  ;;  %v764_v33 = vmul.f32 1.442695, %v735_v30  ;;  %v736_v39 = vsub.f32 %v1600_v32, %v718_v31  ;;  %786 = vadd.xlane.f32.xlu1 %v785_v34  ;;  %789 = vadd.xlane.f32.xlu0 %v788_v35 }
 0x276   : > { %v721_v40 = vpop.xlane.xlu1 %720  ;;  %v791_v43 = vsel %vm673_vm3, %v1658_v38, 0.0 }
 0x277   : > { %v1661_v41 = vpop.eup %1350  ;;  %1360 = vpow2.f32 %v764_v33  ;;  %v766_v37 = vmul.f32 1.442695, %v736_v39  ;;  %v737_v42 = vsub.f32 %v1604_v36, %v721_v40 }
 0x278   : > { %v794_v44 = vsel %vm673_vm3, %v1661_v41, 0.0 }
 0x279   : > { %v1668_v45 = vpop.eup %1352  ;;  %1362 = vpow2.f32 %v766_v37  ;;  %v768_v46 = vmul.f32 1.442695, %v737_v42  ;;  %792 = vadd.xlane.f32.xlu1 %v791_v43  ;;  %795 = vadd.xlane.f32.xlu0 %v794_v44 }
 0x27a   : > { %v797_v47 = vsel %vm673_vm3, %v1668_v45, 0.0 }
 0x27b   : > { %v1670_v32 = vpop.eup %1354  ;;  %1364 = vpow2.f32 %v768_v46 }
 0x27c   : > { %v800_v36 = vsel %vm673_vm3, %v1670_v32, 0.0 }
 0x27d   : > { %v1676_v48 = vpop.eup %1356  ;;  %798 = vadd.xlane.f32.xlu1 %v797_v47  ;;  %801 = vadd.xlane.f32.xlu0 %v800_v36 }
 0x27e   : > { %v803_v50 = vsel %vm673_vm3, %v1676_v48, 0.0 }
 0x27f   : > { %v1678_v49 = vpop.eup %1358 }
 0x280   : > { %v806_v51 = vsel %vm673_vm3, %v1678_v49, 0.0 }
 0x281   : > { %v1684_v52 = vpop.eup %1360  ;;  %804 = vadd.xlane.f32.xlu1 %v803_v50  ;;  %807 = vadd.xlane.f32.xlu0 %v806_v51 }
 0x282   : > { %v809_v54 = vsel %vm673_vm3, %v1684_v52, 0.0 }
 0x283   : > { %v1686_v53 = vpop.eup %1362 }
 0x284   : > { %v812_v55 = vsel %vm673_vm3, %v1686_v53, 0.0 }
 0x285   : > { %v1692_v56 = vpop.eup %1364  ;;  %810 = vadd.xlane.f32.xlu1 %v809_v54  ;;  %813 = vadd.xlane.f32.xlu0 %v812_v55 }
 0x286   : > { %v815_v57 = vsel %vm673_vm3, %v1692_v56, 0.0 }
 0x289   : > { %816 = vadd.xlane.f32.xlu1 %v815_v57 }
 0x2f6   : > { %v772_v60 = vpop.xlane.xlu0 %771 }
 0x2f7   : > { %1366 = vrcp.f32 %v772_v60 }
 0x2fa   : > { %v775_v61 = vpop.xlane.xlu1 %774  ;;  %v778_v62 = vpop.xlane.xlu0 %777 }
 0x2fb   : > { %1368 = vrcp.f32 %v775_v61 }
 0x2fe   : > { %v781_v0 = vpop.xlane.xlu1 %780  ;;  %v784_v7 = vpop.xlane.xlu0 %783 }
 0x2ff   : > { %1370 = vrcp.f32 %v781_v0 }
 0x300   : > { %1372 = vrcp.f32 %v778_v62 }
 0x301   : > { %v1367_v1 = vpop.eup %1366 }
 0x302   : > { %v787_v2 = vpop.xlane.xlu1 %786  ;;  %v834_v5 = vmul.f32 %v1367_v1, %v1623_v63  ;;  %v790_v15 = vpop.xlane.xlu0 %789 }
 0x303   : > { %1374 = vrcp.f32 %v787_v2 }
 0x304   : > { %1376 = vrcp.f32 %v784_v7 }
 0x305   : > { %v1369_v3 = vpop.eup %1368 }
 0x306   : > { %v835_v6 = vmul.f32 %v1369_v3, %v1631_v8  ;;  %v793_v8 = vpop.xlane.xlu1 %792 }
 0x307   : > { %1378 = vrcp.f32 %v793_v8 }
 0x308   : > { %v1247_v10 = vpack.c.bf16 %v835_v6, %v834_v5  ;;  %1380 = vrcp.f32 %v790_v15 }
 0x309   : > { %v1371_v11 = vpop.eup %1370 }
 0x30a   : > { %1249 = vmatpush3.bf16.xpose.msk.msra.mxu1 %vm1701_vm5, %v1247_v10  ;;  %v1373_v12 = vpop.eup %1372  ;;  %v837_v63 = vmul.f32 %v1371_v11, %v1638_v14  ;;  %v799_v22 = vpop.xlane.xlu1 %798 }
 0x30b   : > { %1250 = vmatprep.subr.bf16.mxu1 %v1438_v58  ;;  %v836_v13 = vmul.f32 %v1373_v12, %v1628_v4  ;;  %v796_v14 = vpop.xlane.xlu0 %795  ;;  %1382 = vrcp.f32 %v799_v22 }
 0x30c   : > { %1384 = vrcp.f32 %v796_v14 }
 0x30d   : > { %v1251_v16 = vpack.c.bf16 %v837_v63, %v836_v13  ;;  %v1375_v17 = vpop.eup %1374 }
 0x30e   : > { %v1377_v19 = vpop.eup %1376  ;;  %v839_v21 = vmul.f32 %v1375_v17, %v1648_v26  ;;  %v805_v28 = vpop.xlane.xlu1 %804 }
 0x30f   : > { %v838_v23 = vmul.f32 %v1377_v19, %v1641_v18  ;;  %v802_v26 = vpop.xlane.xlu0 %801  ;;  %1386 = vrcp.f32 %v805_v28 }
 0x310   : > { %1388 = vrcp.f32 %v802_v26 }
 0x311   : > { %v1255_v25 = vpack.c.bf16 %v839_v21, %v838_v23  ;;  %v1379_v4 = vpop.eup %1378 }
 0x312   : > { %1253 = vmatpush3.bf16.xpose.msk.msra.mxu1 %vm1701_vm5, %v1251_v16  ;;  %v1381_v20 = vpop.eup %1380  ;;  %v841_v27 = vmul.f32 %v1379_v4, %v1658_v38  ;;  %v811_v35 = vpop.xlane.xlu1 %810 }
 0x313   : > { %1254 = vmatprep.subr.bf16.mxu1 %v1438_v58  ;;  %v840_v24 = vmul.f32 %v1381_v20, %v1651_v29  ;;  %v808_v38 = vpop.xlane.xlu0 %807  ;;  %1390 = vrcp.f32 %v811_v35 }
 0x314   : > { %1392 = vrcp.f32 %v808_v38 }
 0x315   : > { %v1259_v30 = vpack.c.bf16 %v841_v27, %v840_v24  ;;  %v1383_v18 = vpop.eup %1382 }
 0x316   : > { %v1385_v31 = vpop.eup %1384  ;;  %v843_v34 = vmul.f32 %v1383_v18, %v1668_v45  ;;  %v817_v42 = vpop.xlane.xlu1 %816 }
 0x317   : > { %v842_v33 = vmul.f32 %v1385_v31, %v1661_v41  ;;  %v814_v44 = vpop.xlane.xlu0 %813  ;;  %1394 = vrcp.f32 %v817_v42 }
 0x318   : > { %1396 = vrcp.f32 %v814_v44 }
 0x319   : > { %v1263_v39 = vpack.c.bf16 %v843_v34, %v842_v33  ;;  %v1387_v29 = vpop.eup %1386 }
 0x31a   : > { %1257 = vmatpush3.bf16.xpose.msk.msra.mxu1 %vm1701_vm5, %v1255_v25  ;;  %v1389_v40 = vpop.eup %1388  ;;  %v845_v37 = vmul.f32 %v1387_v29, %v1676_v48 }
 0x31b   : > { %1258 = vmatprep.subr.bf16.mxu1 %v1438_v58  ;;  %v844_v43 = vmul.f32 %v1389_v40, %v1670_v32 }
 0x31d   : > { %v1267_v45 = vpack.c.bf16 %v845_v37, %v844_v43  ;;  %v1391_v41 = vpop.eup %1390 }
 0x31e   : > { %v1393_v46 = vpop.eup %1392  ;;  %v847_v47 = vmul.f32 %v1391_v41, %v1684_v52 }
 0x31f   : > { %v846_v36 = vmul.f32 %v1393_v46, %v1678_v49  ;;  %v850_v49 = vld [vmem:[%s312_s10] sm:$0x1] }
 0x321   : > { %v1271_v32 = vpack.c.bf16 %v847_v47, %v846_v36  ;;  %v1395_v48 = vpop.eup %1394 }
 0x322   : > { %1261 = vmatpush3.bf16.xpose.msk.msra.mxu1 %vm1701_vm5, %v1259_v30  ;;  %v1397_v50 = vpop.eup %1396  ;;  %v849_v51 = vmul.f32 %v1395_v48, %v1692_v56 }
 0x323   : > { %1262 = vmatprep.subr.bf16.mxu1 %v1438_v58  ;;  %v848_v54 = vmul.f32 %v1397_v50, %v1686_v53 }
 0x325   : > { %v1275_v55 = vpack.c.bf16 %v849_v51, %v848_v54 }
 0x32a   : > { %1265 = vmatpush3.bf16.xpose.msk.msra.mxu1 %vm1701_vm5, %v1263_v39 }
 0x32b   : > { %1266 = vmatprep.subr.bf16.mxu1 %v1438_v58 }
 0x332   : > { %1269 = vmatpush3.bf16.xpose.msk.msra.mxu1 %vm1701_vm5, %v1267_v45 }
 0x333   : > { %1270 = vmatprep.subr.bf16.mxu1 %v1438_v58 }
 0x33a   : > { %1273 = vmatpush3.bf16.xpose.msk.msra.mxu1 %vm1701_vm5, %v1271_v32 }
 0x33b   : > { %1274 = vmatprep.subr.bf16.mxu1 %v1438_v58 }
 0x342   : > { %1277 = vmatpush3.bf16.xpose.msk.msra.mxu1 %vm1701_vm5, %v1275_v55 }
 0x349   : > { %1244 = vmatmul.mubr.msk.f32.vlgmr.msra.gmra.mrb[16].mxu1 %vm673_vm3, %v850_v49 }
 0x41c   : > { %v968_v52 = vpop.f32.mrb[16].mxu1 }
 0x41d   : > { %972 = vst [vmem:[%s319_s15] sm:$0x1] %v968_v52  ;;  %v1245_v53 = vpop.f32.mrb[17].mxu1 }
 0x41e PF: > { %s16_s25 = sadd.s32 1, %s1436_s25   ;;  %s1777_s21 = smov %s1428_s23 }
 0x41f   : > { %p13_p8 = scmp.ge.s32.totalorder %s16_s25, 6   ;;  %s1778_s22 = smov %s1432_s24 }
 0x420   : > { %s1779_s23 = smov %s1782_s26  ;;  %s1780_s24 = smov %s1786_s27 }
 0x421   :  { %15 = sbr.rel (!%p13_p8) target bundleno = 3 (0x3), region = 80 }

// kernel: lite_depth_decoder_forward.2
= control target key start
LH: loop header
LB: loop body
LE: loop exit
PB: predicated region body
PF: predicated region fallthrough
CT: control target
= control target key end

     0   :  { %s13432_s6 = smov 1   ;;  %s13433_s10 = smov 2   ;;  %s15161_s0 = inlined_call_operand.smem [shape: u32[30], index: -1, kind: input, shape index: {}] }
   0x1   :  { %s13481_s5 = sld [smem:[%s15161_s0]]   ;;  %s13434_s14 = smov 3  }
   0x2   :  { %s13486_s9 = sld [smem:[%s15161_s0 + %s13432_s6]]   ;;  %s13435_s18 = smov 4  }
   0x3   :  { %s13491_s13 = sld [smem:[%s15161_s0 + %s13433_s10]]   ;;  %s13436_s22 = smov 5  }
   0x4   :  { %s13496_s17 = sld [smem:[%s15161_s0 + %s13434_s14]]   ;;  %s13437_s26 = smov 6  }
   0x5   :  { %s13501_s21 = sld [smem:[%s15161_s0 + %s13435_s18]]   ;;  %s13438_s30 = smov 7  }
   0x6   :  { %s13506_s25 = sld [smem:[%s15161_s0 + %s13436_s22]]   ;;  %s13439_s4 = smov 8  }
   0x7   :  { %s13511_s29 = sld [smem:[%s15161_s0 + %s13437_s26]]   ;;  %s13440_s10 = smov 9  }
   0x8   :  { %s13516_s3 = sld [smem:[%s15161_s0 + %s13438_s30]]   ;;  %s13441_s15 = smov 10  }
   0x9   :  { %s13521_s8 = sld [smem:[%s15161_s0 + %s13439_s4]]   ;;  %s13442_s20 = smov 11  }
   0xa   :  { %s13526_s14 = sld [smem:[%s15161_s0 + %s13440_s10]]   ;;  %s13443_s26 = smov 12  }
   0xb   :  { %s13531_s19 = sld [smem:[%s15161_s0 + %s13441_s15]]   ;;  %s13444_s1 = smov 13  }
   0xc   :  { %s13536_s24 = sld [smem:[%s15161_s0 + %s13442_s20]]   ;;  %s13445_s7 = smov 14  }
   0xd   :  { %s13541_s30 = sld [smem:[%s15161_s0 + %s13443_s26]]   ;;  %s13446_s15 = smov 15  }
   0xe   :  { %s13546_s6 = sld [smem:[%s15161_s0 + %s13444_s1]]   ;;  %s13447_s22 = smov 16  }
   0xf   :  { %s13551_s12 = sld [smem:[%s15161_s0 + %s13445_s7]]   ;;  %s13448_s28 = smov 17  }
  0x10   :  { %s13556_s20 = sld [smem:[%s15161_s0 + %s13446_s15]]   ;;  %s13449_s7 = smov 18  }
  0x11   :  { %s13561_s27 = sld [smem:[%s15161_s0 + %s13447_s22]]   ;;  %s13450_s15 = smov 19  }
  0x12   :  { %s13566_s4 = sld [smem:[%s15161_s0 + %s13448_s28]]   ;;  %s13451_s22 = smov 20  }
  0x13   :  { %15181 = sst [smem:[#allocation2_spill]] %s13541_s30  ;;  %s13452_s28 = smov 21  }
  0x14   :  { %15182 = sst [smem:[#allocation3_spill]] %s13546_s6 }
  0x15   :  { %s13571_s6 = sld [smem:[%s15161_s0 + %s13449_s7]]   ;;  %s13453_s7 = smov 22  }
  0x16   :  { %15183 = sst [smem:[#allocation4_spill]] %s13556_s20 }
  0x17   :  { %s13576_s20 = sld [smem:[%s15161_s0 + %s13450_s15]]   ;;  %s13454_s15 = smov 23  }
  0x18   :  { %15184 = sst [smem:[#allocation5_spill]] %s13566_s4 }
  0x19   :  { %s13581_s30 = sld [smem:[%s15161_s0 + %s13451_s22]]   ;;  %s13455_s22 = smov 24  }
  0x1a   :  { %s13586_s4 = sld [smem:[%s15161_s0 + %s13452_s28]]   ;;  %s13456_s28 = smov 25  }
  0x1b   :  { %15185 = sst [smem:[#allocation6_spill]] %s13571_s6 }
  0x1c   :  { %s13591_s6 = sld [smem:[%s15161_s0 + %s13453_s7]]   ;;  %s13457_s7 = smov 26  }
  0x1d   :  { %15186 = sst [smem:[#allocation7_spill]] %s13576_s20 }
  0x1e   :  { %s13596_s20 = sld [smem:[%s15161_s0 + %s13454_s15]]   ;;  %s13458_s15 = smov 27  }
  0x1f   :  { %15187 = sst [smem:[#allocation8_spill]] %s13581_s30 }
  0x20   :  { %15188 = sst [smem:[#allocation9_spill]] %s13586_s4 }
  0x21   :  { %s13601_s30 = sld [smem:[%s15161_s0 + %s13455_s22]]   ;;  %s13459_s22 = smov 28  }
  0x22   :  { %15189 = sst [smem:[#allocation10_spill]] %s13591_s6 }
  0x23   :  { %s13606_s4 = sld [smem:[%s15161_s0 + %s13456_s28]]   ;;  %s13460_s28 = smov 29  }
  0x24   :  { %15190 = sst [smem:[#allocation11_spill]] %s13596_s20 }
  0x25   :  { %s13611_s6 = sld [smem:[%s15161_s0 + %s13457_s7]]   ;;  %s13628_s7 = smov 0  }
  0x26   :  { %s13616_s20 = sld [smem:[%s15161_s0 + %s13458_s15]]  }
  0x27   :  { %15191 = sst [smem:[#allocation12_spill]] %s13601_s30 }
  0x28   :  { %s13621_s30 = sld [smem:[%s15161_s0 + %s13459_s22]]  }
  0x29   :  { %15192 = sst [smem:[#allocation13_spill]] %s13606_s4 }
  0x2a   :  { %s13626_s4 = sld [smem:[%s15161_s0 + %s13460_s28]]  }
  0x2b LB: > { %s11544_s10 = sadd.s32 4294967295, %s13430_s7   ;;  %p11548_p0 = scmp.ge.s32.totalorder %s13430_s7, 1  ;;  %s13430_s7 = sphi %s13628_s7, %s70_s7  }
  0x2c   : > { %p820_p1 = scmp.lt.s32.totalorder %s13430_s7, 3 }
  0x2e   : > { %p821_p2 = pnand %p11548_p0, %p820_p1 }
  0x2f   : > { %v12979_v0 = vld [vmem:[%s13491_s13] sm:$0xff] (!%p821_p2)   ;;  %v13461_v1 = vmov (!%p821_p2), 0.0   ;;  %v12980_v2 = vld [vmem:[%s13491_s13 + $0x8] sm:$0xff] (!%p821_p2)   ;;  %vm13462_vm0 = vmmov (!%p821_p2), 0   ;;  %p899_p3 = scmp.lt.s32.totalorder (!%p821_p2), %s11544_s10, 1  ;;  %v12981_v3 = vld [vmem:[%s13491_s13 + $0x10] sm:$0xff] (!%p821_p2)   ;;  %v1239_v50 = vlaneseq (!%p821_p2) }
  0x30   : > { %824 = sbr.rel (%p821_p2) target bundleno = 11662 (0x2d8e), region = 132  ;;  %12583 = vmatprep.subr.bf16.mxu0 (!%p821_p2), %v13461_v1  ;;  %12603 = vmatprep.subr.bf16.mxu1 (!%p821_p2), %v13461_v1  ;;  %v12982_v4 = vld [vmem:[%s13491_s13 + $0x18] sm:$0xff] (!%p821_p2)   ;;  %vm959_vm1 = vcmask (!%p821_p2), 523264   ;;  %v12984_v6 = vld [vmem:[%s13501_s21] sm:$0xff] (!%p821_p2)   ;;  %v12986_v8 = vld [vmem:[%s13501_s21 + $0x8] sm:$0xff] (!%p821_p2)   ;;  %vm1032_vm2 = vcmask (!%p821_p2), 261120  }
  0x31   : > { %12584 = vmatpush3.bf16.msra.mxu0 (!%p821_p2), %v12979_v0  ;;  %12591 = vmatprep.mubr.msk.bf16.mxu0 (!%p821_p2), %vm13462_vm0, %v13461_v1  ;;  %v12985_v7 = vld [vmem:[%s13506_s25] sm:$0xff] (!%p821_p2)   ;;  %v12987_v9 = vld [vmem:[%s13506_s25 + $0x8] sm:$0xff] (!%p821_p2)   ;;  %s15173_s15 = smov (!%p821_p2), 104   ;;  %s15177_s16 = smov (!%p821_p2), 120   ;;  %v13466_v48 = vmov (!%p821_p2), 1983009808  }
  0x32   : > { %12585 = vmatprep.subr.bf16.mxu0 (!%p821_p2), %v13461_v1  ;;  %12607 = vmatprep.mubr.msk.bf16.mxu1 (!%p821_p2), %vm13462_vm0, %v13461_v1  ;;  %v11553_v10 = vld [vmem:[%s13496_s17] ss:$0 sm:$0xff] (!%p821_p2)  ;;  %v1005_v16 = vld [vmem:[%s13486_s9 + $0x8] sm:$0xff] (!%p821_p2)  ;;  %s13465_s18 = smov (!%p821_p2), 112   ;;  %v1237_v49 = vunpack.c.l.s4 (!%p821_p2), %v13466_v48  ;;  %v13697_v52 = vshrl.u32 (!%p821_p2), %v1239_v50, 7  ;;  %v13468_v56 = vmov (!%p821_p2), 0  }
  0x33   : > { %12604 = vmatpush3.bf16.msra.mxu1 (!%p821_p2), %v12985_v7  ;;  %v1004_v14 = vld [vmem:[%s13486_s9] sm:$0xff] (!%p821_p2)  ;;  %v12989_v23 = vld [vmem:[%s13511_s29 + $0x8] sm:$0xff] (!%p821_p2)   ;;  %v13467_v53 = vmov (!%p821_p2), 1934713408   ;;  %v13701_v57 = vpack.i.b16 (!%p821_p2), %v13468_v56, %v13468_v56  ;;  %vm2019_vm3 = vcmask (!%p821_p2), 64512   ;;  %vm2216_vm4 = vcmask (!%p821_p2), 130048  }
  0x34   : > { %12605 = vmatprep.subr.bf16.mxu1 (!%p821_p2), %v13461_v1  ;;  %v12988_v21 = vld [vmem:[%s13511_s29] sm:$0xff] (!%p821_p2)   ;;  %v1238_v51 = vunpack.c.0.s8 (!%p821_p2), %v1237_v49  ;;  %v1268_v54 = vunpack.c.l.s4 (!%p821_p2), %v13467_v53  ;;  %s15179_s22 = smov (!%p821_p2), 16   ;;  %s15175_s23 = smov (!%p821_p2), 8   ;;  %vm2760_vm5 = vcmask (!%p821_p2), 195584   ;;  %vm11347_vm6 = vcmask (!%p821_p2), 1046528  }
  0x35   : > { %12586 = vmatpush3.bf16.msra.mxu0 (!%p821_p2), %v12980_v2  ;;  %v11560_v24 = vld [vmem:[%s13516_s3] ss:$0 sm:$0xff] (!%p821_p2)  ;;  %s15171_s26 = smov (!%p821_p2), 24   ;;  %s15193_s28 = sld [smem:[#allocation2_spill]] (!%p821_p2)  ;;  %vm11260_vm11 = vcmask (!%p821_p2), 122880  }
  0x36   : > { %12587 = vmatprep.subr.bf16.mxu0 (!%p821_p2), %v13461_v1  ;;  %v11564_v26 = vld [vmem:[%s13521_s8] ss:$0 sm:$0xff] (!%p821_p2)  ;;  %v13704_v61 = vsub.s32 (!%p821_p2), %v1238_v51, %v13697_v52  ;;  %v1269_v63 = vunpack.c.0.s8 (!%p821_p2), %v1268_v54  ;;  %s15194_s1 = sld [smem:[#allocation3_spill]] (!%p821_p2)  ;;  %s15195_s2 = sld [smem:[#allocation4_spill]] (!%p821_p2) }
  0x37   : > { %s15211_s10 = smov (!%p899_p3, %s11544_s10), 1  ;;  %12606 = vmatpush3.bf16.msra.mxu1 %v12987_v9  ;;  %v11568_v40 = vld [vmem:[%s13526_s14] ss:$0 sm:$0xff] }
  0x38   : > { %s12260_s0 = sshll.u32 %s15211_s10, 3  ;;  %12619 = vmatprep.subr.bf16.mxu1 %v13461_v1 }
  0x39   : > { %s903_s11 = scalar_lea.vmem %s13481_s5, %s12260_s0  ;;  %12588 = vmatpush3.bf16.msra.mxu0 %v12981_v3  ;;  %s15196_s0 = sld [smem:[#allocation5_spill]] }
  0x3a   : > { %12589 = vmatprep.subr.bf16.mxu0 %v13461_v1  ;;  %v12983_v5 = vld [vmem:[%s903_s11] sm:$0xff]   ;;  %s15197_s11 = sld [smem:[#allocation6_spill]] }
  0x3d   : > { %12590 = vmatpush3.bf16.msra.mxu0 %v12982_v4 }
  0x3e   : > { %12595 = vmatprep.subr.bf16.mxu0 %v13461_v1 }
  0x40   : > { %12592 = vmatmul.mubr.msk.bf16.vlgmr.msra.gmra.mrb[0].mxu0 %vm959_vm1, %v12983_v5 }
  0x41   : > { %12599 = vmatprep.mubr.msk.bf16.mxu0 %vm13462_vm0, %v13461_v1  ;;  %12596 = vmatpush3.bf16.msra.mxu0 %v12984_v6 }
  0x42   : > { %12597 = vmatprep.subr.bf16.mxu0 %v13461_v1 }
  0x45   : > { %12598 = vmatpush3.bf16.msra.mxu0 %v12986_v8 }
  0x46   : > { %12611 = vmatprep.subr.bf16.mxu0 %v13461_v1 }
 0x113   : > { %v997_v11 = vpop.f32.mrb[0].mxu0 }
 0x114   : > { %v998_v12 = vadd.f32 %v11553_v10, %v997_v11  ;;  %v12593_v13 = vpop.f32.mrb[1].mxu0  ;;  %v13709_v11 = vsub.s32 %v1269_v63, %v13697_v52 }
 0x115   : > { %v1000_v15 = vpop.f32.mrb[2].mxu0 }
 0x116   : > { %v1001_v17 = vadd.f32 %v11553_v10, %v1000_v15  ;;  %v12594_v18 = vpop.f32.mrb[3].mxu0  ;;  %v13667_v19 = vadd.f32 %v1004_v14, %v998_v12 }
 0x118   : > { %v13669_v20 = vadd.f32 %v1005_v16, %v1001_v17 }
 0x11a   : > { %v1008_v22 = vpack.c.bf16 %v13669_v20, %v13667_v19 }
 0x11c   : > { %12600 = vmatmul.mubr.msk.bf16.vlgmr.msra.gmra.mrb[4].mxu0 %vm1032_vm2, %v1008_v22  ;;  %12608 = vmatmul.mubr.msk.bf16.vlgmr.msra.gmra.mrb[0].mxu1 %vm1032_vm2, %v1008_v22 }
 0x11d   : > { %12612 = vmatpush3.bf16.msra.mxu0 %v12988_v21  ;;  %12615 = vmatprep.mubr.msk.bf16.mxu0 %vm13462_vm0, %v13461_v1 }
 0x11e   : > { %12613 = vmatprep.subr.bf16.mxu0 %v13461_v1  ;;  %12621 = vmatprep.mubr.msk.bf16.mxu1 %vm13462_vm0, %v13461_v1 }
 0x121   : > { %12614 = vmatpush3.bf16.msra.mxu0 %v12989_v23 }
 0x122   : > { %12625 = vmatprep.subr.bf16.mxu0 %v13461_v1 }
 0x124   : > { %12616 = vmatmul.mubr.msk.bf16.vlgmr.msra.gmra.mrb[8].mxu0 %vm1032_vm2, %v1008_v22 }
 0x125   : > { %12627 = vmatprep.mubr.msk.bf16.mxu0 %vm13462_vm0, %v13461_v1 }
 0x1ef   : > { %v1070_v25 = vpop.f32.mrb[4].mxu0  ;;  %v1134_v27 = vpop.f32.mrb[0].mxu1 }
 0x1f0   : > { %v12601_v28 = vpop.f32.mrb[5].mxu0  ;;  %v12609_v29 = vpop.f32.mrb[1].mxu1  ;;  %v1071_v32 = vadd.f32 %v11560_v24, %v1070_v25  ;;  %v1135_v33 = vadd.f32 %v11564_v26, %v1134_v27 }
 0x1f1   : > { %v1073_v30 = vpop.f32.mrb[6].mxu0  ;;  %v1137_v31 = vpop.f32.mrb[2].mxu1 }
 0x1f2   : > { %v1074_v34 = vadd.f32 %v11560_v24, %v1073_v30  ;;  %v1138_v35 = vadd.f32 %v11564_v26, %v1137_v31  ;;  %v12602_v36 = vpop.f32.mrb[7].mxu0  ;;  %v12610_v37 = vpop.f32.mrb[3].mxu1 }
 0x1f4   : > { %v1205_v38 = vpack.c.bf16 %v1074_v34, %v1071_v32  ;;  %v1479_v39 = vpack.c.bf16 %v1138_v35, %v1135_v33 }
 0x1f6   : > { %1485 = vrot.lane.b32.xlu1 %v1479_v39, %s15173_s15  ;;  %1481 = vrot.lane.b32.xlu0 %v1479_v39, %s15177_s16  ;;  %v1491_v62 = vshrl.u32 %v1479_v39, 16  ;;  %v1217_v16 = vshrl.u32 %v1205_v38, 16 }
 0x1f7   : > { %v1198_v41 = vpop.f32.mrb[8].mxu0 }
 0x1f8   : > { %v12617_v42 = vpop.f32.mrb[9].mxu0  ;;  %v1199_v44 = vadd.f32 %v11568_v40, %v1198_v41 }
 0x1f9   : > { %v1201_v43 = vpop.f32.mrb[10].mxu0 }
 0x1fa   : > { %v1202_v45 = vadd.f32 %v11568_v40, %v1201_v43  ;;  %1483 = vrot.lane.b32.xlu0 %v1479_v39, %s13465_s18  ;;  %1207 = vrot.lane.b32.xlu1 %v1205_v38, %s15177_s16  ;;  %v12618_v46 = vpop.f32.mrb[11].mxu0 }
 0x1fc   : > { %v13693_v47 = vpack.c.bf16 %v1202_v45, %v1199_v44 }
 0x1fe   : > { %1209 = vrot.lane.b32.xlu0 %v1205_v38, %s13465_s18  ;;  %1211 = vrot.lane.b32.xlu1 %v1205_v38, %s15173_s15 }
 0x268   : > { %v1486_v55 = vpop.permute.xlu1 %1485  ;;  %v1482_v58 = vpop.permute.xlu0 %1481 }
 0x269   : > { %v1489_v59 = vpack.i.b16 %v1482_v58, %v1479_v39  ;;  %v1492_v60 = vshrl.u32 %v1482_v58, 16  ;;  %v1500_v6 = vshrl.u32 %v1486_v55, 16 }
 0x26b   : > { %v1503_v0 = vcombine.high %v1489_v59, %v13701_v57  ;;  %v1493_v4 = vpack.i.b16 %v1492_v60, %v1491_v62  ;;  %v1510_v10 = vrot.slane %v1489_v59, %v13704_v61 }
 0x26c   : > { %v1484_v2 = vpop.permute.xlu0 %1483  ;;  %v1208_v3 = vpop.permute.xlu1 %1207 }
 0x26d   : > { %v1497_v5 = vpack.i.b16 %v1486_v55, %v1484_v2  ;;  %v1499_v7 = vshrl.u32 %v1484_v2, 16  ;;  %v1215_v8 = vpack.i.b16 %v1208_v3, %v1205_v38  ;;  %v1218_v9 = vshrl.u32 %v1208_v3, 16 }
 0x26e   : > { %v1517_v14 = vrot.slane %v1503_v0, %v13704_v61  ;;  %v1569_v17 = vcombine.high %v1493_v4, %v13701_v57  ;;  %v1576_v31 = vrot.slane %v1493_v4, %v13704_v61 }
 0x26f   : > { %v1518_v12 = vcombine.high %v1497_v5, %v13701_v57  ;;  %v1525_v13 = vrot.slane %v1497_v5, %v13704_v61  ;;  %v1501_v15 = vpack.i.b16 %v1500_v6, %v1499_v7  ;;  %v1219_v25 = vpack.i.b16 %v1218_v9, %v1217_v16 }
 0x270   : > { %v1235_v26 = vcombine.high %v1215_v8, %v13701_v57  ;;  %v1210_v33 = vpop.permute.xlu0 %1209  ;;  %v1212_v34 = vpop.permute.xlu1 %1211  ;;  %v1583_v35 = vrot.slane %v1569_v17, %v13704_v61  ;;  %v1242_v40 = vrot.slane %v1215_v8, %v13704_v61 }
 0x271   : > { %v1532_v18 = vrot.slane %v1518_v12, %v13704_v61  ;;  %v1533_v21 = vcombine.low %v1510_v10, %v1525_v13  ;;  %v1534_v22 = vcombine.high %v1510_v10, %v1525_v13  ;;  %v1584_v23 = vcombine.high %v1501_v15, %v13701_v57 }
 0x272   : > { %v1591_v24 = vrot.slane %v1501_v15, %v13704_v61  ;;  %v1301_v41 = vcombine.high %v1219_v25, %v13701_v57  ;;  %v1249_v43 = vrot.slane %v1235_v26, %v13704_v61  ;;  %v1225_v44 = vshrl.u32 %v1210_v33, 16 }
 0x273   : > { %v1541_v27 = vrot.slane %v1533_v21, %v13709_v11  ;;  %v1548_v28 = vrot.slane %v1534_v22, %v13709_v11  ;;  %v1549_v29 = vcombine.low %v1517_v14, %v1532_v18  ;;  %v1550_v30 = vcombine.high %v1517_v14, %v1532_v18 }
 0x274   : > { %v1598_v32 = vrot.slane %v1584_v23, %v13704_v61  ;;  %v1599_v38 = vcombine.low %v1576_v31, %v1591_v24  ;;  %v1600_v39 = vcombine.high %v1576_v31, %v1591_v24  ;;  %v1223_v45 = vpack.i.b16 %v1212_v34, %v1210_v33 }
 0x275   : > { %v1557_v36 = vrot.slane %v1549_v29, %v13709_v11  ;;  %v1564_v37 = vrot.slane %v1550_v30, %v13709_v11  ;;  %v1635_v42 = vcombine.low %v1541_v27, %v1548_v28  ;;  %v11576_v49 = vcombine.high %v1541_v27, %v1548_v28 }
 0x276   : > { %v1615_v46 = vcombine.low %v1583_v35, %v1598_v32  ;;  %v1616_v48 = vcombine.high %v1583_v35, %v1598_v32  ;;  %v1226_v53 = vshrl.u32 %v1212_v34, 16  ;;  %v1250_v54 = vcombine.high %v1223_v45, %v13701_v57 }
 0x277   : > { %v1651_v50 = vcombine.low %v1557_v36, %v1564_v37  ;;  %v11577_v51 = vcombine.high %v1557_v36, %v1564_v37  ;;  %v1257_v55 = vrot.slane %v1223_v45, %v13704_v61  ;;  %v1607_v58 = vrot.slane %v1599_v38, %v13709_v11 }
 0x278   : > { %v1614_v59 = vrot.slane %v1600_v39, %v13709_v11  ;;  %v1308_v60 = vrot.slane %v1219_v25, %v13704_v61  ;;  %v1315_v62 = vrot.slane %v1301_v41, %v13704_v61  ;;  %v1227_v63 = vpack.i.b16 %v1226_v53, %v1225_v44 }
 0x279   : > { %v1264_v0 = vrot.slane %v1250_v54, %v13704_v61  ;;  %v1265_v2 = vcombine.low %v1242_v40, %v1257_v55  ;;  %v1266_v3 = vcombine.high %v1242_v40, %v1257_v55  ;;  %v1623_v4 = vrot.slane %v1615_v46, %v13709_v11 }
 0x27a   : > { %v1630_v5 = vrot.slane %v1616_v48, %v13709_v11  ;;  %v1642_v6 = vrot.slane %v1635_v42, %v13704_v61  ;;  %v1650_v7 = vrot.slane %v11576_v49, %v13704_v61  ;;  %v1658_v10 = vrot.slane %v1651_v50, %v13704_v61 }
 0x27b   : > { %v1281_v8 = vcombine.low %v1249_v43, %v1264_v0  ;;  %v1282_v9 = vcombine.high %v1249_v43, %v1264_v0  ;;  %v1666_v12 = vrot.slane %v11577_v51, %v13704_v61  ;;  %v1685_v13 = vcombine.low %v1607_v58, %v1614_v59 }
 0x27c   : > { %v11578_v14 = vcombine.high %v1607_v58, %v1614_v59  ;;  %v1316_v15 = vcombine.high %v1227_v63, %v13701_v57  ;;  %v1323_v16 = vrot.slane %v1227_v63, %v13704_v61  ;;  %v1273_v17 = vrot.slane %v1265_v2, %v13709_v11 }
 0x27d   : > { %v1280_v18 = vrot.slane %v1266_v3, %v13709_v11  ;;  %v1289_v21 = vrot.slane %v1281_v8, %v13709_v11  ;;  %v1296_v22 = vrot.slane %v1282_v9, %v13709_v11  ;;  %v1667_v26 = vcombine.low %v1642_v6, %v1650_v7 }
 0x27e   : > { %v1330_v23 = vrot.slane %v1316_v15, %v13704_v61  ;;  %v1331_v24 = vcombine.low %v1308_v60, %v1323_v16  ;;  %v1332_v25 = vcombine.high %v1308_v60, %v1323_v16  ;;  %v1675_v29 = vcombine.low %v1658_v10, %v1666_v12 }
 0x27f   : > { %v1383_v27 = vcombine.low %v1289_v21, %v1296_v22  ;;  %v11573_v28 = vcombine.high %v1289_v21, %v1296_v22  ;;  %v1701_v30 = vcombine.low %v1623_v4, %v1630_v5  ;;  %v1367_v35 = vcombine.low %v1273_v17, %v1280_v18 }
 0x280   : > { %v1339_v31 = vrot.slane %v1331_v24, %v13709_v11  ;;  %v1346_v32 = vrot.slane %v1332_v25, %v13709_v11  ;;  %v1347_v33 = vcombine.low %v1315_v62, %v1330_v23  ;;  %v1348_v34 = vcombine.high %v1315_v62, %v1330_v23 }
 0x281   : > { %v11572_v36 = vcombine.high %v1273_v17, %v1280_v18  ;;  %v1692_v37 = vrot.slane %v1685_v13, %v13704_v61  ;;  %v1700_v38 = vrot.slane %v11578_v14, %v13704_v61  ;;  %v1674_v43 = vrot.slane %v1667_v26, %v13709_v11 }
 0x282   : > { %v1355_v39 = vrot.slane %v1347_v33, %v13709_v11  ;;  %v1362_v40 = vrot.slane %v1348_v34, %v13709_v11  ;;  %v1417_v41 = vcombine.low %v1339_v31, %v1346_v32  ;;  %v11574_v42 = vcombine.high %v1339_v31, %v1346_v32 }
 0x283   : > { %v1682_v44 = vrot.slane %v1675_v29, %v13709_v11  ;;  %v1708_v45 = vrot.slane %v1701_v30, %v13704_v61  ;;  %v11579_v46 = vcombine.high %v1623_v4, %v1630_v5  ;;  %v1390_v48 = vrot.slane %v1383_v27, %v13704_v61 }
 0x284   : > { %v1398_v49 = vrot.slane %v11573_v28, %v13704_v61  ;;  %v1433_v50 = vcombine.low %v1355_v39, %v1362_v40  ;;  %v11575_v51 = vcombine.high %v1355_v39, %v1362_v40  ;;  %v1424_v53 = vrot.slane %v1417_v41, %v13704_v61 }
 0x285   : > { %v1432_v54 = vrot.slane %v11574_v42, %v13704_v61  ;;  %v1716_v55 = vrot.slane %v11579_v46, %v13704_v61  ;;  %v1717_v58 = vcombine.low %v1692_v37, %v1700_v38  ;;  %v1374_v59 = vrot.slane %v1367_v35, %v13704_v61 }
 0x286   : > { %v1382_v60 = vrot.slane %v11572_v36, %v13704_v61  ;;  %v1440_v62 = vrot.slane %v1433_v50, %v13704_v61  ;;  %v1448_v63 = vrot.slane %v11575_v51, %v13704_v61  ;;  %v1407_v2 = vcombine.low %v1390_v48, %v1398_v49 }
 0x287   : > { %v1725_v0 = vcombine.low %v1708_v45, %v1716_v55  ;;  %v1683_v3 = vcombine.low %v1674_v43, %v1682_v44  ;;  %v1449_v5 = vcombine.low %v1424_v53, %v1432_v54  ;;  %v1724_v6 = vrot.slane %v1717_v58, %v13709_v11 }
 0x288   : > { %v1457_v4 = vcombine.low %v1440_v62, %v1448_v63  ;;  %v1399_v8 = vcombine.low %v1374_v59, %v1382_v60  ;;  %v1414_v13 = vrot.slane %v1407_v2, %v13709_v11  ;;  %v1684_v24 = vcombine.high %v1674_v43, %v1682_v44 }
 0x289   : > { %v1732_v7 = vrot.slane %v1725_v0, %v13709_v11  ;;  %v1738_v12 = vshrl.u32 %v1683_v3, 16  ;;  %v1456_v16 = vrot.slane %v1449_v5, %v13709_v11 }
 0x28a   : > { %v1464_v10 = vrot.slane %v1457_v4, %v13709_v11  ;;  %v1406_v18 = vrot.slane %v1399_v8, %v13709_v11  ;;  %v1744_v30 = vshrl.u32 %v1684_v24, 16 }
 0x28b   : > { %v1733_v9 = vcombine.low %v1724_v6, %v1732_v7  ;;  %v1734_v17 = vcombine.high %v1724_v6, %v1732_v7 }
 0x28c   : > { %v1465_v23 = vcombine.low %v1456_v16, %v1464_v10  ;;  %v1415_v26 = vcombine.low %v1406_v18, %v1414_v13  ;;  %v1466_v36 = vcombine.high %v1456_v16, %v1464_v10  ;;  %v1416_v38 = vcombine.high %v1406_v18, %v1414_v13 }
 0x28d   : > { %v1737_v14 = vpack.i.b16 %v1733_v9, %v1683_v3  ;;  %v1739_v15 = vshrl.u32 %v1733_v9, 16  ;;  %v1745_v27 = vshrl.u32 %v1734_v17, 16  ;;  %v1743_v28 = vpack.i.b16 %v1734_v17, %v1684_v24 }
 0x28e   : > { %v1471_v29 = vshrl.u32 %v1465_v23, 16  ;;  %v1469_v31 = vpack.i.b16 %v1465_v23, %v1415_v26  ;;  %v1470_v32 = vshrl.u32 %v1415_v26, 16  ;;  %v1477_v39 = vshrl.u32 %v1466_v36, 16 }
 0x28f   : > { %v2024_v21 = vsel %vm2019_vm3, %v1737_v14, 0  ;;  %v1740_v22 = vpack.i.b16 %v1739_v15, %v1738_v12  ;;  %v1746_v33 = vpack.i.b16 %v1745_v27, %v1744_v30  ;;  %v2118_v34 = vsel %vm2019_vm3, %v1743_v28, 0 }
 0x290   : > { %12620 = vmatpush3.bf16.xpose.msra.mxu1 %v2024_v21  ;;  %v1472_v35 = vpack.i.b16 %v1471_v29, %v1470_v32  ;;  %v1475_v40 = vpack.i.b16 %v1466_v36, %v1416_v38  ;;  %v1476_v41 = vshrl.u32 %v1416_v38, 16 }
 0x291   : > { %v2071_v25 = vsel %vm2019_vm3, %v1740_v22, 0  ;;  %12631 = vmatprep.subr.bf16.mxu1 %v13461_v1  ;;  %v2165_v37 = vsel %vm2019_vm3, %v1746_v33, 0 }
 0x292   : > { %12626 = vmatpush3.bf16.xpose.msra.mxu0 %v2071_v25  ;;  %v1478_v42 = vpack.i.b16 %v1477_v39, %v1476_v41 }
 0x293   : > { %12637 = vmatprep.subr.bf16.mxu0 %v13461_v1 }
 0x297   : > { %12622 = vmatmul.mubr.msk.bf16.vlgmr.msra.gmra.mrb[4].mxu1 %vm2019_vm3, %v1469_v31 }
 0x298   : > { %12632 = vmatpush3.bf16.xpose.msra.mxu1 %v2118_v34  ;;  %12633 = vmatprep.mubr.msk.bf16.mxu1 %vm13462_vm0, %v13461_v1 }
 0x299   : > { %12628 = vmatmul.mubr.msk.bf16.vlgmr.msra.gmra.mrb[12].mxu0 %vm2019_vm3, %v1472_v35  ;;  %12643 = vmatprep.subr.bf16.mxu1 %v13461_v1 }
 0x29a   : > { %12638 = vmatpush3.bf16.xpose.msra.mxu0 %v2165_v37  ;;  %12639 = vmatprep.mubr.msk.bf16.mxu0 %vm13462_vm0, %v13461_v1 }
 0x29b   : > { %12649 = vmatprep.subr.bf16.mxu0 %v13461_v1 }
 0x29f   : > { %12634 = vmatmul.mubr.msk.bf16.vlgmr.msra.gmra.mrb[8].mxu1 %vm2019_vm3, %v1475_v40 }
 0x2a0   : > { %12645 = vmatprep.mubr.msk.bf16.mxu1 %vm13462_vm0, %v13461_v1 }
 0x2a1   : > { %12640 = vmatmul.mubr.msk.bf16.vlgmr.msra.gmra.mrb[16].mxu0 %vm2019_vm3, %v1478_v42 }
 0x2a2   : > { %12651 = vmatprep.mubr.msk.bf16.mxu0 %vm13462_vm0, %v13461_v1 }
 0x36a   : > { %v2060_v43 = vpop.f32.mrb[4].mxu1 }
 0x36b   : > { %v2208_v44 = vmul.f32 0.35355338, %v2060_v43  ;;  %v12623_v45 = vpop.f32.mrb[5].mxu1  ;;  %v1759_v43 = vshrl.u32 %v13693_v47, 16 }
 0x36c   : > { %v2063_v46 = vpop.f32.mrb[6].mxu1  ;;  %v2107_v48 = vpop.f32.mrb[12].mxu0 }
 0x36d   : > { %v2209_v49 = vmul.f32 0.35355338, %v2063_v46  ;;  %v12624_v50 = vpop.f32.mrb[7].mxu1  ;;  %v12629_v51 = vpop.f32.mrb[13].mxu0  ;;  %v2210_v53 = vmul.f32 0.35355338, %v2107_v48 }
 0x36e   : > { %v2217_v54 = vsel %vm2216_vm4, %v2208_v44, -inf  ;;  %v2110_v55 = vpop.f32.mrb[14].mxu0 }
 0x36f   : > { %2218 = vmax.xlane.f32.xlu0 %v2217_v54  ;;  %v12630_v58 = vpop.f32.mrb[15].mxu0  ;;  %v2220_v59 = vsel %vm2216_vm4, %v2209_v49, -inf  ;;  %v2211_v60 = vmul.f32 0.35355338, %v2110_v55  ;;  %v2223_v63 = vsel %vm2216_vm4, %v2210_v53, -inf }
 0x370   : > { %2221 = vmax.xlane.f32.xlu1 %v2220_v59 }
 0x371   : > { %v2226_v7 = vsel %vm2216_vm4, %v2211_v60, -inf }
 0x372   : > { %v2154_v62 = vpop.f32.mrb[8].mxu1 }
 0x373   : > { %v2212_v0 = vmul.f32 0.35355338, %v2154_v62  ;;  %2224 = vmax.xlane.f32.xlu0 %v2223_v63  ;;  %v12635_v2 = vpop.f32.mrb[9].mxu1 }
 0x374   : > { %v2157_v3 = vpop.f32.mrb[10].mxu1  ;;  %v2201_v4 = vpop.f32.mrb[16].mxu0 }
 0x375   : > { %v12636_v5 = vpop.f32.mrb[11].mxu1  ;;  %v12641_v6 = vpop.f32.mrb[17].mxu0  ;;  %v2213_v8 = vmul.f32 0.35355338, %v2157_v3  ;;  %v2214_v9 = vmul.f32 0.35355338, %v2201_v4 }
 0x376   : > { %v2229_v10 = vsel %vm2216_vm4, %v2212_v0, -inf  ;;  %v2204_v12 = vpop.f32.mrb[18].mxu0 }
 0x377   : > { %2230 = vmax.xlane.f32.xlu1 %v2229_v10  ;;  %2227 = vmax.xlane.f32.xlu0 %v2226_v7  ;;  %v12642_v13 = vpop.f32.mrb[19].mxu0  ;;  %v2215_v14 = vmul.f32 0.35355338, %v2204_v12  ;;  %v2232_v15 = vsel %vm2216_vm4, %v2213_v8, -inf  ;;  %v2235_v16 = vsel %vm2216_vm4, %v2214_v9, -inf }
 0x379   : > { %v2238_v17 = vsel %vm2216_vm4, %v2215_v14, -inf }
 0x37b   : > { %2233 = vmax.xlane.f32.xlu0 %v2232_v15  ;;  %2236 = vmax.xlane.f32.xlu1 %v2235_v16 }
 0x37f   : > { %2239 = vmax.xlane.f32.xlu0 %v2238_v17 }
 0x38c   : > { %1749 = vrot.lane.b32.xlu1 %v13693_v47, %s15177_s16 }
 0x390   : > { %1753 = vrot.lane.b32.xlu1 %v13693_v47, %s15173_s15 }
 0x395   : > { %1751 = vrot.lane.b32.xlu0 %v13693_v47, %s13465_s18 }
 0x3fc   : > { %v2219_v18 = vpop.xlane.xlu0 %2218 }
 0x3fd   : > { %v2241_v21 = vsub.f32 %v2208_v44, %v2219_v18  ;;  %v2222_v22 = vpop.xlane.xlu1 %2221 }
 0x3fe   : > { %v2242_v23 = vsub.f32 %v2209_v49, %v2222_v22 }
 0x3ff   : > { %v2249_v24 = vmul.f32 1.442695, %v2241_v21 }
 0x400   : > { %v2251_v25 = vmul.f32 1.442695, %v2242_v23  ;;  %v2225_v26 = vpop.xlane.xlu0 %2224 }
 0x401   : > { %13262 = vpow2.f32 %v2249_v24  ;;  %v2243_v27 = vsub.f32 %v2210_v53, %v2225_v26 }
 0x402   : > { %13264 = vpow2.f32 %v2251_v25 }
 0x403   : > { %v2253_v28 = vmul.f32 1.442695, %v2243_v27 }
 0x404   : > { %v2231_v29 = vpop.xlane.xlu1 %2230  ;;  %v2228_v30 = vpop.xlane.xlu0 %2227 }
 0x405   : > { %13266 = vpow2.f32 %v2253_v28  ;;  %v2245_v31 = vsub.f32 %v2212_v0, %v2231_v29  ;;  %v2244_v32 = vsub.f32 %v2211_v60, %v2228_v30 }
 0x407   : > { %v2257_v33 = vmul.f32 1.442695, %v2245_v31  ;;  %v2255_v34 = vmul.f32 1.442695, %v2244_v32 }
 0x408   : > { %v2234_v35 = vpop.xlane.xlu0 %2233  ;;  %v2237_v36 = vpop.xlane.xlu1 %2236 }
 0x409   : > { %13268 = vpow2.f32 %v2257_v33  ;;  %v2246_v37 = vsub.f32 %v2213_v8, %v2234_v35  ;;  %v2247_v38 = vsub.f32 %v2214_v9, %v2237_v36 }
 0x40a   : > { %13270 = vpow2.f32 %v2255_v34 }
 0x40b   : > { %v13807_v39 = vpop.eup %13262  ;;  %v2259_v40 = vmul.f32 1.442695, %v2246_v37  ;;  %v2261_v42 = vmul.f32 1.442695, %v2247_v38 }
 0x40c   : > { %v13809_v41 = vpop.eup %13264  ;;  %v1750_v44 = vpop.permute.xlu1 %1749  ;;  %v2265_v46 = vsel %vm2216_vm4, %v13807_v39, 0.0 }
 0x40d   : > { %v2240_v45 = vpop.xlane.xlu0 %2239  ;;  %13272 = vpow2.f32 %v2259_v40  ;;  %v1757_v48 = vpack.i.b16 %v1750_v44, %v13693_v47  ;;  %v1760_v49 = vshrl.u32 %v1750_v44, 16  ;;  %2266 = vadd.xlane.f32.xlu1 %v2265_v46  ;;  %v2268_v51 = vsel %vm2216_vm4, %v13809_v41, 0.0 }
 0x40e   : > { %v2248_v50 = vsub.f32 %v2215_v14, %v2240_v45  ;;  %2269 = vadd.xlane.f32.xlu0 %v2268_v51  ;;  %13274 = vpow2.f32 %v2261_v42 }
 0x40f   : > { %v13817_v53 = vpop.eup %13266  ;;  %v1761_v54 = vpack.i.b16 %v1760_v49, %v1759_v43  ;;  %v1771_v60 = vcombine.high %v1757_v48, %v13701_v57  ;;  %v1778_v5 = vrot.slane %v1757_v48, %v13704_v61 }
 0x410   : > { %v2263_v55 = vmul.f32 1.442695, %v2248_v50  ;;  %v1754_v58 = vpop.permute.xlu1 %1753  ;;  %v2271_v0 = vsel %vm2216_vm4, %v13817_v53, 0.0 }
 0x411   : > { %v1752_v59 = vpop.permute.xlu0 %1751  ;;  %v1768_v62 = vshrl.u32 %v1754_v58, 16  ;;  %v1837_v3 = vcombine.high %v1761_v54, %v13701_v57  ;;  %v1785_v9 = vrot.slane %v1771_v60, %v13704_v61  ;;  %v1844_v18 = vrot.slane %v1761_v54, %v13704_v61 }
 0x412   : > { %13276 = vpow2.f32 %v2263_v55  ;;  %v1765_v63 = vpack.i.b16 %v1754_v58, %v1752_v59  ;;  %v1767_v47 = vshrl.u32 %v1752_v59, 16  ;;  %2272 = vadd.xlane.f32.xlu0 %v2271_v0 }
 0x413   : > { %v13822_v2 = vpop.eup %13268  ;;  %v1851_v21 = vrot.slane %v1837_v3, %v13704_v61 }
 0x414   : > { %v13825_v4 = vpop.eup %13270  ;;  %v1769_v6 = vpack.i.b16 %v1768_v62, %v1767_v47  ;;  %v1786_v7 = vcombine.high %v1765_v63, %v13701_v57  ;;  %v1793_v8 = vrot.slane %v1765_v63, %v13704_v61  ;;  %v2277_v12 = vsel %vm2216_vm4, %v13822_v2, 0.0 }
 0x415   : > { %v2274_v10 = vsel %vm2216_vm4, %v13825_v4, 0.0 }
 0x416   : > { %v1800_v13 = vrot.slane %v1786_v7, %v13704_v61  ;;  %v1801_v14 = vcombine.low %v1778_v5, %v1793_v8  ;;  %v1802_v15 = vcombine.high %v1778_v5, %v1793_v8  ;;  %v1852_v16 = vcombine.high %v1769_v6, %v13701_v57  ;;  %2275 = vadd.xlane.f32.xlu1 %v2274_v10 }
 0x417   : > { %v13837_v17 = vpop.eup %13272  ;;  %v1859_v22 = vrot.slane %v1769_v6, %v13704_v61  ;;  %2278 = vadd.xlane.f32.xlu0 %v2277_v12 }
 0x418   : > { %v1809_v23 = vrot.slane %v1801_v14, %v13709_v11  ;;  %v1816_v24 = vrot.slane %v1802_v15, %v13709_v11  ;;  %v1817_v25 = vcombine.low %v1785_v9, %v1800_v13  ;;  %v1818_v26 = vcombine.high %v1785_v9, %v1800_v13  ;;  %v13847_v31 = vpop.eup %13274 }
 0x419   : > { %v1866_v27 = vrot.slane %v1852_v16, %v13704_v61  ;;  %v1867_v28 = vcombine.low %v1844_v18, %v1859_v22  ;;  %v1868_v29 = vcombine.high %v1844_v18, %v1859_v22  ;;  %v2280_v30 = vsel %vm2216_vm4, %v13837_v17, 0.0 }
 0x41a   : > { %v1825_v32 = vrot.slane %v1817_v25, %v13709_v11  ;;  %v1832_v33 = vrot.slane %v1818_v26, %v13709_v11  ;;  %v1903_v34 = vcombine.low %v1809_v23, %v1816_v24  ;;  %v11580_v35 = vcombine.high %v1809_v23, %v1816_v24  ;;  %2281 = vadd.xlane.f32.xlu1 %v2280_v30 }
 0x41b   : > { %v1875_v37 = vrot.slane %v1867_v28, %v13709_v11  ;;  %v1882_v38 = vrot.slane %v1868_v29, %v13709_v11  ;;  %v1883_v40 = vcombine.low %v1851_v21, %v1866_v27  ;;  %v1884_v42 = vcombine.high %v1851_v21, %v1866_v27 }
 0x41c   : > { %v13851_v36 = vpop.eup %13276  ;;  %v1910_v43 = vrot.slane %v1903_v34, %v13704_v61  ;;  %v1918_v44 = vrot.slane %v11580_v35, %v13704_v61  ;;  %v1919_v45 = vcombine.low %v1825_v32, %v1832_v33  ;;  %v11581_v46 = vcombine.high %v1825_v32, %v1832_v33 }
 0x41d   : > { %v1891_v48 = vrot.slane %v1883_v40, %v13709_v11  ;;  %v1898_v49 = vrot.slane %v1884_v42, %v13709_v11  ;;  %v1953_v50 = vcombine.low %v1875_v37, %v1882_v38  ;;  %v11582_v51 = vcombine.high %v1875_v37, %v1882_v38 }
 0x41e   : > { %v2283_v54 = vsel %vm2216_vm4, %v13847_v31, 0.0  ;;  %v2286_v55 = vsel %vm2216_vm4, %v13851_v36, 0.0  ;;  %v1926_v58 = vrot.slane %v1919_v45, %v13704_v61  ;;  %v1934_v59 = vrot.slane %v11581_v46, %v13704_v61 }
 0x41f   : > { %v1969_v60 = vcombine.low %v1891_v48, %v1898_v49  ;;  %v11583_v62 = vcombine.high %v1891_v48, %v1898_v49  ;;  %2284 = vadd.xlane.f32.xlu0 %v2283_v54  ;;  %2287 = vadd.xlane.f32.xlu1 %v2286_v55  ;;  %v1935_v63 = vcombine.low %v1910_v43, %v1918_v44 }
 0x420   : > { %v1943_v47 = vcombine.low %v1926_v58, %v1934_v59  ;;  %v1960_v0 = vrot.slane %v1953_v50, %v13704_v61  ;;  %v1968_v3 = vrot.slane %v11582_v51, %v13704_v61 }
 0x421   : > { %v1976_v5 = vrot.slane %v1969_v60, %v13704_v61  ;;  %v1984_v6 = vrot.slane %v11583_v62, %v13704_v61  ;;  %v1942_v7 = vrot.slane %v1935_v63, %v13709_v11 }
 0x422   : > { %v1950_v8 = vrot.slane %v1943_v47, %v13709_v11  ;;  %v1985_v9 = vcombine.low %v1960_v0, %v1968_v3 }
 0x423   : > { %v1993_v10 = vcombine.low %v1976_v5, %v1984_v6 }
 0x424   : > { %v1951_v12 = vcombine.low %v1942_v7, %v1950_v8  ;;  %v1952_v13 = vcombine.high %v1942_v7, %v1950_v8  ;;  %v1992_v14 = vrot.slane %v1985_v9, %v13709_v11 }
 0x425   : > { %v2000_v15 = vrot.slane %v1993_v10, %v13709_v11 }
 0x426   : > { %v2007_v21 = vshrl.u32 %v1951_v12, 16  ;;  %v2015_v22 = vshrl.u32 %v1952_v13, 16 }
 0x427   : > { %v2001_v16 = vcombine.low %v1992_v14, %v2000_v15  ;;  %v2002_v18 = vcombine.high %v1992_v14, %v2000_v15 }
 0x429   : > { %v2005_v23 = vpack.i.b16 %v2001_v16, %v1951_v12  ;;  %v2008_v24 = vshrl.u32 %v2001_v16, 16  ;;  %v2013_v25 = vpack.i.b16 %v2002_v18, %v1952_v13  ;;  %v2016_v26 = vshrl.u32 %v2002_v18, 16 }
 0x42b   : > { %12644 = vmatpush3.bf16.msra.mxu1 %v2005_v23  ;;  %v2009_v27 = vpack.i.b16 %v2008_v24, %v2007_v21  ;;  %v2017_v28 = vpack.i.b16 %v2016_v26, %v2015_v22 }
 0x42c   : > { %12655 = vmatprep.subr.bf16.mxu1 %v13461_v1 }
 0x42d   : > { %12650 = vmatpush3.bf16.msra.mxu0 %v2009_v27 }
 0x42e   : > { %12661 = vmatprep.subr.bf16.mxu0 %v13461_v1 }
 0x49a   : > { %v2267_v29 = vpop.xlane.xlu1 %2266 }
 0x49b   : > { %13278 = vrcp.f32 %v2267_v29  ;;  %v2270_v30 = vpop.xlane.xlu0 %2269 }
 0x49c   : > { %13280 = vrcp.f32 %v2270_v30 }
 0x49f   : > { %v2273_v32 = vpop.xlane.xlu0 %2272 }
 0x4a0   : > { %13282 = vrcp.f32 %v2273_v32 }
 0x4a3   : > { %v2276_v33 = vpop.xlane.xlu1 %2275 }
 0x4a4   : > { %13284 = vrcp.f32 %v2276_v33  ;;  %v2279_v34 = vpop.xlane.xlu0 %2278 }
 0x4a5   : > { %v13279_v35 = vpop.eup %13278  ;;  %13286 = vrcp.f32 %v2279_v34 }
 0x4a6   : > { %v13281_v37 = vpop.eup %13280  ;;  %v2297_v40 = vmul.f32 %v13279_v35, %v13807_v39 }
 0x4a7   : > { %v2282_v38 = vpop.xlane.xlu1 %2281  ;;  %v2298_v42 = vmul.f32 %v13281_v37, %v13809_v41 }
 0x4a8   : > { %13288 = vrcp.f32 %v2282_v38 }
 0x4a9   : > { %v2305_v43 = vpack.c.bf16 %v2298_v42, %v2297_v40 }
 0x4aa   : > { %v13283_v44 = vpop.eup %13282 }
 0x4ab   : > { %12646 = vmatmul.mubr.msk.bf16.vlgmr.msra.gmra.mrb[12].mxu1 %vm2216_vm4, %v2305_v43  ;;  %v2299_v39 = vmul.f32 %v13283_v44, %v13817_v53 }
 0x4ac   : > { %v2285_v45 = vpop.xlane.xlu0 %2284  ;;  %v2288_v46 = vpop.xlane.xlu1 %2287  ;;  %12656 = vmatpush3.bf16.msra.mxu1 %v2013_v25  ;;  %12657 = vmatprep.mubr.msk.bf16.mxu1 %vm13462_vm0, %v13461_v1 }
 0x4ad   : > { %13290 = vrcp.f32 %v2285_v45  ;;  %12667 = vmatprep.subr.bf16.mxu1 %v13461_v1 }
 0x4ae   : > { %v13285_v48 = vpop.eup %13284  ;;  %13292 = vrcp.f32 %v2288_v46 }
 0x4af   : > { %v2300_v41 = vmul.f32 %v13285_v48, %v13825_v4  ;;  %v13287_v49 = vpop.eup %13286 }
 0x4b0   : > { %v2301_v54 = vmul.f32 %v13287_v49, %v13822_v2 }
 0x4b1   : > { %v2306_v50 = vpack.c.bf16 %v2300_v41, %v2299_v39 }
 0x4b2   : > { %v13289_v51 = vpop.eup %13288 }
 0x4b3   : > { %v2302_v55 = vmul.f32 %v13289_v51, %v13837_v17  ;;  %12652 = vmatmul.mubr.msk.bf16.vlgmr.msra.gmra.mrb[20].mxu0 %vm2216_vm4, %v2306_v50  ;;  %v12990_v17 = vld [vmem:[%s13531_s19] sm:$0xff]  }
 0x4b4   : > { %12662 = vmatpush3.bf16.msra.mxu0 %v2017_v28  ;;  %12663 = vmatprep.mubr.msk.bf16.mxu0 %vm13462_vm0, %v13461_v1 }
 0x4b5   : > { %v2307_v58 = vpack.c.bf16 %v2302_v55, %v2301_v54 }
 0x4b7   : > { %v13291_v59 = vpop.eup %13290  ;;  %12658 = vmatmul.mubr.msk.bf16.vlgmr.msra.gmra.mrb[16].mxu1 %vm2216_vm4, %v2307_v58 }
 0x4b8   : > { %v13293_v53 = vpop.eup %13292  ;;  %12671 = vmatprep.mubr.msk.bf16.mxu1 %vm13462_vm0, %v13461_v1  ;;  %v2303_v4 = vmul.f32 %v13291_v59, %v13847_v31  ;;  %12668 = vmatpush3.bf16.msra.mxu1 %v12990_v17 }
 0x4b9   : > { %v2304_v2 = vmul.f32 %v13293_v53, %v13851_v36  ;;  %12669 = vmatprep.subr.bf16.mxu1 %v13461_v1 }
 0x4bb   : > { %v2308_v60 = vpack.c.bf16 %v2304_v2, %v2303_v4 }
 0x4bd   : > { %12664 = vmatmul.mubr.msk.bf16.vlgmr.msra.gmra.mrb[24].mxu0 %vm2216_vm4, %v2308_v60 }
 0x4be   : > { %2982 = vmatprep.mubr.bf16.mxu0 %v13468_v56 }
 0x57e   : > { %v2346_v62 = vpop.f32.mrb[12].mxu1 }
 0x57f   : > { %v12647_v63 = vpop.f32.mrb[13].mxu1 }
 0x580   : > { %v2349_v47 = vpop.f32.mrb[14].mxu1 }
 0x581   : > { %v2485_v0 = vpack.c.bf16 %v2349_v47, %v2346_v62  ;;  %v12648_v3 = vpop.f32.mrb[15].mxu1 }
 0x583   : > { %v2493_v9 = vshrl.u32 %v2485_v0, 16 }
 0x586   : > { %v2390_v5 = vpop.f32.mrb[20].mxu0 }
 0x587   : > { %v12653_v6 = vpop.f32.mrb[21].mxu0 }
 0x588   : > { %v2393_v7 = vpop.f32.mrb[22].mxu0 }
 0x589   : > { %v2486_v31 = vpack.c.bf16 %v2393_v7, %v2390_v5  ;;  %v12654_v8 = vpop.f32.mrb[23].mxu0 }
 0x58a   : > { %v2434_v36 = vpop.f32.mrb[16].mxu1 }
 0x58b   : > { %v2491_v10 = vpack.i.b16 %v2486_v31, %v2485_v0  ;;  %v2494_v12 = vshrl.u32 %v2486_v31, 16  ;;  %v12659_v13 = vpop.f32.mrb[17].mxu1 }
 0x58c   : > { %v2437_v14 = vpop.f32.mrb[18].mxu1 }
 0x58d   : > { %v2495_v15 = vpack.i.b16 %v2494_v12, %v2493_v9  ;;  %v2487_v16 = vpack.c.bf16 %v2437_v14, %v2434_v36  ;;  %v12660_v18 = vpop.f32.mrb[19].mxu1  ;;  %v2505_v26 = vcombine.high %v2491_v10, %v13701_v57  ;;  %v2512_v30 = vrot.slane %v2491_v10, %v13704_v61 }
 0x58f   : > { %v2501_v27 = vshrl.u32 %v2487_v16, 16  ;;  %v2519_v35 = vrot.slane %v2505_v26, %v13704_v61  ;;  %v2571_v37 = vcombine.high %v2495_v15, %v13701_v57  ;;  %v2578_v44 = vrot.slane %v2495_v15, %v13704_v61  ;;  %v12991_v15 = vld [vmem:[%s13531_s19 + $0x8] sm:$0xff]  }
 0x590   : > { %v2478_v21 = vpop.f32.mrb[24].mxu0  ;;  %12670 = vmatpush3.bf16.msra.mxu1 %v12991_v15 }
 0x591   : > { %v12665_v22 = vpop.f32.mrb[25].mxu0  ;;  %v2585_v49 = vrot.slane %v2571_v37, %v13704_v61 }
 0x592   : > { %v2481_v23 = vpop.f32.mrb[26].mxu0 }
 0x593   : > { %v2488_v24 = vpack.c.bf16 %v2481_v23, %v2478_v21  ;;  %v12666_v25 = vpop.f32.mrb[27].mxu0 }
 0x595   : > { %v2499_v28 = vpack.i.b16 %v2488_v24, %v2487_v16  ;;  %v2502_v29 = vshrl.u32 %v2488_v24, 16 }
 0x597   : > { %v2503_v32 = vpack.i.b16 %v2502_v29, %v2501_v27  ;;  %v2520_v33 = vcombine.high %v2499_v28, %v13701_v57  ;;  %v2527_v34 = vrot.slane %v2499_v28, %v13704_v61 }
 0x599   : > { %v2534_v38 = vrot.slane %v2520_v33, %v13704_v61  ;;  %v2535_v40 = vcombine.low %v2512_v30, %v2527_v34  ;;  %v2536_v42 = vcombine.high %v2512_v30, %v2527_v34  ;;  %v2586_v43 = vcombine.high %v2503_v32, %v13701_v57 }
 0x59a   : > { %v2593_v45 = vrot.slane %v2503_v32, %v13704_v61 }
 0x59b   : > { %v2543_v46 = vrot.slane %v2535_v40, %v13709_v11  ;;  %v2550_v48 = vrot.slane %v2536_v42, %v13709_v11  ;;  %v2551_v39 = vcombine.low %v2519_v35, %v2534_v38  ;;  %v2552_v41 = vcombine.high %v2519_v35, %v2534_v38 }
 0x59c   : > { %v2600_v50 = vrot.slane %v2586_v43, %v13704_v61  ;;  %v2601_v51 = vcombine.low %v2578_v44, %v2593_v45  ;;  %v2602_v54 = vcombine.high %v2578_v44, %v2593_v45 }
 0x59d   : > { %v2559_v55 = vrot.slane %v2551_v39, %v13709_v11  ;;  %v2566_v58 = vrot.slane %v2552_v41, %v13709_v11  ;;  %v2637_v59 = vcombine.low %v2543_v46, %v2550_v48  ;;  %v11592_v53 = vcombine.high %v2543_v46, %v2550_v48  ;;  %v11596_v41 = vld [vmem:[%s13536_s24] ss:$0 sm:$0xff] }
 0x59e   : > { %v2609_v4 = vrot.slane %v2601_v51, %v13709_v11  ;;  %v2616_v2 = vrot.slane %v2602_v54, %v13709_v11  ;;  %v2617_v60 = vcombine.low %v2585_v49, %v2600_v50  ;;  %v2618_v17 = vcombine.high %v2585_v49, %v2600_v50 }
 0x59f   : > { %v2653_v62 = vcombine.low %v2559_v55, %v2566_v58  ;;  %v11593_v63 = vcombine.high %v2559_v55, %v2566_v58  ;;  %v2644_v47 = vrot.slane %v2637_v59, %v13704_v61  ;;  %v2652_v0 = vrot.slane %v11592_v53, %v13704_v61 }
 0x5a0   : > { %v2625_v3 = vrot.slane %v2617_v60, %v13709_v11  ;;  %v2632_v5 = vrot.slane %v2618_v17, %v13709_v11  ;;  %v2687_v6 = vcombine.low %v2609_v4, %v2616_v2  ;;  %v11594_v7 = vcombine.high %v2609_v4, %v2616_v2 }
 0x5a1   : > { %v2660_v31 = vrot.slane %v2653_v62, %v13704_v61  ;;  %v2668_v8 = vrot.slane %v11593_v63, %v13704_v61  ;;  %v2669_v36 = vcombine.low %v2644_v47, %v2652_v0 }
 0x5a2   : > { %v2694_v9 = vrot.slane %v2687_v6, %v13704_v61  ;;  %v2702_v10 = vrot.slane %v11594_v7, %v13704_v61  ;;  %v2703_v12 = vcombine.low %v2625_v3, %v2632_v5  ;;  %v11595_v13 = vcombine.high %v2625_v3, %v2632_v5  ;;  %v12994_v6 = vld [vmem:[%s13551_s12 + $0x4] ss:$16 sps:$4 sm:$0xff]   ;;  %v12997_v7 = vld [vmem:[%s13551_s12 + $0xc] ss:$16 sps:$4 sm:$0xff]  }
 0x5a3   : > { %v2677_v14 = vcombine.low %v2660_v31, %v2668_v8  ;;  %v2676_v22 = vrot.slane %v2669_v36, %v13709_v11  ;;  %v12992_v31 = vld [vmem:[%s13551_s12] ss:$16 sps:$4 sm:$0xff]   ;;  %v12995_v8 = vld [vmem:[%s13551_s12 + $0x8] ss:$16 sps:$4 sm:$0xff]   ;;  %2950 = vmatprep.subr.bf16.mxu0 %v12994_v6  ;;  %2993 = vmatprep.subr.bf16.mxu1 %v12997_v7  ;;  %v13000_v36 = vld [vmem:[%s13551_s12 + $0x24] ss:$16 sps:$4 sm:$0xff]  }
 0x5a4   : > { %v2710_v16 = vrot.slane %v2703_v12, %v13704_v61  ;;  %v2718_v18 = vrot.slane %v11595_v13, %v13704_v61  ;;  %v2719_v21 = vcombine.low %v2694_v9, %v2702_v10  ;;  %2951 = vmatpush1.bf16.msra.mxu0 %v12992_v31  ;;  %v12998_v9 = vld [vmem:[%s13551_s12 + $0x20] ss:$16 sps:$4 sm:$0xff]   ;;  %v13001_v10 = vld [vmem:[%s13551_s12 + $0x28] ss:$16 sps:$4 sm:$0xff]   ;;  %v13003_v12 = vld [vmem:[%s13551_s12 + $0x2c] ss:$16 sps:$4 sm:$0xff]  }
 0x5a5   : > { %v2684_v23 = vrot.slane %v2677_v14, %v13709_v11  ;;  %2952 = vmatprep.subr.bf16.mxu0 %v13000_v36  ;;  %v13004_v13 = vld [vmem:[%s13561_s27 + $0x40] sm:$0xff]   ;;  %v14001_v6 = vsub.s32 2, %v13697_v52  ;;  %v14005_v31 = vsub.s32 1, %v13697_v52 }
 0x5a6   : > { %v2727_v24 = vcombine.low %v2710_v16, %v2718_v18  ;;  %v2726_v27 = vrot.slane %v2719_v21, %v13709_v11  ;;  %v13005_v14 = vld [vmem:[%s13561_s27 + $0xc0] sm:$0xff]  }
 0x5a7   : > { %v2686_v25 = vcombine.high %v2676_v22, %v2684_v23  ;;  %v2685_v26 = vcombine.low %v2676_v22, %v2684_v23  ;;  %v2885_v7 = vld [vmem:[%s15195_s2] sm:$0xf] }
 0x5a8   : > { %v2734_v28 = vrot.slane %v2727_v24, %v13709_v11  ;;  %2953 = vmatpush1.bf16.msra.mxu0 %v12998_v9  ;;  %v2898_v9 = vrot.slane %v2885_v7, %v14001_v6 }
 0x5a9   : > { %v2740_v32 = vshrl.u32 %v2685_v26, 16  ;;  %v2746_v33 = vshrl.u32 %v2686_v25, 16  ;;  %12295 = vmatprep.subr.bf16.mxu0 %v13004_v13 }
 0x5aa   : > { %v2736_v29 = vcombine.high %v2726_v27, %v2734_v28  ;;  %v2735_v30 = vcombine.low %v2726_v27, %v2734_v28 }
 0x5ac   : > { %v2745_v34 = vpack.i.b16 %v2736_v29, %v2686_v25  ;;  %v2741_v35 = vshrl.u32 %v2735_v30, 16  ;;  %v2747_v37 = vshrl.u32 %v2736_v29, 16  ;;  %v2739_v38 = vpack.i.b16 %v2735_v30, %v2685_v26  ;;  %v11600_v26 = vld [vmem:[%s15193_s28] ss:$0 sm:$0xff] }
 0x5ad   : > { %v11601_v30 = vld [vmem:[%s15194_s1] ss:$0 sm:$0xff] }
 0x5ae   : > { %2751 = vrot.lane.b32.xlu1 %v2745_v34, %s15179_s22  ;;  %v2742_v40 = vpack.i.b16 %v2741_v35, %v2740_v32  ;;  %v2748_v42 = vpack.i.b16 %v2747_v37, %v2746_v33  ;;  %v13006_v35 = vld [vmem:[%s13561_s27] sm:$0xff]  }
 0x5af   : > { %v13007_v37 = vld [vmem:[%s13561_s27 + $0x80] sm:$0xff]  }
 0x5b0   : > { %2749 = vrot.lane.b32.xlu0 %v2742_v40, %s15175_s23  ;;  %v13008_v40 = vld [vmem:[%s13561_s27 + $0x48] sm:$0xff]  }
 0x5b2   : > { %2753 = vrot.lane.b32.xlu1 %v2748_v42, %s15171_s26  ;;  %v13009_v42 = vld [vmem:[%s13561_s27 + $0xc8] sm:$0xff]   ;;  %s15198_s26 = sld [smem:[#allocation7_spill]] }
 0x620   : > { %v2752_v43 = vpop.permute.xlu1 %2751 }
 0x622   : > { %v2750_v44 = vpop.permute.xlu0 %2749 }
 0x623   : > { %v2757_v45 = vsel %vm2019_vm3, %v2739_v38, %v2750_v44  ;;  %v13011_v44 = vld [vmem:[%s13561_s27 + $0x88] sm:$0xff]  }
 0x624   : > { %v2754_v46 = vpop.permute.xlu1 %2753  ;;  %v2759_v48 = vsel %vm2216_vm4, %v2757_v45, %v2752_v43  ;;  %v13010_v43 = vld [vmem:[%s13561_s27 + $0x8] sm:$0xff]   ;;  %v13012_v45 = vld [vmem:[%s13561_s27 + $0x50] sm:$0xff]  }
 0x625   : > { %v2762_v39 = vsel %vm2760_vm5, %v2759_v48, %v2754_v46  ;;  %v13013_v46 = vld [vmem:[%s13561_s27 + $0xd0] sm:$0xff]  }
 0x626   : > { %12672 = vmatmul.mubr.msk.bf16.vlgmr.msra.gmra.mrb[20].mxu1 %vm1032_vm2, %v2762_v39  ;;  %v13014_v48 = vld [vmem:[%s13561_s27 + $0x10] sm:$0xff]  }
 0x627   : > { %3025 = vmatprep.mubr.bf16.mxu1 %v13468_v56  ;;  %2994 = vmatpush1.bf16.msra.mxu1 %v12995_v8  ;;  %v13015_v39 = vld [vmem:[%s13561_s27 + $0x90] sm:$0xff]   ;;  %v14008_v8 = vsub.s32 3, %v13697_v52 }
 0x628   : > { %2995 = vmatprep.subr.bf16.mxu1 %v13003_v12 }
 0x629   : > { %v2902_v12 = vrot.slane %v2885_v7, %v14008_v8 }
 0x62b   : > { %2996 = vmatpush1.bf16.msra.mxu1 %v13001_v10  ;;  %v2894_v10 = vrot.slane %v2885_v7, %v14005_v31 }
 0x62c   : > { %12317 = vmatprep.subr.bf16.mxu1 %v13005_v14 }
 0x6f9   : > { %v2822_v49 = vpop.f32.mrb[20].mxu1 }
 0x6fa   : > { %v2823_v50 = vadd.f32 %v11596_v41, %v2822_v49  ;;  %v12673_v51 = vpop.f32.mrb[21].mxu1  ;;  %v13017_v49 = vld [vmem:[%s13561_s27 + $0xd8] sm:$0xff]  }
 0x6fb   : > { %v2825_v54 = vpop.f32.mrb[22].mxu1  ;;  %v13019_v51 = vld [vmem:[%s13561_s27 + $0x98] sm:$0xff]  }
 0x6fc   : > { %v2826_v55 = vadd.f32 %v11596_v41, %v2825_v54  ;;  %v12674_v58 = vpop.f32.mrb[23].mxu1  ;;  %v2829_v59 = vadd.f32 %v2823_v50, %v13667_v19  ;;  %v13016_v41 = vld [vmem:[%s13561_s27 + $0x58] sm:$0xff]   ;;  %v13020_v54 = vld [vmem:[%s13561_s27 + $0x60] sm:$0xff]  }
 0x6fd   : > { %v13018_v50 = vld [vmem:[%s13561_s27 + $0x18] sm:$0xff]   ;;  %v13022_v58 = vld [vmem:[%s13561_s27 + $0x20] sm:$0xff]  }
 0x6fe   : > { %v2833_v53 = vsel %vm1032_vm2, %v2829_v59, 0.0  ;;  %v2830_v4 = vadd.f32 %v2826_v55, %v13669_v20  ;;  %v13021_v55 = vld [vmem:[%s13561_s27 + $0xe0] sm:$0xff]  }
 0x6ff   : > { %2834 = vadd.xlane.f32.xlu0 %v2833_v53  ;;  %v13024_v53 = vld [vmem:[%s13561_s27 + $0x68] sm:$0xff]  }
 0x700   : > { %v2836_v2 = vsel %vm1032_vm2, %v2830_v4, 0.0 }
 0x701   : > { %2837 = vadd.xlane.f32.xlu1 %v2836_v2  ;;  %v13026_v2 = vld [vmem:[%s13561_s27 + $0x28] sm:$0xff]  }
 0x78c   : > { %v2835_v60 = vpop.xlane.xlu0 %2834 }
 0x78d   : > { %v2840_v17 = vmul.f32 0.03125, %v2835_v60  ;;  %v13027_v60 = vld [vmem:[%s13561_s27 + $0xa8] sm:$0xff]  }
 0x78e   : > { %v2838_v62 = vpop.xlane.xlu1 %2837 }
 0x78f   : > { %v2842_v63 = vsub.f32 %v2829_v59, %v2840_v17  ;;  %v2841_v47 = vmul.f32 0.03125, %v2838_v62  ;;  %v13023_v59 = vld [vmem:[%s13561_s27 + $0xa0] sm:$0xff]   ;;  %v13028_v17 = vld [vmem:[%s13561_s27 + $0x70] sm:$0xff]  }
 0x790   : > { %v13029_v62 = vld [vmem:[%s13561_s27 + $0xf0] sm:$0xff]  }
 0x791   : > { %v2843_v0 = vsub.f32 %v2830_v4, %v2841_v47  ;;  %v2844_v19 = vmul.f32 %v2842_v63, %v2842_v63  ;;  %v13025_v4 = vld [vmem:[%s13561_s27 + $0xe8] sm:$0xff]   ;;  %v13031_v47 = vld [vmem:[%s13561_s27 + $0xb0] sm:$0xff]  }
 0x793   : > { %v2846_v20 = vsel %vm1032_vm2, %v2844_v19, 0.0  ;;  %v2845_v3 = vmul.f32 %v2843_v0, %v2843_v0  ;;  %v13033_v19 = vld [vmem:[%s13561_s27 + $0xf8] sm:$0xff]  }
 0x794   : > { %2847 = vadd.xlane.f32.xlu0 %v2846_v20  ;;  %v13034_v20 = vld [vmem:[%s13561_s27 + $0x38] sm:$0xff]  }
 0x795   : > { %v2849_v5 = vsel %vm1032_vm2, %v2845_v3, 0.0  ;;  %v13035_v3 = vld [vmem:[%s13561_s27 + $0xb8] sm:$0xff]  }
 0x798   : > { %2850 = vadd.xlane.f32.xlu0 %v2849_v5  ;;  %v13998_v5 = vsub.s32 0, %v13697_v52 }
 0x79a   : > { %v2890_v36 = vrot.slane %v2885_v7, %v13998_v5 }
 0x821   : > { %v2848_v15 = vpop.xlane.xlu0 %2847 }
 0x822   : > { %v2852_v16 = vmul.f32 0.03125, %v2848_v15 }
 0x824   : > { %v2854_v18 = vadd.f32 1e-05, %v2852_v16 }
 0x825   : > { %v2851_v21 = vpop.xlane.xlu0 %2850 }
 0x826   : > { %13294 = vrsqrt.f32 %v2854_v18  ;;  %v2853_v22 = vmul.f32 0.03125, %v2851_v21 }
 0x828   : > { %v2855_v23 = vadd.f32 1e-05, %v2853_v22 }
 0x82a   : > { %13296 = vrsqrt.f32 %v2855_v23 }
 0x830   : > { %v13295_v24 = vpop.eup %13294 }
 0x831   : > { %v2858_v25 = vmul.f32 %v13295_v24, %v2842_v63  ;;  %v13030_v63 = vld [vmem:[%s13561_s27 + $0x30] sm:$0xff]  }
 0x833   : > { %v2866_v28 = vmul.f32 %v11600_v26, %v2858_v25 }
 0x834   : > { %v13297_v27 = vpop.eup %13296 }
 0x835   : > { %v2859_v29 = vmul.f32 %v13297_v27, %v2843_v0  ;;  %v13957_v33 = vadd.f32 %v11601_v30, %v2866_v28  ;;  %v13032_v0 = vld [vmem:[%s13561_s27 + $0x78] sm:$0xff]  }
 0x837   : > { %v2867_v32 = vmul.f32 %v11600_v26, %v2859_v29 }
 0x839   : > { %v13959_v34 = vadd.f32 %v11601_v30, %v2867_v32 }
 0x83b   : > { %v2876_v38 = vpack.c.bf16 %v13959_v34, %v13957_v33 }
 0x83d   : > { %11610 = vmatmul.mubr.msk.bf16.vlgmr.msra.gmra.mrb[28].mxu0 %vm1032_vm2, %v2876_v38  ;;  %11611 = vmatmul.mubr.msk.bf16.vlgmr.msra.gmra.mrb[24].mxu1 %vm1032_vm2, %v2876_v38 }
 0x83e   : > { %12296 = vmatpush3.bf16.msra.mxu0 %v13006_v35  ;;  %12318 = vmatpush3.bf16.msra.mxu1 %v13007_v37 }
 0x83f   : > { %12297 = vmatprep.subr.bf16.mxu0 %v13008_v40  ;;  %12319 = vmatprep.subr.bf16.mxu1 %v13009_v42 }
 0x842   : > { %12298 = vmatpush3.bf16.msra.mxu0 %v13010_v43  ;;  %12320 = vmatpush3.bf16.msra.mxu1 %v13011_v44 }
 0x843   : > { %12299 = vmatprep.subr.bf16.mxu0 %v13012_v45  ;;  %12321 = vmatprep.subr.bf16.mxu1 %v13013_v46 }
 0x846   : > { %12300 = vmatpush3.bf16.msra.mxu0 %v13014_v48  ;;  %12322 = vmatpush3.bf16.msra.mxu1 %v13015_v39 }
 0x847   : > { %12301 = vmatprep.subr.bf16.mxu0 %v13016_v41  ;;  %12323 = vmatprep.subr.bf16.mxu1 %v13017_v49 }
 0x84a   : > { %12302 = vmatpush3.bf16.msra.mxu0 %v13018_v50  ;;  %12324 = vmatpush3.bf16.msra.mxu1 %v13019_v51  ;;  %v11612_v50 = vld [vmem:[%s15196_s0] ss:$0 sm:$0xff] }
 0x84b   : > { %12303 = vmatprep.subr.bf16.mxu0 %v13020_v54  ;;  %12325 = vmatprep.subr.bf16.mxu1 %v13021_v55 }
 0x84e   : > { %12304 = vmatpush3.bf16.msra.mxu0 %v13022_v58  ;;  %12326 = vmatpush3.bf16.msra.mxu1 %v13023_v59 }
 0x84f   : > { %12305 = vmatprep.subr.bf16.mxu0 %v13024_v53  ;;  %12327 = vmatprep.subr.bf16.mxu1 %v13025_v4 }
 0x852   : > { %12306 = vmatpush3.bf16.msra.mxu0 %v13026_v2  ;;  %12328 = vmatpush3.bf16.msra.mxu1 %v13027_v60 }
 0x853   : > { %12307 = vmatprep.subr.bf16.mxu0 %v13028_v17  ;;  %12329 = vmatprep.subr.bf16.mxu1 %v13029_v62 }
 0x856   : > { %12308 = vmatpush3.bf16.msra.mxu0 %v13030_v63  ;;  %12330 = vmatpush3.bf16.msra.mxu1 %v13031_v47 }
 0x857   : > { %12309 = vmatprep.subr.bf16.mxu0 %v13032_v0  ;;  %12331 = vmatprep.subr.bf16.mxu1 %v13033_v19 }
 0x85a   : > { %12310 = vmatpush3.bf16.msra.mxu0 %v13034_v20  ;;  %12332 = vmatpush3.bf16.msra.mxu1 %v13035_v3 }
 0x85b   : > { %12675 = vmatprep.subr.bf16.mxu0 %v13461_v1  ;;  %12683 = vmatprep.subr.bf16.mxu1 %v13461_v1 }
 0x910   : > { %v2984_v13 = vpop.f32.mrb[28].mxu0  ;;  %v3027_v14 = vpop.f32.mrb[24].mxu1 }
 0x911   : > { %v2985_v15 = vadd.f32 %v2984_v13, %v2890_v36  ;;  %v3028_v16 = vadd.f32 %v3027_v14, %v2898_v9  ;;  %v2986_v18 = vpop.f32.mrb[29].mxu0  ;;  %v3029_v21 = vpop.f32.mrb[25].mxu1 }
 0x912   : > { %v2987_v22 = vadd.f32 %v2986_v18, %v2894_v10  ;;  %v3030_v23 = vadd.f32 %v3029_v21, %v2902_v12  ;;  %v2988_v24 = vpop.f32.mrb[30].mxu0  ;;  %v3031_v25 = vpop.f32.mrb[26].mxu1  ;;  %v13036_v18 = vld [vmem:[%s13501_s21 + $0x10] sm:$0xff]  }
 0x913   : > { %v2989_v52 = vadd.f32 %v2988_v24, %v2890_v36  ;;  %v3032_v26 = vadd.f32 %v3031_v25, %v2898_v9  ;;  %v2990_v27 = vpop.f32.mrb[31].mxu0  ;;  %v3033_v28 = vpop.f32.mrb[27].mxu1  ;;  %v3036_v32 = vmax.f32 %v2985_v15, 0.0  ;;  %v3038_v35 = vmax.f32 %v3028_v16, 0.0  ;;  %v13037_v21 = vld [vmem:[%s13506_s25 + $0x10] sm:$0xff]  }
 0x914   : > { %v2991_v29 = vadd.f32 %v2990_v27, %v2894_v10  ;;  %v3034_v30 = vadd.f32 %v3033_v28, %v2902_v12  ;;  %v3037_v40 = vmax.f32 %v2987_v22, 0.0  ;;  %v3039_v42 = vmax.f32 %v3030_v23, 0.0  ;;  %v13038_v22 = vld [vmem:[%s13501_s21 + $0x18] sm:$0xff]  }
 0x915   : > { %v3040_v37 = vmax.f32 %v2989_v52, 0.0  ;;  %v3042_v38 = vmax.f32 %v3032_v26, 0.0  ;;  %v13039_v23 = vld [vmem:[%s13506_s25 + $0x18] sm:$0xff]  }
 0x916   : > { %v3041_v43 = vmax.f32 %v2991_v29, 0.0  ;;  %v3043_v44 = vmax.f32 %v3034_v30, 0.0  ;;  %v11645_v30 = vld [vmem:[%s15197_s11] ss:$0 sm:$0xff] }
 0x917   : > { %v3044_v45 = vpack.c.bf16 %v3040_v37, %v3036_v32  ;;  %v3046_v46 = vpack.c.bf16 %v3042_v38, %v3038_v35 }
 0x918   : > { %v3045_v48 = vpack.c.bf16 %v3041_v43, %v3037_v40  ;;  %v3047_v39 = vpack.c.bf16 %v3043_v44, %v3039_v42  ;;  %v11646_v40 = vld [vmem:[%s15198_s26] ss:$0 sm:$0xff] }
 0x91a   : > { %3343 = vmatprep.mubr.bf16.mxu0 %v3045_v48  ;;  %3384 = vmatprep.mubr.bf16.mxu1 %v3047_v39  ;;  %v13041_v48 = vld [vmem:[%s13511_s29 + $0x18] sm:$0xff]   ;;  %v11652_v39 = vld [vmem:[%s13516_s3 + $0x1] ss:$0 sm:$0xff] }
 0x91b   : > { %3344 = vmatmul.mubr.bf16.vlgmr.msra.gmra.mrb[32].mxu0 %v3044_v45  ;;  %3385 = vmatmul.mubr.bf16.vlgmr.msra.gmra.mrb[28].mxu1 %v3046_v46  ;;  %v13040_v45 = vld [vmem:[%s13511_s29 + $0x10] sm:$0xff]  }
 0x91c   : > { %12679 = vmatprep.mubr.msk.bf16.mxu0 %vm13462_vm0, %v13461_v1  ;;  %12687 = vmatprep.mubr.msk.bf16.mxu1 %vm13462_vm0, %v13461_v1 }
 0x91d   : > { %12676 = vmatpush3.bf16.msra.mxu0 %v13036_v18  ;;  %12684 = vmatpush3.bf16.msra.mxu1 %v13037_v21 }
 0x91e   : > { %12677 = vmatprep.subr.bf16.mxu0 %v13461_v1  ;;  %12685 = vmatprep.subr.bf16.mxu1 %v13461_v1 }
 0x921   : > { %12678 = vmatpush3.bf16.msra.mxu0 %v13038_v22  ;;  %12686 = vmatpush3.bf16.msra.mxu1 %v13039_v23 }
 0x922   : > { %12691 = vmatprep.subr.bf16.mxu0 %v13461_v1  ;;  %12699 = vmatprep.subr.bf16.mxu1 %v13461_v1 }
 0x9ee   : > { %v12311_v41 = vpop.f32.mrb[32].mxu0  ;;  %v12333_v49 = vpop.f32.mrb[28].mxu1 }
 0x9ef   : > { %v12312_v51 = vpop.f32.mrb[33].mxu0  ;;  %v12334_v54 = vpop.f32.mrb[29].mxu1 }
 0x9f0   : > { %v12313_v55 = vadd.f32 %v12312_v51, %v12311_v41  ;;  %v12335_v58 = vadd.f32 %v12334_v54, %v12333_v49  ;;  %v12314_v59 = vpop.f32.mrb[34].mxu0  ;;  %v12336_v53 = vpop.f32.mrb[30].mxu1  ;;  %v11661_v49 = vld [vmem:[%s13521_s8 + $0x1] ss:$0 sm:$0xff] }
 0x9f1   : > { %v12315_v4 = vpop.f32.mrb[35].mxu0  ;;  %v12337_v2 = vpop.f32.mrb[31].mxu1 }
 0x9f2   : > { %v3346_v60 = vadd.f32 %v12313_v55, %v11612_v50  ;;  %v12316_v17 = vadd.f32 %v12315_v4, %v12314_v59  ;;  %v12338_v62 = vadd.f32 %v12337_v2, %v12336_v53 }
 0x9f4   : > { %v3387_v63 = vadd.f32 %v12335_v58, %v3346_v60  ;;  %v3349_v47 = vadd.f32 %v12316_v17, %v11612_v50 }
 0x9f6   : > { %v3390_v0 = vadd.f32 %v12338_v62, %v3349_v47  ;;  %v3393_v19 = vadd.f32 %v3387_v63, %v13957_v33  ;;  %v11670_v47 = vld [vmem:[%s13526_s14 + $0x1] ss:$0 sm:$0xff] }
 0x9f8   : > { %v3397_v20 = vsel %vm1032_vm2, %v3393_v19, 0.0  ;;  %v3394_v3 = vadd.f32 %v3390_v0, %v13959_v34 }
 0x9f9   : > { %3398 = vadd.xlane.f32.xlu1 %v3397_v20 }
 0x9fa   : > { %v3400_v7 = vsel %vm1032_vm2, %v3394_v3, 0.0 }
 0x9fb   : > { %3401 = vadd.xlane.f32.xlu0 %v3400_v7 }
 0xa86   : > { %v3399_v36 = vpop.xlane.xlu1 %3398 }
 0xa87   : > { %v3403_v9 = vmul.f32 0.03125, %v3399_v36 }
 0xa88   : > { %v3402_v10 = vpop.xlane.xlu0 %3401 }
 0xa89   : > { %v3405_v12 = vsub.f32 %v3393_v19, %v3403_v9  ;;  %v3404_v13 = vmul.f32 0.03125, %v3402_v10 }
 0xa8b   : > { %v3406_v14 = vsub.f32 %v3394_v3, %v3404_v13  ;;  %v3407_v15 = vmul.f32 %v3405_v12, %v3405_v12 }
 0xa8d   : > { %v3409_v33 = vsel %vm1032_vm2, %v3407_v15, 0.0  ;;  %v3408_v16 = vmul.f32 %v3406_v14, %v3406_v14 }
 0xa8e   : > { %3410 = vadd.xlane.f32.xlu1 %v3409_v33 }
 0xa8f   : > { %v3412_v34 = vsel %vm1032_vm2, %v3408_v16, 0.0 }
 0xa90   : > { %3413 = vadd.xlane.f32.xlu0 %v3412_v34 }
 0xb1b   : > { %v3411_v24 = vpop.xlane.xlu1 %3410 }
 0xb1c   : > { %v3415_v25 = vmul.f32 0.03125, %v3411_v24 }
 0xb1d   : > { %v3414_v52 = vpop.xlane.xlu0 %3413 }
 0xb1e   : > { %v3417_v26 = vadd.f32 1e-05, %v3415_v25  ;;  %v3416_v27 = vmul.f32 0.03125, %v3414_v52 }
 0xb20   : > { %13298 = vrsqrt.f32 %v3417_v26  ;;  %v3418_v28 = vadd.f32 1e-05, %v3416_v27 }
 0xb22   : > { %13300 = vrsqrt.f32 %v3418_v28 }
 0xb2a   : > { %v13299_v29 = vpop.eup %13298 }
 0xb2b   : > { %v3421_v32 = vmul.f32 %v13299_v29, %v3405_v12 }
 0xb2c   : > { %v13301_v35 = vpop.eup %13300 }
 0xb2d   : > { %v3429_v37 = vmul.f32 %v11645_v30, %v3421_v32  ;;  %v3422_v38 = vmul.f32 %v13301_v35, %v3406_v14 }
 0xb2f   : > { %v3430_v42 = vmul.f32 %v11645_v30, %v3422_v38  ;;  %v14035_v43 = vadd.f32 %v11646_v40, %v3429_v37 }
 0xb31   : > { %v14037_v44 = vadd.f32 %v11646_v40, %v3430_v42 }
 0xb33   : > { %v3439_v46 = vpack.c.bf16 %v14037_v44, %v14035_v43 }
 0xb35   : > { %12680 = vmatmul.mubr.msk.bf16.vlgmr.msra.gmra.mrb[36].mxu0 %vm1032_vm2, %v3439_v46  ;;  %12688 = vmatmul.mubr.msk.bf16.vlgmr.msra.gmra.mrb[32].mxu1 %vm1032_vm2, %v3439_v46 }
 0xb36   : > { %12692 = vmatpush3.bf16.msra.mxu0 %v13040_v45  ;;  %12695 = vmatprep.mubr.msk.bf16.mxu0 %vm13462_vm0, %v13461_v1 }
 0xb37   : > { %12693 = vmatprep.subr.bf16.mxu0 %v13461_v1  ;;  %12701 = vmatprep.mubr.msk.bf16.mxu1 %vm13462_vm0, %v13461_v1 }
 0xb3a   : > { %12694 = vmatpush3.bf16.msra.mxu0 %v13041_v48 }
 0xb3b   : > { %12705 = vmatprep.subr.bf16.mxu0 %v13461_v1 }
 0xb3d   : > { %12696 = vmatmul.mubr.msk.bf16.vlgmr.msra.gmra.mrb[40].mxu0 %vm1032_vm2, %v3439_v46 }
 0xb3e   : > { %12707 = vmatprep.mubr.msk.bf16.mxu0 %vm13462_vm0, %v13461_v1 }
 0xc08   : > { %v3502_v41 = vpop.f32.mrb[36].mxu0  ;;  %v3568_v50 = vpop.f32.mrb[32].mxu1 }
 0xc09   : > { %v12681_v51 = vpop.f32.mrb[37].mxu0  ;;  %v12689_v54 = vpop.f32.mrb[33].mxu1  ;;  %v3503_v59 = vadd.f32 %v11652_v39, %v3502_v41  ;;  %v3569_v53 = vadd.f32 %v11661_v49, %v3568_v50 }
 0xc0a   : > { %v3505_v55 = vpop.f32.mrb[38].mxu0  ;;  %v3571_v58 = vpop.f32.mrb[34].mxu1 }
 0xc0b   : > { %v3506_v4 = vadd.f32 %v11652_v39, %v3505_v55  ;;  %v3572_v2 = vadd.f32 %v11661_v49, %v3571_v58  ;;  %v12682_v60 = vpop.f32.mrb[39].mxu0  ;;  %v12690_v17 = vpop.f32.mrb[35].mxu1 }
 0xc0d   : > { %v14056_v62 = vpack.c.bf16 %v3506_v4, %v3503_v59  ;;  %v3909_v63 = vpack.c.bf16 %v3572_v2, %v3569_v53 }
 0xc0f   : > { %3913 = vrot.lane.b32.xlu0 %v3909_v63, %s13465_s18  ;;  %3911 = vrot.lane.b32.xlu1 %v3909_v63, %s15177_s16  ;;  %v3921_v13 = vshrl.u32 %v3909_v63, 16  ;;  %v3653_v59 = vshrl.u32 %v14056_v62, 16 }
 0xc10   : > { %v3634_v0 = vpop.f32.mrb[40].mxu0 }
 0xc11   : > { %v12697_v19 = vpop.f32.mrb[41].mxu0  ;;  %v3635_v3 = vadd.f32 %v11670_v47, %v3634_v0 }
 0xc12   : > { %v3637_v20 = vpop.f32.mrb[42].mxu0 }
 0xc13   : > { %v3638_v7 = vadd.f32 %v11670_v47, %v3637_v20  ;;  %3915 = vrot.lane.b32.xlu1 %v3909_v63, %s15173_s15  ;;  %3645 = vrot.lane.b32.xlu0 %v14056_v62, %s13465_s18  ;;  %v12698_v36 = vpop.f32.mrb[43].mxu0 }
 0xc15   : > { %v14064_v9 = vpack.c.bf16 %v3638_v7, %v3635_v3 }
 0xc17   : > { %3643 = vrot.lane.b32.xlu1 %v14056_v62, %s15177_s16 }
 0xc1b   : > { %3647 = vrot.lane.b32.xlu1 %v14056_v62, %s15173_s15 }
 0xc81   : > { %v3912_v10 = vpop.permute.xlu1 %3911  ;;  %v3914_v15 = vpop.permute.xlu0 %3913 }
 0xc82   : > { %v3919_v12 = vpack.i.b16 %v3912_v10, %v3909_v63  ;;  %v3922_v14 = vshrl.u32 %v3912_v10, 16  ;;  %v3929_v21 = vshrl.u32 %v3914_v15, 16 }
 0xc84   : > { %v3923_v33 = vpack.i.b16 %v3922_v14, %v3921_v13  ;;  %v3933_v16 = vcombine.high %v3919_v12, %v13701_v57  ;;  %v3940_v24 = vrot.slane %v3919_v12, %v13704_v61 }
 0xc85   : > { %v3916_v34 = vpop.permute.xlu1 %3915  ;;  %v3646_v58 = vpop.permute.xlu0 %3645 }
 0xc86   : > { %v3927_v18 = vpack.i.b16 %v3916_v34, %v3914_v15  ;;  %v3999_v22 = vcombine.high %v3923_v33, %v13701_v57  ;;  %v3930_v23 = vshrl.u32 %v3916_v34, 16  ;;  %v3947_v26 = vrot.slane %v3933_v16, %v13704_v61 }
 0xc87   : > { %v4006_v29 = vrot.slane %v3923_v33, %v13704_v61  ;;  %v3661_v19 = vshrl.u32 %v3646_v58, 16 }
 0xc88   : > { %v3948_v25 = vcombine.high %v3927_v18, %v13701_v57  ;;  %v3955_v52 = vrot.slane %v3927_v18, %v13704_v61  ;;  %v3931_v27 = vpack.i.b16 %v3930_v23, %v3929_v21  ;;  %v4013_v37 = vrot.slane %v3999_v22, %v13704_v61 }
 0xc89   : > { %v3644_v28 = vpop.permute.xlu1 %3643 }
 0xc8a   : > { %v3962_v30 = vrot.slane %v3948_v25, %v13704_v61  ;;  %v3963_v32 = vcombine.low %v3940_v24, %v3955_v52  ;;  %v3964_v35 = vcombine.high %v3940_v24, %v3955_v52  ;;  %v4014_v38 = vcombine.high %v3931_v27, %v13701_v57 }
 0xc8b   : > { %v4021_v40 = vrot.slane %v3931_v27, %v13704_v61  ;;  %v3651_v42 = vpack.i.b16 %v3644_v28, %v14056_v62  ;;  %v3654_v39 = vshrl.u32 %v3644_v28, 16 }
 0xc8c   : > { %v3971_v45 = vrot.slane %v3963_v32, %v13709_v11  ;;  %v3979_v46 = vcombine.low %v3947_v26, %v3962_v30  ;;  %v3980_v48 = vcombine.high %v3947_v26, %v3962_v30  ;;  %v3978_v41 = vrot.slane %v3964_v35, %v13709_v11 }
 0xc8d   : > { %v4028_v49 = vrot.slane %v4014_v38, %v13704_v61  ;;  %v4029_v50 = vcombine.low %v4006_v29, %v4021_v40  ;;  %v4030_v51 = vcombine.high %v4006_v29, %v4021_v40  ;;  %v3648_v17 = vpop.permute.xlu1 %3647  ;;  %v3665_v63 = vcombine.high %v3651_v42, %v13701_v57 }
 0xc8e   : > { %v3987_v54 = vrot.slane %v3979_v46, %v13709_v11  ;;  %v3994_v55 = vrot.slane %v3980_v48, %v13709_v11  ;;  %v4065_v47 = vcombine.low %v3971_v45, %v3978_v41  ;;  %v3655_v20 = vpack.i.b16 %v3654_v39, %v3653_v59 }
 0xc8f   : > { %v4037_v53 = vrot.slane %v4029_v50, %v13709_v11  ;;  %v4044_v4 = vrot.slane %v4030_v51, %v13709_v11  ;;  %v4045_v2 = vcombine.low %v4013_v37, %v4028_v49  ;;  %v4046_v60 = vcombine.high %v4013_v37, %v4028_v49 }
 0xc90   : > { %v4081_v0 = vcombine.low %v3987_v54, %v3994_v55  ;;  %v11678_v3 = vcombine.high %v3971_v45, %v3978_v41  ;;  %v11679_v7 = vcombine.high %v3987_v54, %v3994_v55  ;;  %v3672_v36 = vrot.slane %v3651_v42, %v13704_v61 }
 0xc91   : > { %v3659_v10 = vpack.i.b16 %v3648_v17, %v3646_v58  ;;  %v4053_v62 = vrot.slane %v4045_v2, %v13709_v11  ;;  %v4060_v12 = vrot.slane %v4046_v60, %v13709_v11  ;;  %v4115_v13 = vcombine.low %v4037_v53, %v4044_v4 }
 0xc92   : > { %v3662_v14 = vshrl.u32 %v3648_v17, 16  ;;  %v11680_v15 = vcombine.high %v4037_v53, %v4044_v4  ;;  %v3679_v33 = vrot.slane %v3665_v63, %v13704_v61  ;;  %v3731_v18 = vcombine.high %v3655_v20, %v13701_v57 }
 0xc93   : > { %v3680_v16 = vcombine.high %v3659_v10, %v13701_v57  ;;  %v3687_v34 = vrot.slane %v3659_v10, %v13704_v61  ;;  %v3738_v21 = vrot.slane %v3655_v20, %v13704_v61  ;;  %v4088_v23 = vrot.slane %v4081_v0, %v13704_v61 }
 0xc94   : > { %v3663_v22 = vpack.i.b16 %v3662_v14, %v3661_v19  ;;  %v4096_v26 = vrot.slane %v11679_v7, %v13704_v61  ;;  %v4072_v29 = vrot.slane %v4065_v47, %v13704_v61  ;;  %v4080_v30 = vrot.slane %v11678_v3, %v13704_v61 }
 0xc95   : > { %v3694_v24 = vrot.slane %v3680_v16, %v13704_v61  ;;  %v3695_v25 = vcombine.low %v3672_v36, %v3687_v34  ;;  %v3696_v52 = vcombine.high %v3672_v36, %v3687_v34  ;;  %v3745_v40 = vrot.slane %v3731_v18, %v13704_v61 }
 0xc96   : > { %v3746_v27 = vcombine.high %v3663_v22, %v13701_v57  ;;  %v3753_v28 = vrot.slane %v3663_v22, %v13704_v61  ;;  %v4105_v41 = vcombine.low %v4088_v23, %v4096_v26  ;;  %v4131_v49 = vcombine.low %v4053_v62, %v4060_v12 }
 0xc97   : > { %v3703_v32 = vrot.slane %v3695_v25, %v13709_v11  ;;  %v3710_v35 = vrot.slane %v3696_v52, %v13709_v11  ;;  %v3711_v37 = vcombine.low %v3679_v33, %v3694_v24  ;;  %v3712_v38 = vcombine.high %v3679_v33, %v3694_v24 }
 0xc98   : > { %v3760_v42 = vrot.slane %v3746_v27, %v13704_v61  ;;  %v3761_v45 = vcombine.low %v3738_v21, %v3753_v28  ;;  %v3762_v46 = vcombine.high %v3738_v21, %v3753_v28  ;;  %v4097_v47 = vcombine.low %v4072_v29, %v4080_v30 }
 0xc99   : > { %v3719_v48 = vrot.slane %v3711_v37, %v13709_v11  ;;  %v3726_v39 = vrot.slane %v3712_v38, %v13709_v11  ;;  %v3797_v58 = vcombine.low %v3703_v32, %v3710_v35  ;;  %v11674_v59 = vcombine.high %v3703_v32, %v3710_v35 }
 0xc9a   : > { %v3769_v50 = vrot.slane %v3761_v45, %v13709_v11  ;;  %v3776_v51 = vrot.slane %v3762_v46, %v13709_v11  ;;  %v3777_v54 = vcombine.low %v3745_v40, %v3760_v42  ;;  %v3778_v55 = vcombine.high %v3745_v40, %v3760_v42 }
 0xc9b   : > { %v3813_v53 = vcombine.low %v3719_v48, %v3726_v39  ;;  %v11675_v4 = vcombine.high %v3719_v48, %v3726_v39  ;;  %v4112_v0 = vrot.slane %v4105_v41, %v13709_v11  ;;  %v4122_v19 = vrot.slane %v4115_v13, %v13704_v61 }
 0xc9c   : > { %v3785_v2 = vrot.slane %v3777_v54, %v13709_v11  ;;  %v3792_v60 = vrot.slane %v3778_v55, %v13709_v11  ;;  %v3847_v17 = vcombine.low %v3769_v50, %v3776_v51  ;;  %v11676_v63 = vcombine.high %v3769_v50, %v3776_v51 }
 0xc9d   : > { %v4130_v20 = vrot.slane %v11680_v15, %v13704_v61  ;;  %v3820_v3 = vrot.slane %v3813_v53, %v13704_v61  ;;  %v3828_v7 = vrot.slane %v11675_v4, %v13704_v61  ;;  %v4138_v16 = vrot.slane %v4131_v49, %v13704_v61 }
 0xc9e   : > { %v3863_v36 = vcombine.low %v3785_v2, %v3792_v60  ;;  %v11677_v10 = vcombine.high %v3785_v2, %v3792_v60  ;;  %v3854_v14 = vrot.slane %v3847_v17, %v13704_v61  ;;  %v3862_v33 = vrot.slane %v11676_v63, %v13704_v61 }
 0xc9f   : > { %v11681_v34 = vcombine.high %v4053_v62, %v4060_v12  ;;  %v3804_v18 = vrot.slane %v3797_v58, %v13704_v61  ;;  %v3812_v21 = vrot.slane %v11674_v59, %v13704_v61  ;;  %v4147_v23 = vcombine.low %v4122_v19, %v4130_v20 }
 0xca0   : > { %v3870_v13 = vrot.slane %v3863_v36, %v13704_v61  ;;  %v3878_v15 = vrot.slane %v11677_v10, %v13704_v61  ;;  %v4104_v24 = vrot.slane %v4097_v47, %v13709_v11  ;;  %v3837_v52 = vcombine.low %v3820_v3, %v3828_v7 }
 0xca1   : > { %v4146_v22 = vrot.slane %v11681_v34, %v13704_v61  ;;  %v3879_v26 = vcombine.low %v3854_v14, %v3862_v33  ;;  %v3829_v28 = vcombine.low %v3804_v18, %v3812_v21  ;;  %v4154_v62 = vrot.slane %v4147_v23, %v13709_v11 }
 0xca2   : > { %v3887_v25 = vcombine.low %v3870_v13, %v3878_v15  ;;  %v4113_v29 = vcombine.low %v4104_v24, %v4112_v0  ;;  %v3844_v35 = vrot.slane %v3837_v52, %v13709_v11  ;;  %v4114_v50 = vcombine.high %v4104_v24, %v4112_v0 }
 0xca3   : > { %v4155_v27 = vcombine.low %v4138_v16, %v4146_v22  ;;  %v3886_v37 = vrot.slane %v3879_v26, %v13709_v11  ;;  %v3836_v40 = vrot.slane %v3829_v28, %v13709_v11 }
 0xca4   : > { %v3894_v30 = vrot.slane %v3887_v25, %v13709_v11  ;;  %v4168_v38 = vshrl.u32 %v4113_v29, 16  ;;  %v4174_v4 = vshrl.u32 %v4114_v50, 16 }
 0xca5   : > { %v4162_v12 = vrot.slane %v4155_v27, %v13709_v11  ;;  %v3845_v49 = vcombine.low %v3836_v40, %v3844_v35  ;;  %v3846_v0 = vcombine.high %v3836_v40, %v3844_v35 }
 0xca6   : > { %v3895_v46 = vcombine.low %v3886_v37, %v3894_v30  ;;  %v3896_v63 = vcombine.high %v3886_v37, %v3894_v30 }
 0xca7   : > { %v4163_v32 = vcombine.low %v4154_v62, %v4162_v12  ;;  %v4164_v48 = vcombine.high %v4154_v62, %v4162_v12  ;;  %v3900_v53 = vshrl.u32 %v3845_v49, 16  ;;  %v3906_v3 = vshrl.u32 %v3846_v0, 16 }
 0xca8   : > { %v3901_v54 = vshrl.u32 %v3895_v46, 16  ;;  %v3899_v58 = vpack.i.b16 %v3895_v46, %v3845_v49  ;;  %v3907_v19 = vshrl.u32 %v3896_v63, 16  ;;  %v3905_v20 = vpack.i.b16 %v3896_v63, %v3846_v0 }
 0xca9   : > { %v4167_v42 = vpack.i.b16 %v4163_v32, %v4113_v29  ;;  %v4169_v45 = vshrl.u32 %v4163_v32, 16  ;;  %v4175_v55 = vshrl.u32 %v4164_v48, 16  ;;  %v4173_v59 = vpack.i.b16 %v4164_v48, %v4114_v50 }
 0xcaa   : > { %v3902_v2 = vpack.i.b16 %v3901_v54, %v3900_v53  ;;  %v3908_v7 = vpack.i.b16 %v3907_v19, %v3906_v3 }
 0xcab   : > { %v4453_v39 = vsel %vm2019_vm3, %v4167_v42, 0  ;;  %v4170_v41 = vpack.i.b16 %v4169_v45, %v4168_v38  ;;  %v4176_v60 = vpack.i.b16 %v4175_v55, %v4174_v4  ;;  %v4547_v17 = vsel %vm2019_vm3, %v4173_v59, 0 }
 0xcac   : > { %12700 = vmatpush3.bf16.xpose.msra.mxu1 %v4453_v39 }
 0xcad   : > { %v4500_v51 = vsel %vm2019_vm3, %v4170_v41, 0  ;;  %12711 = vmatprep.subr.bf16.mxu1 %v13461_v1  ;;  %v4594_v47 = vsel %vm2019_vm3, %v4176_v60, 0 }
 0xcae   : > { %12706 = vmatpush3.bf16.xpose.msra.mxu0 %v4500_v51 }
 0xcaf   : > { %12717 = vmatprep.subr.bf16.mxu0 %v13461_v1 }
 0xcb3   : > { %12702 = vmatmul.mubr.msk.bf16.vlgmr.msra.gmra.mrb[36].mxu1 %vm2019_vm3, %v3899_v58 }
 0xcb4   : > { %12712 = vmatpush3.bf16.xpose.msra.mxu1 %v4547_v17  ;;  %12713 = vmatprep.mubr.msk.bf16.mxu1 %vm13462_vm0, %v13461_v1 }
 0xcb5   : > { %12708 = vmatmul.mubr.msk.bf16.vlgmr.msra.gmra.mrb[44].mxu0 %vm2019_vm3, %v3902_v2  ;;  %12723 = vmatprep.subr.bf16.mxu1 %v13461_v1 }
 0xcb6   : > { %12718 = vmatpush3.bf16.xpose.msra.mxu0 %v4594_v47  ;;  %12719 = vmatprep.mubr.msk.bf16.mxu0 %vm13462_vm0, %v13461_v1 }
 0xcb7   : > { %12729 = vmatprep.subr.bf16.mxu0 %v13461_v1 }
 0xcbb   : > { %12714 = vmatmul.mubr.msk.bf16.vlgmr.msra.gmra.mrb[40].mxu1 %vm2019_vm3, %v3905_v20 }
 0xcbc   : > { %12725 = vmatprep.mubr.msk.bf16.mxu1 %vm13462_vm0, %v13461_v1 }
 0xcbd   : > { %12720 = vmatmul.mubr.msk.bf16.vlgmr.msra.gmra.mrb[48].mxu0 %vm2019_vm3, %v3908_v7 }
 0xcbe   : > { %12731 = vmatprep.mubr.msk.bf16.mxu0 %vm13462_vm0, %v13461_v1 }
 0xd86   : > { %v4489_v36 = vpop.f32.mrb[36].mxu1 }
 0xd87   : > { %v4637_v10 = vmul.f32 0.35355338, %v4489_v36  ;;  %v12703_v14 = vpop.f32.mrb[37].mxu1 }
 0xd88   : > { %v4492_v33 = vpop.f32.mrb[38].mxu1  ;;  %v4536_v16 = vpop.f32.mrb[44].mxu0 }
 0xd89   : > { %v4638_v34 = vmul.f32 0.35355338, %v4492_v33  ;;  %v12704_v18 = vpop.f32.mrb[39].mxu1  ;;  %v12709_v21 = vpop.f32.mrb[45].mxu0  ;;  %v4639_v13 = vmul.f32 0.35355338, %v4536_v16 }
 0xd8a   : > { %v4645_v15 = vsel %vm2216_vm4, %v4637_v10, -inf  ;;  %v4539_v22 = vpop.f32.mrb[46].mxu0  ;;  %v4189_v33 = vshrl.u32 %v14064_v9, 16 }
 0xd8b   : > { %4646 = vmax.xlane.f32.xlu0 %v4645_v15  ;;  %v12710_v23 = vpop.f32.mrb[47].mxu0  ;;  %v4648_v24 = vsel %vm2216_vm4, %v4638_v34, -inf  ;;  %v4640_v25 = vmul.f32 0.35355338, %v4539_v22  ;;  %v4651_v26 = vsel %vm2216_vm4, %v4639_v13, -inf }
 0xd8c   : > { %4649 = vmax.xlane.f32.xlu1 %v4648_v24 }
 0xd8d   : > { %v4654_v32 = vsel %vm2216_vm4, %v4640_v25, -inf }
 0xd8e   : > { %v4583_v52 = vpop.f32.mrb[40].mxu1 }
 0xd8f   : > { %v4641_v27 = vmul.f32 0.35355338, %v4583_v52  ;;  %4652 = vmax.xlane.f32.xlu0 %v4651_v26  ;;  %v12715_v28 = vpop.f32.mrb[41].mxu1 }
 0xd90   : > { %v4586_v29 = vpop.f32.mrb[42].mxu1  ;;  %v4630_v62 = vpop.f32.mrb[48].mxu0 }
 0xd91   : > { %v12716_v12 = vpop.f32.mrb[43].mxu1  ;;  %v12721_v30 = vpop.f32.mrb[49].mxu0  ;;  %v4642_v35 = vmul.f32 0.35355338, %v4586_v29  ;;  %v4643_v37 = vmul.f32 0.35355338, %v4630_v62 }
 0xd92   : > { %v4657_v38 = vsel %vm2216_vm4, %v4641_v27, -inf  ;;  %v4633_v40 = vpop.f32.mrb[50].mxu0 }
 0xd93   : > { %4658 = vmax.xlane.f32.xlu1 %v4657_v38  ;;  %4655 = vmax.xlane.f32.xlu0 %v4654_v32  ;;  %v12722_v42 = vpop.f32.mrb[51].mxu0  ;;  %v4644_v45 = vmul.f32 0.35355338, %v4633_v40  ;;  %v4660_v46 = vsel %vm2216_vm4, %v4642_v35, -inf  ;;  %v4663_v48 = vsel %vm2216_vm4, %v4643_v37, -inf }
 0xd95   : > { %v4666_v39 = vsel %vm2216_vm4, %v4644_v45, -inf }
 0xd97   : > { %4661 = vmax.xlane.f32.xlu0 %v4660_v46  ;;  %4664 = vmax.xlane.f32.xlu1 %v4663_v48 }
 0xd9b   : > { %4667 = vmax.xlane.f32.xlu0 %v4666_v39 }
 0xda8   : > { %4179 = vrot.lane.b32.xlu1 %v14064_v9, %s15177_s16 }
 0xdac   : > { %4183 = vrot.lane.b32.xlu1 %v14064_v9, %s15173_s15  ;;  %s15199_s15 = smov 24  }
 0xdb1   : > { %4181 = vrot.lane.b32.xlu0 %v14064_v9, %s13465_s18 }
 0xe18   : > { %v4647_v41 = vpop.xlane.xlu0 %4646 }
 0xe19   : > { %v4669_v49 = vsub.f32 %v4637_v10, %v4647_v41  ;;  %v4650_v50 = vpop.xlane.xlu1 %4649 }
 0xe1a   : > { %v4670_v51 = vsub.f32 %v4638_v34, %v4650_v50 }
 0xe1b   : > { %v4677_v54 = vmul.f32 1.442695, %v4669_v49 }
 0xe1c   : > { %v4679_v55 = vmul.f32 1.442695, %v4670_v51  ;;  %v4653_v58 = vpop.xlane.xlu0 %4652 }
 0xe1d   : > { %13302 = vpow2.f32 %v4677_v54  ;;  %v4671_v59 = vsub.f32 %v4639_v13, %v4653_v58 }
 0xe1e   : > { %13304 = vpow2.f32 %v4679_v55 }
 0xe1f   : > { %v4681_v53 = vmul.f32 1.442695, %v4671_v59 }
 0xe20   : > { %v4659_v4 = vpop.xlane.xlu1 %4658  ;;  %v4656_v2 = vpop.xlane.xlu0 %4655 }
 0xe21   : > { %13306 = vpow2.f32 %v4681_v53  ;;  %v4673_v60 = vsub.f32 %v4641_v27, %v4659_v4  ;;  %v4672_v17 = vsub.f32 %v4640_v25, %v4656_v2 }
 0xe23   : > { %v4685_v63 = vmul.f32 1.442695, %v4673_v60  ;;  %v4683_v47 = vmul.f32 1.442695, %v4672_v17 }
 0xe24   : > { %v4662_v0 = vpop.xlane.xlu0 %4661  ;;  %v4665_v19 = vpop.xlane.xlu1 %4664 }
 0xe25   : > { %13308 = vpow2.f32 %v4685_v63  ;;  %v4674_v20 = vsub.f32 %v4642_v35, %v4662_v0  ;;  %v4675_v3 = vsub.f32 %v4643_v37, %v4665_v19 }
 0xe26   : > { %13310 = vpow2.f32 %v4683_v47 }
 0xe27   : > { %v14170_v7 = vpop.eup %13302  ;;  %v4687_v36 = vmul.f32 1.442695, %v4674_v20  ;;  %v4689_v14 = vmul.f32 1.442695, %v4675_v3 }
 0xe28   : > { %v14172_v10 = vpop.eup %13304  ;;  %v4180_v16 = vpop.permute.xlu1 %4179  ;;  %v4693_v18 = vsel %vm2216_vm4, %v14170_v7, 0.0 }
 0xe29   : > { %v4668_v34 = vpop.xlane.xlu0 %4667  ;;  %13312 = vpow2.f32 %v4687_v36  ;;  %v4187_v21 = vpack.i.b16 %v4180_v16, %v14064_v9  ;;  %v4190_v13 = vshrl.u32 %v4180_v16, 16  ;;  %4694 = vadd.xlane.f32.xlu1 %v4693_v18  ;;  %v4696_v22 = vsel %vm2216_vm4, %v14172_v10, 0.0 }
 0xe2a   : > { %v4676_v15 = vsub.f32 %v4644_v45, %v4668_v34  ;;  %4697 = vadd.xlane.f32.xlu0 %v4696_v22  ;;  %13314 = vpow2.f32 %v4689_v14 }
 0xe2b   : > { %v14180_v23 = vpop.eup %13306  ;;  %v4191_v24 = vpack.i.b16 %v4190_v13, %v4189_v33  ;;  %v4201_v27 = vcombine.high %v4187_v21, %v13701_v57  ;;  %v4208_v35 = vrot.slane %v4187_v21, %v13704_v61 }
 0xe2c   : > { %v4691_v25 = vmul.f32 1.442695, %v4676_v15  ;;  %v4184_v52 = vpop.permute.xlu1 %4183  ;;  %v4699_v62 = vsel %vm2216_vm4, %v14180_v23, 0.0 }
 0xe2d   : > { %v4182_v26 = vpop.permute.xlu0 %4181  ;;  %v4198_v28 = vshrl.u32 %v4184_v52, 16  ;;  %v4267_v30 = vcombine.high %v4191_v24, %v13701_v57  ;;  %v4215_v42 = vrot.slane %v4201_v27, %v13704_v61  ;;  %v4274_v51 = vrot.slane %v4191_v24, %v13704_v61 }
 0xe2e   : > { %13316 = vpow2.f32 %v4691_v25  ;;  %v4195_v29 = vpack.i.b16 %v4184_v52, %v4182_v26  ;;  %v4197_v9 = vshrl.u32 %v4182_v26, 16  ;;  %4700 = vadd.xlane.f32.xlu0 %v4699_v62 }
 0xe2f   : > { %v14185_v12 = vpop.eup %13308  ;;  %v4281_v54 = vrot.slane %v4267_v30, %v13704_v61 }
 0xe30   : > { %v14188_v32 = vpop.eup %13310  ;;  %v4199_v37 = vpack.i.b16 %v4198_v28, %v4197_v9  ;;  %v4216_v38 = vcombine.high %v4195_v29, %v13701_v57  ;;  %v4223_v40 = vrot.slane %v4195_v29, %v13704_v61  ;;  %v4705_v46 = vsel %vm2216_vm4, %v14185_v12, 0.0 }
 0xe31   : > { %v4702_v45 = vsel %vm2216_vm4, %v14188_v32, 0.0 }
 0xe32   : > { %v4230_v48 = vrot.slane %v4216_v38, %v13704_v61  ;;  %v4231_v39 = vcombine.low %v4208_v35, %v4223_v40  ;;  %v4232_v41 = vcombine.high %v4208_v35, %v4223_v40  ;;  %v4282_v49 = vcombine.high %v4199_v37, %v13701_v57  ;;  %4703 = vadd.xlane.f32.xlu1 %v4702_v45 }
 0xe33   : > { %v14200_v50 = vpop.eup %13312  ;;  %v4289_v55 = vrot.slane %v4199_v37, %v13704_v61  ;;  %4706 = vadd.xlane.f32.xlu0 %v4705_v46 }
 0xe34   : > { %v4239_v58 = vrot.slane %v4231_v39, %v13709_v11  ;;  %v4246_v59 = vrot.slane %v4232_v41, %v13709_v11  ;;  %v4247_v53 = vcombine.low %v4215_v42, %v4230_v48  ;;  %v4248_v4 = vcombine.high %v4215_v42, %v4230_v48  ;;  %v14210_v47 = vpop.eup %13314 }
 0xe35   : > { %v4296_v2 = vrot.slane %v4282_v49, %v13704_v61  ;;  %v4297_v60 = vcombine.low %v4274_v51, %v4289_v55  ;;  %v4298_v17 = vcombine.high %v4274_v51, %v4289_v55  ;;  %v4708_v63 = vsel %vm2216_vm4, %v14200_v50, 0.0 }
 0xe36   : > { %v4255_v0 = vrot.slane %v4247_v53, %v13709_v11  ;;  %v4262_v19 = vrot.slane %v4248_v4, %v13709_v11  ;;  %v4333_v20 = vcombine.low %v4239_v58, %v4246_v59  ;;  %v11682_v3 = vcombine.high %v4239_v58, %v4246_v59  ;;  %4709 = vadd.xlane.f32.xlu1 %v4708_v63 }
 0xe37   : > { %v4305_v14 = vrot.slane %v4297_v60, %v13709_v11  ;;  %v4312_v33 = vrot.slane %v4298_v17, %v13709_v11  ;;  %v4313_v16 = vcombine.low %v4281_v54, %v4296_v2  ;;  %v4314_v34 = vcombine.high %v4281_v54, %v4296_v2 }
 0xe38   : > { %v14214_v36 = vpop.eup %13316  ;;  %v4340_v18 = vrot.slane %v4333_v20, %v13704_v61  ;;  %v4348_v21 = vrot.slane %v11682_v3, %v13704_v61  ;;  %v4349_v13 = vcombine.low %v4255_v0, %v4262_v19  ;;  %v11683_v15 = vcombine.high %v4255_v0, %v4262_v19 }
 0xe39   : > { %v4321_v22 = vrot.slane %v4313_v16, %v13709_v11  ;;  %v4328_v24 = vrot.slane %v4314_v34, %v13709_v11  ;;  %v4383_v25 = vcombine.low %v4305_v14, %v4312_v33  ;;  %v11684_v52 = vcombine.high %v4305_v14, %v4312_v33 }
 0xe3a   : > { %v4356_v26 = vrot.slane %v4349_v13, %v13704_v61  ;;  %v4364_v27 = vrot.slane %v11683_v15, %v13704_v61  ;;  %v4711_v28 = vsel %vm2216_vm4, %v14210_v47, 0.0  ;;  %v4714_v29 = vsel %vm2216_vm4, %v14214_v36, 0.0 }
 0xe3b   : > { %v4390_v9 = vrot.slane %v4383_v25, %v13704_v61  ;;  %v4398_v62 = vrot.slane %v11684_v52, %v13704_v61  ;;  %v4399_v30 = vcombine.low %v4321_v22, %v4328_v24  ;;  %v11685_v35 = vcombine.high %v4321_v22, %v4328_v24  ;;  %4712 = vadd.xlane.f32.xlu0 %v4711_v28 }
 0xe3c   : > { %4715 = vadd.xlane.f32.xlu1 %v4714_v29  ;;  %v4365_v37 = vcombine.low %v4340_v18, %v4348_v21  ;;  %v4373_v38 = vcombine.low %v4356_v26, %v4364_v27 }
 0xe3d   : > { %v4406_v40 = vrot.slane %v4399_v30, %v13704_v61  ;;  %v4414_v42 = vrot.slane %v11685_v35, %v13704_v61  ;;  %v4415_v45 = vcombine.low %v4390_v9, %v4398_v62 }
 0xe3e   : > { %v4372_v46 = vrot.slane %v4365_v37, %v13709_v11  ;;  %v4380_v48 = vrot.slane %v4373_v38, %v13709_v11 }
 0xe3f   : > { %v4423_v39 = vcombine.low %v4406_v40, %v4414_v42  ;;  %v4422_v51 = vrot.slane %v4415_v45, %v13709_v11 }
 0xe40   : > { %v4381_v41 = vcombine.low %v4372_v46, %v4380_v48  ;;  %v4382_v49 = vcombine.high %v4372_v46, %v4380_v48 }
 0xe41   : > { %v4430_v54 = vrot.slane %v4423_v39, %v13709_v11 }
 0xe42   : > { %v4437_v59 = vshrl.u32 %v4381_v41, 16  ;;  %v4445_v53 = vshrl.u32 %v4382_v49, 16 }
 0xe43   : > { %v4431_v55 = vcombine.low %v4422_v51, %v4430_v54  ;;  %v4432_v58 = vcombine.high %v4422_v51, %v4430_v54 }
 0xe45   : > { %v4435_v4 = vpack.i.b16 %v4431_v55, %v4381_v41  ;;  %v4438_v2 = vshrl.u32 %v4431_v55, 16  ;;  %v4443_v60 = vpack.i.b16 %v4432_v58, %v4382_v49  ;;  %v4446_v17 = vshrl.u32 %v4432_v58, 16 }
 0xe47   : > { %12724 = vmatpush3.bf16.msra.mxu1 %v4435_v4  ;;  %v4439_v63 = vpack.i.b16 %v4438_v2, %v4437_v59  ;;  %v4447_v0 = vpack.i.b16 %v4446_v17, %v4445_v53 }
 0xe48   : > { %12735 = vmatprep.subr.bf16.mxu1 %v13461_v1 }
 0xe49   : > { %12730 = vmatpush3.bf16.msra.mxu0 %v4439_v63 }
 0xe4a   : > { %12741 = vmatprep.subr.bf16.mxu0 %v13461_v1 }
 0xeb6   : > { %v4695_v19 = vpop.xlane.xlu1 %4694 }
 0xeb7   : > { %13318 = vrcp.f32 %v4695_v19  ;;  %v4698_v20 = vpop.xlane.xlu0 %4697 }
 0xeb8   : > { %13320 = vrcp.f32 %v4698_v20 }
 0xebb   : > { %v4701_v3 = vpop.xlane.xlu0 %4700 }
 0xebc   : > { %13322 = vrcp.f32 %v4701_v3 }
 0xebf   : > { %v4704_v14 = vpop.xlane.xlu1 %4703 }
 0xec0   : > { %13324 = vrcp.f32 %v4704_v14  ;;  %v4707_v33 = vpop.xlane.xlu0 %4706 }
 0xec1   : > { %v13319_v16 = vpop.eup %13318  ;;  %13326 = vrcp.f32 %v4707_v33 }
 0xec2   : > { %v13321_v34 = vpop.eup %13320  ;;  %v4725_v21 = vmul.f32 %v13319_v16, %v14170_v7 }
 0xec3   : > { %v4710_v18 = vpop.xlane.xlu1 %4709  ;;  %v4726_v13 = vmul.f32 %v13321_v34, %v14172_v10 }
 0xec4   : > { %13328 = vrcp.f32 %v4710_v18 }
 0xec5   : > { %v4733_v15 = vpack.c.bf16 %v4726_v13, %v4725_v21 }
 0xec6   : > { %v13323_v22 = vpop.eup %13322 }
 0xec7   : > { %12726 = vmatmul.mubr.msk.bf16.vlgmr.msra.gmra.mrb[44].mxu1 %vm2216_vm4, %v4733_v15  ;;  %v4727_v7 = vmul.f32 %v13323_v22, %v14180_v23 }
 0xec8   : > { %v4713_v24 = vpop.xlane.xlu0 %4712  ;;  %12736 = vmatpush3.bf16.msra.mxu1 %v4443_v60  ;;  %12737 = vmatprep.mubr.msk.bf16.mxu1 %vm13462_vm0, %v13461_v1 }
 0xec9   : > { %13330 = vrcp.f32 %v4713_v24  ;;  %v4716_v25 = vpop.xlane.xlu1 %4715  ;;  %12747 = vmatprep.subr.bf16.mxu1 %v13461_v1 }
 0xeca   : > { %v13325_v52 = vpop.eup %13324  ;;  %13332 = vrcp.f32 %v4716_v25 }
 0xecb   : > { %v4728_v10 = vmul.f32 %v13325_v52, %v14188_v32  ;;  %v13327_v26 = vpop.eup %13326 }
 0xecc   : > { %v4729_v29 = vmul.f32 %v13327_v26, %v14185_v12 }
 0xecd   : > { %v4734_v27 = vpack.c.bf16 %v4728_v10, %v4727_v7 }
 0xece   : > { %v13329_v28 = vpop.eup %13328 }
 0xecf   : > { %v4730_v9 = vmul.f32 %v13329_v28, %v14200_v50  ;;  %12732 = vmatmul.mubr.msk.bf16.vlgmr.msra.gmra.mrb[52].mxu0 %vm2216_vm4, %v4734_v27  ;;  %v13042_v50 = vld [vmem:[%s13531_s19 + $0x10] sm:$0xff]  }
 0xed0   : > { %12742 = vmatpush3.bf16.msra.mxu0 %v4447_v0  ;;  %12743 = vmatprep.mubr.msk.bf16.mxu0 %vm13462_vm0, %v13461_v1 }
 0xed1   : > { %v4735_v62 = vpack.c.bf16 %v4730_v9, %v4729_v29 }
 0xed3   : > { %v13331_v30 = vpop.eup %13330  ;;  %12738 = vmatmul.mubr.msk.bf16.vlgmr.msra.gmra.mrb[48].mxu1 %vm2216_vm4, %v4735_v62 }
 0xed4   : > { %v13333_v23 = vpop.eup %13332  ;;  %12751 = vmatprep.mubr.msk.bf16.mxu1 %vm13462_vm0, %v13461_v1  ;;  %v4731_v32 = vmul.f32 %v13331_v30, %v14210_v47  ;;  %12748 = vmatpush3.bf16.msra.mxu1 %v13042_v50 }
 0xed5   : > { %v4732_v12 = vmul.f32 %v13333_v23, %v14214_v36  ;;  %12749 = vmatprep.subr.bf16.mxu1 %v13461_v1 }
 0xed7   : > { %v4736_v35 = vpack.c.bf16 %v4732_v12, %v4731_v32 }
 0xed9   : > { %12744 = vmatmul.mubr.msk.bf16.vlgmr.msra.gmra.mrb[56].mxu0 %vm2216_vm4, %v4736_v35 }
 0xeda   : > { %5414 = vmatprep.mubr.bf16.mxu0 %v13468_v56 }
 0xf9a   : > { %v4774_v37 = vpop.f32.mrb[44].mxu1 }
 0xf9b   : > { %v12727_v38 = vpop.f32.mrb[45].mxu1 }
 0xf9c   : > { %v4777_v40 = vpop.f32.mrb[46].mxu1 }
 0xf9d   : > { %v4913_v42 = vpack.c.bf16 %v4777_v40, %v4774_v37  ;;  %v12728_v45 = vpop.f32.mrb[47].mxu1 }
 0xf9f   : > { %v4921_v49 = vshrl.u32 %v4913_v42, 16 }
 0xfa2   : > { %v4818_v46 = vpop.f32.mrb[52].mxu0 }
 0xfa3   : > { %v12733_v48 = vpop.f32.mrb[53].mxu0 }
 0xfa4   : > { %v4821_v39 = vpop.f32.mrb[54].mxu0 }
 0xfa5   : > { %v4914_v47 = vpack.c.bf16 %v4821_v39, %v4818_v46  ;;  %v12734_v41 = vpop.f32.mrb[55].mxu0 }
 0xfa6   : > { %v4862_v36 = vpop.f32.mrb[48].mxu1 }
 0xfa7   : > { %v4919_v51 = vpack.i.b16 %v4914_v47, %v4913_v42  ;;  %v4922_v54 = vshrl.u32 %v4914_v47, 16  ;;  %v12739_v55 = vpop.f32.mrb[49].mxu1 }
 0xfa8   : > { %v4865_v58 = vpop.f32.mrb[50].mxu1 }
 0xfa9   : > { %v4923_v59 = vpack.i.b16 %v4922_v54, %v4921_v49  ;;  %v4915_v53 = vpack.c.bf16 %v4865_v58, %v4862_v36  ;;  %v12740_v4 = vpop.f32.mrb[51].mxu1  ;;  %v4933_v19 = vcombine.high %v4919_v51, %v13701_v57  ;;  %v4940_v33 = vrot.slane %v4919_v51, %v13704_v61 }
 0xfab   : > { %v4929_v20 = vshrl.u32 %v4915_v53, 16  ;;  %v4947_v21 = vrot.slane %v4933_v19, %v13704_v61  ;;  %v4999_v13 = vcombine.high %v4923_v59, %v13701_v57  ;;  %v5006_v52 = vrot.slane %v4923_v59, %v13704_v61 }
 0xfac   : > { %v4906_v2 = vpop.f32.mrb[56].mxu0 }
 0xfad   : > { %v12745_v60 = vpop.f32.mrb[57].mxu0  ;;  %v5013_v29 = vrot.slane %v4999_v13, %v13704_v61 }
 0xfae   : > { %v4909_v17 = vpop.f32.mrb[58].mxu0 }
 0xfaf   : > { %v4916_v63 = vpack.c.bf16 %v4909_v17, %v4906_v2  ;;  %v12746_v0 = vpop.f32.mrb[59].mxu0  ;;  %v13043_v2 = vld [vmem:[%s13531_s19 + $0x18] sm:$0xff]  }
 0xfb0   : > { %12750 = vmatpush3.bf16.msra.mxu1 %v13043_v2  ;;  %v13055_v2 = vld [vmem:[%s13551_s12 + $0x6c] ss:$16 sps:$4 sm:$0xff]  }
 0xfb1   : > { %v4927_v3 = vpack.i.b16 %v4916_v63, %v4915_v53  ;;  %v4930_v14 = vshrl.u32 %v4916_v63, 16 }
 0xfb3   : > { %v4931_v16 = vpack.i.b16 %v4930_v14, %v4929_v20  ;;  %v4948_v34 = vcombine.high %v4927_v3, %v13701_v57  ;;  %v4955_v18 = vrot.slane %v4927_v3, %v13704_v61 }
 0xfb5   : > { %v4962_v15 = vrot.slane %v4948_v34, %v13704_v61  ;;  %v4963_v22 = vcombine.low %v4940_v33, %v4955_v18  ;;  %v4964_v24 = vcombine.high %v4940_v33, %v4955_v18  ;;  %v5014_v25 = vcombine.high %v4931_v16, %v13701_v57 }
 0xfb6   : > { %v5021_v7 = vrot.slane %v4931_v16, %v13704_v61 }
 0xfb7   : > { %v4971_v10 = vrot.slane %v4963_v22, %v13709_v11  ;;  %v4978_v26 = vrot.slane %v4964_v24, %v13709_v11  ;;  %v4979_v27 = vcombine.low %v4947_v21, %v4962_v15  ;;  %v4980_v28 = vcombine.high %v4947_v21, %v4962_v15 }
 0xfb8   : > { %v5028_v9 = vrot.slane %v5014_v25, %v13704_v61  ;;  %v5029_v62 = vcombine.low %v5006_v52, %v5021_v7  ;;  %v5030_v30 = vcombine.high %v5006_v52, %v5021_v7 }
 0xfb9   : > { %v4987_v23 = vrot.slane %v4979_v27, %v13709_v11  ;;  %v4994_v32 = vrot.slane %v4980_v28, %v13709_v11  ;;  %v5065_v12 = vcombine.low %v4971_v10, %v4978_v26  ;;  %v11694_v35 = vcombine.high %v4971_v10, %v4978_v26 }
 0xfba   : > { %v5037_v50 = vrot.slane %v5029_v62, %v13709_v11  ;;  %v5044_v37 = vrot.slane %v5030_v30, %v13709_v11  ;;  %v5045_v38 = vcombine.low %v5013_v29, %v5028_v9  ;;  %v5046_v40 = vcombine.high %v5013_v29, %v5028_v9  ;;  %v11703_v62 = vld [vmem:[%s13536_s24 + $0x1] ss:$0 sm:$0xff] }
 0xfbb   : > { %v5081_v42 = vcombine.low %v4987_v23, %v4994_v32  ;;  %v11695_v45 = vcombine.high %v4987_v23, %v4994_v32  ;;  %v5072_v46 = vrot.slane %v5065_v12, %v13704_v61  ;;  %v5080_v48 = vrot.slane %v11694_v35, %v13704_v61 }
 0xfbc   : > { %v5053_v39 = vrot.slane %v5045_v38, %v13709_v11  ;;  %v5060_v47 = vrot.slane %v5046_v40, %v13709_v11  ;;  %v5115_v41 = vcombine.low %v5037_v50, %v5044_v37  ;;  %v11696_v36 = vcombine.high %v5037_v50, %v5044_v37 }
 0xfbd   : > { %v5088_v49 = vrot.slane %v5081_v42, %v13704_v61  ;;  %v5096_v51 = vrot.slane %v11695_v45, %v13704_v61  ;;  %v5097_v54 = vcombine.low %v5072_v46, %v5080_v48 }
 0xfbe   : > { %v5122_v55 = vrot.slane %v5115_v41, %v13704_v61  ;;  %v5130_v58 = vrot.slane %v11696_v36, %v13704_v61  ;;  %v5131_v59 = vcombine.low %v5053_v39, %v5060_v47  ;;  %v11697_v53 = vcombine.high %v5053_v39, %v5060_v47 }
 0xfbf   : > { %v5105_v4 = vcombine.low %v5088_v49, %v5096_v51  ;;  %v5104_v0 = vrot.slane %v5097_v54, %v13709_v11  ;;  %v13046_v51 = vld [vmem:[%s13551_s12 + $0x44] ss:$16 sps:$4 sm:$0xff]   ;;  %v13049_v54 = vld [vmem:[%s13551_s12 + $0x4c] ss:$16 sps:$4 sm:$0xff]  }
 0xfc0   : > { %v5138_v60 = vrot.slane %v5131_v59, %v13704_v61  ;;  %v5146_v17 = vrot.slane %v11697_v53, %v13704_v61  ;;  %v5147_v63 = vcombine.low %v5122_v55, %v5130_v58  ;;  %v13044_v55 = vld [vmem:[%s13551_s12 + $0x40] ss:$16 sps:$4 sm:$0xff]   ;;  %v13047_v58 = vld [vmem:[%s13551_s12 + $0x48] ss:$16 sps:$4 sm:$0xff]   ;;  %5382 = vmatprep.subr.bf16.mxu0 %v13046_v51  ;;  %5425 = vmatprep.subr.bf16.mxu1 %v13049_v54  ;;  %v13052_v59 = vld [vmem:[%s13551_s12 + $0x64] ss:$16 sps:$4 sm:$0xff]  }
 0xfc1   : > { %v5112_v19 = vrot.slane %v5105_v4, %v13709_v11  ;;  %5383 = vmatpush1.bf16.msra.mxu0 %v13044_v55  ;;  %v13050_v53 = vld [vmem:[%s13551_s12 + $0x60] ss:$16 sps:$4 sm:$0xff]   ;;  %v13053_v4 = vld [vmem:[%s13551_s12 + $0x68] ss:$16 sps:$4 sm:$0xff]   ;;  %v11719_v55 = vld [vmem:[%s15195_s2 + $0x4] sm:$0xf] }
 0xfc2   : > { %v5155_v20 = vcombine.low %v5138_v60, %v5146_v17  ;;  %v5154_v33 = vrot.slane %v5147_v63, %v13709_v11  ;;  %5384 = vmatprep.subr.bf16.mxu0 %v13052_v59  ;;  %v13056_v60 = vld [vmem:[%s13561_s27 + $0x140] sm:$0xff]   ;;  %v13086_v51 = vld [vmem:[%s13561_s27 + $0x138] sm:$0xff]   ;;  %v5330_v59 = vrot.slane %v11719_v55, %v14001_v6 }
 0xfc3   : > { %v5114_v3 = vcombine.high %v5104_v0, %v5112_v19  ;;  %v5113_v14 = vcombine.low %v5104_v0, %v5112_v19  ;;  %v13057_v17 = vld [vmem:[%s13561_s27 + $0x1c0] sm:$0xff]   ;;  %v13087_v54 = vld [vmem:[%s13561_s27 + $0x1b8] sm:$0xff]  }
 0xfc4   : > { %v5162_v16 = vrot.slane %v5155_v20, %v13709_v11 }
 0xfc5   : > { %v5168_v21 = vshrl.u32 %v5113_v14, 16  ;;  %v5174_v13 = vshrl.u32 %v5114_v3, 16  ;;  %5385 = vmatpush1.bf16.msra.mxu0 %v13050_v53  ;;  %v5326_v53 = vrot.slane %v11719_v55, %v14005_v31 }
 0xfc6   : > { %v5164_v34 = vcombine.high %v5154_v33, %v5162_v16  ;;  %v5163_v18 = vcombine.low %v5154_v33, %v5162_v16  ;;  %12367 = vmatprep.subr.bf16.mxu0 %v13056_v60 }
 0xfc8   : > { %v5173_v15 = vpack.i.b16 %v5164_v34, %v5114_v3  ;;  %v5169_v22 = vshrl.u32 %v5163_v18, 16  ;;  %v5175_v24 = vshrl.u32 %v5164_v34, 16  ;;  %v5167_v25 = vpack.i.b16 %v5163_v18, %v5113_v14  ;;  %v11709_v34 = vld [vmem:[%s15193_s28 + $0x1] ss:$0 sm:$0xff] }
 0xfca   : > { %5179 = vrot.lane.b32.xlu1 %v5173_v15, %s15179_s22  ;;  %v5170_v52 = vpack.i.b16 %v5169_v22, %v5168_v21  ;;  %v5176_v7 = vpack.i.b16 %v5175_v24, %v5174_v13  ;;  %v11710_v15 = vld [vmem:[%s15194_s1 + $0x1] ss:$0 sm:$0xff] }
 0xfcc   : > { %5177 = vrot.lane.b32.xlu0 %v5170_v52, %s15175_s23  ;;  %v13058_v52 = vld [vmem:[%s13561_s27 + $0x100] sm:$0xff]   ;;  %s15200_s23 = smov 104  }
 0xfce   : > { %5181 = vrot.lane.b32.xlu1 %v5176_v7, %s15199_s15  ;;  %v13059_v7 = vld [vmem:[%s13561_s27 + $0x180] sm:$0xff]  }
0x103c   : > { %v5180_v10 = vpop.permute.xlu1 %5179 }
0x103e   : > { %v5178_v26 = vpop.permute.xlu0 %5177 }
0x103f   : > { %v5185_v27 = vsel %vm2019_vm3, %v5167_v25, %v5178_v26  ;;  %v13060_v26 = vld [vmem:[%s13561_s27 + $0x148] sm:$0xff]  }
0x1040   : > { %v5182_v28 = vpop.permute.xlu1 %5181  ;;  %v5187_v29 = vsel %vm2216_vm4, %v5185_v27, %v5180_v10  ;;  %v13061_v27 = vld [vmem:[%s13561_s27 + $0x1c8] sm:$0xff]  }
0x1041   : > { %v5189_v9 = vsel %vm2760_vm5, %v5187_v29, %v5182_v28  ;;  %v13062_v28 = vld [vmem:[%s13561_s27 + $0x108] sm:$0xff]  }
0x1042   : > { %12752 = vmatmul.mubr.msk.bf16.vlgmr.msra.gmra.mrb[52].mxu1 %vm1032_vm2, %v5189_v9  ;;  %v13063_v29 = vld [vmem:[%s13561_s27 + $0x188] sm:$0xff]   ;;  %v13064_v9 = vld [vmem:[%s13561_s27 + $0x150] sm:$0xff]  }
0x1043   : > { %5457 = vmatprep.mubr.bf16.mxu1 %v13468_v56  ;;  %5426 = vmatpush1.bf16.msra.mxu1 %v13047_v58  ;;  %v5322_v58 = vrot.slane %v11719_v55, %v13998_v5 }
0x1044   : > { %5427 = vmatprep.subr.bf16.mxu1 %v13055_v2 }
0x1047   : > { %5428 = vmatpush1.bf16.msra.mxu1 %v13053_v4  ;;  %v5334_v4 = vrot.slane %v11719_v55, %v14008_v8 }
0x1048   : > { %12389 = vmatprep.subr.bf16.mxu1 %v13057_v17 }
0x1115   : > { %v5251_v30 = vpop.f32.mrb[52].mxu1 }
0x1116   : > { %v5252_v23 = vadd.f32 %v11703_v62, %v5251_v30  ;;  %v12753_v32 = vpop.f32.mrb[53].mxu1  ;;  %v13066_v30 = vld [vmem:[%s13561_s27 + $0x110] sm:$0xff]  }
0x1117   : > { %v5254_v12 = vpop.f32.mrb[54].mxu1  ;;  %v13068_v32 = vld [vmem:[%s13561_s27 + $0x158] sm:$0xff]  }
0x1118   : > { %v5255_v35 = vadd.f32 %v11703_v62, %v5254_v12  ;;  %v12754_v50 = vpop.f32.mrb[55].mxu1  ;;  %v5258_v37 = vadd.f32 %v5252_v23, %v14035_v43  ;;  %v13065_v62 = vld [vmem:[%s13561_s27 + $0x1d0] sm:$0xff]   ;;  %v13069_v12 = vld [vmem:[%s13561_s27 + $0x1d8] sm:$0xff]  }
0x1119   : > { %v13067_v23 = vld [vmem:[%s13561_s27 + $0x190] sm:$0xff]   ;;  %v13071_v50 = vld [vmem:[%s13561_s27 + $0x198] sm:$0xff]  }
0x111a   : > { %v5264_v38 = vsel %vm1032_vm2, %v5258_v37, 0.0  ;;  %v5259_v40 = vadd.f32 %v5255_v35, %v14037_v44  ;;  %v13070_v35 = vld [vmem:[%s13561_s27 + $0x118] sm:$0xff]  }
0x111b   : > { %5265 = vadd.xlane.f32.xlu0 %v5264_v38  ;;  %v13073_v38 = vld [vmem:[%s13561_s27 + $0x1e0] sm:$0xff]  }
0x111c   : > { %v5267_v42 = vsel %vm1032_vm2, %v5259_v40, 0.0 }
0x111d   : > { %5268 = vadd.xlane.f32.xlu1 %v5267_v42  ;;  %v13075_v42 = vld [vmem:[%s13561_s27 + $0x1a0] sm:$0xff]  }
0x11a8   : > { %v5266_v45 = vpop.xlane.xlu0 %5265 }
0x11a9   : > { %v5270_v46 = vmul.f32 0.03125, %v5266_v45  ;;  %v13076_v45 = vld [vmem:[%s13561_s27 + $0x168] sm:$0xff]  }
0x11aa   : > { %v5269_v48 = vpop.xlane.xlu1 %5268 }
0x11ab   : > { %v5272_v39 = vsub.f32 %v5258_v37, %v5270_v46  ;;  %v5271_v47 = vmul.f32 0.03125, %v5269_v48  ;;  %v13072_v37 = vld [vmem:[%s13561_s27 + $0x160] sm:$0xff]   ;;  %v13077_v46 = vld [vmem:[%s13561_s27 + $0x1e8] sm:$0xff]  }
0x11ac   : > { %v13078_v48 = vld [vmem:[%s13561_s27 + $0x128] sm:$0xff]  }
0x11ad   : > { %v5273_v41 = vsub.f32 %v5259_v40, %v5271_v47  ;;  %v5274_v43 = vmul.f32 %v5272_v39, %v5272_v39  ;;  %v13074_v40 = vld [vmem:[%s13561_s27 + $0x120] sm:$0xff]   ;;  %v13080_v47 = vld [vmem:[%s13561_s27 + $0x170] sm:$0xff]  }
0x11af   : > { %v5276_v44 = vsel %vm1032_vm2, %v5274_v43, 0.0  ;;  %v5275_v36 = vmul.f32 %v5273_v41, %v5273_v41  ;;  %v13082_v43 = vld [vmem:[%s13561_s27 + $0x130] sm:$0xff]  }
0x11b0   : > { %5277 = vadd.xlane.f32.xlu0 %v5276_v44  ;;  %v13083_v44 = vld [vmem:[%s13561_s27 + $0x1b0] sm:$0xff]  }
0x11b1   : > { %v5279_v49 = vsel %vm1032_vm2, %v5275_v36, 0.0  ;;  %v13084_v36 = vld [vmem:[%s13561_s27 + $0x178] sm:$0xff]  }
0x11b4   : > { %5280 = vadd.xlane.f32.xlu0 %v5279_v49  ;;  %v13085_v49 = vld [vmem:[%s13561_s27 + $0x1f8] sm:$0xff]  }
0x123d   : > { %v5278_v63 = vpop.xlane.xlu0 %5277 }
0x123e   : > { %v5282_v0 = vmul.f32 0.03125, %v5278_v63 }
0x1240   : > { %v5284_v19 = vadd.f32 1e-05, %v5282_v0 }
0x1241   : > { %v5281_v20 = vpop.xlane.xlu0 %5280 }
0x1242   : > { %13334 = vrsqrt.f32 %v5284_v19  ;;  %v5283_v3 = vmul.f32 0.03125, %v5281_v20 }
0x1244   : > { %v5285_v14 = vadd.f32 1e-05, %v5283_v3 }
0x1246   : > { %13336 = vrsqrt.f32 %v5285_v14 }
0x124c   : > { %v13335_v33 = vpop.eup %13334 }
0x124d   : > { %v5288_v16 = vmul.f32 %v13335_v33, %v5272_v39  ;;  %v13079_v39 = vld [vmem:[%s13561_s27 + $0x1a8] sm:$0xff]  }
0x124f   : > { %v5296_v21 = vmul.f32 %v11709_v34, %v5288_v16 }
0x1250   : > { %v13337_v18 = vpop.eup %13336 }
0x1251   : > { %v5289_v13 = vmul.f32 %v13337_v18, %v5273_v41  ;;  %v14320_v24 = vadd.f32 %v11710_v15, %v5296_v21  ;;  %v13081_v41 = vld [vmem:[%s13561_s27 + $0x1f0] sm:$0xff]  }
0x1253   : > { %v5297_v22 = vmul.f32 %v11709_v34, %v5289_v13 }
0x1255   : > { %v14322_v25 = vadd.f32 %v11710_v15, %v5297_v22 }
0x1257   : > { %v5306_v10 = vpack.c.bf16 %v14322_v25, %v14320_v24 }
0x1259   : > { %11728 = vmatmul.mubr.msk.bf16.vlgmr.msra.gmra.mrb[60].mxu0 %vm1032_vm2, %v5306_v10  ;;  %11729 = vmatmul.mubr.msk.bf16.vlgmr.msra.gmra.mrb[56].mxu1 %vm1032_vm2, %v5306_v10 }
0x125a   : > { %12368 = vmatpush3.bf16.msra.mxu0 %v13058_v52  ;;  %12390 = vmatpush3.bf16.msra.mxu1 %v13059_v7 }
0x125b   : > { %12369 = vmatprep.subr.bf16.mxu0 %v13060_v26  ;;  %12391 = vmatprep.subr.bf16.mxu1 %v13061_v27 }
0x125e   : > { %12370 = vmatpush3.bf16.msra.mxu0 %v13062_v28  ;;  %12392 = vmatpush3.bf16.msra.mxu1 %v13063_v29 }
0x125f   : > { %12371 = vmatprep.subr.bf16.mxu0 %v13064_v9  ;;  %12393 = vmatprep.subr.bf16.mxu1 %v13065_v62 }
0x1262   : > { %12372 = vmatpush3.bf16.msra.mxu0 %v13066_v30  ;;  %12394 = vmatpush3.bf16.msra.mxu1 %v13067_v23 }
0x1263   : > { %12373 = vmatprep.subr.bf16.mxu0 %v13068_v32  ;;  %12395 = vmatprep.subr.bf16.mxu1 %v13069_v12 }
0x1266   : > { %12374 = vmatpush3.bf16.msra.mxu0 %v13070_v35  ;;  %12396 = vmatpush3.bf16.msra.mxu1 %v13071_v50  ;;  %v11795_v35 = vld [vmem:[%s15196_s0 + $0x1] ss:$0 sm:$0xff] }
0x1267   : > { %12375 = vmatprep.subr.bf16.mxu0 %v13072_v37  ;;  %12397 = vmatprep.subr.bf16.mxu1 %v13073_v38 }
0x126a   : > { %12376 = vmatpush3.bf16.msra.mxu0 %v13074_v40  ;;  %12398 = vmatpush3.bf16.msra.mxu1 %v13075_v42 }
0x126b   : > { %12377 = vmatprep.subr.bf16.mxu0 %v13076_v45  ;;  %12399 = vmatprep.subr.bf16.mxu1 %v13077_v46 }
0x126e   : > { %12378 = vmatpush3.bf16.msra.mxu0 %v13078_v48  ;;  %12400 = vmatpush3.bf16.msra.mxu1 %v13079_v39 }
0x126f   : > { %12379 = vmatprep.subr.bf16.mxu0 %v13080_v47  ;;  %12401 = vmatprep.subr.bf16.mxu1 %v13081_v41 }
0x1272   : > { %12380 = vmatpush3.bf16.msra.mxu0 %v13082_v43  ;;  %12402 = vmatpush3.bf16.msra.mxu1 %v13083_v44 }
0x1273   : > { %12381 = vmatprep.subr.bf16.mxu0 %v13084_v36  ;;  %12403 = vmatprep.subr.bf16.mxu1 %v13085_v49 }
0x1276   : > { %12382 = vmatpush3.bf16.msra.mxu0 %v13086_v51  ;;  %12404 = vmatpush3.bf16.msra.mxu1 %v13087_v54 }
0x1277   : > { %12755 = vmatprep.subr.bf16.mxu0 %v13461_v1  ;;  %12763 = vmatprep.subr.bf16.mxu1 %v13461_v1 }
0x132c   : > { %v5416_v2 = vpop.f32.mrb[60].mxu0  ;;  %v5459_v60 = vpop.f32.mrb[56].mxu1 }
0x132d   : > { %v5417_v17 = vadd.f32 %v5416_v2, %v5322_v58  ;;  %v5460_v63 = vadd.f32 %v5459_v60, %v5330_v59  ;;  %v5418_v0 = vpop.f32.mrb[61].mxu0  ;;  %v5461_v19 = vpop.f32.mrb[57].mxu1 }
0x132e   : > { %v5419_v20 = vadd.f32 %v5418_v0, %v5326_v53  ;;  %v5462_v3 = vadd.f32 %v5461_v19, %v5334_v4  ;;  %v5420_v14 = vpop.f32.mrb[62].mxu0  ;;  %v5463_v33 = vpop.f32.mrb[58].mxu1  ;;  %v13088_v0 = vld [vmem:[%s13501_s21 + $0x20] sm:$0xff]  }
0x132f   : > { %v5421_v16 = vadd.f32 %v5420_v14, %v5322_v58  ;;  %v5464_v34 = vadd.f32 %v5463_v33, %v5330_v59  ;;  %v5422_v18 = vpop.f32.mrb[63].mxu0  ;;  %v5465_v21 = vpop.f32.mrb[59].mxu1  ;;  %v5468_v22 = vmax.f32 %v5417_v17, 0.0  ;;  %v5470_v52 = vmax.f32 %v5460_v63, 0.0  ;;  %v13089_v19 = vld [vmem:[%s13506_s25 + $0x20] sm:$0xff]  }
0x1330   : > { %v5423_v13 = vadd.f32 %v5422_v18, %v5326_v53  ;;  %v5466_v15 = vadd.f32 %v5465_v21, %v5334_v4  ;;  %v5469_v26 = vmax.f32 %v5419_v20, 0.0  ;;  %v5471_v27 = vmax.f32 %v5462_v3, 0.0  ;;  %v13090_v20 = vld [vmem:[%s13501_s21 + $0x28] sm:$0xff]  }
0x1331   : > { %v5472_v7 = vmax.f32 %v5421_v16, 0.0  ;;  %v5474_v10 = vmax.f32 %v5464_v34, 0.0  ;;  %v13091_v3 = vld [vmem:[%s13506_s25 + $0x28] sm:$0xff]  }
0x1332   : > { %v5473_v28 = vmax.f32 %v5423_v13, 0.0  ;;  %v5475_v29 = vmax.f32 %v5466_v15, 0.0  ;;  %v11830_v15 = vld [vmem:[%s15197_s11 + $0x1] ss:$0 sm:$0xff] }
0x1333   : > { %v5476_v9 = vpack.c.bf16 %v5472_v7, %v5468_v22  ;;  %v5478_v62 = vpack.c.bf16 %v5474_v10, %v5470_v52 }
0x1334   : > { %v5477_v30 = vpack.c.bf16 %v5473_v28, %v5469_v26  ;;  %v5479_v23 = vpack.c.bf16 %v5475_v29, %v5471_v27  ;;  %v11831_v26 = vld [vmem:[%s15198_s26 + $0x1] ss:$0 sm:$0xff] }
0x1336   : > { %5777 = vmatprep.mubr.bf16.mxu0 %v5477_v30  ;;  %5818 = vmatprep.mubr.bf16.mxu1 %v5479_v23  ;;  %v13093_v30 = vld [vmem:[%s13511_s29 + $0x28] sm:$0xff]   ;;  %v11837_v23 = vld [vmem:[%s13516_s3 + $0x2] ss:$0 sm:$0xff] }
0x1337   : > { %5778 = vmatmul.mubr.bf16.vlgmr.msra.gmra.mrb[64].mxu0 %v5476_v9  ;;  %5819 = vmatmul.mubr.bf16.vlgmr.msra.gmra.mrb[60].mxu1 %v5478_v62  ;;  %v13092_v9 = vld [vmem:[%s13511_s29 + $0x20] sm:$0xff]  }
0x1338   : > { %12759 = vmatprep.mubr.msk.bf16.mxu0 %vm13462_vm0, %v13461_v1  ;;  %12767 = vmatprep.mubr.msk.bf16.mxu1 %vm13462_vm0, %v13461_v1 }
0x1339   : > { %12756 = vmatpush3.bf16.msra.mxu0 %v13088_v0  ;;  %12764 = vmatpush3.bf16.msra.mxu1 %v13089_v19 }
0x133a   : > { %12757 = vmatprep.subr.bf16.mxu0 %v13461_v1  ;;  %12765 = vmatprep.subr.bf16.mxu1 %v13461_v1 }
0x133d   : > { %12758 = vmatpush3.bf16.msra.mxu0 %v13090_v20  ;;  %12766 = vmatpush3.bf16.msra.mxu1 %v13091_v3 }
0x133e   : > { %12771 = vmatprep.subr.bf16.mxu0 %v13461_v1  ;;  %12779 = vmatprep.subr.bf16.mxu1 %v13461_v1 }
0x140a   : > { %v12383_v32 = vpop.f32.mrb[64].mxu0  ;;  %v12405_v12 = vpop.f32.mrb[60].mxu1 }
0x140b   : > { %v12384_v50 = vpop.f32.mrb[65].mxu0  ;;  %v12406_v37 = vpop.f32.mrb[61].mxu1 }
0x140c   : > { %v12385_v38 = vadd.f32 %v12384_v50, %v12383_v32  ;;  %v12407_v40 = vadd.f32 %v12406_v37, %v12405_v12  ;;  %v12386_v42 = vpop.f32.mrb[66].mxu0  ;;  %v12408_v45 = vpop.f32.mrb[62].mxu1  ;;  %v11846_v12 = vld [vmem:[%s13521_s8 + $0x2] ss:$0 sm:$0xff] }
0x140d   : > { %v12387_v46 = vpop.f32.mrb[67].mxu0  ;;  %v12409_v48 = vpop.f32.mrb[63].mxu1 }
0x140e   : > { %v5780_v39 = vadd.f32 %v12385_v38, %v11795_v35  ;;  %v12388_v47 = vadd.f32 %v12387_v46, %v12386_v42  ;;  %v12410_v41 = vadd.f32 %v12409_v48, %v12408_v45 }
0x1410   : > { %v5821_v43 = vadd.f32 %v12407_v40, %v5780_v39  ;;  %v5783_v44 = vadd.f32 %v12388_v47, %v11795_v35 }
0x1412   : > { %v5824_v36 = vadd.f32 %v12410_v41, %v5783_v44  ;;  %v5827_v49 = vadd.f32 %v5821_v43, %v14320_v24  ;;  %v11855_v44 = vld [vmem:[%s13526_s14 + $0x2] ss:$0 sm:$0xff] }
0x1414   : > { %v5833_v51 = vsel %vm1032_vm2, %v5827_v49, 0.0  ;;  %v5828_v54 = vadd.f32 %v5824_v36, %v14322_v25 }
0x1415   : > { %5834 = vadd.xlane.f32.xlu1 %v5833_v51 }
0x1416   : > { %v5836_v55 = vsel %vm1032_vm2, %v5828_v54, 0.0 }
0x1417   : > { %5837 = vadd.xlane.f32.xlu0 %v5836_v55 }
0x14a2   : > { %v5835_v58 = vpop.xlane.xlu1 %5834 }
0x14a3   : > { %v5839_v59 = vmul.f32 0.03125, %v5835_v58 }
0x14a4   : > { %v5838_v53 = vpop.xlane.xlu0 %5837 }
0x14a5   : > { %v5841_v4 = vsub.f32 %v5827_v49, %v5839_v59  ;;  %v5840_v2 = vmul.f32 0.03125, %v5838_v53 }
0x14a7   : > { %v5842_v60 = vsub.f32 %v5828_v54, %v5840_v2  ;;  %v5843_v17 = vmul.f32 %v5841_v4, %v5841_v4 }
0x14a9   : > { %v5845_v24 = vsel %vm1032_vm2, %v5843_v17, 0.0  ;;  %v5844_v63 = vmul.f32 %v5842_v60, %v5842_v60 }
0x14aa   : > { %5846 = vadd.xlane.f32.xlu1 %v5845_v24 }
0x14ab   : > { %v5848_v25 = vsel %vm1032_vm2, %v5844_v63, 0.0 }
0x14ac   : > { %5849 = vadd.xlane.f32.xlu0 %v5848_v25 }
0x1537   : > { %v5847_v14 = vpop.xlane.xlu1 %5846 }
0x1538   : > { %v5851_v33 = vmul.f32 0.03125, %v5847_v14 }
0x1539   : > { %v5850_v16 = vpop.xlane.xlu0 %5849 }
0x153a   : > { %v5853_v34 = vadd.f32 1e-05, %v5851_v33  ;;  %v5852_v18 = vmul.f32 0.03125, %v5850_v16 }
0x153c   : > { %13338 = vrsqrt.f32 %v5853_v34  ;;  %v5854_v21 = vadd.f32 1e-05, %v5852_v18 }
0x153e   : > { %13340 = vrsqrt.f32 %v5854_v21 }
0x1546   : > { %v13339_v13 = vpop.eup %13338 }
0x1547   : > { %v5857_v22 = vmul.f32 %v13339_v13, %v5841_v4 }
0x1548   : > { %v13341_v52 = vpop.eup %13340 }
0x1549   : > { %v5865_v7 = vmul.f32 %v11830_v15, %v5857_v22  ;;  %v5858_v10 = vmul.f32 %v13341_v52, %v5842_v60 }
0x154b   : > { %v5866_v27 = vmul.f32 %v11830_v15, %v5858_v10  ;;  %v14386_v28 = vadd.f32 %v11831_v26, %v5865_v7 }
0x154d   : > { %v14388_v29 = vadd.f32 %v11831_v26, %v5866_v27 }
0x154f   : > { %v5875_v62 = vpack.c.bf16 %v14388_v29, %v14386_v28 }
0x1551   : > { %12760 = vmatmul.mubr.msk.bf16.vlgmr.msra.gmra.mrb[68].mxu0 %vm1032_vm2, %v5875_v62  ;;  %12768 = vmatmul.mubr.msk.bf16.vlgmr.msra.gmra.mrb[64].mxu1 %vm1032_vm2, %v5875_v62 }
0x1552   : > { %12772 = vmatpush3.bf16.msra.mxu0 %v13092_v9  ;;  %12775 = vmatprep.mubr.msk.bf16.mxu0 %vm13462_vm0, %v13461_v1 }
0x1553   : > { %12773 = vmatprep.subr.bf16.mxu0 %v13461_v1  ;;  %12781 = vmatprep.mubr.msk.bf16.mxu1 %vm13462_vm0, %v13461_v1 }
0x1556   : > { %12774 = vmatpush3.bf16.msra.mxu0 %v13093_v30 }
0x1557   : > { %12785 = vmatprep.subr.bf16.mxu0 %v13461_v1 }
0x1559   : > { %12776 = vmatmul.mubr.msk.bf16.vlgmr.msra.gmra.mrb[72].mxu0 %vm1032_vm2, %v5875_v62 }
0x155a   : > { %12787 = vmatprep.mubr.msk.bf16.mxu0 %vm13462_vm0, %v13461_v1 }
0x1624   : > { %v5938_v32 = vpop.f32.mrb[68].mxu0  ;;  %v6004_v35 = vpop.f32.mrb[64].mxu1 }
0x1625   : > { %v12761_v50 = vpop.f32.mrb[69].mxu0  ;;  %v12769_v37 = vpop.f32.mrb[65].mxu1  ;;  %v5939_v42 = vadd.f32 %v11837_v23, %v5938_v32  ;;  %v6005_v45 = vadd.f32 %v11846_v12, %v6004_v35 }
0x1626   : > { %v5941_v38 = vpop.f32.mrb[70].mxu0  ;;  %v6007_v40 = vpop.f32.mrb[66].mxu1 }
0x1627   : > { %v5942_v46 = vadd.f32 %v11837_v23, %v5941_v38  ;;  %v6008_v48 = vadd.f32 %v11846_v12, %v6007_v40  ;;  %v12762_v39 = vpop.f32.mrb[71].mxu0  ;;  %v12770_v47 = vpop.f32.mrb[67].mxu1 }
0x1629   : > { %v6077_v41 = vpack.c.bf16 %v5942_v46, %v5939_v42  ;;  %v6345_v43 = vpack.c.bf16 %v6008_v48, %v6005_v45 }
0x162b   : > { %6349 = vrot.lane.b32.xlu0 %v6345_v43, %s13465_s18  ;;  %6347 = vrot.lane.b32.xlu1 %v6345_v43, %s15177_s16  ;;  %v6357_v2 = vshrl.u32 %v6345_v43, 16  ;;  %v6089_v15 = vshrl.u32 %v6077_v41, 16 }
0x162c   : > { %v6070_v36 = vpop.f32.mrb[72].mxu0 }
0x162d   : > { %v12777_v49 = vpop.f32.mrb[73].mxu0  ;;  %v6071_v54 = vadd.f32 %v11855_v44, %v6070_v36 }
0x162e   : > { %v6073_v51 = vpop.f32.mrb[74].mxu0 }
0x162f   : > { %v6074_v55 = vadd.f32 %v11855_v44, %v6073_v51  ;;  %6351 = vrot.lane.b32.xlu1 %v6345_v43, %s15200_s23  ;;  %6081 = vrot.lane.b32.xlu0 %v6077_v41, %s13465_s18  ;;  %v12778_v58 = vpop.f32.mrb[75].mxu0 }
0x1631   : > { %v14412_v59 = vpack.c.bf16 %v6074_v55, %v6071_v54 }
0x1633   : > { %6079 = vrot.lane.b32.xlu1 %v6077_v41, %s15177_s16 }
0x1637   : > { %6083 = vrot.lane.b32.xlu1 %v6077_v41, %s15200_s23 }
0x169d   : > { %v6348_v53 = vpop.permute.xlu1 %6347  ;;  %v6350_v17 = vpop.permute.xlu0 %6349 }
0x169e   : > { %v6355_v4 = vpack.i.b16 %v6348_v53, %v6345_v43  ;;  %v6358_v60 = vshrl.u32 %v6348_v53, 16  ;;  %v6365_v20 = vshrl.u32 %v6350_v17, 16 }
0x16a0   : > { %v6359_v24 = vpack.i.b16 %v6358_v60, %v6357_v2  ;;  %v6369_v63 = vcombine.high %v6355_v4, %v13701_v57  ;;  %v6376_v14 = vrot.slane %v6355_v4, %v13704_v61 }
0x16a1   : > { %v6352_v25 = vpop.permute.xlu1 %6351  ;;  %v6082_v48 = vpop.permute.xlu0 %6081 }
0x16a2   : > { %v6435_v0 = vcombine.high %v6359_v24, %v13701_v57  ;;  %v6363_v19 = vpack.i.b16 %v6352_v25, %v6350_v17  ;;  %v6366_v3 = vshrl.u32 %v6352_v25, 16  ;;  %v6383_v34 = vrot.slane %v6369_v63, %v13704_v61 }
0x16a3   : > { %v6442_v18 = vrot.slane %v6359_v24, %v13704_v61  ;;  %v6097_v58 = vshrl.u32 %v6082_v48, 16 }
0x16a4   : > { %v6384_v33 = vcombine.high %v6363_v19, %v13701_v57  ;;  %v6391_v16 = vrot.slane %v6363_v19, %v13704_v61  ;;  %v6367_v21 = vpack.i.b16 %v6366_v3, %v6365_v20  ;;  %v6449_v22 = vrot.slane %v6435_v0, %v13704_v61 }
0x16a5   : > { %v6080_v13 = vpop.permute.xlu1 %6079 }
0x16a6   : > { %v6398_v52 = vrot.slane %v6384_v33, %v13704_v61  ;;  %v6399_v7 = vcombine.low %v6376_v14, %v6391_v16  ;;  %v6400_v10 = vcombine.high %v6376_v14, %v6391_v16  ;;  %v6450_v26 = vcombine.high %v6367_v21, %v13701_v57 }
0x16a7   : > { %v6457_v27 = vrot.slane %v6367_v21, %v13704_v61  ;;  %v6087_v9 = vpack.i.b16 %v6080_v13, %v6077_v41  ;;  %v6090_v62 = vshrl.u32 %v6080_v13, 16 }
0x16a8   : > { %v6407_v30 = vrot.slane %v6399_v7, %v13709_v11  ;;  %v6414_v23 = vrot.slane %v6400_v10, %v13709_v11  ;;  %v6415_v32 = vcombine.low %v6383_v34, %v6398_v52  ;;  %v6416_v12 = vcombine.high %v6383_v34, %v6398_v52 }
0x16a9   : > { %v6464_v35 = vrot.slane %v6450_v26, %v13704_v61  ;;  %v6465_v50 = vcombine.low %v6442_v18, %v6457_v27  ;;  %v6466_v37 = vcombine.high %v6442_v18, %v6457_v27  ;;  %v6091_v38 = vpack.i.b16 %v6090_v62, %v6089_v15  ;;  %v6084_v49 = vpop.permute.xlu1 %6083 }
0x16aa   : > { %v6423_v40 = vrot.slane %v6415_v32, %v13709_v11  ;;  %v6430_v42 = vrot.slane %v6416_v12, %v13709_v11  ;;  %v6501_v45 = vcombine.low %v6407_v30, %v6414_v23  ;;  %v11863_v46 = vcombine.high %v6407_v30, %v6414_v23 }
0x16ab   : > { %v6473_v39 = vrot.slane %v6465_v50, %v13709_v11  ;;  %v6480_v47 = vrot.slane %v6466_v37, %v13709_v11  ;;  %v6481_v41 = vcombine.low %v6449_v22, %v6464_v35  ;;  %v6482_v43 = vcombine.high %v6449_v22, %v6464_v35 }
0x16ac   : > { %v6517_v44 = vcombine.low %v6423_v40, %v6430_v42  ;;  %v11864_v36 = vcombine.high %v6423_v40, %v6430_v42  ;;  %v14437_v55 = vrot.slane %v6501_v45, %v13704_v61  ;;  %v6516_v53 = vrot.slane %v11863_v46, %v13704_v61 }
0x16ad   : > { %v6489_v51 = vrot.slane %v6481_v41, %v13709_v11  ;;  %v6496_v54 = vrot.slane %v6482_v43, %v13709_v11  ;;  %v6551_v4 = vcombine.low %v6473_v39, %v6480_v47  ;;  %v6101_v2 = vcombine.high %v6087_v9, %v13701_v57 }
0x16ae   : > { %v6167_v60 = vcombine.high %v6091_v38, %v13701_v57  ;;  %v11865_v17 = vcombine.high %v6473_v39, %v6480_v47  ;;  %v6108_v24 = vrot.slane %v6087_v9, %v13704_v61  ;;  %v6095_v63 = vpack.i.b16 %v6084_v49, %v6082_v48 }
0x16af   : > { %v6098_v25 = vshrl.u32 %v6084_v49, 16  ;;  %v6567_v0 = vcombine.low %v6489_v51, %v6496_v54  ;;  %v6174_v19 = vrot.slane %v6091_v38, %v13704_v61  ;;  %v6524_v20 = vrot.slane %v6517_v44, %v13704_v61 }
0x16b0   : > { %v6532_v3 = vrot.slane %v11864_v36, %v13704_v61  ;;  %v11866_v14 = vcombine.high %v6489_v51, %v6496_v54  ;;  %v6116_v16 = vcombine.high %v6095_v63, %v13701_v57  ;;  %v6123_v34 = vrot.slane %v6095_v63, %v13704_v61 }
0x16b1   : > { %v6099_v33 = vpack.i.b16 %v6098_v25, %v6097_v58  ;;  %v6115_v18 = vrot.slane %v6101_v2, %v13704_v61  ;;  %v6181_v21 = vrot.slane %v6167_v60, %v13704_v61  ;;  %v6533_v13 = vcombine.low %v14437_v55, %v6516_v53 }
0x16b2   : > { %v6541_v15 = vcombine.low %v6524_v20, %v6532_v3  ;;  %v6130_v22 = vrot.slane %v6116_v16, %v13704_v61  ;;  %v6131_v52 = vcombine.low %v6108_v24, %v6123_v34  ;;  %v6132_v7 = vcombine.high %v6108_v24, %v6123_v34 }
0x16b3   : > { %v6182_v10 = vcombine.high %v6099_v33, %v13701_v57  ;;  %v6189_v26 = vrot.slane %v6099_v33, %v13704_v61  ;;  %v6558_v27 = vrot.slane %v6551_v4, %v13704_v61  ;;  %v6566_v9 = vrot.slane %v11865_v17, %v13704_v61 }
0x16b4   : > { %v6574_v62 = vrot.slane %v6567_v0, %v13704_v61  ;;  %v6139_v30 = vrot.slane %v6131_v52, %v13709_v11  ;;  %v6146_v23 = vrot.slane %v6132_v7, %v13709_v11  ;;  %v6147_v32 = vcombine.low %v6115_v18, %v6130_v22 }
0x16b5   : > { %v6148_v12 = vcombine.high %v6115_v18, %v6130_v22  ;;  %v6196_v35 = vrot.slane %v6182_v10, %v13704_v61  ;;  %v6197_v50 = vcombine.low %v6174_v19, %v6189_v26  ;;  %v6198_v37 = vcombine.high %v6174_v19, %v6189_v26 }
0x16b6   : > { %v6582_v38 = vrot.slane %v11866_v14, %v13704_v61  ;;  %v6155_v40 = vrot.slane %v6147_v32, %v13709_v11  ;;  %v6233_v45 = vcombine.low %v6139_v30, %v6146_v23  ;;  %v11859_v46 = vcombine.high %v6139_v30, %v6146_v23 }
0x16b7   : > { %v6162_v42 = vrot.slane %v6148_v12, %v13709_v11  ;;  %v6205_v48 = vrot.slane %v6197_v50, %v13709_v11  ;;  %v6212_v39 = vrot.slane %v6198_v37, %v13709_v11  ;;  %v6213_v47 = vcombine.low %v6181_v21, %v6196_v35 }
0x16b8   : > { %v6214_v41 = vcombine.high %v6181_v21, %v6196_v35  ;;  %v6240_v43 = vrot.slane %v6233_v45, %v13704_v61  ;;  %v6248_v44 = vrot.slane %v11859_v46, %v13704_v61  ;;  %v6548_v2 = vrot.slane %v6541_v15, %v13709_v11 }
0x16b9   : > { %v6249_v36 = vcombine.low %v6155_v40, %v6162_v42  ;;  %v11860_v49 = vcombine.high %v6155_v40, %v6162_v42  ;;  %v6221_v51 = vrot.slane %v6213_v47, %v13709_v11  ;;  %v6283_v55 = vcombine.low %v6205_v48, %v6212_v39 }
0x16ba   : > { %v6228_v54 = vrot.slane %v6214_v41, %v13709_v11  ;;  %v11861_v58 = vcombine.high %v6205_v48, %v6212_v39  ;;  %v6583_v60 = vcombine.low %v6558_v27, %v6566_v9  ;;  %v6540_v19 = vrot.slane %v6533_v13, %v13709_v11 }
0x16bb   : > { %v6256_v53 = vrot.slane %v6249_v36, %v13704_v61  ;;  %v6264_v4 = vrot.slane %v11860_v49, %v13704_v61  ;;  %v6290_v17 = vrot.slane %v6283_v55, %v13704_v61  ;;  %v6591_v20 = vcombine.low %v6574_v62, %v6582_v38 }
0x16bc   : > { %v6298_v24 = vrot.slane %v11861_v58, %v13704_v61  ;;  %v6299_v63 = vcombine.low %v6221_v51, %v6228_v54  ;;  %v11862_v25 = vcombine.high %v6221_v51, %v6228_v54  ;;  %v6265_v3 = vcombine.low %v6240_v43, %v6248_v44 }
0x16bd   : > { %v6273_v0 = vcombine.low %v6256_v53, %v6264_v4  ;;  %v6549_v34 = vcombine.low %v6540_v19, %v6548_v2  ;;  %v6590_v18 = vrot.slane %v6583_v60, %v13709_v11  ;;  %v6598_v21 = vrot.slane %v6591_v20, %v13709_v11 }
0x16be   : > { %v6306_v14 = vrot.slane %v6299_v63, %v13704_v61  ;;  %v6314_v33 = vrot.slane %v11862_v25, %v13704_v61  ;;  %v6315_v16 = vcombine.low %v6290_v17, %v6298_v24  ;;  %v6272_v7 = vrot.slane %v6265_v3, %v13709_v11 }
0x16bf   : > { %v6599_v22 = vcombine.low %v6590_v18, %v6598_v21  ;;  %v6280_v52 = vrot.slane %v6273_v0, %v13709_v11  ;;  %v6604_v27 = vshrl.u32 %v6549_v34, 16  ;;  %v6600_v62 = vcombine.high %v6590_v18, %v6598_v21 }
0x16c0   : > { %v6323_v15 = vcombine.low %v6306_v14, %v6314_v33  ;;  %v6322_v13 = vrot.slane %v6315_v16, %v13709_v11  ;;  %v6550_v35 = vcombine.high %v6540_v19, %v6548_v2 }
0x16c1   : > { %v6603_v26 = vpack.i.b16 %v6599_v22, %v6549_v34  ;;  %v6605_v9 = vshrl.u32 %v6599_v22, 16  ;;  %v6281_v12 = vcombine.low %v6272_v7, %v6280_v52  ;;  %v6611_v38 = vshrl.u32 %v6600_v62, 16 }
0x16c2   : > { %v6330_v10 = vrot.slane %v6323_v15, %v13709_v11  ;;  %v6609_v42 = vpack.i.b16 %v6600_v62, %v6550_v35  ;;  %v6610_v46 = vshrl.u32 %v6550_v35, 16  ;;  %v6282_v44 = vcombine.high %v6272_v7, %v6280_v52 }
0x16c3   : > { %v6889_v23 = vsel %vm2019_vm3, %v6603_v26, 0  ;;  %v6606_v32 = vpack.i.b16 %v6605_v9, %v6604_v27  ;;  %v6336_v45 = vshrl.u32 %v6281_v12, 16 }
0x16c4   : > { %v6331_v30 = vcombine.low %v6322_v13, %v6330_v10  ;;  %12780 = vmatpush3.bf16.xpose.msra.mxu1 %v6889_v23  ;;  %v6612_v39 = vpack.i.b16 %v6611_v38, %v6610_v46  ;;  %v6983_v47 = vsel %vm2019_vm3, %v6609_v42, 0  ;;  %v6332_v41 = vcombine.high %v6322_v13, %v6330_v10 }
0x16c5   : > { %v6936_v50 = vsel %vm2019_vm3, %v6606_v32, 0  ;;  %12791 = vmatprep.subr.bf16.mxu1 %v13461_v1  ;;  %v6342_v51 = vshrl.u32 %v6282_v44, 16 }
0x16c6   : > { %v6337_v37 = vshrl.u32 %v6331_v30, 16  ;;  %12786 = vmatpush3.bf16.xpose.msra.mxu0 %v6936_v50  ;;  %v6335_v40 = vpack.i.b16 %v6331_v30, %v6281_v12  ;;  %v7030_v43 = vsel %vm2019_vm3, %v6612_v39, 0  ;;  %v6343_v36 = vshrl.u32 %v6332_v41, 16 }
0x16c7   : > { %12797 = vmatprep.subr.bf16.mxu0 %v13461_v1  ;;  %v6341_v49 = vpack.i.b16 %v6332_v41, %v6282_v44 }
0x16c8   : > { %v6338_v48 = vpack.i.b16 %v6337_v37, %v6336_v45  ;;  %v6344_v54 = vpack.i.b16 %v6343_v36, %v6342_v51 }
0x16cb   : > { %12782 = vmatmul.mubr.msk.bf16.vlgmr.msra.gmra.mrb[68].mxu1 %vm2019_vm3, %v6335_v40 }
0x16cc   : > { %12792 = vmatpush3.bf16.xpose.msra.mxu1 %v6983_v47  ;;  %12793 = vmatprep.mubr.msk.bf16.mxu1 %vm13462_vm0, %v13461_v1 }
0x16cd   : > { %12788 = vmatmul.mubr.msk.bf16.vlgmr.msra.gmra.mrb[76].mxu0 %vm2019_vm3, %v6338_v48  ;;  %12803 = vmatprep.subr.bf16.mxu1 %v13461_v1 }
0x16ce   : > { %12798 = vmatpush3.bf16.xpose.msra.mxu0 %v7030_v43  ;;  %12799 = vmatprep.mubr.msk.bf16.mxu0 %vm13462_vm0, %v13461_v1 }
0x16cf   : > { %12809 = vmatprep.subr.bf16.mxu0 %v13461_v1 }
0x16d3   : > { %12794 = vmatmul.mubr.msk.bf16.vlgmr.msra.gmra.mrb[72].mxu1 %vm2019_vm3, %v6341_v49 }
0x16d4   : > { %12805 = vmatprep.mubr.msk.bf16.mxu1 %vm13462_vm0, %v13461_v1 }
0x16d5   : > { %12800 = vmatmul.mubr.msk.bf16.vlgmr.msra.gmra.mrb[80].mxu0 %vm2019_vm3, %v6344_v54 }
0x16d6   : > { %12811 = vmatprep.mubr.msk.bf16.mxu0 %vm13462_vm0, %v13461_v1 }
0x179e   : > { %v6925_v55 = vpop.f32.mrb[68].mxu1 }
0x179f   : > { %v7073_v58 = vmul.f32 0.35355338, %v6925_v55  ;;  %v12783_v53 = vpop.f32.mrb[69].mxu1 }
0x17a0   : > { %v6928_v4 = vpop.f32.mrb[70].mxu1  ;;  %v6972_v2 = vpop.f32.mrb[76].mxu0 }
0x17a1   : > { %v7074_v60 = vmul.f32 0.35355338, %v6928_v4  ;;  %v12784_v17 = vpop.f32.mrb[71].mxu1  ;;  %v12789_v24 = vpop.f32.mrb[77].mxu0  ;;  %v7075_v63 = vmul.f32 0.35355338, %v6972_v2 }
0x17a2   : > { %v7081_v25 = vsel %vm2216_vm4, %v7073_v58, -inf  ;;  %v6975_v0 = vpop.f32.mrb[78].mxu0  ;;  %v6625_v4 = vshrl.u32 %v14412_v59, 16 }
0x17a3   : > { %7082 = vmax.xlane.f32.xlu0 %v7081_v25  ;;  %v12790_v19 = vpop.f32.mrb[79].mxu0  ;;  %v7084_v20 = vsel %vm2216_vm4, %v7074_v60, -inf  ;;  %v7076_v3 = vmul.f32 0.35355338, %v6975_v0  ;;  %v7087_v33 = vsel %vm2216_vm4, %v7075_v63, -inf }
0x17a4   : > { %7085 = vmax.xlane.f32.xlu1 %v7084_v20 }
0x17a5   : > { %v7090_v52 = vsel %vm2216_vm4, %v7076_v3, -inf }
0x17a6   : > { %v7019_v14 = vpop.f32.mrb[72].mxu1 }
0x17a7   : > { %v7077_v16 = vmul.f32 0.35355338, %v7019_v14  ;;  %7088 = vmax.xlane.f32.xlu0 %v7087_v33  ;;  %v12795_v34 = vpop.f32.mrb[73].mxu1 }
0x17a8   : > { %v7022_v18 = vpop.f32.mrb[74].mxu1  ;;  %v7066_v21 = vpop.f32.mrb[80].mxu0 }
0x17a9   : > { %v12796_v15 = vpop.f32.mrb[75].mxu1  ;;  %v12801_v22 = vpop.f32.mrb[81].mxu0  ;;  %v7078_v7 = vmul.f32 0.35355338, %v7022_v18  ;;  %v7079_v13 = vmul.f32 0.35355338, %v7066_v21 }
0x17aa   : > { %v7093_v10 = vsel %vm2216_vm4, %v7077_v16, -inf  ;;  %v7069_v26 = vpop.f32.mrb[82].mxu0 }
0x17ab   : > { %7094 = vmax.xlane.f32.xlu1 %v7093_v10  ;;  %7091 = vmax.xlane.f32.xlu0 %v7090_v52  ;;  %v12802_v27 = vpop.f32.mrb[83].mxu0  ;;  %v7080_v9 = vmul.f32 0.35355338, %v7069_v26  ;;  %v7096_v62 = vsel %vm2216_vm4, %v7078_v7, -inf  ;;  %v7099_v30 = vsel %vm2216_vm4, %v7079_v13, -inf }
0x17ad   : > { %v7102_v23 = vsel %vm2216_vm4, %v7080_v9, -inf }
0x17af   : > { %7097 = vmax.xlane.f32.xlu0 %v7096_v62  ;;  %7100 = vmax.xlane.f32.xlu1 %v7099_v30 }
0x17b3   : > { %7103 = vmax.xlane.f32.xlu0 %v7102_v23 }
0x17c0   : > { %6615 = vrot.lane.b32.xlu1 %v14412_v59, %s15177_s16  ;;  %s15201_s16 = smov 8  }
0x17c4   : > { %6619 = vrot.lane.b32.xlu1 %v14412_v59, %s15200_s23 }
0x17c9   : > { %6617 = vrot.lane.b32.xlu0 %v14412_v59, %s13465_s18 }
0x1830   : > { %v7083_v32 = vpop.xlane.xlu0 %7082 }
0x1831   : > { %v7105_v12 = vsub.f32 %v7073_v58, %v7083_v32  ;;  %v7086_v35 = vpop.xlane.xlu1 %7085 }
0x1832   : > { %v7106_v50 = vsub.f32 %v7074_v60, %v7086_v35 }
0x1833   : > { %v7113_v37 = vmul.f32 1.442695, %v7105_v12 }
0x1834   : > { %v7115_v38 = vmul.f32 1.442695, %v7106_v50  ;;  %v7089_v40 = vpop.xlane.xlu0 %7088 }
0x1835   : > { %13342 = vpow2.f32 %v7113_v37  ;;  %v7107_v42 = vsub.f32 %v7075_v63, %v7089_v40 }
0x1836   : > { %13344 = vpow2.f32 %v7115_v38 }
0x1837   : > { %v7117_v45 = vmul.f32 1.442695, %v7107_v42 }
0x1838   : > { %v7095_v46 = vpop.xlane.xlu1 %7094  ;;  %v7092_v48 = vpop.xlane.xlu0 %7091 }
0x1839   : > { %13346 = vpow2.f32 %v7117_v45  ;;  %v7109_v39 = vsub.f32 %v7077_v16, %v7095_v46  ;;  %v7108_v47 = vsub.f32 %v7076_v3, %v7092_v48 }
0x183b   : > { %v7121_v41 = vmul.f32 1.442695, %v7109_v39  ;;  %v7119_v43 = vmul.f32 1.442695, %v7108_v47 }
0x183c   : > { %v7098_v44 = vpop.xlane.xlu0 %7097  ;;  %v7101_v36 = vpop.xlane.xlu1 %7100 }
0x183d   : > { %13348 = vpow2.f32 %v7121_v41  ;;  %v7110_v49 = vsub.f32 %v7078_v7, %v7098_v44  ;;  %v7111_v51 = vsub.f32 %v7079_v13, %v7101_v36 }
0x183e   : > { %13350 = vpow2.f32 %v7119_v43 }
0x183f   : > { %v14517_v54 = vpop.eup %13342  ;;  %v7123_v55 = vmul.f32 1.442695, %v7110_v49  ;;  %v7125_v53 = vmul.f32 1.442695, %v7111_v51 }
0x1840   : > { %v14519_v58 = vpop.eup %13344  ;;  %v6616_v2 = vpop.permute.xlu1 %6615  ;;  %v7129_v17 = vsel %vm2216_vm4, %v14517_v54, 0.0 }
0x1841   : > { %v7104_v60 = vpop.xlane.xlu0 %7103  ;;  %13352 = vpow2.f32 %v7123_v55  ;;  %v6623_v24 = vpack.i.b16 %v6616_v2, %v14412_v59  ;;  %v6626_v63 = vshrl.u32 %v6616_v2, 16  ;;  %7130 = vadd.xlane.f32.xlu1 %v7129_v17  ;;  %v7132_v0 = vsel %vm2216_vm4, %v14519_v58, 0.0 }
0x1842   : > { %v7112_v25 = vsub.f32 %v7080_v9, %v7104_v60  ;;  %7133 = vadd.xlane.f32.xlu0 %v7132_v0  ;;  %13354 = vpow2.f32 %v7125_v53 }
0x1843   : > { %v14527_v19 = vpop.eup %13346  ;;  %v6627_v20 = vpack.i.b16 %v6626_v63, %v6625_v4  ;;  %v6637_v16 = vcombine.high %v6623_v24, %v13701_v57  ;;  %v6644_v7 = vrot.slane %v6623_v24, %v13704_v61 }
0x1844   : > { %v7127_v3 = vmul.f32 1.442695, %v7112_v25  ;;  %v6620_v14 = vpop.permute.xlu1 %6619  ;;  %v7135_v21 = vsel %vm2216_vm4, %v14527_v19, 0.0 }
0x1845   : > { %v6618_v33 = vpop.permute.xlu0 %6617  ;;  %v6634_v34 = vshrl.u32 %v6620_v14, 16  ;;  %v6703_v22 = vcombine.high %v6627_v20, %v13701_v57  ;;  %v6651_v27 = vrot.slane %v6637_v16, %v13704_v61  ;;  %v6710_v50 = vrot.slane %v6627_v20, %v13704_v61 }
0x1846   : > { %13356 = vpow2.f32 %v7127_v3  ;;  %v6631_v18 = vpack.i.b16 %v6620_v14, %v6618_v33  ;;  %v6633_v59 = vshrl.u32 %v6618_v33, 16  ;;  %7136 = vadd.xlane.f32.xlu0 %v7135_v21 }
0x1847   : > { %v14532_v15 = vpop.eup %13348  ;;  %v6717_v37 = vrot.slane %v6703_v22, %v13704_v61 }
0x1848   : > { %v14535_v52 = vpop.eup %13350  ;;  %v6635_v13 = vpack.i.b16 %v6634_v34, %v6633_v59  ;;  %v6652_v10 = vcombine.high %v6631_v18, %v13701_v57  ;;  %v6659_v26 = vrot.slane %v6631_v18, %v13704_v61  ;;  %v7141_v62 = vsel %vm2216_vm4, %v14532_v15, 0.0 }
0x1849   : > { %v7138_v9 = vsel %vm2216_vm4, %v14535_v52, 0.0 }
0x184a   : > { %v6666_v30 = vrot.slane %v6652_v10, %v13704_v61  ;;  %v6667_v23 = vcombine.low %v6644_v7, %v6659_v26  ;;  %v6668_v32 = vcombine.high %v6644_v7, %v6659_v26  ;;  %v6718_v12 = vcombine.high %v6635_v13, %v13701_v57  ;;  %7139 = vadd.xlane.f32.xlu1 %v7138_v9 }
0x184b   : > { %v14547_v35 = vpop.eup %13352  ;;  %v6725_v38 = vrot.slane %v6635_v13, %v13704_v61  ;;  %7142 = vadd.xlane.f32.xlu0 %v7141_v62 }
0x184c   : > { %v6675_v40 = vrot.slane %v6667_v23, %v13709_v11  ;;  %v6682_v42 = vrot.slane %v6668_v32, %v13709_v11  ;;  %v6683_v45 = vcombine.low %v6651_v27, %v6666_v30  ;;  %v6684_v46 = vcombine.high %v6651_v27, %v6666_v30  ;;  %v14557_v43 = vpop.eup %13354 }
0x184d   : > { %v6732_v48 = vrot.slane %v6718_v12, %v13704_v61  ;;  %v6733_v39 = vcombine.low %v6710_v50, %v6725_v38  ;;  %v6734_v47 = vcombine.high %v6710_v50, %v6725_v38  ;;  %v7144_v41 = vsel %vm2216_vm4, %v14547_v35, 0.0 }
0x184e   : > { %v6691_v44 = vrot.slane %v6683_v45, %v13709_v11  ;;  %v6698_v36 = vrot.slane %v6684_v46, %v13709_v11  ;;  %v6769_v49 = vcombine.low %v6675_v40, %v6682_v42  ;;  %v11867_v51 = vcombine.high %v6675_v40, %v6682_v42  ;;  %7145 = vadd.xlane.f32.xlu1 %v7144_v41 }
0x184f   : > { %v6741_v53 = vrot.slane %v6733_v39, %v13709_v11  ;;  %v6748_v4 = vrot.slane %v6734_v47, %v13709_v11  ;;  %v6749_v2 = vcombine.low %v6717_v37, %v6732_v48  ;;  %v6750_v60 = vcombine.high %v6717_v37, %v6732_v48 }
0x1850   : > { %v14561_v55 = vpop.eup %13356  ;;  %v6776_v17 = vrot.slane %v6769_v49, %v13704_v61  ;;  %v6784_v24 = vrot.slane %v11867_v51, %v13704_v61  ;;  %v6785_v63 = vcombine.low %v6691_v44, %v6698_v36  ;;  %v11868_v25 = vcombine.high %v6691_v44, %v6698_v36 }
0x1851   : > { %v6757_v0 = vrot.slane %v6749_v2, %v13709_v11  ;;  %v6764_v20 = vrot.slane %v6750_v60, %v13709_v11  ;;  %v6819_v3 = vcombine.low %v6741_v53, %v6748_v4  ;;  %v11869_v14 = vcombine.high %v6741_v53, %v6748_v4 }
0x1852   : > { %v6792_v33 = vrot.slane %v6785_v63, %v13704_v61  ;;  %v6800_v16 = vrot.slane %v11868_v25, %v13704_v61  ;;  %v7147_v34 = vsel %vm2216_vm4, %v14557_v43, 0.0  ;;  %v7150_v18 = vsel %vm2216_vm4, %v14561_v55, 0.0 }
0x1853   : > { %v6826_v59 = vrot.slane %v6819_v3, %v13704_v61  ;;  %v6834_v21 = vrot.slane %v11869_v14, %v13704_v61  ;;  %v6835_v22 = vcombine.low %v6757_v0, %v6764_v20  ;;  %v11870_v7 = vcombine.high %v6757_v0, %v6764_v20  ;;  %7148 = vadd.xlane.f32.xlu0 %v7147_v34 }
0x1854   : > { %7151 = vadd.xlane.f32.xlu1 %v7150_v18  ;;  %v6801_v13 = vcombine.low %v6776_v17, %v6784_v24  ;;  %v6809_v10 = vcombine.low %v6792_v33, %v6800_v16 }
0x1855   : > { %v6842_v26 = vrot.slane %v6835_v22, %v13704_v61  ;;  %v6850_v27 = vrot.slane %v11870_v7, %v13704_v61  ;;  %v6851_v9 = vcombine.low %v6826_v59, %v6834_v21 }
0x1856   : > { %v6808_v62 = vrot.slane %v6801_v13, %v13709_v11  ;;  %v6816_v30 = vrot.slane %v6809_v10, %v13709_v11 }
0x1857   : > { %v6859_v23 = vcombine.low %v6842_v26, %v6850_v27  ;;  %v6858_v50 = vrot.slane %v6851_v9, %v13709_v11 }
0x1858   : > { %v6817_v32 = vcombine.low %v6808_v62, %v6816_v30  ;;  %v6818_v12 = vcombine.high %v6808_v62, %v6816_v30 }
0x1859   : > { %v6866_v37 = vrot.slane %v6859_v23, %v13709_v11 }
0x185a   : > { %v6873_v42 = vshrl.u32 %v6817_v32, 16  ;;  %v6881_v45 = vshrl.u32 %v6818_v12, 16 }
0x185b   : > { %v6867_v38 = vcombine.low %v6858_v50, %v6866_v37  ;;  %v6868_v40 = vcombine.high %v6858_v50, %v6866_v37 }
0x185d   : > { %v6871_v46 = vpack.i.b16 %v6867_v38, %v6817_v32  ;;  %v6874_v48 = vshrl.u32 %v6867_v38, 16  ;;  %v6879_v39 = vpack.i.b16 %v6868_v40, %v6818_v12  ;;  %v6882_v47 = vshrl.u32 %v6868_v40, 16 }
0x185f   : > { %12804 = vmatpush3.bf16.msra.mxu1 %v6871_v46  ;;  %v6875_v41 = vpack.i.b16 %v6874_v48, %v6873_v42  ;;  %v6883_v44 = vpack.i.b16 %v6882_v47, %v6881_v45 }
0x1860   : > { %12815 = vmatprep.subr.bf16.mxu1 %v13461_v1 }
0x1861   : > { %12810 = vmatpush3.bf16.msra.mxu0 %v6875_v41 }
0x1862   : > { %12821 = vmatprep.subr.bf16.mxu0 %v13461_v1 }
0x18ce   : > { %v7131_v36 = vpop.xlane.xlu1 %7130 }
0x18cf   : > { %13358 = vrcp.f32 %v7131_v36  ;;  %v7134_v49 = vpop.xlane.xlu0 %7133 }
0x18d0   : > { %13360 = vrcp.f32 %v7134_v49 }
0x18d3   : > { %v7137_v51 = vpop.xlane.xlu0 %7136 }
0x18d4   : > { %13362 = vrcp.f32 %v7137_v51 }
0x18d7   : > { %v7140_v53 = vpop.xlane.xlu1 %7139 }
0x18d8   : > { %13364 = vrcp.f32 %v7140_v53  ;;  %v7143_v4 = vpop.xlane.xlu0 %7142 }
0x18d9   : > { %v13359_v2 = vpop.eup %13358  ;;  %13366 = vrcp.f32 %v7143_v4 }
0x18da   : > { %v13361_v60 = vpop.eup %13360  ;;  %v7161_v24 = vmul.f32 %v13359_v2, %v14517_v54 }
0x18db   : > { %v7146_v17 = vpop.xlane.xlu1 %7145  ;;  %v7162_v63 = vmul.f32 %v13361_v60, %v14519_v58 }
0x18dc   : > { %13368 = vrcp.f32 %v7146_v17 }
0x18dd   : > { %v7169_v25 = vpack.c.bf16 %v7162_v63, %v7161_v24 }
0x18de   : > { %v13363_v0 = vpop.eup %13362 }
0x18df   : > { %12806 = vmatmul.mubr.msk.bf16.vlgmr.msra.gmra.mrb[76].mxu1 %vm2216_vm4, %v7169_v25  ;;  %v7163_v54 = vmul.f32 %v13363_v0, %v14527_v19 }
0x18e0   : > { %v7149_v20 = vpop.xlane.xlu0 %7148  ;;  %12816 = vmatpush3.bf16.msra.mxu1 %v6879_v39  ;;  %12817 = vmatprep.mubr.msk.bf16.mxu1 %vm13462_vm0, %v13461_v1 }
0x18e1   : > { %13370 = vrcp.f32 %v7149_v20  ;;  %v7152_v3 = vpop.xlane.xlu1 %7151  ;;  %12827 = vmatprep.subr.bf16.mxu1 %v13461_v1 }
0x18e2   : > { %v13365_v14 = vpop.eup %13364  ;;  %13372 = vrcp.f32 %v7152_v3 }
0x18e3   : > { %v7164_v58 = vmul.f32 %v13365_v14, %v14535_v52  ;;  %v13367_v33 = vpop.eup %13366 }
0x18e4   : > { %v7165_v18 = vmul.f32 %v13367_v33, %v14532_v15 }
0x18e5   : > { %v7170_v16 = vpack.c.bf16 %v7164_v58, %v7163_v54 }
0x18e6   : > { %v13369_v34 = vpop.eup %13368 }
0x18e7   : > { %v7166_v59 = vmul.f32 %v13369_v34, %v14547_v35  ;;  %12812 = vmatmul.mubr.msk.bf16.vlgmr.msra.gmra.mrb[84].mxu0 %vm2216_vm4, %v7170_v16  ;;  %v13094_v35 = vld [vmem:[%s13531_s19 + $0x20] sm:$0xff]  }
0x18e8   : > { %12822 = vmatpush3.bf16.msra.mxu0 %v6883_v44  ;;  %12823 = vmatprep.mubr.msk.bf16.mxu0 %vm13462_vm0, %v13461_v1 }
0x18e9   : > { %v7171_v21 = vpack.c.bf16 %v7166_v59, %v7165_v18 }
0x18eb   : > { %v13371_v22 = vpop.eup %13370  ;;  %12818 = vmatmul.mubr.msk.bf16.vlgmr.msra.gmra.mrb[80].mxu1 %vm2216_vm4, %v7171_v21 }
0x18ec   : > { %v13373_v19 = vpop.eup %13372  ;;  %12831 = vmatprep.mubr.msk.bf16.mxu1 %vm13462_vm0, %v13461_v1  ;;  %v7167_v52 = vmul.f32 %v13371_v22, %v14557_v43  ;;  %12828 = vmatpush3.bf16.msra.mxu1 %v13094_v35 }
0x18ed   : > { %v7168_v15 = vmul.f32 %v13373_v19, %v14561_v55  ;;  %12829 = vmatprep.subr.bf16.mxu1 %v13461_v1 }
0x18ef   : > { %v7172_v7 = vpack.c.bf16 %v7168_v15, %v7167_v52 }
0x18f1   : > { %12824 = vmatmul.mubr.msk.bf16.vlgmr.msra.gmra.mrb[88].mxu0 %vm2216_vm4, %v7172_v7 }
0x18f2   : > { %7850 = vmatprep.mubr.bf16.mxu0 %v13468_v56 }
0x19b2   : > { %v7210_v13 = vpop.f32.mrb[76].mxu1 }
0x19b3   : > { %v12807_v10 = vpop.f32.mrb[77].mxu1 }
0x19b4   : > { %v7213_v26 = vpop.f32.mrb[78].mxu1 }
0x19b5   : > { %v7349_v27 = vpack.c.bf16 %v7213_v26, %v7210_v13  ;;  %v12808_v9 = vpop.f32.mrb[79].mxu1 }
0x19b7   : > { %v7357_v12 = vshrl.u32 %v7349_v27, 16 }
0x19ba   : > { %v7254_v62 = vpop.f32.mrb[84].mxu0 }
0x19bb   : > { %v12813_v30 = vpop.f32.mrb[85].mxu0 }
0x19bc   : > { %v7257_v23 = vpop.f32.mrb[86].mxu0 }
0x19bd   : > { %v7350_v43 = vpack.c.bf16 %v7257_v23, %v7254_v62  ;;  %v12814_v32 = vpop.f32.mrb[87].mxu0 }
0x19be   : > { %v7298_v55 = vpop.f32.mrb[80].mxu1 }
0x19bf   : > { %v7355_v50 = vpack.i.b16 %v7350_v43, %v7349_v27  ;;  %v7358_v37 = vshrl.u32 %v7350_v43, 16  ;;  %v12819_v38 = vpop.f32.mrb[81].mxu1 }
0x19c0   : > { %v7301_v40 = vpop.f32.mrb[82].mxu1 }
0x19c1   : > { %v7359_v42 = vpack.i.b16 %v7358_v37, %v7357_v12  ;;  %v7351_v45 = vpack.c.bf16 %v7301_v40, %v7298_v55  ;;  %v12820_v46 = vpop.f32.mrb[83].mxu1  ;;  %v7369_v36 = vcombine.high %v7355_v50, %v13701_v57  ;;  %v7376_v4 = vrot.slane %v7355_v50, %v13704_v61 }
0x19c3   : > { %v7365_v49 = vshrl.u32 %v7351_v45, 16  ;;  %v7383_v24 = vrot.slane %v7369_v36, %v13704_v61  ;;  %v7435_v63 = vcombine.high %v7359_v42, %v13701_v57  ;;  %v7442_v14 = vrot.slane %v7359_v42, %v13704_v61 }
0x19c4   : > { %v7342_v48 = vpop.f32.mrb[88].mxu0 }
0x19c5   : > { %v12825_v39 = vpop.f32.mrb[89].mxu0  ;;  %v7449_v18 = vrot.slane %v7435_v63, %v13704_v61 }
0x19c6   : > { %v7345_v47 = vpop.f32.mrb[90].mxu0 }
0x19c7   : > { %v7352_v41 = vpack.c.bf16 %v7345_v47, %v7342_v48  ;;  %v12826_v44 = vpop.f32.mrb[91].mxu0  ;;  %v13095_v48 = vld [vmem:[%s13531_s19 + $0x28] sm:$0xff]  }
0x19c8   : > { %12830 = vmatpush3.bf16.msra.mxu1 %v13095_v48  ;;  %v13107_v48 = vld [vmem:[%s13551_s12 + $0xac] ss:$16 sps:$4 sm:$0xff]  }
0x19c9   : > { %v7363_v51 = vpack.i.b16 %v7352_v41, %v7351_v45  ;;  %v7366_v53 = vshrl.u32 %v7352_v41, 16 }
0x19cb   : > { %v7367_v2 = vpack.i.b16 %v7366_v53, %v7365_v49  ;;  %v7384_v60 = vcombine.high %v7363_v51, %v13701_v57  ;;  %v7391_v17 = vrot.slane %v7363_v51, %v13704_v61 }
0x19cd   : > { %v7398_v25 = vrot.slane %v7384_v60, %v13704_v61  ;;  %v7399_v0 = vcombine.low %v7376_v4, %v7391_v17  ;;  %v7400_v20 = vcombine.high %v7376_v4, %v7391_v17  ;;  %v7450_v3 = vcombine.high %v7367_v2, %v13701_v57 }
0x19ce   : > { %v7457_v54 = vrot.slane %v7367_v2, %v13704_v61 }
0x19cf   : > { %v7407_v58 = vrot.slane %v7399_v0, %v13709_v11  ;;  %v7414_v33 = vrot.slane %v7400_v20, %v13709_v11  ;;  %v7415_v16 = vcombine.low %v7383_v24, %v7398_v25  ;;  %v7416_v34 = vcombine.high %v7383_v24, %v7398_v25 }
0x19d0   : > { %v7464_v59 = vrot.slane %v7450_v3, %v13704_v61  ;;  %v7465_v21 = vcombine.low %v7442_v14, %v7457_v54  ;;  %v7466_v22 = vcombine.high %v7442_v14, %v7457_v54 }
0x19d1   : > { %v7423_v19 = vrot.slane %v7415_v16, %v13709_v11  ;;  %v7430_v52 = vrot.slane %v7416_v34, %v13709_v11  ;;  %v7501_v15 = vcombine.low %v7407_v58, %v7414_v33  ;;  %v11879_v7 = vcombine.high %v7407_v58, %v7414_v33 }
0x19d2   : > { %v7473_v35 = vrot.slane %v7465_v21, %v13709_v11  ;;  %v7480_v13 = vrot.slane %v7466_v22, %v13709_v11  ;;  %v7481_v10 = vcombine.low %v7449_v18, %v7464_v59  ;;  %v7482_v26 = vcombine.high %v7449_v18, %v7464_v59  ;;  %v11888_v21 = vld [vmem:[%s13536_s24 + $0x2] ss:$0 sm:$0xff] }
0x19d3   : > { %v7517_v27 = vcombine.low %v7423_v19, %v7430_v52  ;;  %v11880_v9 = vcombine.high %v7423_v19, %v7430_v52  ;;  %v7508_v62 = vrot.slane %v7501_v15, %v13704_v61  ;;  %v7516_v30 = vrot.slane %v11879_v7, %v13704_v61 }
0x19d4   : > { %v7489_v23 = vrot.slane %v7481_v10, %v13709_v11  ;;  %v7496_v43 = vrot.slane %v7482_v26, %v13709_v11  ;;  %v7551_v32 = vcombine.low %v7473_v35, %v7480_v13  ;;  %v11881_v55 = vcombine.high %v7473_v35, %v7480_v13 }
0x19d5   : > { %v7524_v12 = vrot.slane %v7517_v27, %v13704_v61  ;;  %v7532_v50 = vrot.slane %v11880_v9, %v13704_v61  ;;  %v7533_v37 = vcombine.low %v7508_v62, %v7516_v30 }
0x19d6   : > { %v7558_v38 = vrot.slane %v7551_v32, %v13704_v61  ;;  %v7566_v40 = vrot.slane %v11881_v55, %v13704_v61  ;;  %v7567_v42 = vcombine.low %v7489_v23, %v7496_v43  ;;  %v11882_v45 = vcombine.high %v7489_v23, %v7496_v43 }
0x19d7   : > { %v7541_v46 = vcombine.low %v7524_v12, %v7532_v50  ;;  %v7540_v44 = vrot.slane %v7533_v37, %v13709_v11  ;;  %v13098_v50 = vld [vmem:[%s13551_s12 + $0x84] ss:$16 sps:$4 sm:$0xff]   ;;  %v13101_v37 = vld [vmem:[%s13551_s12 + $0x8c] ss:$16 sps:$4 sm:$0xff]  }
0x19d8   : > { %v7574_v39 = vrot.slane %v7567_v42, %v13704_v61  ;;  %v7582_v47 = vrot.slane %v11882_v45, %v13704_v61  ;;  %v7583_v41 = vcombine.low %v7558_v38, %v7566_v40  ;;  %v13096_v38 = vld [vmem:[%s13551_s12 + $0x80] ss:$16 sps:$4 sm:$0xff]   ;;  %v13099_v40 = vld [vmem:[%s13551_s12 + $0x88] ss:$16 sps:$4 sm:$0xff]   ;;  %7818 = vmatprep.subr.bf16.mxu0 %v13098_v50  ;;  %7861 = vmatprep.subr.bf16.mxu1 %v13101_v37  ;;  %v13104_v42 = vld [vmem:[%s13551_s12 + $0xa4] ss:$16 sps:$4 sm:$0xff]  }
0x19d9   : > { %v7548_v36 = vrot.slane %v7541_v46, %v13709_v11  ;;  %7819 = vmatpush1.bf16.msra.mxu0 %v13096_v38  ;;  %v13102_v45 = vld [vmem:[%s13551_s12 + $0xa0] ss:$16 sps:$4 sm:$0xff]   ;;  %v13105_v46 = vld [vmem:[%s13551_s12 + $0xa8] ss:$16 sps:$4 sm:$0xff]  }
0x19da   : > { %v7591_v49 = vcombine.low %v7574_v39, %v7582_v47  ;;  %v7590_v4 = vrot.slane %v7583_v41, %v13709_v11  ;;  %7820 = vmatprep.subr.bf16.mxu0 %v13104_v42  ;;  %v13108_v39 = vld [vmem:[%s13561_s27 + $0x240] sm:$0xff]   ;;  %v13138_v50 = vld [vmem:[%s13561_s27 + $0x238] sm:$0xff]   ;;  %v11904_v38 = vld [vmem:[%s15195_s2 + $0x8] sm:$0xf] }
0x19db   : > { %v7550_v51 = vcombine.high %v7540_v44, %v7548_v36  ;;  %v7549_v53 = vcombine.low %v7540_v44, %v7548_v36  ;;  %v13109_v47 = vld [vmem:[%s13561_s27 + $0x2c0] sm:$0xff]   ;;  %v13139_v37 = vld [vmem:[%s13561_s27 + $0x2b8] sm:$0xff]   ;;  %v7766_v42 = vrot.slane %v11904_v38, %v14001_v6 }
0x19dc   : > { %v7598_v2 = vrot.slane %v7591_v49, %v13709_v11 }
0x19dd   : > { %v7610_v24 = vshrl.u32 %v7550_v51, 16  ;;  %v7604_v63 = vshrl.u32 %v7549_v53, 16  ;;  %7821 = vmatpush1.bf16.msra.mxu0 %v13102_v45  ;;  %v7762_v45 = vrot.slane %v11904_v38, %v14005_v31 }
0x19de   : > { %v7599_v60 = vcombine.low %v7590_v4, %v7598_v2  ;;  %v7600_v17 = vcombine.high %v7590_v4, %v7598_v2  ;;  %12439 = vmatprep.subr.bf16.mxu0 %v13108_v39 }
0x19e0   : > { %v7609_v25 = vpack.i.b16 %v7600_v17, %v7550_v51  ;;  %v7611_v0 = vshrl.u32 %v7600_v17, 16  ;;  %v7605_v20 = vshrl.u32 %v7599_v60, 16  ;;  %v7603_v3 = vpack.i.b16 %v7599_v60, %v7549_v53  ;;  %v11894_v60 = vld [vmem:[%s15193_s28 + $0x2] ss:$0 sm:$0xff] }
0x19e2   : > { %7615 = vrot.lane.b32.xlu1 %v7609_v25, %s15179_s22  ;;  %v7606_v14 = vpack.i.b16 %v7605_v20, %v7604_v63  ;;  %v7612_v54 = vpack.i.b16 %v7611_v0, %v7610_v24  ;;  %v11895_v25 = vld [vmem:[%s15194_s1 + $0x2] ss:$0 sm:$0xff]  ;;  %s15202_s22 = smov 120  }
0x19e4   : > { %7613 = vrot.lane.b32.xlu0 %v7606_v14, %s15201_s16  ;;  %v13110_v14 = vld [vmem:[%s13561_s27 + $0x200] sm:$0xff]  }
0x19e6   : > { %7617 = vrot.lane.b32.xlu1 %v7612_v54, %s15199_s15  ;;  %v13111_v54 = vld [vmem:[%s13561_s27 + $0x280] sm:$0xff]  }
0x1a54   : > { %v7616_v58 = vpop.permute.xlu1 %7615 }
0x1a56   : > { %v7614_v33 = vpop.permute.xlu0 %7613 }
0x1a57   : > { %v7621_v16 = vsel %vm2019_vm3, %v7603_v3, %v7614_v33  ;;  %v13112_v33 = vld [vmem:[%s13561_s27 + $0x248] sm:$0xff]  }
0x1a58   : > { %v7618_v34 = vpop.permute.xlu1 %7617  ;;  %v7623_v18 = vsel %vm2216_vm4, %v7621_v16, %v7616_v58  ;;  %v13113_v16 = vld [vmem:[%s13561_s27 + $0x2c8] sm:$0xff]  }
0x1a59   : > { %v7625_v59 = vsel %vm2760_vm5, %v7623_v18, %v7618_v34  ;;  %v13114_v34 = vld [vmem:[%s13561_s27 + $0x208] sm:$0xff]  }
0x1a5a   : > { %12832 = vmatmul.mubr.msk.bf16.vlgmr.msra.gmra.mrb[84].mxu1 %vm1032_vm2, %v7625_v59  ;;  %v13115_v18 = vld [vmem:[%s13561_s27 + $0x288] sm:$0xff]   ;;  %v13116_v59 = vld [vmem:[%s13561_s27 + $0x250] sm:$0xff]  }
0x1a5b   : > { %7893 = vmatprep.mubr.bf16.mxu1 %v13468_v56  ;;  %7862 = vmatpush1.bf16.msra.mxu1 %v13099_v40  ;;  %v7758_v40 = vrot.slane %v11904_v38, %v13998_v5 }
0x1a5c   : > { %7863 = vmatprep.subr.bf16.mxu1 %v13107_v48 }
0x1a5f   : > { %7864 = vmatpush1.bf16.msra.mxu1 %v13105_v46  ;;  %v7770_v46 = vrot.slane %v11904_v38, %v14008_v8 }
0x1a60   : > { %12461 = vmatprep.subr.bf16.mxu1 %v13109_v47 }
0x1b2d   : > { %v7687_v22 = vpop.f32.mrb[84].mxu1 }
0x1b2e   : > { %v7688_v19 = vadd.f32 %v11888_v21, %v7687_v22  ;;  %v12833_v52 = vpop.f32.mrb[85].mxu1  ;;  %v13118_v22 = vld [vmem:[%s13561_s27 + $0x210] sm:$0xff]  }
0x1b2f   : > { %v7690_v15 = vpop.f32.mrb[86].mxu1  ;;  %v13120_v52 = vld [vmem:[%s13561_s27 + $0x258] sm:$0xff]  }
0x1b30   : > { %v7694_v7 = vadd.f32 %v7688_v19, %v14386_v28  ;;  %v7691_v35 = vadd.f32 %v11888_v21, %v7690_v15  ;;  %v12834_v13 = vpop.f32.mrb[87].mxu1  ;;  %v13117_v21 = vld [vmem:[%s13561_s27 + $0x2d0] sm:$0xff]   ;;  %v13121_v15 = vld [vmem:[%s13561_s27 + $0x2d8] sm:$0xff]  }
0x1b31   : > { %v13119_v19 = vld [vmem:[%s13561_s27 + $0x290] sm:$0xff]   ;;  %v13124_v13 = vld [vmem:[%s13561_s27 + $0x260] sm:$0xff]  }
0x1b32   : > { %v7695_v10 = vadd.f32 %v7691_v35, %v14388_v29  ;;  %v7700_v26 = vsel %vm1032_vm2, %v7694_v7, 0.0  ;;  %v13123_v35 = vld [vmem:[%s13561_s27 + $0x298] sm:$0xff]  }
0x1b33   : > { %7701 = vadd.xlane.f32.xlu0 %v7700_v26  ;;  %v13126_v26 = vld [vmem:[%s13561_s27 + $0x220] sm:$0xff]  }
0x1b34   : > { %v7703_v27 = vsel %vm1032_vm2, %v7695_v10, 0.0 }
0x1b35   : > { %7704 = vadd.xlane.f32.xlu1 %v7703_v27  ;;  %v13127_v27 = vld [vmem:[%s13561_s27 + $0x2a0] sm:$0xff]  }
0x1bc0   : > { %v7702_v9 = vpop.xlane.xlu0 %7701 }
0x1bc1   : > { %v7706_v62 = vmul.f32 0.03125, %v7702_v9  ;;  %v13128_v9 = vld [vmem:[%s13561_s27 + $0x268] sm:$0xff]  }
0x1bc2   : > { %v7705_v30 = vpop.xlane.xlu1 %7704 }
0x1bc3   : > { %v7708_v23 = vsub.f32 %v7694_v7, %v7706_v62  ;;  %v7707_v28 = vmul.f32 0.03125, %v7705_v30  ;;  %v13122_v7 = vld [vmem:[%s13561_s27 + $0x218] sm:$0xff]   ;;  %v13129_v62 = vld [vmem:[%s13561_s27 + $0x2e8] sm:$0xff]  }
0x1bc4   : > { %v13130_v30 = vld [vmem:[%s13561_s27 + $0x228] sm:$0xff]  }
0x1bc5   : > { %v7709_v43 = vsub.f32 %v7695_v10, %v7707_v28  ;;  %v7710_v32 = vmul.f32 %v7708_v23, %v7708_v23  ;;  %v13125_v10 = vld [vmem:[%s13561_s27 + $0x2e0] sm:$0xff]   ;;  %v13132_v28 = vld [vmem:[%s13561_s27 + $0x270] sm:$0xff]  }
0x1bc7   : > { %v7712_v29 = vsel %vm1032_vm2, %v7710_v32, 0.0  ;;  %v7711_v55 = vmul.f32 %v7709_v43, %v7709_v43  ;;  %v13134_v32 = vld [vmem:[%s13561_s27 + $0x230] sm:$0xff]  }
0x1bc8   : > { %7713 = vadd.xlane.f32.xlu0 %v7712_v29  ;;  %v13135_v29 = vld [vmem:[%s13561_s27 + $0x2b0] sm:$0xff]  }
0x1bc9   : > { %v7715_v12 = vsel %vm1032_vm2, %v7711_v55, 0.0  ;;  %v13136_v55 = vld [vmem:[%s13561_s27 + $0x278] sm:$0xff]  }
0x1bcc   : > { %7716 = vadd.xlane.f32.xlu0 %v7715_v12  ;;  %v13137_v12 = vld [vmem:[%s13561_s27 + $0x2f8] sm:$0xff]  }
0x1c55   : > { %v7714_v41 = vpop.xlane.xlu0 %7713 }
0x1c56   : > { %v7718_v44 = vmul.f32 0.03125, %v7714_v41 }
0x1c58   : > { %v7720_v36 = vadd.f32 1e-05, %v7718_v44 }
0x1c59   : > { %v7717_v49 = vpop.xlane.xlu0 %7716 }
0x1c5a   : > { %13374 = vrsqrt.f32 %v7720_v36  ;;  %v7719_v51 = vmul.f32 0.03125, %v7717_v49 }
0x1c5c   : > { %v7721_v53 = vadd.f32 1e-05, %v7719_v51 }
0x1c5e   : > { %13376 = vrsqrt.f32 %v7721_v53 }
0x1c64   : > { %v13375_v4 = vpop.eup %13374 }
0x1c65   : > { %v7724_v2 = vmul.f32 %v13375_v4, %v7708_v23  ;;  %v13131_v23 = vld [vmem:[%s13561_s27 + $0x2a8] sm:$0xff]  }
0x1c67   : > { %v7732_v24 = vmul.f32 %v11894_v60, %v7724_v2 }
0x1c68   : > { %v13377_v17 = vpop.eup %13376 }
0x1c69   : > { %v7725_v63 = vmul.f32 %v13377_v17, %v7709_v43  ;;  %v14667_v20 = vadd.f32 %v11895_v25, %v7732_v24  ;;  %v13133_v43 = vld [vmem:[%s13561_s27 + $0x2f0] sm:$0xff]  }
0x1c6b   : > { %v7733_v0 = vmul.f32 %v11894_v60, %v7725_v63 }
0x1c6d   : > { %v14669_v3 = vadd.f32 %v11895_v25, %v7733_v0 }
0x1c6f   : > { %v7742_v58 = vpack.c.bf16 %v14669_v3, %v14667_v20 }
0x1c71   : > { %11913 = vmatmul.mubr.msk.bf16.vlgmr.msra.gmra.mrb[92].mxu0 %vm1032_vm2, %v7742_v58  ;;  %11914 = vmatmul.mubr.msk.bf16.vlgmr.msra.gmra.mrb[88].mxu1 %vm1032_vm2, %v7742_v58 }
0x1c72   : > { %12440 = vmatpush3.bf16.msra.mxu0 %v13110_v14  ;;  %12462 = vmatpush3.bf16.msra.mxu1 %v13111_v54 }
0x1c73   : > { %12441 = vmatprep.subr.bf16.mxu0 %v13112_v33  ;;  %12463 = vmatprep.subr.bf16.mxu1 %v13113_v16 }
0x1c76   : > { %12442 = vmatpush3.bf16.msra.mxu0 %v13114_v34  ;;  %12464 = vmatpush3.bf16.msra.mxu1 %v13115_v18 }
0x1c77   : > { %12443 = vmatprep.subr.bf16.mxu0 %v13116_v59  ;;  %12465 = vmatprep.subr.bf16.mxu1 %v13117_v21 }
0x1c7a   : > { %12444 = vmatpush3.bf16.msra.mxu0 %v13118_v22  ;;  %12466 = vmatpush3.bf16.msra.mxu1 %v13119_v19 }
0x1c7b   : > { %12445 = vmatprep.subr.bf16.mxu0 %v13120_v52  ;;  %12467 = vmatprep.subr.bf16.mxu1 %v13121_v15 }
0x1c7e   : > { %12446 = vmatpush3.bf16.msra.mxu0 %v13122_v7  ;;  %12468 = vmatpush3.bf16.msra.mxu1 %v13123_v35  ;;  %v11980_v7 = vld [vmem:[%s15196_s0 + $0x2] ss:$0 sm:$0xff] }
0x1c7f   : > { %12447 = vmatprep.subr.bf16.mxu0 %v13124_v13  ;;  %12469 = vmatprep.subr.bf16.mxu1 %v13125_v10 }
0x1c82   : > { %12448 = vmatpush3.bf16.msra.mxu0 %v13126_v26  ;;  %12470 = vmatpush3.bf16.msra.mxu1 %v13127_v27 }
0x1c83   : > { %12449 = vmatprep.subr.bf16.mxu0 %v13128_v9  ;;  %12471 = vmatprep.subr.bf16.mxu1 %v13129_v62 }
0x1c86   : > { %12450 = vmatpush3.bf16.msra.mxu0 %v13130_v30  ;;  %12472 = vmatpush3.bf16.msra.mxu1 %v13131_v23 }
0x1c87   : > { %12451 = vmatprep.subr.bf16.mxu0 %v13132_v28  ;;  %12473 = vmatprep.subr.bf16.mxu1 %v13133_v43 }
0x1c8a   : > { %12452 = vmatpush3.bf16.msra.mxu0 %v13134_v32  ;;  %12474 = vmatpush3.bf16.msra.mxu1 %v13135_v29 }
0x1c8b   : > { %12453 = vmatprep.subr.bf16.mxu0 %v13136_v55  ;;  %12475 = vmatprep.subr.bf16.mxu1 %v13137_v12 }
0x1c8e   : > { %12454 = vmatpush3.bf16.msra.mxu0 %v13138_v50  ;;  %12476 = vmatpush3.bf16.msra.mxu1 %v13139_v37 }
0x1c8f   : > { %12835 = vmatprep.subr.bf16.mxu0 %v13461_v1  ;;  %12843 = vmatprep.subr.bf16.mxu1 %v13461_v1 }
0x1d44   : > { %v7852_v48 = vpop.f32.mrb[92].mxu0  ;;  %v7895_v39 = vpop.f32.mrb[88].mxu1 }
0x1d45   : > { %v7853_v47 = vadd.f32 %v7852_v48, %v7758_v40  ;;  %v7896_v41 = vadd.f32 %v7895_v39, %v7766_v42  ;;  %v7854_v44 = vpop.f32.mrb[93].mxu0  ;;  %v7897_v36 = vpop.f32.mrb[89].mxu1 }
0x1d46   : > { %v7855_v49 = vadd.f32 %v7854_v44, %v7762_v45  ;;  %v7898_v51 = vadd.f32 %v7897_v36, %v7770_v46  ;;  %v7856_v53 = vpop.f32.mrb[94].mxu0  ;;  %v7899_v4 = vpop.f32.mrb[90].mxu1  ;;  %v13140_v44 = vld [vmem:[%s13501_s21 + $0x30] sm:$0xff]  }
0x1d47   : > { %v7857_v2 = vadd.f32 %v7856_v53, %v7758_v40  ;;  %v7900_v60 = vadd.f32 %v7899_v4, %v7766_v42  ;;  %v7858_v17 = vpop.f32.mrb[95].mxu0  ;;  %v7901_v24 = vpop.f32.mrb[91].mxu1  ;;  %v7904_v0 = vmax.f32 %v7853_v47, 0.0  ;;  %v7906_v14 = vmax.f32 %v7896_v41, 0.0  ;;  %v13141_v36 = vld [vmem:[%s13506_s25 + $0x30] sm:$0xff]  }
0x1d48   : > { %v7859_v63 = vadd.f32 %v7858_v17, %v7762_v45  ;;  %v7902_v25 = vadd.f32 %v7901_v24, %v7770_v46  ;;  %v7905_v33 = vmax.f32 %v7855_v49, 0.0  ;;  %v7907_v16 = vmax.f32 %v7898_v51, 0.0  ;;  %v13142_v49 = vld [vmem:[%s13501_s21 + $0x38] sm:$0xff]  }
0x1d49   : > { %v7908_v54 = vmax.f32 %v7857_v2, 0.0  ;;  %v7910_v58 = vmax.f32 %v7900_v60, 0.0  ;;  %v13143_v51 = vld [vmem:[%s13506_s25 + $0x38] sm:$0xff]  }
0x1d4a   : > { %v7909_v34 = vmax.f32 %v7859_v63, 0.0  ;;  %v7911_v18 = vmax.f32 %v7902_v25, 0.0  ;;  %v12015_v25 = vld [vmem:[%s15197_s11 + $0x2] ss:$0 sm:$0xff] }
0x1d4b   : > { %v7912_v59 = vpack.c.bf16 %v7908_v54, %v7904_v0  ;;  %v7914_v21 = vpack.c.bf16 %v7910_v58, %v7906_v14 }
0x1d4c   : > { %v7913_v22 = vpack.c.bf16 %v7909_v34, %v7905_v33  ;;  %v7915_v19 = vpack.c.bf16 %v7911_v18, %v7907_v16  ;;  %v12016_v33 = vld [vmem:[%s15198_s26 + $0x2] ss:$0 sm:$0xff] }
0x1d4e   : > { %8213 = vmatprep.mubr.bf16.mxu0 %v7913_v22  ;;  %8254 = vmatprep.mubr.bf16.mxu1 %v7915_v19  ;;  %v13145_v22 = vld [vmem:[%s13511_s29 + $0x38] sm:$0xff]   ;;  %v12022_v19 = vld [vmem:[%s13516_s3 + $0x3] ss:$0 sm:$0xff] }
0x1d4f   : > { %8214 = vmatmul.mubr.bf16.vlgmr.msra.gmra.mrb[96].mxu0 %v7912_v59  ;;  %8255 = vmatmul.mubr.bf16.vlgmr.msra.gmra.mrb[92].mxu1 %v7914_v21  ;;  %v13144_v59 = vld [vmem:[%s13511_s29 + $0x30] sm:$0xff]  }
0x1d50   : > { %12839 = vmatprep.mubr.msk.bf16.mxu0 %vm13462_vm0, %v13461_v1  ;;  %12847 = vmatprep.mubr.msk.bf16.mxu1 %vm13462_vm0, %v13461_v1 }
0x1d51   : > { %12836 = vmatpush3.bf16.msra.mxu0 %v13140_v44  ;;  %12844 = vmatpush3.bf16.msra.mxu1 %v13141_v36 }
0x1d52   : > { %12837 = vmatprep.subr.bf16.mxu0 %v13461_v1  ;;  %12845 = vmatprep.subr.bf16.mxu1 %v13461_v1 }
0x1d55   : > { %12838 = vmatpush3.bf16.msra.mxu0 %v13142_v49  ;;  %12846 = vmatpush3.bf16.msra.mxu1 %v13143_v51 }
0x1d56   : > { %12851 = vmatprep.subr.bf16.mxu0 %v13461_v1  ;;  %12859 = vmatprep.subr.bf16.mxu1 %v13461_v1 }
0x1e22   : > { %v12455_v52 = vpop.f32.mrb[96].mxu0  ;;  %v12477_v15 = vpop.f32.mrb[92].mxu1 }
0x1e23   : > { %v12456_v35 = vpop.f32.mrb[97].mxu0  ;;  %v12478_v13 = vpop.f32.mrb[93].mxu1 }
0x1e24   : > { %v12457_v10 = vadd.f32 %v12456_v35, %v12455_v52  ;;  %v12479_v26 = vadd.f32 %v12478_v13, %v12477_v15  ;;  %v12458_v27 = vpop.f32.mrb[98].mxu0  ;;  %v12480_v9 = vpop.f32.mrb[94].mxu1  ;;  %v12031_v15 = vld [vmem:[%s13521_s8 + $0x3] ss:$0 sm:$0xff] }
0x1e25   : > { %v12459_v62 = vpop.f32.mrb[99].mxu0  ;;  %v12481_v30 = vpop.f32.mrb[95].mxu1 }
0x1e26   : > { %v8216_v23 = vadd.f32 %v12457_v10, %v11980_v7  ;;  %v12460_v28 = vadd.f32 %v12459_v62, %v12458_v27  ;;  %v12482_v43 = vadd.f32 %v12481_v30, %v12480_v9 }
0x1e28   : > { %v8257_v32 = vadd.f32 %v12479_v26, %v8216_v23  ;;  %v8219_v29 = vadd.f32 %v12460_v28, %v11980_v7 }
0x1e2a   : > { %v8260_v55 = vadd.f32 %v12482_v43, %v8219_v29  ;;  %v8263_v12 = vadd.f32 %v8257_v32, %v14667_v20  ;;  %v12040_v29 = vld [vmem:[%s13526_s14 + $0x3] ss:$0 sm:$0xff] }
0x1e2c   : > { %v8269_v50 = vsel %vm1032_vm2, %v8263_v12, 0.0  ;;  %v8264_v37 = vadd.f32 %v8260_v55, %v14669_v3 }
0x1e2d   : > { %8270 = vadd.xlane.f32.xlu1 %v8269_v50 }
0x1e2e   : > { %v8272_v38 = vsel %vm1032_vm2, %v8264_v37, 0.0 }
0x1e2f   : > { %8273 = vadd.xlane.f32.xlu0 %v8272_v38 }
0x1eba   : > { %v8271_v40 = vpop.xlane.xlu1 %8270 }
0x1ebb   : > { %v8275_v42 = vmul.f32 0.03125, %v8271_v40 }
0x1ebc   : > { %v8274_v45 = vpop.xlane.xlu0 %8273 }
0x1ebd   : > { %v8277_v46 = vsub.f32 %v8263_v12, %v8275_v42  ;;  %v8276_v48 = vmul.f32 0.03125, %v8274_v45 }
0x1ebf   : > { %v8278_v39 = vsub.f32 %v8264_v37, %v8276_v48  ;;  %v8279_v47 = vmul.f32 %v8277_v46, %v8277_v46 }
0x1ec1   : > { %v8281_v20 = vsel %vm1032_vm2, %v8279_v47, 0.0  ;;  %v8280_v41 = vmul.f32 %v8278_v39, %v8278_v39 }
0x1ec2   : > { %8282 = vadd.xlane.f32.xlu1 %v8281_v20 }
0x1ec3   : > { %v8284_v3 = vsel %vm1032_vm2, %v8280_v41, 0.0 }
0x1ec4   : > { %8285 = vadd.xlane.f32.xlu0 %v8284_v3 }
0x1f4f   : > { %v8283_v53 = vpop.xlane.xlu1 %8282 }
0x1f50   : > { %v8287_v4 = vmul.f32 0.03125, %v8283_v53 }
0x1f51   : > { %v8286_v2 = vpop.xlane.xlu0 %8285 }
0x1f52   : > { %v8289_v60 = vadd.f32 1e-05, %v8287_v4  ;;  %v8288_v17 = vmul.f32 0.03125, %v8286_v2 }
0x1f54   : > { %13378 = vrsqrt.f32 %v8289_v60  ;;  %v8290_v24 = vadd.f32 1e-05, %v8288_v17 }
0x1f56   : > { %13380 = vrsqrt.f32 %v8290_v24 }
0x1f5e   : > { %v13379_v63 = vpop.eup %13378 }
0x1f5f   : > { %v8293_v0 = vmul.f32 %v13379_v63, %v8277_v46 }
0x1f60   : > { %v13381_v14 = vpop.eup %13380 }
0x1f61   : > { %v8301_v54 = vmul.f32 %v12015_v25, %v8293_v0  ;;  %v8294_v58 = vmul.f32 %v13381_v14, %v8278_v39 }
0x1f63   : > { %v8302_v16 = vmul.f32 %v12015_v25, %v8294_v58  ;;  %v14733_v34 = vadd.f32 %v12016_v33, %v8301_v54 }
0x1f65   : > { %v14735_v18 = vadd.f32 %v12016_v33, %v8302_v16 }
0x1f67   : > { %v8311_v21 = vpack.c.bf16 %v14735_v18, %v14733_v34 }
0x1f69   : > { %12840 = vmatmul.mubr.msk.bf16.vlgmr.msra.gmra.mrb[100].mxu0 %vm1032_vm2, %v8311_v21  ;;  %12848 = vmatmul.mubr.msk.bf16.vlgmr.msra.gmra.mrb[96].mxu1 %vm1032_vm2, %v8311_v21 }
0x1f6a   : > { %12852 = vmatpush3.bf16.msra.mxu0 %v13144_v59  ;;  %12855 = vmatprep.mubr.msk.bf16.mxu0 %vm13462_vm0, %v13461_v1 }
0x1f6b   : > { %12853 = vmatprep.subr.bf16.mxu0 %v13461_v1  ;;  %12861 = vmatprep.mubr.msk.bf16.mxu1 %vm13462_vm0, %v13461_v1 }
0x1f6e   : > { %12854 = vmatpush3.bf16.msra.mxu0 %v13145_v22 }
0x1f6f   : > { %12865 = vmatprep.subr.bf16.mxu0 %v13461_v1 }
0x1f71   : > { %12856 = vmatmul.mubr.msk.bf16.vlgmr.msra.gmra.mrb[104].mxu0 %vm1032_vm2, %v8311_v21 }
0x1f72   : > { %12867 = vmatprep.mubr.msk.bf16.mxu0 %vm13462_vm0, %v13461_v1 }
0x203c   : > { %v8374_v52 = vpop.f32.mrb[100].mxu0  ;;  %v8440_v7 = vpop.f32.mrb[96].mxu1 }
0x203d   : > { %v12841_v35 = vpop.f32.mrb[101].mxu0  ;;  %v12849_v13 = vpop.f32.mrb[97].mxu1  ;;  %v8375_v27 = vadd.f32 %v12022_v19, %v8374_v52  ;;  %v8441_v9 = vadd.f32 %v12031_v15, %v8440_v7 }
0x203e   : > { %v8377_v10 = vpop.f32.mrb[102].mxu0  ;;  %v8443_v26 = vpop.f32.mrb[98].mxu1 }
0x203f   : > { %v8378_v62 = vadd.f32 %v12022_v19, %v8377_v10  ;;  %v8444_v30 = vadd.f32 %v12031_v15, %v8443_v26  ;;  %v12842_v23 = vpop.f32.mrb[103].mxu0  ;;  %v12850_v28 = vpop.f32.mrb[99].mxu1 }
0x2041   : > { %v8513_v43 = vpack.c.bf16 %v8378_v62, %v8375_v27  ;;  %v8781_v32 = vpack.c.bf16 %v8444_v30, %v8441_v9 }
0x2043   : > { %8785 = vrot.lane.b32.xlu0 %v8781_v32, %s13465_s18  ;;  %8783 = vrot.lane.b32.xlu1 %v8781_v32, %s15202_s22  ;;  %v8793_v48 = vshrl.u32 %v8781_v32, 16  ;;  %v8525_v25 = vshrl.u32 %v8513_v43, 16 }
0x2044   : > { %v8506_v55 = vpop.f32.mrb[104].mxu0 }
0x2045   : > { %v12857_v12 = vpop.f32.mrb[105].mxu0  ;;  %v8507_v37 = vadd.f32 %v12040_v29, %v8506_v55 }
0x2046   : > { %v8509_v50 = vpop.f32.mrb[106].mxu0 }
0x2047   : > { %v8510_v38 = vadd.f32 %v12040_v29, %v8509_v50  ;;  %8787 = vrot.lane.b32.xlu1 %v8781_v32, %s15200_s23  ;;  %8517 = vrot.lane.b32.xlu0 %v8513_v43, %s13465_s18  ;;  %v12858_v40 = vpop.f32.mrb[107].mxu0 }
0x2049   : > { %v14759_v42 = vpack.c.bf16 %v8510_v38, %v8507_v37 }
0x204b   : > { %8515 = vrot.lane.b32.xlu1 %v8513_v43, %s15202_s22 }
0x204f   : > { %8519 = vrot.lane.b32.xlu1 %v8513_v43, %s15200_s23 }
0x20b5   : > { %v8784_v45 = vpop.permute.xlu1 %8783  ;;  %v8786_v47 = vpop.permute.xlu0 %8785 }
0x20b6   : > { %v8791_v46 = vpack.i.b16 %v8784_v45, %v8781_v32  ;;  %v8794_v39 = vshrl.u32 %v8784_v45, 16  ;;  %v8801_v49 = vshrl.u32 %v8786_v47, 16 }
0x20b8   : > { %v8795_v20 = vpack.i.b16 %v8794_v39, %v8793_v48  ;;  %v8805_v41 = vcombine.high %v8791_v46, %v13701_v57  ;;  %v8812_v53 = vrot.slane %v8791_v46, %v13704_v61 }
0x20b9   : > { %v8788_v3 = vpop.permute.xlu1 %8787  ;;  %v8518_v30 = vpop.permute.xlu0 %8517 }
0x20ba   : > { %v8871_v44 = vcombine.high %v8795_v20, %v13701_v57  ;;  %v8799_v36 = vpack.i.b16 %v8788_v3, %v8786_v47  ;;  %v8802_v51 = vshrl.u32 %v8788_v3, 16  ;;  %v8819_v60 = vrot.slane %v8805_v41, %v13704_v61 }
0x20bb   : > { %v8878_v17 = vrot.slane %v8795_v20, %v13704_v61  ;;  %v8533_v40 = vshrl.u32 %v8518_v30, 16 }
0x20bc   : > { %v8820_v4 = vcombine.high %v8799_v36, %v13701_v57  ;;  %v8827_v2 = vrot.slane %v8799_v36, %v13704_v61  ;;  %v8803_v24 = vpack.i.b16 %v8802_v51, %v8801_v49  ;;  %v8885_v0 = vrot.slane %v8871_v44, %v13704_v61 }
0x20bd   : > { %v8516_v63 = vpop.permute.xlu1 %8515 }
0x20be   : > { %v8834_v14 = vrot.slane %v8820_v4, %v13704_v61  ;;  %v8835_v54 = vcombine.low %v8812_v53, %v8827_v2  ;;  %v8836_v58 = vcombine.high %v8812_v53, %v8827_v2  ;;  %v8886_v33 = vcombine.high %v8803_v24, %v13701_v57 }
0x20bf   : > { %v8893_v16 = vrot.slane %v8803_v24, %v13704_v61  ;;  %v8523_v59 = vpack.i.b16 %v8516_v63, %v8513_v43  ;;  %v8526_v21 = vshrl.u32 %v8516_v63, 16 }
0x20c0   : > { %v8843_v22 = vrot.slane %v8835_v54, %v13709_v11  ;;  %v8850_v19 = vrot.slane %v8836_v58, %v13709_v11  ;;  %v8851_v52 = vcombine.low %v8819_v60, %v8834_v14  ;;  %v8852_v15 = vcombine.high %v8819_v60, %v8834_v14 }
0x20c1   : > { %v8900_v7 = vrot.slane %v8886_v33, %v13704_v61  ;;  %v8901_v35 = vcombine.low %v8878_v17, %v8893_v16  ;;  %v8902_v13 = vcombine.high %v8878_v17, %v8893_v16  ;;  %v8527_v10 = vpack.i.b16 %v8526_v21, %v8525_v25  ;;  %v8520_v12 = vpop.permute.xlu1 %8519 }
0x20c2   : > { %v8859_v26 = vrot.slane %v8851_v52, %v13709_v11  ;;  %v8866_v27 = vrot.slane %v8852_v15, %v13709_v11  ;;  %v8937_v9 = vcombine.low %v8843_v22, %v8850_v19  ;;  %v12048_v62 = vcombine.high %v8843_v22, %v8850_v19 }
0x20c3   : > { %v8909_v23 = vrot.slane %v8901_v35, %v13709_v11  ;;  %v8916_v28 = vrot.slane %v8902_v13, %v13709_v11  ;;  %v8917_v43 = vcombine.low %v8885_v0, %v8900_v7  ;;  %v8918_v32 = vcombine.high %v8885_v0, %v8900_v7 }
0x20c4   : > { %v8953_v29 = vcombine.low %v8859_v26, %v8866_v27  ;;  %v12049_v55 = vcombine.high %v8859_v26, %v8866_v27  ;;  %v14784_v38 = vrot.slane %v8937_v9, %v13704_v61  ;;  %v8952_v45 = vrot.slane %v12048_v62, %v13704_v61 }
0x20c5   : > { %v8925_v50 = vrot.slane %v8917_v43, %v13709_v11  ;;  %v8932_v37 = vrot.slane %v8918_v32, %v13709_v11  ;;  %v8987_v46 = vcombine.low %v8909_v23, %v8916_v28  ;;  %v8537_v48 = vcombine.high %v8523_v59, %v13701_v57 }
0x20c6   : > { %v8603_v39 = vcombine.high %v8527_v10, %v13701_v57  ;;  %v12050_v47 = vcombine.high %v8909_v23, %v8916_v28  ;;  %v8544_v20 = vrot.slane %v8523_v59, %v13704_v61  ;;  %v8531_v41 = vpack.i.b16 %v8520_v12, %v8518_v30 }
0x20c7   : > { %v8534_v3 = vshrl.u32 %v8520_v12, 16  ;;  %v9003_v44 = vcombine.low %v8925_v50, %v8932_v37  ;;  %v8610_v36 = vrot.slane %v8527_v10, %v13704_v61  ;;  %v8960_v49 = vrot.slane %v8953_v29, %v13704_v61 }
0x20c8   : > { %v8968_v51 = vrot.slane %v12049_v55, %v13704_v61  ;;  %v12051_v53 = vcombine.high %v8925_v50, %v8932_v37  ;;  %v8552_v2 = vcombine.high %v8531_v41, %v13701_v57  ;;  %v8559_v60 = vrot.slane %v8531_v41, %v13704_v61 }
0x20c9   : > { %v8535_v4 = vpack.i.b16 %v8534_v3, %v8533_v40  ;;  %v8551_v17 = vrot.slane %v8537_v48, %v13704_v61  ;;  %v8617_v24 = vrot.slane %v8603_v39, %v13704_v61  ;;  %v8969_v63 = vcombine.low %v14784_v38, %v8952_v45 }
0x20ca   : > { %v8977_v25 = vcombine.low %v8960_v49, %v8968_v51  ;;  %v8566_v0 = vrot.slane %v8552_v2, %v13704_v61  ;;  %v8567_v14 = vcombine.low %v8544_v20, %v8559_v60  ;;  %v8568_v54 = vcombine.high %v8544_v20, %v8559_v60 }
0x20cb   : > { %v8618_v58 = vcombine.high %v8535_v4, %v13701_v57  ;;  %v8625_v33 = vrot.slane %v8535_v4, %v13704_v61  ;;  %v8994_v16 = vrot.slane %v8987_v46, %v13704_v61  ;;  %v9002_v59 = vrot.slane %v12050_v47, %v13704_v61 }
0x20cc   : > { %v9010_v21 = vrot.slane %v9003_v44, %v13704_v61  ;;  %v8575_v22 = vrot.slane %v8567_v14, %v13709_v11  ;;  %v8582_v19 = vrot.slane %v8568_v54, %v13709_v11  ;;  %v8583_v52 = vcombine.low %v8551_v17, %v8566_v0 }
0x20cd   : > { %v8584_v15 = vcombine.high %v8551_v17, %v8566_v0  ;;  %v8632_v7 = vrot.slane %v8618_v58, %v13704_v61  ;;  %v8633_v35 = vcombine.low %v8610_v36, %v8625_v33  ;;  %v8634_v13 = vcombine.high %v8610_v36, %v8625_v33 }
0x20ce   : > { %v9018_v10 = vrot.slane %v12051_v53, %v13704_v61  ;;  %v8591_v26 = vrot.slane %v8583_v52, %v13709_v11  ;;  %v8669_v9 = vcombine.low %v8575_v22, %v8582_v19  ;;  %v12044_v62 = vcombine.high %v8575_v22, %v8582_v19 }
0x20cf   : > { %v8598_v27 = vrot.slane %v8584_v15, %v13709_v11  ;;  %v8641_v30 = vrot.slane %v8633_v35, %v13709_v11  ;;  %v8648_v23 = vrot.slane %v8634_v13, %v13709_v11  ;;  %v8649_v28 = vcombine.low %v8617_v24, %v8632_v7 }
0x20d0   : > { %v8650_v43 = vcombine.high %v8617_v24, %v8632_v7  ;;  %v8676_v32 = vrot.slane %v8669_v9, %v13704_v61  ;;  %v8684_v29 = vrot.slane %v12044_v62, %v13704_v61  ;;  %v8984_v48 = vrot.slane %v8977_v25, %v13709_v11 }
0x20d1   : > { %v8685_v55 = vcombine.low %v8591_v26, %v8598_v27  ;;  %v12045_v12 = vcombine.high %v8591_v26, %v8598_v27  ;;  %v8657_v50 = vrot.slane %v8649_v28, %v13709_v11  ;;  %v8719_v38 = vcombine.low %v8641_v30, %v8648_v23 }
0x20d2   : > { %v8664_v37 = vrot.slane %v8650_v43, %v13709_v11  ;;  %v12046_v40 = vcombine.high %v8641_v30, %v8648_v23  ;;  %v9019_v39 = vcombine.low %v8994_v16, %v9002_v59  ;;  %v8976_v36 = vrot.slane %v8969_v63, %v13709_v11 }
0x20d3   : > { %v8692_v45 = vrot.slane %v8685_v55, %v13704_v61  ;;  %v8700_v46 = vrot.slane %v12045_v12, %v13704_v61  ;;  %v8726_v47 = vrot.slane %v8719_v38, %v13704_v61  ;;  %v9027_v49 = vcombine.low %v9010_v21, %v9018_v10 }
0x20d4   : > { %v8734_v20 = vrot.slane %v12046_v40, %v13704_v61  ;;  %v8735_v41 = vcombine.low %v8657_v50, %v8664_v37  ;;  %v12047_v3 = vcombine.high %v8657_v50, %v8664_v37  ;;  %v8701_v51 = vcombine.low %v8676_v32, %v8684_v29 }
0x20d5   : > { %v8709_v44 = vcombine.low %v8692_v45, %v8700_v46  ;;  %v8985_v60 = vcombine.low %v8976_v36, %v8984_v48  ;;  %v9026_v17 = vrot.slane %v9019_v39, %v13709_v11  ;;  %v9034_v24 = vrot.slane %v9027_v49, %v13709_v11 }
0x20d6   : > { %v8742_v53 = vrot.slane %v8735_v41, %v13704_v61  ;;  %v8750_v4 = vrot.slane %v12047_v3, %v13704_v61  ;;  %v8751_v2 = vcombine.low %v8726_v47, %v8734_v20  ;;  %v8708_v54 = vrot.slane %v8701_v51, %v13709_v11 }
0x20d7   : > { %v9035_v0 = vcombine.low %v9026_v17, %v9034_v24  ;;  %v8716_v14 = vrot.slane %v8709_v44, %v13709_v11  ;;  %v9040_v16 = vshrl.u32 %v8985_v60, 16  ;;  %v9036_v21 = vcombine.high %v9026_v17, %v9034_v24 }
0x20d8   : > { %v8759_v25 = vcombine.low %v8742_v53, %v8750_v4  ;;  %v8758_v63 = vrot.slane %v8751_v2, %v13709_v11  ;;  %v8986_v7 = vcombine.high %v8976_v36, %v8984_v48 }
0x20d9   : > { %v9039_v33 = vpack.i.b16 %v9035_v0, %v8985_v60  ;;  %v9041_v59 = vshrl.u32 %v9035_v0, 16  ;;  %v8717_v15 = vcombine.low %v8708_v54, %v8716_v14  ;;  %v9047_v10 = vshrl.u32 %v9036_v21, 16 }
0x20da   : > { %v8766_v58 = vrot.slane %v8759_v25, %v13709_v11  ;;  %v9045_v27 = vpack.i.b16 %v9036_v21, %v8986_v7  ;;  %v9046_v62 = vshrl.u32 %v8986_v7, 16  ;;  %v8718_v29 = vcombine.high %v8708_v54, %v8716_v14 }
0x20db   : > { %v9325_v19 = vsel %vm2019_vm3, %v9039_v33, 0  ;;  %v9042_v52 = vpack.i.b16 %v9041_v59, %v9040_v16  ;;  %v8772_v9 = vshrl.u32 %v8717_v15, 16 }
0x20dc   : > { %v8767_v22 = vcombine.low %v8758_v63, %v8766_v58  ;;  %12860 = vmatpush3.bf16.xpose.msra.mxu1 %v9325_v19  ;;  %v9048_v23 = vpack.i.b16 %v9047_v10, %v9046_v62  ;;  %v9419_v28 = vsel %vm2019_vm3, %v9045_v27, 0  ;;  %v8768_v43 = vcombine.high %v8758_v63, %v8766_v58 }
0x20dd   : > { %v9372_v35 = vsel %vm2019_vm3, %v9042_v52, 0  ;;  %12871 = vmatprep.subr.bf16.mxu1 %v13461_v1  ;;  %v8778_v50 = vshrl.u32 %v8718_v29, 16 }
0x20de   : > { %v8773_v13 = vshrl.u32 %v8767_v22, 16  ;;  %12866 = vmatpush3.bf16.xpose.msra.mxu0 %v9372_v35  ;;  %v8771_v26 = vpack.i.b16 %v8767_v22, %v8717_v15  ;;  %v9466_v32 = vsel %vm2019_vm3, %v9048_v23, 0  ;;  %v8779_v55 = vshrl.u32 %v8768_v43, 16 }
0x20df   : > { %12877 = vmatprep.subr.bf16.mxu0 %v13461_v1  ;;  %v8777_v12 = vpack.i.b16 %v8768_v43, %v8718_v29 }
0x20e0   : > { %v8774_v30 = vpack.i.b16 %v8773_v13, %v8772_v9  ;;  %v8780_v37 = vpack.i.b16 %v8779_v55, %v8778_v50 }
0x20e3   : > { %12862 = vmatmul.mubr.msk.bf16.vlgmr.msra.gmra.mrb[100].mxu1 %vm2019_vm3, %v8771_v26 }
0x20e4   : > { %12872 = vmatpush3.bf16.xpose.msra.mxu1 %v9419_v28  ;;  %12873 = vmatprep.mubr.msk.bf16.mxu1 %vm13462_vm0, %v13461_v1 }
0x20e5   : > { %12868 = vmatmul.mubr.msk.bf16.vlgmr.msra.gmra.mrb[108].mxu0 %vm2019_vm3, %v8774_v30  ;;  %12883 = vmatprep.subr.bf16.mxu1 %v13461_v1 }
0x20e6   : > { %12878 = vmatpush3.bf16.xpose.msra.mxu0 %v9466_v32  ;;  %12879 = vmatprep.mubr.msk.bf16.mxu0 %vm13462_vm0, %v13461_v1 }
0x20e7   : > { %12889 = vmatprep.subr.bf16.mxu0 %v13461_v1 }
0x20eb   : > { %12874 = vmatmul.mubr.msk.bf16.vlgmr.msra.gmra.mrb[104].mxu1 %vm2019_vm3, %v8777_v12 }
0x20ec   : > { %12885 = vmatprep.mubr.msk.bf16.mxu1 %vm13462_vm0, %v13461_v1 }
0x20ed   : > { %12880 = vmatmul.mubr.msk.bf16.vlgmr.msra.gmra.mrb[112].mxu0 %vm2019_vm3, %v8780_v37 }
0x20ee   : > { %12891 = vmatprep.mubr.msk.bf16.mxu0 %vm13462_vm0, %v13461_v1 }
0x21b6   : > { %v9361_v38 = vpop.f32.mrb[100].mxu1 }
0x21b7   : > { %v9509_v40 = vmul.f32 0.35355338, %v9361_v38  ;;  %v12863_v45 = vpop.f32.mrb[101].mxu1 }
0x21b8   : > { %v9364_v46 = vpop.f32.mrb[102].mxu1  ;;  %v9408_v48 = vpop.f32.mrb[108].mxu0 }
0x21b9   : > { %v9510_v39 = vmul.f32 0.35355338, %v9364_v46  ;;  %v12864_v47 = vpop.f32.mrb[103].mxu1  ;;  %v12869_v20 = vpop.f32.mrb[109].mxu0  ;;  %v9511_v41 = vmul.f32 0.35355338, %v9408_v48 }
0x21ba   : > { %v9517_v3 = vsel %vm2216_vm4, %v9509_v40, -inf  ;;  %v9411_v44 = vpop.f32.mrb[110].mxu0  ;;  %v9061_v46 = vshrl.u32 %v14759_v42, 16 }
0x21bb   : > { %9518 = vmax.xlane.f32.xlu0 %v9517_v3  ;;  %v12870_v36 = vpop.f32.mrb[111].mxu0  ;;  %v9520_v49 = vsel %vm2216_vm4, %v9510_v39, -inf  ;;  %v9512_v51 = vmul.f32 0.35355338, %v9411_v44  ;;  %v9523_v4 = vsel %vm2216_vm4, %v9511_v41, -inf }
0x21bc   : > { %9521 = vmax.xlane.f32.xlu1 %v9520_v49 }
0x21bd   : > { %v9526_v14 = vsel %vm2216_vm4, %v9512_v51, -inf }
0x21be   : > { %v9455_v53 = vpop.f32.mrb[104].mxu1 }
0x21bf   : > { %v9513_v2 = vmul.f32 0.35355338, %v9455_v53  ;;  %9524 = vmax.xlane.f32.xlu0 %v9523_v4  ;;  %v12875_v60 = vpop.f32.mrb[105].mxu1 }
0x21c0   : > { %v9458_v17 = vpop.f32.mrb[106].mxu1  ;;  %v9502_v24 = vpop.f32.mrb[112].mxu0 }
0x21c1   : > { %v12876_v25 = vpop.f32.mrb[107].mxu1  ;;  %v12881_v0 = vpop.f32.mrb[113].mxu0  ;;  %v9514_v54 = vmul.f32 0.35355338, %v9458_v17  ;;  %v9515_v63 = vmul.f32 0.35355338, %v9502_v24 }
0x21c2   : > { %v9529_v58 = vsel %vm2216_vm4, %v9513_v2, -inf  ;;  %v9505_v33 = vpop.f32.mrb[114].mxu0 }
0x21c3   : > { %9530 = vmax.xlane.f32.xlu1 %v9529_v58  ;;  %9527 = vmax.xlane.f32.xlu0 %v9526_v14  ;;  %v12882_v16 = vpop.f32.mrb[115].mxu0  ;;  %v9516_v59 = vmul.f32 0.35355338, %v9505_v33  ;;  %v9532_v21 = vsel %vm2216_vm4, %v9514_v54, -inf  ;;  %v9535_v22 = vsel %vm2216_vm4, %v9515_v63, -inf }
0x21c5   : > { %v9538_v19 = vsel %vm2216_vm4, %v9516_v59, -inf }
0x21c7   : > { %9533 = vmax.xlane.f32.xlu0 %v9532_v21  ;;  %9536 = vmax.xlane.f32.xlu1 %v9535_v22 }
0x21cb   : > { %9539 = vmax.xlane.f32.xlu0 %v9538_v19 }
0x21d8   : > { %9051 = vrot.lane.b32.xlu1 %v14759_v42, %s15202_s22  ;;  %s15206_s22 = sld [smem:[#allocation12_spill]] }
0x21dc   : > { %9055 = vrot.lane.b32.xlu1 %v14759_v42, %s15200_s23  ;;  %s15207_s23 = sld [smem:[#allocation9_spill]] }
0x21e1   : > { %9053 = vrot.lane.b32.xlu0 %v14759_v42, %s13465_s18  ;;  %s15203_s18 = smov 16  }
0x2248   : > { %v9519_v52 = vpop.xlane.xlu0 %9518 }
0x2249   : > { %v9541_v15 = vsub.f32 %v9509_v40, %v9519_v52  ;;  %v9522_v7 = vpop.xlane.xlu1 %9521 }
0x224a   : > { %v9542_v35 = vsub.f32 %v9510_v39, %v9522_v7 }
0x224b   : > { %v9549_v13 = vmul.f32 1.442695, %v9541_v15 }
0x224c   : > { %v9551_v10 = vmul.f32 1.442695, %v9542_v35  ;;  %v9525_v26 = vpop.xlane.xlu0 %9524 }
0x224d   : > { %13382 = vpow2.f32 %v9549_v13  ;;  %v9543_v27 = vsub.f32 %v9511_v41, %v9525_v26 }
0x224e   : > { %13384 = vpow2.f32 %v9551_v10 }
0x224f   : > { %v9553_v9 = vmul.f32 1.442695, %v9543_v27 }
0x2250   : > { %v9531_v62 = vpop.xlane.xlu1 %9530  ;;  %v9528_v30 = vpop.xlane.xlu0 %9527 }
0x2251   : > { %13386 = vpow2.f32 %v9553_v9  ;;  %v9545_v23 = vsub.f32 %v9513_v2, %v9531_v62  ;;  %v9544_v28 = vsub.f32 %v9512_v51, %v9528_v30 }
0x2253   : > { %v9557_v43 = vmul.f32 1.442695, %v9545_v23  ;;  %v9555_v32 = vmul.f32 1.442695, %v9544_v28 }
0x2254   : > { %v9534_v29 = vpop.xlane.xlu0 %9533  ;;  %v9537_v55 = vpop.xlane.xlu1 %9536 }
0x2255   : > { %13388 = vpow2.f32 %v9557_v43  ;;  %v9546_v12 = vsub.f32 %v9514_v54, %v9534_v29  ;;  %v9547_v50 = vsub.f32 %v9515_v63, %v9537_v55 }
0x2256   : > { %13390 = vpow2.f32 %v9555_v32 }
0x2257   : > { %v14864_v37 = vpop.eup %13382  ;;  %v9559_v38 = vmul.f32 1.442695, %v9546_v12  ;;  %v9561_v45 = vmul.f32 1.442695, %v9547_v50 }
0x2258   : > { %v14866_v40 = vpop.eup %13384  ;;  %v9052_v48 = vpop.permute.xlu1 %9051  ;;  %v9565_v47 = vsel %vm2216_vm4, %v14864_v37, 0.0 }
0x2259   : > { %v9540_v39 = vpop.xlane.xlu0 %9539  ;;  %13392 = vpow2.f32 %v9559_v38  ;;  %v9059_v20 = vpack.i.b16 %v9052_v48, %v14759_v42  ;;  %v9062_v41 = vshrl.u32 %v9052_v48, 16  ;;  %9566 = vadd.xlane.f32.xlu1 %v9565_v47  ;;  %v9568_v44 = vsel %vm2216_vm4, %v14866_v40, 0.0 }
0x225a   : > { %v9548_v3 = vsub.f32 %v9516_v59, %v9540_v39  ;;  %9569 = vadd.xlane.f32.xlu0 %v9568_v44  ;;  %13394 = vpow2.f32 %v9561_v45 }
0x225b   : > { %v14874_v36 = vpop.eup %13386  ;;  %v9063_v49 = vpack.i.b16 %v9062_v41, %v9061_v46  ;;  %v9073_v2 = vcombine.high %v9059_v20, %v13701_v57  ;;  %v9080_v54 = vrot.slane %v9059_v20, %v13704_v61 }
0x225c   : > { %v9563_v51 = vmul.f32 1.442695, %v9548_v3  ;;  %v9056_v53 = vpop.permute.xlu1 %9055  ;;  %v9571_v24 = vsel %vm2216_vm4, %v14874_v36, 0.0 }
0x225d   : > { %v9054_v4 = vpop.permute.xlu0 %9053  ;;  %v9070_v60 = vshrl.u32 %v9056_v53, 16  ;;  %v9139_v0 = vcombine.high %v9063_v49, %v13701_v57  ;;  %v9087_v16 = vrot.slane %v9073_v2, %v13704_v61  ;;  %v9146_v35 = vrot.slane %v9063_v49, %v13704_v61 }
0x225e   : > { %13396 = vpow2.f32 %v9563_v51  ;;  %v9067_v17 = vpack.i.b16 %v9056_v53, %v9054_v4  ;;  %v9069_v42 = vshrl.u32 %v9054_v4, 16  ;;  %9572 = vadd.xlane.f32.xlu0 %v9571_v24 }
0x225f   : > { %v14879_v25 = vpop.eup %13388  ;;  %v9153_v13 = vrot.slane %v9139_v0, %v13704_v61 }
0x2260   : > { %v14882_v14 = vpop.eup %13390  ;;  %v9071_v63 = vpack.i.b16 %v9070_v60, %v9069_v42  ;;  %v9088_v58 = vcombine.high %v9067_v17, %v13701_v57  ;;  %v9095_v33 = vrot.slane %v9067_v17, %v13704_v61  ;;  %v9577_v21 = vsel %vm2216_vm4, %v14879_v25, 0.0 }
0x2261   : > { %v9574_v59 = vsel %vm2216_vm4, %v14882_v14, 0.0 }
0x2262   : > { %v9102_v22 = vrot.slane %v9088_v58, %v13704_v61  ;;  %v9103_v19 = vcombine.low %v9080_v54, %v9095_v33  ;;  %v9104_v52 = vcombine.high %v9080_v54, %v9095_v33  ;;  %v9154_v15 = vcombine.high %v9071_v63, %v13701_v57  ;;  %9575 = vadd.xlane.f32.xlu1 %v9574_v59 }
0x2263   : > { %v14894_v7 = vpop.eup %13392  ;;  %v9161_v10 = vrot.slane %v9071_v63, %v13704_v61  ;;  %9578 = vadd.xlane.f32.xlu0 %v9577_v21 }
0x2264   : > { %v9111_v26 = vrot.slane %v9103_v19, %v13709_v11  ;;  %v9118_v27 = vrot.slane %v9104_v52, %v13709_v11  ;;  %v9119_v9 = vcombine.low %v9087_v16, %v9102_v22  ;;  %v9120_v62 = vcombine.high %v9087_v16, %v9102_v22  ;;  %v14904_v32 = vpop.eup %13394 }
0x2265   : > { %v9168_v30 = vrot.slane %v9154_v15, %v13704_v61  ;;  %v9169_v23 = vcombine.low %v9146_v35, %v9161_v10  ;;  %v9170_v28 = vcombine.high %v9146_v35, %v9161_v10  ;;  %v9580_v43 = vsel %vm2216_vm4, %v14894_v7, 0.0 }
0x2266   : > { %v9127_v29 = vrot.slane %v9119_v9, %v13709_v11  ;;  %v9134_v55 = vrot.slane %v9120_v62, %v13709_v11  ;;  %v9205_v12 = vcombine.low %v9111_v26, %v9118_v27  ;;  %v12052_v50 = vcombine.high %v9111_v26, %v9118_v27  ;;  %9581 = vadd.xlane.f32.xlu1 %v9580_v43 }
0x2267   : > { %v9177_v45 = vrot.slane %v9169_v23, %v13709_v11  ;;  %v9184_v46 = vrot.slane %v9170_v28, %v13709_v11  ;;  %v9185_v48 = vcombine.low %v9153_v13, %v9168_v30  ;;  %v9186_v39 = vcombine.high %v9153_v13, %v9168_v30 }
0x2268   : > { %v14908_v38 = vpop.eup %13396  ;;  %v9212_v47 = vrot.slane %v9205_v12, %v13704_v61  ;;  %v9220_v20 = vrot.slane %v12052_v50, %v13704_v61  ;;  %v9221_v41 = vcombine.low %v9127_v29, %v9134_v55  ;;  %v12053_v3 = vcombine.high %v9127_v29, %v9134_v55 }
0x2269   : > { %v9193_v44 = vrot.slane %v9185_v48, %v13709_v11  ;;  %v9200_v49 = vrot.slane %v9186_v39, %v13709_v11  ;;  %v9255_v51 = vcombine.low %v9177_v45, %v9184_v46  ;;  %v12054_v53 = vcombine.high %v9177_v45, %v9184_v46 }
0x226a   : > { %v9228_v4 = vrot.slane %v9221_v41, %v13704_v61  ;;  %v9236_v2 = vrot.slane %v12053_v3, %v13704_v61  ;;  %v9583_v60 = vsel %vm2216_vm4, %v14904_v32, 0.0  ;;  %v9586_v17 = vsel %vm2216_vm4, %v14908_v38, 0.0 }
0x226b   : > { %v9262_v42 = vrot.slane %v9255_v51, %v13704_v61  ;;  %v9270_v24 = vrot.slane %v12054_v53, %v13704_v61  ;;  %v9271_v0 = vcombine.low %v9193_v44, %v9200_v49  ;;  %v12055_v54 = vcombine.high %v9193_v44, %v9200_v49  ;;  %9584 = vadd.xlane.f32.xlu0 %v9583_v60 }
0x226c   : > { %9587 = vadd.xlane.f32.xlu1 %v9586_v17  ;;  %v9237_v63 = vcombine.low %v9212_v47, %v9220_v20  ;;  %v9245_v58 = vcombine.low %v9228_v4, %v9236_v2 }
0x226d   : > { %v9278_v33 = vrot.slane %v9271_v0, %v13704_v61  ;;  %v9286_v16 = vrot.slane %v12055_v54, %v13704_v61  ;;  %v9287_v59 = vcombine.low %v9262_v42, %v9270_v24 }
0x226e   : > { %v9244_v21 = vrot.slane %v9237_v63, %v13709_v11  ;;  %v9252_v22 = vrot.slane %v9245_v58, %v13709_v11 }
0x226f   : > { %v9295_v19 = vcombine.low %v9278_v33, %v9286_v16  ;;  %v9294_v35 = vrot.slane %v9287_v59, %v13709_v11 }
0x2270   : > { %v9253_v52 = vcombine.low %v9244_v21, %v9252_v22  ;;  %v9254_v15 = vcombine.high %v9244_v21, %v9252_v22 }
0x2271   : > { %v9302_v13 = vrot.slane %v9295_v19, %v13709_v11 }
0x2272   : > { %v9309_v27 = vshrl.u32 %v9253_v52, 16  ;;  %v9317_v9 = vshrl.u32 %v9254_v15, 16 }
0x2273   : > { %v9303_v10 = vcombine.low %v9294_v35, %v9302_v13  ;;  %v9304_v26 = vcombine.high %v9294_v35, %v9302_v13 }
0x2275   : > { %v9307_v62 = vpack.i.b16 %v9303_v10, %v9253_v52  ;;  %v9310_v30 = vshrl.u32 %v9303_v10, 16  ;;  %v9315_v23 = vpack.i.b16 %v9304_v26, %v9254_v15  ;;  %v9318_v28 = vshrl.u32 %v9304_v26, 16 }
0x2277   : > { %12884 = vmatpush3.bf16.msra.mxu1 %v9307_v62  ;;  %v9311_v43 = vpack.i.b16 %v9310_v30, %v9309_v27  ;;  %v9319_v29 = vpack.i.b16 %v9318_v28, %v9317_v9 }
0x2278   : > { %12895 = vmatprep.subr.bf16.mxu1 %v13461_v1 }
0x2279   : > { %12890 = vmatpush3.bf16.msra.mxu0 %v9311_v43 }
0x227a   : > { %12901 = vmatprep.subr.bf16.mxu0 %v13461_v1 }
0x22e6   : > { %v9567_v55 = vpop.xlane.xlu1 %9566 }
0x22e7   : > { %13398 = vrcp.f32 %v9567_v55  ;;  %v9570_v12 = vpop.xlane.xlu0 %9569 }
0x22e8   : > { %13400 = vrcp.f32 %v9570_v12 }
0x22eb   : > { %v9573_v50 = vpop.xlane.xlu0 %9572 }
0x22ec   : > { %13402 = vrcp.f32 %v9573_v50 }
0x22ef   : > { %v9576_v45 = vpop.xlane.xlu1 %9575 }
0x22f0   : > { %13404 = vrcp.f32 %v9576_v45  ;;  %v9579_v46 = vpop.xlane.xlu0 %9578 }
0x22f1   : > { %v13399_v48 = vpop.eup %13398  ;;  %13406 = vrcp.f32 %v9579_v46 }
0x22f2   : > { %v13401_v39 = vpop.eup %13400  ;;  %v9597_v20 = vmul.f32 %v13399_v48, %v14864_v37 }
0x22f3   : > { %v9582_v47 = vpop.xlane.xlu1 %9581  ;;  %v9598_v41 = vmul.f32 %v13401_v39, %v14866_v40 }
0x22f4   : > { %13408 = vrcp.f32 %v9582_v47 }
0x22f5   : > { %v9605_v3 = vpack.c.bf16 %v9598_v41, %v9597_v20 }
0x22f6   : > { %v13403_v44 = vpop.eup %13402 }
0x22f7   : > { %12886 = vmatmul.mubr.msk.bf16.vlgmr.msra.gmra.mrb[108].mxu1 %vm2216_vm4, %v9605_v3  ;;  %v9599_v37 = vmul.f32 %v13403_v44, %v14874_v36 }
0x22f8   : > { %v9585_v49 = vpop.xlane.xlu0 %9584  ;;  %12896 = vmatpush3.bf16.msra.mxu1 %v9315_v23  ;;  %12897 = vmatprep.mubr.msk.bf16.mxu1 %vm13462_vm0, %v13461_v1 }
0x22f9   : > { %13410 = vrcp.f32 %v9585_v49  ;;  %v9588_v51 = vpop.xlane.xlu1 %9587  ;;  %12907 = vmatprep.subr.bf16.mxu1 %v13461_v1 }
0x22fa   : > { %v13405_v53 = vpop.eup %13404  ;;  %13412 = vrcp.f32 %v9588_v51 }
0x22fb   : > { %v9600_v40 = vmul.f32 %v13405_v53, %v14882_v14  ;;  %v13407_v4 = vpop.eup %13406 }
0x22fc   : > { %v9601_v17 = vmul.f32 %v13407_v4, %v14879_v25 }
0x22fd   : > { %v9606_v2 = vpack.c.bf16 %v9600_v40, %v9599_v37 }
0x22fe   : > { %v13409_v60 = vpop.eup %13408 }
0x22ff   : > { %v9602_v42 = vmul.f32 %v13409_v60, %v14894_v7  ;;  %12892 = vmatmul.mubr.msk.bf16.vlgmr.msra.gmra.mrb[116].mxu0 %vm2216_vm4, %v9606_v2  ;;  %v13146_v7 = vld [vmem:[%s13531_s19 + $0x30] sm:$0xff]  }
0x2300   : > { %12902 = vmatpush3.bf16.msra.mxu0 %v9319_v29  ;;  %12903 = vmatprep.mubr.msk.bf16.mxu0 %vm13462_vm0, %v13461_v1 }
0x2301   : > { %v9607_v24 = vpack.c.bf16 %v9602_v42, %v9601_v17 }
0x2303   : > { %v13411_v0 = vpop.eup %13410  ;;  %12898 = vmatmul.mubr.msk.bf16.vlgmr.msra.gmra.mrb[112].mxu1 %vm2216_vm4, %v9607_v24 }
0x2304   : > { %v13413_v36 = vpop.eup %13412  ;;  %12911 = vmatprep.mubr.msk.bf16.mxu1 %vm13462_vm0, %v13461_v1  ;;  %v9603_v14 = vmul.f32 %v13411_v0, %v14904_v32  ;;  %12908 = vmatpush3.bf16.msra.mxu1 %v13146_v7 }
0x2305   : > { %v9604_v25 = vmul.f32 %v13413_v36, %v14908_v38  ;;  %12909 = vmatprep.subr.bf16.mxu1 %v13461_v1 }
0x2307   : > { %v9608_v54 = vpack.c.bf16 %v9604_v25, %v9603_v14 }
0x2309   : > { %12904 = vmatmul.mubr.msk.bf16.vlgmr.msra.gmra.mrb[120].mxu0 %vm2216_vm4, %v9608_v54 }
0x230a   : > { %10286 = vmatprep.mubr.bf16.mxu0 %v13468_v56 }
0x23ca   : > { %v9646_v63 = vpop.f32.mrb[108].mxu1 }
0x23cb   : > { %v12887_v58 = vpop.f32.mrb[109].mxu1 }
0x23cc   : > { %v9649_v33 = vpop.f32.mrb[110].mxu1 }
0x23cd   : > { %v9785_v16 = vpack.c.bf16 %v9649_v33, %v9646_v63  ;;  %v12888_v59 = vpop.f32.mrb[111].mxu1 }
0x23cf   : > { %v9793_v15 = vshrl.u32 %v9785_v16, 16 }
0x23d2   : > { %v9690_v21 = vpop.f32.mrb[116].mxu0 }
0x23d3   : > { %v12893_v22 = vpop.f32.mrb[117].mxu0 }
0x23d4   : > { %v9693_v19 = vpop.f32.mrb[118].mxu0 }
0x23d5   : > { %v9786_v32 = vpack.c.bf16 %v9693_v19, %v9690_v21  ;;  %v12894_v52 = vpop.f32.mrb[119].mxu0 }
0x23d6   : > { %v9734_v38 = vpop.f32.mrb[112].mxu1 }
0x23d7   : > { %v9791_v35 = vpack.i.b16 %v9786_v32, %v9785_v16  ;;  %v9794_v13 = vshrl.u32 %v9786_v32, 16  ;;  %v12899_v10 = vpop.f32.mrb[113].mxu1 }
0x23d8   : > { %v9737_v26 = vpop.f32.mrb[114].mxu1 }
0x23d9   : > { %v9795_v27 = vpack.i.b16 %v9794_v13, %v9793_v15  ;;  %v9787_v9 = vpack.c.bf16 %v9737_v26, %v9734_v38  ;;  %v12900_v62 = vpop.f32.mrb[115].mxu1  ;;  %v9805_v55 = vcombine.high %v9791_v35, %v13701_v57  ;;  %v9812_v46 = vrot.slane %v9791_v35, %v13704_v61 }
0x23da   : > { %v13147_v62 = vld [vmem:[%s13531_s19 + $0x38] sm:$0xff]  }
0x23db   : > { %v9801_v12 = vshrl.u32 %v9787_v9, 16  ;;  %v9819_v20 = vrot.slane %v9805_v55, %v13704_v61  ;;  %v9871_v41 = vcombine.high %v9795_v27, %v13701_v57  ;;  %v9878_v53 = vrot.slane %v9795_v27, %v13704_v61  ;;  %12910 = vmatpush3.bf16.msra.mxu1 %v13147_v62 }
0x23dc   : > { %v9778_v30 = vpop.f32.mrb[120].mxu0 }
0x23dd   : > { %v12905_v23 = vpop.f32.mrb[121].mxu0  ;;  %v9885_v17 = vrot.slane %v9871_v41, %v13704_v61 }
0x23de   : > { %v9781_v28 = vpop.f32.mrb[122].mxu0 }
0x23df   : > { %v9788_v43 = vpack.c.bf16 %v9781_v28, %v9778_v30  ;;  %v12906_v29 = vpop.f32.mrb[123].mxu0 }
0x23e1   : > { %v9799_v50 = vpack.i.b16 %v9788_v43, %v9787_v9  ;;  %v9802_v45 = vshrl.u32 %v9788_v43, 16 }
0x23e3   : > { %v9803_v48 = vpack.i.b16 %v9802_v45, %v9801_v12  ;;  %v9820_v39 = vcombine.high %v9799_v50, %v13701_v57  ;;  %v9827_v47 = vrot.slane %v9799_v50, %v13704_v61 }
0x23e5   : > { %v9834_v3 = vrot.slane %v9820_v39, %v13704_v61  ;;  %v9835_v44 = vcombine.low %v9812_v46, %v9827_v47  ;;  %v9836_v49 = vcombine.high %v9812_v46, %v9827_v47  ;;  %v9886_v51 = vcombine.high %v9803_v48, %v13701_v57 }
0x23e6   : > { %v9893_v37 = vrot.slane %v9803_v48, %v13704_v61 }
0x23e7   : > { %v9843_v40 = vrot.slane %v9835_v44, %v13709_v11  ;;  %v9850_v4 = vrot.slane %v9836_v49, %v13709_v11  ;;  %v9851_v2 = vcombine.low %v9819_v20, %v9834_v3  ;;  %v9852_v60 = vcombine.high %v9819_v20, %v9834_v3 }
0x23e8   : > { %v9900_v42 = vrot.slane %v9886_v51, %v13704_v61  ;;  %v9901_v24 = vcombine.low %v9878_v53, %v9893_v37  ;;  %v9902_v0 = vcombine.high %v9878_v53, %v9893_v37 }
0x23e9   : > { %v9859_v36 = vrot.slane %v9851_v2, %v13709_v11  ;;  %v9866_v57 = vrot.slane %v9852_v60, %v13709_v11  ;;  %v9937_v14 = vcombine.low %v9843_v40, %v9850_v4  ;;  %v12064_v25 = vcombine.high %v9843_v40, %v9850_v4  ;;  %v12073_v60 = vld [vmem:[%s13536_s24 + $0x3] ss:$0 sm:$0xff] }
0x23ea   : > { %v9909_v54 = vrot.slane %v9901_v24, %v13709_v11  ;;  %v9916_v7 = vrot.slane %v9902_v0, %v13709_v11  ;;  %v9917_v63 = vcombine.low %v9885_v17, %v9900_v42  ;;  %v9918_v58 = vcombine.high %v9885_v17, %v9900_v42 }
0x23eb   : > { %v9944_v33 = vrot.slane %v9937_v14, %v13704_v61  ;;  %v9952_v16 = vrot.slane %v12064_v25, %v13704_v61  ;;  %v9953_v59 = vcombine.low %v9859_v36, %v9866_v57  ;;  %v12065_v21 = vcombine.high %v9859_v36, %v9866_v57 }
0x23ec   : > { %v9925_v22 = vrot.slane %v9917_v63, %v13709_v11  ;;  %v9932_v19 = vrot.slane %v9918_v58, %v13709_v11  ;;  %v9987_v32 = vcombine.low %v9909_v54, %v9916_v7  ;;  %v12066_v52 = vcombine.high %v9909_v54, %v9916_v7 }
0x23ed   : > { %v9960_v38 = vrot.slane %v9953_v59, %v13704_v61  ;;  %v9968_v15 = vrot.slane %v12065_v21, %v13704_v61  ;;  %v9969_v35 = vcombine.low %v9944_v33, %v9952_v16 }
0x23ee   : > { %v9994_v13 = vrot.slane %v9987_v32, %v13704_v61  ;;  %v10002_v10 = vrot.slane %v12066_v52, %v13704_v61  ;;  %v10003_v26 = vcombine.low %v9925_v22, %v9932_v19  ;;  %v12067_v27 = vcombine.high %v9925_v22, %v9932_v19  ;;  %v13150_v32 = vld [vmem:[%s13551_s12 + $0xc4] ss:$16 sps:$4 sm:$0xff]   ;;  %v13153_v52 = vld [vmem:[%s13551_s12 + $0xcc] ss:$16 sps:$4 sm:$0xff]  }
0x23ef   : > { %v9977_v9 = vcombine.low %v9960_v38, %v9968_v15  ;;  %v9976_v43 = vrot.slane %v9969_v35, %v13709_v11  ;;  %v13148_v38 = vld [vmem:[%s13551_s12 + $0xc0] ss:$16 sps:$4 sm:$0xff]   ;;  %v13151_v15 = vld [vmem:[%s13551_s12 + $0xc8] ss:$16 sps:$4 sm:$0xff]   ;;  %10254 = vmatprep.subr.bf16.mxu0 %v13150_v32  ;;  %10297 = vmatprep.subr.bf16.mxu1 %v13153_v52  ;;  %v13156_v35 = vld [vmem:[%s13551_s12 + $0xe4] ss:$16 sps:$4 sm:$0xff]  }
0x23f0   : > { %v10010_v30 = vrot.slane %v10003_v26, %v13704_v61  ;;  %v10018_v23 = vrot.slane %v12067_v27, %v13704_v61  ;;  %v10019_v28 = vcombine.low %v9994_v13, %v10002_v10  ;;  %10255 = vmatpush1.bf16.msra.mxu0 %v13148_v38  ;;  %v13154_v13 = vld [vmem:[%s13551_s12 + $0xe0] ss:$16 sps:$4 sm:$0xff]   ;;  %v13157_v10 = vld [vmem:[%s13551_s12 + $0xe8] ss:$16 sps:$4 sm:$0xff]   ;;  %v13159_v26 = vld [vmem:[%s13551_s12 + $0xec] ss:$16 sps:$4 sm:$0xff]  }
0x23f1   : > { %v9984_v29 = vrot.slane %v9977_v9, %v13709_v11  ;;  %10256 = vmatprep.subr.bf16.mxu0 %v13156_v35  ;;  %v13160_v27 = vld [vmem:[%s13561_s27 + $0x340] sm:$0xff]  }
0x23f2   : > { %v10027_v55 = vcombine.low %v10010_v30, %v10018_v23  ;;  %v10026_v45 = vrot.slane %v10019_v28, %v13709_v11  ;;  %v13161_v9 = vld [vmem:[%s13561_s27 + $0x3c0] sm:$0xff]  }
0x23f3   : > { %v9986_v12 = vcombine.high %v9976_v43, %v9984_v29  ;;  %v9985_v50 = vcombine.low %v9976_v43, %v9984_v29 }
0x23f4   : > { %v10034_v46 = vrot.slane %v10027_v55, %v13709_v11  ;;  %10257 = vmatpush1.bf16.msra.mxu0 %v13154_v13 }
0x23f5   : > { %v10040_v47 = vshrl.u32 %v9985_v50, 16  ;;  %v10046_v20 = vshrl.u32 %v9986_v12, 16  ;;  %12511 = vmatprep.subr.bf16.mxu0 %v13160_v27 }
0x23f6   : > { %v10036_v48 = vcombine.high %v10026_v45, %v10034_v46  ;;  %v10035_v39 = vcombine.low %v10026_v45, %v10034_v46 }
0x23f8   : > { %v10045_v41 = vpack.i.b16 %v10036_v48, %v9986_v12  ;;  %v10041_v3 = vshrl.u32 %v10035_v39, 16  ;;  %v10047_v61 = vshrl.u32 %v10036_v48, 16  ;;  %v10039_v44 = vpack.i.b16 %v10035_v39, %v9985_v50  ;;  %v12079_v50 = vld [vmem:[%s15193_s28 + $0x3] ss:$0 sm:$0xff] }
0x23f9   : > { %v12080_v39 = vld [vmem:[%s15194_s1 + $0x3] ss:$0 sm:$0xff] }
0x23fa   : > { %10051 = vrot.lane.b32.xlu1 %v10045_v41, %s15203_s18  ;;  %v10042_v49 = vpack.i.b16 %v10041_v3, %v10040_v47  ;;  %v10048_v51 = vpack.i.b16 %v10047_v61, %v10046_v20  ;;  %v13162_v3 = vld [vmem:[%s13561_s27 + $0x300] sm:$0xff]   ;;  %s15208_s18 = sld [smem:[#allocation11_spill]] }
0x23fb   : > { %v13163_v61 = vld [vmem:[%s13561_s27 + $0x380] sm:$0xff]  }
0x23fc   : > { %10049 = vrot.lane.b32.xlu0 %v10042_v49, %s15201_s16  ;;  %v13164_v49 = vld [vmem:[%s13561_s27 + $0x348] sm:$0xff]   ;;  %s15205_s16 = sld [smem:[#allocation10_spill]] }
0x23fe   : > { %10053 = vrot.lane.b32.xlu1 %v10048_v51, %s15199_s15  ;;  %v13165_v51 = vld [vmem:[%s13561_s27 + $0x3c8] sm:$0xff]   ;;  %s15204_s15 = sld [smem:[#allocation8_spill]] }
0x246c   : > { %v10052_v53 = vpop.permute.xlu1 %10051 }
0x246e   : > { %v10050_v37 = vpop.permute.xlu0 %10049 }
0x246f   : > { %v10057_v11 = vsel %vm2019_vm3, %v10039_v44, %v10050_v37  ;;  %v13167_v37 = vld [vmem:[%s13561_s27 + $0x388] sm:$0xff]  }
0x2470   : > { %v10054_v40 = vpop.permute.xlu1 %10053  ;;  %v10059_v4 = vsel %vm2216_vm4, %v10057_v11, %v10052_v53  ;;  %v13166_v53 = vld [vmem:[%s13561_s27 + $0x308] sm:$0xff]   ;;  %v13168_v11 = vld [vmem:[%s13561_s27 + $0x350] sm:$0xff]  }
0x2471   : > { %v10061_v2 = vsel %vm2760_vm5, %v10059_v4, %v10054_v40  ;;  %v13169_v40 = vld [vmem:[%s13561_s27 + $0x3d0] sm:$0xff]  }
0x2472   : > { %12912 = vmatmul.mubr.msk.bf16.vlgmr.msra.gmra.mrb[116].mxu1 %vm1032_vm2, %v10061_v2  ;;  %v13170_v4 = vld [vmem:[%s13561_s27 + $0x310] sm:$0xff]  }
0x2473   : > { %10329 = vmatprep.mubr.bf16.mxu1 %v13468_v56  ;;  %10298 = vmatpush1.bf16.msra.mxu1 %v13151_v15  ;;  %v13171_v2 = vld [vmem:[%s13561_s27 + $0x390] sm:$0xff]  }
0x2474   : > { %10299 = vmatprep.subr.bf16.mxu1 %v13159_v26 }
0x2477   : > { %10300 = vmatpush1.bf16.msra.mxu1 %v13157_v10 }
0x2478   : > { %12533 = vmatprep.subr.bf16.mxu1 %v13161_v9 }
0x2545   : > { %v10123_v17 = vpop.f32.mrb[116].mxu1 }
0x2546   : > { %v10124_v42 = vadd.f32 %v12073_v60, %v10123_v17  ;;  %v12913_v24 = vpop.f32.mrb[117].mxu1  ;;  %v13173_v17 = vld [vmem:[%s13561_s27 + $0x3d8] sm:$0xff]  }
0x2547   : > { %v10126_v0 = vpop.f32.mrb[118].mxu1  ;;  %v13175_v24 = vld [vmem:[%s13561_s27 + $0x398] sm:$0xff]  }
0x2548   : > { %v10130_v36 = vadd.f32 %v10124_v42, %v14733_v34  ;;  %v10127_v57 = vadd.f32 %v12073_v60, %v10126_v0  ;;  %v12914_v14 = vpop.f32.mrb[119].mxu1  ;;  %v13172_v60 = vld [vmem:[%s13561_s27 + $0x358] sm:$0xff]   ;;  %v13176_v0 = vld [vmem:[%s13561_s27 + $0x360] sm:$0xff]  }
0x2549   : > { %v13174_v42 = vld [vmem:[%s13561_s27 + $0x318] sm:$0xff]   ;;  %v13179_v14 = vld [vmem:[%s13561_s27 + $0x3a0] sm:$0xff]  }
0x254a   : > { %v10131_v25 = vadd.f32 %v10127_v57, %v14735_v18  ;;  %v10136_v54 = vsel %vm1032_vm2, %v10130_v36, 0.0  ;;  %v13178_v57 = vld [vmem:[%s13561_s27 + $0x320] sm:$0xff]  }
0x254b   : > { %10137 = vadd.xlane.f32.xlu0 %v10136_v54  ;;  %v13181_v54 = vld [vmem:[%s13561_s27 + $0x3e8] sm:$0xff]  }
0x254c   : > { %v10139_v7 = vsel %vm1032_vm2, %v10131_v25, 0.0 }
0x254d   : > { %10140 = vadd.xlane.f32.xlu1 %v10139_v7  ;;  %v13182_v7 = vld [vmem:[%s13561_s27 + $0x328] sm:$0xff]  }
0x25d8   : > { %v10138_v63 = vpop.xlane.xlu0 %10137 }
0x25d9   : > { %v10142_v58 = vmul.f32 0.03125, %v10138_v63  ;;  %v13183_v63 = vld [vmem:[%s13561_s27 + $0x3a8] sm:$0xff]  }
0x25da   : > { %v10141_v33 = vpop.xlane.xlu1 %10140 }
0x25db   : > { %v10144_v16 = vsub.f32 %v10130_v36, %v10142_v58  ;;  %v10143_v34 = vmul.f32 0.03125, %v10141_v33  ;;  %v13177_v36 = vld [vmem:[%s13561_s27 + $0x3e0] sm:$0xff]   ;;  %v13184_v58 = vld [vmem:[%s13561_s27 + $0x370] sm:$0xff]  }
0x25dc   : > { %v13185_v33 = vld [vmem:[%s13561_s27 + $0x3f0] sm:$0xff]  }
0x25dd   : > { %v10145_v59 = vsub.f32 %v10131_v25, %v10143_v34  ;;  %v10146_v21 = vmul.f32 %v10144_v16, %v10144_v16  ;;  %v13180_v25 = vld [vmem:[%s13561_s27 + $0x368] sm:$0xff]   ;;  %v13187_v34 = vld [vmem:[%s13561_s27 + $0x3b0] sm:$0xff]  }
0x25df   : > { %v10148_v18 = vsel %vm1032_vm2, %v10146_v21, 0.0  ;;  %v10147_v22 = vmul.f32 %v10145_v59, %v10145_v59  ;;  %v13189_v21 = vld [vmem:[%s13561_s27 + $0x3f8] sm:$0xff]  }
0x25e0   : > { %10149 = vadd.xlane.f32.xlu0 %v10148_v18  ;;  %v13190_v18 = vld [vmem:[%s13561_s27 + $0x338] sm:$0xff]  }
0x25e1   : > { %v10151_v19 = vsel %vm1032_vm2, %v10147_v22, 0.0  ;;  %v13191_v22 = vld [vmem:[%s13561_s27 + $0x3b8] sm:$0xff]  }
0x25e4   : > { %10152 = vadd.xlane.f32.xlu0 %v10151_v19  ;;  %v12089_v19 = vld [vmem:[%s15195_s2 + $0xc] sm:$0xf] }
0x25e5   : > { %v10194_v32 = vrot.slane %v12089_v19, %v13998_v5  ;;  %v10202_v52 = vrot.slane %v12089_v19, %v14001_v6  ;;  %v10198_v38 = vrot.slane %v12089_v19, %v14005_v31  ;;  %v10206_v15 = vrot.slane %v12089_v19, %v14008_v8 }
0x266d   : > { %v10150_v62 = vpop.xlane.xlu0 %10149 }
0x266e   : > { %v10154_v30 = vmul.f32 0.03125, %v10150_v62 }
0x2670   : > { %v10156_v23 = vadd.f32 1e-05, %v10154_v30 }
0x2671   : > { %v10153_v28 = vpop.xlane.xlu0 %10152 }
0x2672   : > { %13414 = vrsqrt.f32 %v10156_v23  ;;  %v10155_v43 = vmul.f32 0.03125, %v10153_v28 }
0x2674   : > { %v10157_v29 = vadd.f32 1e-05, %v10155_v43 }
0x2676   : > { %13416 = vrsqrt.f32 %v10157_v29 }
0x267c   : > { %v13415_v55 = vpop.eup %13414 }
0x267d   : > { %v10160_v12 = vmul.f32 %v13415_v55, %v10144_v16  ;;  %v13186_v16 = vld [vmem:[%s13561_s27 + $0x330] sm:$0xff]  }
0x267f   : > { %v10168_v46 = vmul.f32 %v12079_v50, %v10160_v12 }
0x2680   : > { %v13417_v45 = vpop.eup %13416 }
0x2681   : > { %v10161_v48 = vmul.f32 %v13417_v45, %v10145_v59  ;;  %v15014_v20 = vadd.f32 %v12080_v39, %v10168_v46  ;;  %v13188_v59 = vld [vmem:[%s13561_s27 + $0x378] sm:$0xff]  }
0x2683   : > { %v10169_v47 = vmul.f32 %v12079_v50, %v10161_v48 }
0x2685   : > { %v15016_v41 = vadd.f32 %v12080_v39, %v10169_v47 }
0x2687   : > { %v10178_v44 = vpack.c.bf16 %v15016_v41, %v15014_v20 }
0x2689   : > { %12098 = vmatmul.mubr.msk.bf16.vlgmr.msra.gmra.mrb[124].mxu0 %vm1032_vm2, %v10178_v44  ;;  %12099 = vmatmul.mubr.msk.bf16.vlgmr.msra.gmra.mrb[120].mxu1 %vm1032_vm2, %v10178_v44 }
0x268a   : > { %12512 = vmatpush3.bf16.msra.mxu0 %v13162_v3  ;;  %12534 = vmatpush3.bf16.msra.mxu1 %v13163_v61 }
0x268b   : > { %12513 = vmatprep.subr.bf16.mxu0 %v13164_v49  ;;  %12535 = vmatprep.subr.bf16.mxu1 %v13165_v51 }
0x268e   : > { %12514 = vmatpush3.bf16.msra.mxu0 %v13166_v53  ;;  %12536 = vmatpush3.bf16.msra.mxu1 %v13167_v37 }
0x268f   : > { %12515 = vmatprep.subr.bf16.mxu0 %v13168_v11  ;;  %12537 = vmatprep.subr.bf16.mxu1 %v13169_v40  ;;  %v12165_v40 = vld [vmem:[%s15196_s0 + $0x3] ss:$0 sm:$0xff] }
0x2692   : > { %12516 = vmatpush3.bf16.msra.mxu0 %v13170_v4  ;;  %12538 = vmatpush3.bf16.msra.mxu1 %v13171_v2 }
0x2693   : > { %12517 = vmatprep.subr.bf16.mxu0 %v13172_v60  ;;  %12539 = vmatprep.subr.bf16.mxu1 %v13173_v17 }
0x2696   : > { %12518 = vmatpush3.bf16.msra.mxu0 %v13174_v42  ;;  %12540 = vmatpush3.bf16.msra.mxu1 %v13175_v24 }
0x2697   : > { %12519 = vmatprep.subr.bf16.mxu0 %v13176_v0  ;;  %12541 = vmatprep.subr.bf16.mxu1 %v13177_v36 }
0x269a   : > { %12520 = vmatpush3.bf16.msra.mxu0 %v13178_v57  ;;  %12542 = vmatpush3.bf16.msra.mxu1 %v13179_v14 }
0x269b   : > { %12521 = vmatprep.subr.bf16.mxu0 %v13180_v25  ;;  %12543 = vmatprep.subr.bf16.mxu1 %v13181_v54 }
0x269e   : > { %12522 = vmatpush3.bf16.msra.mxu0 %v13182_v7  ;;  %12544 = vmatpush3.bf16.msra.mxu1 %v13183_v63 }
0x269f   : > { %12523 = vmatprep.subr.bf16.mxu0 %v13184_v58  ;;  %12545 = vmatprep.subr.bf16.mxu1 %v13185_v33 }
0x26a2   : > { %12524 = vmatpush3.bf16.msra.mxu0 %v13186_v16  ;;  %12546 = vmatpush3.bf16.msra.mxu1 %v13187_v34 }
0x26a3   : > { %12525 = vmatprep.subr.bf16.mxu0 %v13188_v59  ;;  %12547 = vmatprep.subr.bf16.mxu1 %v13189_v21 }
0x26a6   : > { %12526 = vmatpush3.bf16.msra.mxu0 %v13190_v18  ;;  %12548 = vmatpush3.bf16.msra.mxu1 %v13191_v22 }
0x275c   : > { %v10288_v35 = vpop.f32.mrb[124].mxu0  ;;  %v10331_v13 = vpop.f32.mrb[120].mxu1 }
0x275d   : > { %v10289_v10 = vadd.f32 %v10288_v35, %v10194_v32  ;;  %v10332_v26 = vadd.f32 %v10331_v13, %v10202_v52  ;;  %v10290_v27 = vpop.f32.mrb[125].mxu0  ;;  %v10333_v9 = vpop.f32.mrb[121].mxu1  ;;  %v13197_v35 = vld [vmem:[%s15204_s15 + $0x14] ss:$8 sps:$4 sm:$0xff]   ;;  %v13195_v13 = vld [vmem:[%s15204_s15 + $0x10] ss:$8 sps:$4 sm:$0xff]  }
0x275e   : > { %v10291_v62 = vadd.f32 %v10290_v27, %v10198_v38  ;;  %v10334_v30 = vadd.f32 %v10333_v9, %v10206_v15  ;;  %v10292_v23 = vpop.f32.mrb[126].mxu0  ;;  %v10335_v28 = vpop.f32.mrb[122].mxu1  ;;  %v13203_v27 = vld [vmem:[%s15205_s16 + $0x14] ss:$8 sps:$4 sm:$0xff]   ;;  %v13201_v9 = vld [vmem:[%s15205_s16 + $0x10] ss:$8 sps:$4 sm:$0xff]  }
0x275f   : > { %v10293_v43 = vadd.f32 %v10292_v23, %v10194_v32  ;;  %v10336_v29 = vadd.f32 %v10335_v28, %v10202_v52  ;;  %v10294_v55 = vpop.f32.mrb[127].mxu0  ;;  %v10337_v12 = vpop.f32.mrb[123].mxu1  ;;  %v10340_v45 = vmax.f32 %v10289_v10, 0.0  ;;  %v10342_v46 = vmax.f32 %v10332_v26, 0.0  ;;  %v13198_v10 = vld [vmem:[%s15205_s16] ss:$8 sps:$4 sm:$0xff]  }
0x2760   : > { %v10295_v50 = vadd.f32 %v10294_v55, %v10198_v38  ;;  %v10338_v6 = vadd.f32 %v10337_v12, %v10206_v15  ;;  %v10341_v39 = vmax.f32 %v10291_v62, 0.0  ;;  %v10343_v47 = vmax.f32 %v10334_v30, 0.0  ;;  %v13194_v38 = vld [vmem:[%s15204_s15 + $0x4] ss:$8 sps:$4 sm:$0xff]   ;;  %v13192_v15 = vld [vmem:[%s15204_s15] ss:$8 sps:$4 sm:$0xff]  }
0x2761   : > { %v10344_v48 = vmax.f32 %v10293_v43, 0.0  ;;  %v10346_v8 = vmax.f32 %v10336_v29, 0.0  ;;  %10787 = vmatprep.subr.bf16.mxu0 %v13194_v38  ;;  %v13200_v26 = vld [vmem:[%s15205_s16 + $0x4] ss:$8 sps:$4 sm:$0xff]   ;;  %v13204_v30 = vld [vmem:[%s15205_s16 + $0x20] ss:$8 sps:$4 sm:$0xff]  }
0x2762   : > { %v10345_v3 = vmax.f32 %v10295_v50, 0.0  ;;  %v10347_v61 = vmax.f32 %v10338_v6, 0.0  ;;  %11040 = vmatprep.subr.bf16.mxu1 %v13200_v26  ;;  %v13206_v62 = vld [vmem:[%s15205_s16 + $0x24] ss:$8 sps:$4 sm:$0xff]   ;;  %v13209_v23 = vld [vmem:[%s15205_s16 + $0x34] ss:$8 sps:$4 sm:$0xff]  }
0x2763   : > { %v10348_v44 = vpack.c.bf16 %v10344_v48, %v10340_v45  ;;  %v10350_v49 = vpack.c.bf16 %v10346_v8, %v10342_v46  ;;  %v13207_v28 = vld [vmem:[%s15205_s16 + $0x30] ss:$8 sps:$4 sm:$0xff]   ;;  %v13212_v43 = vld [vmem:[%s15205_s16 + $0x44] ss:$8 sps:$4 sm:$0xff]   ;;  %v13210_v29 = vld [vmem:[%s15205_s16 + $0x40] ss:$8 sps:$4 sm:$0xff]  }
0x2764   : > { %v10349_v51 = vpack.c.bf16 %v10345_v3, %v10341_v39  ;;  %v10351_v53 = vpack.c.bf16 %v10347_v61, %v10343_v47  ;;  %v13215_v55 = vld [vmem:[%s15205_s16 + $0x54] ss:$8 sps:$4 sm:$0xff]   ;;  %v13213_v12 = vld [vmem:[%s15205_s16 + $0x50] ss:$8 sps:$4 sm:$0xff]   ;;  %v13218_v50 = vld [vmem:[%s15205_s16 + $0x64] ss:$8 sps:$4 sm:$0xff]  }
0x2765   : > { %v13216_v6 = vld [vmem:[%s15205_s16 + $0x60] ss:$8 sps:$4 sm:$0xff]   ;;  %v13221_v45 = vld [vmem:[%s15205_s16 + $0x74] ss:$8 sps:$4 sm:$0xff]   ;;  %v13219_v46 = vld [vmem:[%s15205_s16 + $0x70] ss:$8 sps:$4 sm:$0xff]  }
0x2766   : > { %10649 = vmatprep.mubr.bf16.mxu0 %v10349_v51  ;;  %10690 = vmatprep.mubr.bf16.mxu1 %v10351_v53  ;;  %v13224_v48 = vld [vmem:[%s15205_s16 + $0x84] ss:$8 sps:$4 sm:$0xff]   ;;  %v13222_v8 = vld [vmem:[%s15205_s16 + $0x80] ss:$8 sps:$4 sm:$0xff]   ;;  %v13227_v39 = vld [vmem:[%s15205_s16 + $0x94] ss:$8 sps:$4 sm:$0xff]  }
0x2767   : > { %10650 = vmatmul.mubr.bf16.vlgmr.msra.gmra.mrb[128].mxu0 %v10348_v44  ;;  %10691 = vmatmul.mubr.bf16.vlgmr.msra.gmra.mrb[124].mxu1 %v10350_v49  ;;  %v13225_v47 = vld [vmem:[%s15205_s16 + $0x90] ss:$8 sps:$4 sm:$0xff]   ;;  %v13230_v3 = vld [vmem:[%s15205_s16 + $0xa4] ss:$8 sps:$4 sm:$0xff]   ;;  %v13228_v61 = vld [vmem:[%s15205_s16 + $0xa0] ss:$8 sps:$4 sm:$0xff]  }
0x2768   : > { %10819 = vmatprep.mubr.bf16.mxu0 %v13468_v56  ;;  %10788 = vmatpush1.bf16.msra.mxu0 %v13192_v15  ;;  %v13233_v44 = vld [vmem:[%s15205_s16 + $0xb4] ss:$8 sps:$4 sm:$0xff]   ;;  %v13231_v49 = vld [vmem:[%s15205_s16 + $0xb0] ss:$8 sps:$4 sm:$0xff]   ;;  %v13236_v51 = vld [vmem:[%s15205_s16 + $0xc4] ss:$8 sps:$4 sm:$0xff]  }
0x2769   : > { %10789 = vmatprep.subr.bf16.mxu0 %v13197_v35  ;;  %11041 = vmatpush1.bf16.msra.mxu1 %v13198_v10  ;;  %v13234_v53 = vld [vmem:[%s15205_s16 + $0xc0] ss:$8 sps:$4 sm:$0xff]   ;;  %v13251_v38 = vld [vmem:[%s15206_s22 + $0x10] sm:$0xff]   ;;  %v13252_v15 = vld [vmem:[%s15206_s22 + $0x58] sm:$0xff]  }
0x276a   : > { %11042 = vmatprep.subr.bf16.mxu1 %v13203_v27  ;;  %v13253_v35 = vld [vmem:[%s15206_s22 + $0x18] sm:$0xff]   ;;  %v13255_v10 = vld [vmem:[%s15206_s22 + $0x20] sm:$0xff]   ;;  %v13256_v26 = vld [vmem:[%s15206_s22 + $0x68] sm:$0xff]  }
0x276b   : > { %v13257_v27 = vld [vmem:[%s15206_s22 + $0x28] sm:$0xff]  }
0x276c   : > { %10790 = vmatpush1.bf16.msra.mxu0 %v13195_v13  ;;  %v13254_v13 = vld [vmem:[%s15206_s22 + $0x60] sm:$0xff]  }
0x276d   : > { %11043 = vmatpush1.bf16.msra.mxu1 %v13201_v9  ;;  %v10752_v9 = vld [vmem:[%s15207_s23] sm:$0x3]  ;;  %s15209_s23 = sld [smem:[#allocation13_spill]] }
0x276e   : > { %11044 = vmatprep.subr.bf16.mxu1 %v13206_v62  ;;  %v10777_v62 = vrot.slane %v10752_v9, %v13998_v5 }
0x2771   : > { %11045 = vmatpush1.bf16.msra.mxu1 %v13204_v30  ;;  %v10781_v30 = vrot.slane %v10752_v9, %v14005_v31 }
0x2772   : > { %11046 = vmatprep.subr.bf16.mxu1 %v13209_v23 }
0x2775   : > { %11047 = vmatpush1.bf16.msra.mxu1 %v13207_v28 }
0x2776   : > { %11048 = vmatprep.subr.bf16.mxu1 %v13212_v43 }
0x2779   : > { %11049 = vmatpush1.bf16.msra.mxu1 %v13210_v29 }
0x277a   : > { %11050 = vmatprep.subr.bf16.mxu1 %v13215_v55 }
0x277d   : > { %11051 = vmatpush1.bf16.msra.mxu1 %v13213_v12 }
0x277e   : > { %11052 = vmatprep.subr.bf16.mxu1 %v13218_v50 }
0x2781   : > { %11053 = vmatpush1.bf16.msra.mxu1 %v13216_v6 }
0x2782   : > { %11054 = vmatprep.subr.bf16.mxu1 %v13221_v45 }
0x2785   : > { %11055 = vmatpush1.bf16.msra.mxu1 %v13219_v46 }
0x2786   : > { %11056 = vmatprep.subr.bf16.mxu1 %v13224_v48 }
0x2789   : > { %11057 = vmatpush1.bf16.msra.mxu1 %v13222_v8 }
0x278a   : > { %11058 = vmatprep.subr.bf16.mxu1 %v13227_v39  ;;  %v13258_v39 = vld [vmem:[%s15206_s22 + $0x70] sm:$0xff]  }
0x278d   : > { %11059 = vmatpush1.bf16.msra.mxu1 %v13225_v47  ;;  %v13259_v47 = vld [vmem:[%s15206_s22 + $0x30] sm:$0xff]  }
0x278e   : > { %11060 = vmatprep.subr.bf16.mxu1 %v13230_v3  ;;  %v13260_v3 = vld [vmem:[%s15206_s22 + $0x78] sm:$0xff]  }
0x2791   : > { %11061 = vmatpush1.bf16.msra.mxu1 %v13228_v61  ;;  %v13261_v61 = vld [vmem:[%s15206_s22 + $0x38] sm:$0xff]  }
0x2792   : > { %11062 = vmatprep.subr.bf16.mxu1 %v13233_v44  ;;  %v13472_v44 = vmov 0.0|0.0  }
0x2795   : > { %11063 = vmatpush1.bf16.msra.mxu1 %v13231_v49  ;;  %v10868_v49 = vld [vmem:[%s15208_s18] sm:$0x3]  ;;  %s12261_s18 = sshll.u32 %s15211_s10, 4 }
0x2796   : > { %11064 = vmatprep.subr.bf16.mxu1 %v13236_v51  ;;  %v11033_v51 = vrot.slane %v10868_v49, %v13998_v5  ;;  %s911_s0 = scalar_lea.vmem %s13626_s4, %s12261_s18 }
0x2799   : > { %11065 = vmatpush1.bf16.msra.mxu1 %v13234_v53  ;;  %v11037_v53 = vrot.slane %v10868_v49, %v14005_v31 }
0x283a   : > { %v12527_v37 = vpop.f32.mrb[128].mxu0  ;;  %v12549_v11 = vpop.f32.mrb[124].mxu1 }
0x283b   : > { %v12528_v4 = vpop.f32.mrb[129].mxu0  ;;  %v12550_v2 = vpop.f32.mrb[125].mxu1 }
0x283c   : > { %v12529_v60 = vadd.f32 %v12528_v4, %v12527_v37  ;;  %v12551_v17 = vadd.f32 %v12550_v2, %v12549_v11  ;;  %v12530_v42 = vpop.f32.mrb[130].mxu0  ;;  %v12552_v24 = vpop.f32.mrb[126].mxu1  ;;  %v13239_v37 = vld [vmem:[%s15205_s16 + $0xd4] ss:$8 sps:$4 sm:$0xff]   ;;  %v13237_v11 = vld [vmem:[%s15205_s16 + $0xd0] ss:$8 sps:$4 sm:$0xff]  }
0x283d   : > { %v12531_v0 = vpop.f32.mrb[131].mxu0  ;;  %v12553_v36 = vpop.f32.mrb[127].mxu1  ;;  %11066 = vmatprep.subr.bf16.mxu1 %v13239_v37 }
0x283e   : > { %v10652_v57 = vadd.f32 %v12529_v60, %v12165_v40  ;;  %v12532_v14 = vadd.f32 %v12531_v0, %v12530_v42  ;;  %v12554_v25 = vadd.f32 %v12553_v36, %v12552_v24  ;;  %11067 = vmatpush1.bf16.msra.mxu1 %v13237_v11  ;;  %v12200_v0 = vld [vmem:[%s15197_s11 + $0x3] ss:$0 sm:$0xff] }
0x2840   : > { %v10693_v54 = vadd.f32 %v12551_v17, %v10652_v57  ;;  %v10655_v7 = vadd.f32 %v12532_v14, %v12165_v40  ;;  %v12201_v57 = vld [vmem:[%s15198_s26 + $0x3] ss:$0 sm:$0xff] }
0x2842   : > { %v10696_v63 = vadd.f32 %v12554_v25, %v10655_v7  ;;  %v10699_v58 = vadd.f32 %v10693_v54, %v15014_v20 }
0x2844   : > { %v10705_v56 = vsel %vm1032_vm2, %v10699_v58, 0.0  ;;  %v10700_v33 = vadd.f32 %v10696_v63, %v15016_v41 }
0x2845   : > { %10706 = vadd.xlane.f32.xlu1 %v10705_v56 }
0x2846   : > { %v10708_v16 = vsel %vm1032_vm2, %v10700_v33, 0.0 }
0x2849   : > { %10709 = vadd.xlane.f32.xlu1 %v10708_v16 }
0x28d2   : > { %v10707_v34 = vpop.xlane.xlu1 %10706 }
0x28d3   : > { %v10711_v59 = vmul.f32 0.03125, %v10707_v34 }
0x28d5   : > { %v15063_v21 = vsub.f32 %v10699_v58, %v10711_v59  ;;  %v13242_v59 = vld [vmem:[%s15205_s16 + $0xe4] ss:$8 sps:$4 sm:$0xff]  }
0x28d6   : > { %v10710_v18 = vpop.xlane.xlu1 %10709  ;;  %11068 = vmatprep.subr.bf16.mxu1 %v13242_v59 }
0x28d7   : > { %v10712_v22 = vmul.f32 0.03125, %v10710_v18  ;;  %v10715_v20 = vmul.f32 %v15063_v21, %v15063_v21  ;;  %v13243_v18 = vld [vmem:[%s15205_s16 + $0xf0] ss:$8 sps:$4 sm:$0xff]  }
0x28d9   : > { %v15067_v41 = vsub.f32 %v10700_v33, %v10712_v22  ;;  %v10717_v19 = vsel %vm1032_vm2, %v10715_v20, 0.0  ;;  %v13245_v22 = vld [vmem:[%s15205_s16 + $0xf4] ss:$8 sps:$4 sm:$0xff]   ;;  %v13246_v20 = vld [vmem:[%s15206_s22 + $0x40] sm:$0xff]  }
0x28da   : > { %10718 = vadd.xlane.f32.xlu0 %v10717_v19  ;;  %v13248_v19 = vld [vmem:[%s15206_s22 + $0x48] sm:$0xff]   ;;  %12555 = vmatprep.subr.bf16.mxu0 %v13246_v20 }
0x28db   : > { %v10716_v32 = vmul.f32 %v15067_v41, %v15067_v41 }
0x28dd   : > { %v10720_v52 = vsel %vm1032_vm2, %v10716_v32, 0.0  ;;  %v13249_v32 = vld [vmem:[%s15206_s22 + $0x8] sm:$0xff]  }
0x28de   : > { %10721 = vadd.xlane.f32.xlu0 %v10720_v52  ;;  %v13250_v52 = vld [vmem:[%s15206_s22 + $0x50] sm:$0xff]  }
0x2967   : > { %v10719_v40 = vpop.xlane.xlu0 %10718 }
0x2968   : > { %v10723_v4 = vmul.f32 0.03125, %v10719_v40 }
0x296a   : > { %v10725_v2 = vadd.f32 1e-05, %v10723_v4 }
0x296b   : > { %v10722_v60 = vpop.xlane.xlu0 %10721 }
0x296c   : > { %13418 = vrsqrt.f32 %v10725_v2  ;;  %v10724_v17 = vmul.f32 0.03125, %v10722_v60 }
0x296e   : > { %v10726_v42 = vadd.f32 1e-05, %v10724_v17 }
0x2970   : > { %13420 = vrsqrt.f32 %v10726_v42 }
0x2976   : > { %v13419_v24 = vpop.eup %13418 }
0x2977   : > { %v10729_v36 = vmul.f32 %v13419_v24, %v15063_v21  ;;  %v13240_v21 = vld [vmem:[%s15205_s16 + $0xe0] ss:$8 sps:$4 sm:$0xff]  }
0x2978   : > { %11069 = vmatpush1.bf16.msra.mxu1 %v13240_v21  ;;  %v11267_v24 = vld [vmem:[%s13616_s20] sm:$0xff] }
0x2979   : > { %v10737_v14 = vmul.f32 %v12200_v0, %v10729_v36  ;;  %11070 = vmatprep.subr.bf16.mxu1 %v13245_v22 }
0x297a   : > { %v13421_v25 = vpop.eup %13420 }
0x297b   : > { %v10745_v54 = vadd.f32 %v12201_v57, %v10737_v14  ;;  %v10730_v7 = vmul.f32 %v13421_v25, %v15067_v41  ;;  %v13247_v41 = vld [vmem:[%s15206_s22] sm:$0xff]  }
0x297c   : > { %11071 = vmatpush1.bf16.msra.mxu1 %v13243_v18 }
0x297d   : > { %v10747_v63 = vpack.c.bf16 %v10745_v54, %v10745_v54  ;;  %v10738_v58 = vmul.f32 %v12200_v0, %v10730_v7  ;;  %v11348_v33 = vrot.slane %v10745_v54, 1  ;;  %v11268_v0 = vld [vmem:[%s13616_s20 + $0x8] sm:$0xff]  ;;  %v11121_v54 = vld [vmem:[%s15209_s23] sm:$0x1]  ;;  %s906_s23 = scalar_lea.vmem %s13621_s30, %s15211_s10 }
0x297e   : > { %v12928_v25 = vpack.c.bf16 %v11268_v0, %v11267_v24 }
0x297f   : > { %12206 = vmatmul.mubr.msk.bf16.vlgmr.msra.gmra.mrb[132].mxu0 %vm1032_vm2, %v10747_v63  ;;  %v10746_v56 = vadd.f32 %v12201_v57, %v10738_v58 }
0x2980   : > { %12556 = vmatpush3.bf16.msra.mxu0 %v13247_v41  ;;  %v11343_v41 = vld [vmem:[%s13611_s6] sm:$0xff] }
0x2981   : > { %v11349_v16 = vrot.slane %v10746_v56, 1  ;;  %12557 = vmatprep.subr.bf16.mxu0 %v13248_v19  ;;  %v11344_v19 = vld [vmem:[%s13611_s6 + $0x8] sm:$0xff] }
0x2983   : > { %v15110_v34 = vsel %vm11347_vm6, %v11348_v33, %v11349_v16 }
0x2984   : > { %12558 = vmatpush3.bf16.msra.mxu0 %v13249_v32 }
0x2985   : > { %12559 = vmatprep.subr.bf16.mxu0 %v13250_v52 }
0x2988   : > { %12560 = vmatpush3.bf16.msra.mxu0 %v13251_v38 }
0x2989   : > { %12561 = vmatprep.subr.bf16.mxu0 %v13252_v15 }
0x298c   : > { %12562 = vmatpush3.bf16.msra.mxu0 %v13253_v35 }
0x298d   : > { %12563 = vmatprep.subr.bf16.mxu0 %v13254_v13 }
0x2990   : > { %12564 = vmatpush3.bf16.msra.mxu0 %v13255_v10 }
0x2991   : > { %12565 = vmatprep.subr.bf16.mxu0 %v13256_v26 }
0x2994   : > { %12566 = vmatpush3.bf16.msra.mxu0 %v13257_v27 }
0x2995   : > { %12567 = vmatprep.subr.bf16.mxu0 %v13258_v39 }
0x2998   : > { %12568 = vmatpush3.bf16.msra.mxu0 %v13259_v47 }
0x2999   : > { %12569 = vmatprep.subr.bf16.mxu0 %v13260_v3 }
0x299c   : > { %12570 = vmatpush3.bf16.msra.mxu0 %v13261_v61 }
0x299d   : > { %12927 = vmatprep.subr.bf16.mxu0 %v13472_v44 }
0x2a52   : > { %v10821_v23 = vpop.f32.mrb[132].mxu0 }
0x2a53   : > { %v10822_v28 = vadd.f32 %v10821_v23, %v10777_v62  ;;  %v10823_v43 = vpop.f32.mrb[133].mxu0 }
0x2a54   : > { %v10824_v29 = vadd.f32 %v10823_v43, %v10781_v30  ;;  %v10825_v55 = vpop.f32.mrb[134].mxu0 }
0x2a55   : > { %vm10828_vm7 = vcmp.ge.f32.partialorder %v10822_v28, 0.0  ;;  %v10830_v12 = vmul.f32 0.01, %v10822_v28  ;;  %v10826_v50 = vpop.f32.mrb[135].mxu0 }
0x2a56   : > { %vm10829_vm8 = vcmp.ge.f32.partialorder %v10824_v29, 0.0  ;;  %v10831_v6 = vmul.f32 0.01, %v10824_v29 }
0x2a57   : > { %v10832_v45 = vsel %vm10828_vm7, %v10822_v28, %v10830_v12 }
0x2a58   : > { %v10833_v46 = vsel %vm10829_vm8, %v10824_v29, %v10831_v6  ;;  %v10834_v8 = vpack.c.bf16 %v10832_v45, %v10832_v45 }
0x2a59   : > { %v10835_v48 = vpack.c.bf16 %v10833_v46, %v10833_v46 }
0x2a5b   : > { %11072 = vmatprep.mubr.bf16.mxu1 %v10835_v48 }
0x2a5c   : > { %11073 = vmatmul.mubr.bf16.vlgmr.msra.gmra.mrb[128].mxu1 %v10834_v8 }
0x2b2f   : > { %v11074_v37 = vpop.f32.mrb[128].mxu1 }
0x2b30   : > { %v11075_v11 = vadd.f32 %v11074_v37, %v11033_v51  ;;  %v11076_v40 = vpop.f32.mrb[129].mxu1 }
0x2b31   : > { %v11077_v4 = vadd.f32 %v11076_v40, %v11037_v53  ;;  %v11078_v2 = vpop.f32.mrb[130].mxu1 }
0x2b32   : > { %vm11081_vm9 = vcmp.ge.f32.partialorder %v11075_v11, 0.0  ;;  %v11083_v60 = vmul.f32 0.01, %v11075_v11  ;;  %v11079_v17 = vpop.f32.mrb[131].mxu1 }
0x2b33   : > { %vm11082_vm10 = vcmp.ge.f32.partialorder %v11077_v4, 0.0  ;;  %v11084_v42 = vmul.f32 0.01, %v11077_v4 }
0x2b34   : > { %v11085_v36 = vsel %vm11081_vm9, %v11075_v11, %v11083_v60 }
0x2b35   : > { %v11086_v57 = vsel %vm11082_vm10, %v11077_v4, %v11084_v42  ;;  %v11087_v5 = vpack.c.bf16 %v11085_v36, %v11085_v36 }
0x2b36   : > { %v11088_v14 = vpack.c.bf16 %v11086_v57, %v11086_v57 }
0x2b38   : > { %11250 = vmatprep.mubr.bf16.mxu0 %v11088_v14 }
0x2b39   : > { %11251 = vmatmul.mubr.bf16.vlgmr.msra.gmra.mrb[136].mxu0 %v11087_v5 }
0x2b3a   : > { %12929 = vmatpush3.bf16.msra.mxu0 %v12928_v25  ;;  %12919 = vmatprep.mubr.msk.f32.mxu0 %vm13462_vm0, %v13461_v1 }
0x2b3b   : > { %12922 = vmatprep.subr.mxu0 %v15110_v34 }
0x2c0c   : > { %v12571_v31 = vpop.f32.mrb[136].mxu0 }
0x2c0d   : > { %v12572_v7 = vpop.f32.mrb[137].mxu0 }
0x2c0e   : > { %v12573_v63 = vadd.f32 %v12572_v7, %v12571_v31  ;;  %v12574_v58 = vpop.f32.mrb[138].mxu0 }
0x2c0f   : > { %v12575_v56 = vpop.f32.mrb[139].mxu0 }
0x2c10   : > { %v11253_v33 = vadd.f32 %v12573_v63, %v11121_v54 }
0x2c12   : > { %v11258_v16 = vmax.f32 %v11253_v33, 0.0 }
0x2c14   : > { %v11259_v59 = vadd.f32 0.1, %v11258_v16 }
0x2c16   : > { %v11261_v21 = vsel %vm11260_vm11, %v11259_v59, 0.0 }
0x2c17   : > { %11262 = vadd.xlane.f32.xlu1 %v11261_v21 }
0x2ca4   : > { %v11263_v1 = vpop.xlane.xlu1 %11262 }
0x2ca5   : > { %13422 = vrcp.f32 %v11263_v1 }
0x2caf   : > { %v13423_v18 = vpop.eup %13422 }
0x2cb0   : > { %v11265_v22 = vmul.f32 %v13423_v18, %v11259_v59 }
0x2cb2   : > { %v11266_v20 = vmul.f32 9.999, %v11265_v22 }
0x2cb4   : > { %12920 = vmatmul.mubr.msk.f32.vlgmr.msra.gmra.mrb[140].mxu0 %vm2216_vm4, %v11266_v20 }
0x2cb5   : > { %12923 = vmatpush3.msra.mxu0 %v15110_v34  ;;  %12924 = vmatprep.mubr.msk.f32.mxu0 %vm2019_vm3, %v11343_v41 }
0x2cb8   : > { %12925 = vmatmul.mubr.msk.f32.vlgmr.msra.gmra.mrb[142].mxu0 %vm2019_vm3, %v11344_v19 }
0x2d87   : > { %v11338_v32 = vpop.f32.mrb[140].mxu0 }
0x2d88   : > { %v11339_v52 = vadd.f32 0.001, %v11338_v32  ;;  %v12921_v38 = vpop.f32.mrb[141].mxu0 }
0x2d8a   : > { %11342 = vst.msk [vmem:[%s906_s23] sm:$0x1] %vm11260_vm11, %v11339_v52 }
0x2d8b   : > { %v12926_v15 = vpop.f32.mrb[142].mxu0 }
0x2d8c   : > { %11434 = vst.msk [vmem:[%s911_s0 + $0x8] sm:$0xff] %vm1032_vm2, %v12926_v15  ;;  %v11424_v35 = vpop.f32.mrb[143].mxu0 }
0x2d8d   : > { %11433 = vst.msk [vmem:[%s911_s0] sm:$0xff] %vm1032_vm2, %v11424_v35 }
0x2d8e PF: > { %s70_s7 = sadd.s32 1, %s13430_s7  }
0x2d8f   : > { %p67_p4 = scmp.ge.s32.totalorder %s70_s7, 4  }
0x2d91   :  { %69 = sbr.rel (!%p67_p4) target bundleno = 43 (0x2b), region = 251 }

</bundles_post_ra>
